<compile_context>
chip_gen: v5e
topology: v5e:2x2
jax: 0.10.0
libtpu: 0.0.40
codegen_flags: <defaults>
</compile_context>

<pallas_src>
import jax
import jax.numpy as jnp
from jax import lax
from jax.experimental import pallas as pl
from jax.experimental.pallas import tpu as pltpu


def _make_basic_block_kernel(H, W, Cin, C, TH, S):
    R = TH + 2  # conv1 rows needed for this strip (1-row halo each side)

    def kernel(x_ref, w1_ref, s1_ref, b1_ref, w2_ref, s2_ref, b2_ref,
               o_ref, xpad_ref, p1_ref, mid_ref, p2_ref):
        # x_ref   : (H, W, Cin)        f32  full image (block constant over strip axis)
        # w1_ref  : (9*Cin, C)         bf16 im2col conv1 weights
        # w2_ref  : (9*C,  C)          bf16 im2col conv2 weights
        # s*/b*   : (1, C)             f32  folded BN scale / bias
        # o_ref   : (TH, W, C)         f32  output strip
        # xpad_ref: (TH+4, W+2, Cin)   bf16 zero-padded input rows   (cast once)
        # p1_ref  : (TH+2, W, 9*Cin)   bf16 im2col operand, conv1
        # mid_ref : (TH+2, W+2, C)     bf16 zero-padded conv1 output (cast once)
        # p2_ref  : (TH,   W, 9*C)     bf16 im2col operand, conv2
        cdt = xpad_ref.dtype
        s = pl.program_id(1)
        row0 = s * TH - 2                    # global input row of xpad row 0

        # ---- fill zero-padded input rows for this strip (bf16, cast once) ----
        xpad_ref[:, 0:1, :] = jnp.zeros((TH + 4, 1, Cin), cdt)
        xpad_ref[:, W + 1:W + 2, :] = jnp.zeros((TH + 4, 1, Cin), cdt)
        zrows = jnp.zeros((2, W, Cin), cdt)

        if S == 1:                            # whole image in one strip (TH == H)
            xpad_ref[0:2, 1:1 + W, :] = zrows
            xpad_ref[2:2 + TH, 1:1 + W, :] = x_ref[...].astype(cdt)
            xpad_ref[TH + 2:TH + 4, 1:1 + W, :] = zrows
        else:
            @pl.when(s == 0)                  # top-of-image strip
            def _():
                xpad_ref[0:2, 1:1 + W, :] = zrows
                xpad_ref[2:TH + 4, 1:1 + W, :] = (
                    x_ref[pl.ds(0, TH + 2), :, :].astype(cdt))

            @pl.when(s == S - 1)              # bottom-of-image strip
            def _():
                xpad_ref[0:TH + 2, 1:1 + W, :] = (
                    x_ref[pl.ds(row0, TH + 2), :, :].astype(cdt))
                xpad_ref[TH + 2:TH + 4, 1:1 + W, :] = zrows

            if S >= 3:                        # interior strips: one straight copy
                @pl.when(jnp.logical_and(s > 0, s < S - 1))
                def _():
                    xpad_ref[:, 1:1 + W, :] = (
                        x_ref[pl.ds(row0, TH + 4), :, :].astype(cdt))

        # ---- conv1: ONE MXU matmul over K = 9*Cin (im2col), f32 accumulate ---
        for dy in range(3):
            for dx in range(3):
                t = dy * 3 + dx
                p1_ref[:, :, t * Cin:(t + 1) * Cin] = (
                    xpad_ref[dy:dy + R, dx:dx + W, :])       # pure bf16 move
        acc1 = lax.dot_general(p1_ref[...], w1_ref[...],
                               (((2,), (0,)), ((), ())),
                               preferred_element_type=jnp.float32)   # (R, W, C)
        out1 = jnp.maximum(acc1 * s1_ref[0] + b1_ref[0], 0.0)        # BN1 + ReLU

        # ---- zero-padded conv1 output (bf16, cast once) -----------------------
        mid_ref[:, 0:1, :] = jnp.zeros((R, 1, C), cdt)
        mid_ref[:, W + 1:W + 2, :] = jnp.zeros((R, 1, C), cdt)
        mid_ref[:, 1:1 + W, :] = out1.astype(cdt)

        @pl.when(s == 0)                      # halo row above the image = padding
        def _():
            mid_ref[0:1, :, :] = jnp.zeros((1, W + 2, C), cdt)

        @pl.when(s == S - 1)                  # halo row below the image = padding
        def _():
            mid_ref[R - 1:R, :, :] = jnp.zeros((1, W + 2, C), cdt)

        # ---- conv2: ONE MXU matmul over K = 9*C -------------------------------
        for dy in range(3):
            for dx in range(3):
                t = dy * 3 + dx
                p2_ref[:, :, t * C:(t + 1) * C] = (
                    mid_ref[dy:dy + TH, dx:dx + W, :])       # pure bf16 move
        acc2 = lax.dot_general(p2_ref[...], w2_ref[...],
                               (((2,), (0,)), ((), ())),
                               preferred_element_type=jnp.float32)   # (TH, W, C)
        out2 = acc2 * s2_ref[0] + b2_ref[0]                          # BN2

        # ---- residual add (f32, from the resident input block) + ReLU --------
        if S == 1:
            ident = x_ref[...]
        else:
            ident = x_ref[pl.ds(pl.multiple_of(s * TH, TH), TH), :, :]
        o_ref[...] = jnp.maximum(out2 + ident, 0.0).astype(o_ref.dtype)

    return kernel


def basic_block_pallas(x_nhwc, w1_oihw, bn1, w2_oihw, bn2, eps=1e-5,
                       strip_rows=None, vmem_budget_bytes=28 * 2 ** 20):
    """x_nhwc: (N, H, W, Cin) f32.  w*_oihw: (Cout, Cin, 3, 3).
    bn* = (gamma, beta, running_mean, running_var), each (Cout,)."""
    N, H, W, Cin = x_nhwc.shape
    C = w1_oihw.shape[0]
    assert Cin == C, "stride=1 / downsample=None requires inplanes == planes"

    def scratch_bytes(th):
        r = th + 2
        return 2 * ((th + 4) * (W + 2) * Cin        # xpad (bf16)
                    + r * W * 9 * Cin               # p1   (bf16)
                    + r * (W + 2) * C               # mid  (bf16)
                    + th * W * 9 * C)               # p2   (bf16)

    def vmem_bytes(th):
        blocks = 2 * H * W * Cin * 4 + 2 * th * W * C * 4   # double-buffered x / out
        weights = 2 * (9 * Cin * C * 2 + 9 * C * C * 2 + 4 * 4 * C)
        return scratch_bytes(th) + blocks + weights

    # Strip height: largest divisor of H (prefer multiples of 8; must be >=2
    # unless it is the whole image) whose VMEM footprint fits the budget.
    if strip_rows is not None:
        TH = max(1, min(strip_rows, H))
        while H % TH:
            TH -= 1
    else:
        cands = sorted((d for d in range(1, H + 1) if H % d == 0),
                       key=lambda d: (0 if (d == H or d % 8 == 0) else 1, -d))
        valid = [d for d in cands if d == H or d >= 2]
        TH = next((d for d in valid if vmem_bytes(d) <= vmem_budget_bytes),
                  valid[-1])
    if H // TH >= 2 and TH < 2:      # degenerate (e.g. prime H): use whole image
        TH = H
    S = H // TH

    def fold_bn(bn):
        gamma, beta, mean, var = bn
        scale = (gamma / jnp.sqrt(var + eps)).astype(jnp.float32)
        bias = (beta - mean * scale).astype(jnp.float32)
        return scale.reshape(1, C), bias.reshape(1, C)

    s1, b1 = fold_bn(bn1)
    s2, b2 = fold_bn(bn2)

    # OIHW (Cout, Cin, 3, 3) -> im2col matrix (9*Cin, Cout), taps (ky,kx)-major.
    def to_im2col(w):
        co, ci = w.shape[0], w.shape[1]
        return jnp.transpose(w, (2, 3, 1, 0)).reshape(9 * ci, co).astype(jnp.bfloat16)

    w1 = to_im2col(w1_oihw)
    w2 = to_im2col(w2_oihw)
    x = x_nhwc.astype(jnp.float32)

    kernel = _make_basic_block_kernel(H, W, Cin, C, TH, S)

    flops = int(2 * N * H * W * C * 9 * (Cin + C))
    bytes_accessed = int(N * H * W * Cin * 4 + N * H * W * C * 4
                         + w1.size * 2 + w2.size * 2 + 4 * C * 4)
    vmem_limit = int(min(128 * 2 ** 20,
                         max(32 * 2 ** 20, 1.5 * vmem_bytes(TH) + (1 << 20))))

    return pl.pallas_call(
        kernel,
        out_shape=jax.ShapeDtypeStruct((N, H, W, C), jnp.float32),
        grid_spec=pltpu.PrefetchScalarGridSpec(
            num_scalar_prefetch=0,
            grid=(N, S),
            in_specs=[
                # Full image per batch element (also supplies the f32 residual);
                # block index is constant over the strip axis -> one DMA / image.
                pl.BlockSpec((None, H, W, Cin), lambda n, s: (n, 0, 0, 0)),
                pl.BlockSpec((9 * Cin, C), lambda n, s: (0, 0)),
                pl.BlockSpec((1, C), lambda n, s: (0, 0)),
                pl.BlockSpec((1, C), lambda n, s: (0, 0)),
                pl.BlockSpec((9 * C, C), lambda n, s: (0, 0)),
                pl.BlockSpec((1, C), lambda n, s: (0, 0)),
                pl.BlockSpec((1, C), lambda n, s: (0, 0)),
            ],
            out_specs=pl.BlockSpec((None, TH, W, C), lambda n, s: (n, s, 0, 0)),
            scratch_shapes=[
                pltpu.VMEM((TH + 4, W + 2, Cin), jnp.bfloat16),   # padded input rows
                pltpu.VMEM((TH + 2, W, 9 * Cin), jnp.bfloat16),   # im2col conv1
                pltpu.VMEM((TH + 2, W + 2, C), jnp.bfloat16),     # padded conv1 out
                pltpu.VMEM((TH, W, 9 * C), jnp.bfloat16),         # im2col conv2
            ],
        ),
        compiler_params=pltpu.CompilerParams(
            # Batch axis parallel; when N >= 2, split batch (not strips) across
            # v7x's two TensorCores so the full-image x block is not duplicated.
            dimension_semantics=("parallel", "arbitrary" if N >= 2 else "parallel"),
            vmem_limit_bytes=vmem_limit),
        cost_estimate=pl.CostEstimate(flops=flops, transcendentals=0,
                                      bytes_accessed=bytes_accessed),
    )(x, w1, s1, b1, w2, s2, b2)


def basic_block_reference(x_nhwc, w1_oihw, bn1, w2_oihw, bn2, eps=1e-5,
                          matmul_dtype=None):
    """Plain-JAX reference (inference-mode BN).  matmul_dtype=bf16 mimics the
    kernel's mixed-precision matmuls (bf16 operands, f32 accumulation)."""
    def conv(x, w):
        if matmul_dtype is not None:
            x = x.astype(matmul_dtype)
            w = w.astype(matmul_dtype)
        return lax.conv_general_dilated(
            x, w, window_strides=(1, 1), padding=((1, 1), (1, 1)),
            dimension_numbers=("NHWC", "OIHW", "NHWC"),
            preferred_element_type=jnp.float32)

    def bn(x, p):
        gamma, beta, mean, var = p
        return (x - mean) / jnp.sqrt(var + eps) * gamma + beta

    out = jax.nn.relu(bn(conv(x_nhwc, w1_oihw), bn1))
    out = bn(conv(out, w2_oihw), bn2)
    return jax.nn.relu(out + x_nhwc)


if __name__ == "__main__":
    key = jax.random.PRNGKey(0)
    N, C, H, W = 2, 8, 16, 16           # inplanes == planes == 8, stride=1

    keys = jax.random.split(key, 12)
    # input in PyTorch NCHW convention, converted to NHWC for the kernel
    x_nchw = jax.random.normal(keys[0], (N, C, H, W), jnp.float32)
    x_nhwc = jnp.transpose(x_nchw, (0, 2, 3, 1))

    w1 = jax.random.normal(keys[1], (C, C, 3, 3), jnp.float32) * 0.1
    w2 = jax.random.normal(keys[2], (C, C, 3, 3), jnp.float32) * 0.1

    bn1 = (jax.random.uniform(keys[3], (C,), minval=0.5, maxval=1.5),
           jax.random.normal(keys[4], (C,)) * 0.1,
           jax.random.normal(keys[5], (C,)) * 0.1,
           jax.random.uniform(keys[6], (C,), minval=0.5, maxval=1.5))
    bn2 = (jax.random.uniform(keys[7], (C,), minval=0.5, maxval=1.5),
           jax.random.normal(keys[8], (C,)) * 0.1,
           jax.random.normal(keys[9], (C,)) * 0.1,
           jax.random.uniform(keys[10], (C,), minval=0.5, maxval=1.5))

    out = basic_block_pallas(x_nhwc, w1, bn1, w2, bn2)
    out = jax.block_until_ready(out)
    assert out.shape == (N, H, W, C)

    # structural check: reference with the same bf16 matmul quantization
    ref_bf16 = basic_block_reference(x_nhwc, w1, bn1, w2, bn2,
                                     matmul_dtype=jnp.bfloat16)
    err_q = jnp.max(jnp.abs(out - ref_bf16))
    assert jnp.allclose(out, ref_bf16, rtol=2e-3, atol=2e-3), \
        f"max abs err vs bf16 reference: {err_q}"

    # semantic sanity check: full-f32 reference within bf16 tolerance
    ref_f32 = basic_block_reference(x_nhwc, w1, bn1, w2, bn2)
    err_f = jnp.max(jnp.abs(out - ref_f32))
    assert jnp.allclose(out, ref_f32, rtol=1e-1, atol=1e-1), \
        f"max abs err vs f32 reference: {err_f}"

    print("KERNEL_OK")
</pallas_src>

<mosaic_0001>
module attributes {stable_mosaic.version = 11 : i64} {
  func.func @kernel(%arg0: i32, %arg1: i32, %arg2: memref<1x16x16x8xf32, #tpu.memory_space<vmem>>, %arg3: memref<72x8xbf16, #tpu.memory_space<vmem>>, %arg4: memref<1x8xf32, #tpu.memory_space<vmem>>, %arg5: memref<1x8xf32, #tpu.memory_space<vmem>>, %arg6: memref<72x8xbf16, #tpu.memory_space<vmem>>, %arg7: memref<1x8xf32, #tpu.memory_space<vmem>>, %arg8: memref<1x8xf32, #tpu.memory_space<vmem>>, %arg9: memref<1x16x16x8xf32, #tpu.memory_space<vmem>>, %arg10: memref<20x18x8xbf16, #tpu.memory_space<vmem>>, %arg11: memref<18x16x72xbf16, #tpu.memory_space<vmem>>, %arg12: memref<18x18x8xbf16, #tpu.memory_space<vmem>>, %arg13: memref<16x16x72xbf16, #tpu.memory_space<vmem>>) attributes {dimension_semantics = [#tpu.dimension_semantics<parallel>, #tpu.dimension_semantics<arbitrary>], iteration_bounds = array<i64: 2, 1>, scalar_prefetch = 0 : i64, scratch_operands = 4 : i64, tpu.core_type = #tpu.core_type<tc>, window_params = [{transform_indices = @transform_0, window_bounds = array<i64: 1, 16, 16, 8>}, {pipeline_mode = #tpu.pipeline_mode<synchronous>, transform_indices = @transform_1, window_bounds = array<i64: 72, 8>}, {pipeline_mode = #tpu.pipeline_mode<synchronous>, transform_indices = @transform_2, window_bounds = array<i64: 1, 8>}, {pipeline_mode = #tpu.pipeline_mode<synchronous>, transform_indices = @transform_3, window_bounds = array<i64: 1, 8>}, {pipeline_mode = #tpu.pipeline_mode<synchronous>, transform_indices = @transform_4, window_bounds = array<i64: 72, 8>}, {pipeline_mode = #tpu.pipeline_mode<synchronous>, transform_indices = @transform_5, window_bounds = array<i64: 1, 8>}, {pipeline_mode = #tpu.pipeline_mode<synchronous>, transform_indices = @transform_6, window_bounds = array<i64: 1, 8>}, {transform_indices = @transform_7, window_bounds = array<i64: 1, 16, 16, 8>}]} {
    %cst = arith.constant 0.000000e+00 : bf16
    %0 = vector.broadcast %cst : bf16 to vector<20x1x8xbf16>
    %c0 = arith.constant 0 : index
    %c0_0 = arith.constant 0 : index
    %c0_1 = arith.constant 0 : index
    %1 = vector.load %arg10[%c0, %c0_0, %c0_1] : memref<20x18x8xbf16, #tpu.memory_space<vmem>>, vector<20x1x8xbf16>
    tpu.vector_store %arg10[%c0, %c0_0, %c0_1], %0 {strides = array<i32>} : memref<20x18x8xbf16, #tpu.memory_space<vmem>>, vector<20x1x8xbf16>,
    %cst_2 = arith.constant 0.000000e+00 : bf16
    %2 = vector.broadcast %cst_2 : bf16 to vector<20x1x8xbf16>
    %c0_3 = arith.constant 0 : index
    %c17 = arith.constant 17 : index
    %c0_4 = arith.constant 0 : index
    %3 = vector.load %arg10[%c0_3, %c17, %c0_4] : memref<20x18x8xbf16, #tpu.memory_space<vmem>>, vector<20x1x8xbf16>
    tpu.vector_store %arg10[%c0_3, %c17, %c0_4], %2 {strides = array<i32>} : memref<20x18x8xbf16, #tpu.memory_space<vmem>>, vector<20x1x8xbf16>,
    %cst_5 = arith.constant 0.000000e+00 : bf16
    %4 = vector.broadcast %cst_5 : bf16 to vector<2x16x8xbf16>
    %c0_6 = arith.constant 0 : index
    %c1 = arith.constant 1 : index
    %c0_7 = arith.constant 0 : index
    %5 = vector.load %arg10[%c0_6, %c1, %c0_7] : memref<20x18x8xbf16, #tpu.memory_space<vmem>>, vector<2x16x8xbf16>
    tpu.vector_store %arg10[%c0_6, %c1, %c0_7], %4 {strides = array<i32>} : memref<20x18x8xbf16, #tpu.memory_space<vmem>>, vector<2x16x8xbf16>,
    %c0_8 = arith.constant 0 : index
    %c0_9 = arith.constant 0 : index
    %c0_10 = arith.constant 0 : index
    %c0_11 = arith.constant 0 : index
    %6 = vector.load %arg2[%c0_8, %c0_9, %c0_10, %c0_11] : memref<1x16x16x8xf32, #tpu.memory_space<vmem>>, vector<1x16x16x8xf32>
    %7 = vector.shape_cast %6 : vector<1x16x16x8xf32> to vector<16x16x8xf32>
    %8 = arith.truncf %7 : vector<16x16x8xf32> to vector<16x16x8xbf16>
    %c2 = arith.constant 2 : index
    %c1_12 = arith.constant 1 : index
    %c0_13 = arith.constant 0 : index
    %9 = vector.load %arg10[%c2, %c1_12, %c0_13] : memref<20x18x8xbf16, #tpu.memory_space<vmem>>, vector<16x16x8xbf16>
    tpu.vector_store %arg10[%c2, %c1_12, %c0_13], %8 {strides = array<i32>} : memref<20x18x8xbf16, #tpu.memory_space<vmem>>, vector<16x16x8xbf16>,
    %c18 = arith.constant 18 : index
    %c1_14 = arith.constant 1 : index
    %c0_15 = arith.constant 0 : index
    %10 = vector.load %arg10[%c18, %c1_14, %c0_15] : memref<20x18x8xbf16, #tpu.memory_space<vmem>>, vector<2x16x8xbf16>
    tpu.vector_store %arg10[%c18, %c1_14, %c0_15], %4 {strides = array<i32>} : memref<20x18x8xbf16, #tpu.memory_space<vmem>>, vector<2x16x8xbf16>,
    %c0_16 = arith.constant 0 : index
    %c0_17 = arith.constant 0 : index
    %c0_18 = arith.constant 0 : index
    %11 = vector.load %arg10[%c0_16, %c0_17, %c0_18] : memref<20x18x8xbf16, #tpu.memory_space<vmem>>, vector<18x16x8xbf16>
    %c0_19 = arith.constant 0 : index
    %c0_20 = arith.constant 0 : index
    %c0_21 = arith.constant 0 : index
    %12 = vector.load %arg11[%c0_19, %c0_20, %c0_21] : memref<18x16x72xbf16, #tpu.memory_space<vmem>>, vector<18x16x8xbf16>
    tpu.vector_store %arg11[%c0_19, %c0_20, %c0_21], %11 {strides = array<i32>} : memref<18x16x72xbf16, #tpu.memory_space<vmem>>, vector<18x16x8xbf16>,
    %c0_22 = arith.constant 0 : index
    %c1_23 = arith.constant 1 : index
    %c0_24 = arith.constant 0 : index
    %13 = vector.load %arg10[%c0_22, %c1_23, %c0_24] : memref<20x18x8xbf16, #tpu.memory_space<vmem>>, vector<18x16x8xbf16>
    %c0_25 = arith.constant 0 : index
    %c0_26 = arith.constant 0 : index
    %c8 = arith.constant 8 : index
    %14 = vector.load %arg11[%c0_25, %c0_26, %c8] : memref<18x16x72xbf16, #tpu.memory_space<vmem>>, vector<18x16x8xbf16>
    tpu.vector_store %arg11[%c0_25, %c0_26, %c8], %13 {strides = array<i32>} : memref<18x16x72xbf16, #tpu.memory_space<vmem>>, vector<18x16x8xbf16>,
    %c0_27 = arith.constant 0 : index
    %c2_28 = arith.constant 2 : index
    %c0_29 = arith.constant 0 : index
    %15 = vector.load %arg10[%c0_27, %c2_28, %c0_29] : memref<20x18x8xbf16, #tpu.memory_space<vmem>>, vector<18x16x8xbf16>
    %c0_30 = arith.constant 0 : index
    %c0_31 = arith.constant 0 : index
    %c16 = arith.constant 16 : index
    %16 = vector.load %arg11[%c0_30, %c0_31, %c16] : memref<18x16x72xbf16, #tpu.memory_space<vmem>>, vector<18x16x8xbf16>
    tpu.vector_store %arg11[%c0_30, %c0_31, %c16], %15 {strides = array<i32>} : memref<18x16x72xbf16, #tpu.memory_space<vmem>>, vector<18x16x8xbf16>,
    %c1_32 = arith.constant 1 : index
    %c0_33 = arith.constant 0 : index
    %c0_34 = arith.constant 0 : index
    %17 = vector.load %arg10[%c1_32, %c0_33, %c0_34] : memref<20x18x8xbf16, #tpu.memory_space<vmem>>, vector<18x16x8xbf16>
    %c0_35 = arith.constant 0 : index
    %c0_36 = arith.constant 0 : index
    %c24 = arith.constant 24 : index
    %18 = vector.load %arg11[%c0_35, %c0_36, %c24] : memref<18x16x72xbf16, #tpu.memory_space<vmem>>, vector<18x16x8xbf16>
    tpu.vector_store %arg11[%c0_35, %c0_36, %c24], %17 {strides = array<i32>} : memref<18x16x72xbf16, #tpu.memory_space<vmem>>, vector<18x16x8xbf16>,
    %c1_37 = arith.constant 1 : index
    %c1_38 = arith.constant 1 : index
    %c0_39 = arith.constant 0 : index
    %19 = vector.load %arg10[%c1_37, %c1_38, %c0_39] : memref<20x18x8xbf16, #tpu.memory_space<vmem>>, vector<18x16x8xbf16>
    %c0_40 = arith.constant 0 : index
    %c0_41 = arith.constant 0 : index
    %c32 = arith.constant 32 : index
    %20 = vector.load %arg11[%c0_40, %c0_41, %c32] : memref<18x16x72xbf16, #tpu.memory_space<vmem>>, vector<18x16x8xbf16>
    tpu.vector_store %arg11[%c0_40, %c0_41, %c32], %19 {strides = array<i32>} : memref<18x16x72xbf16, #tpu.memory_space<vmem>>, vector<18x16x8xbf16>,
    %c1_42 = arith.constant 1 : index
    %c2_43 = arith.constant 2 : index
    %c0_44 = arith.constant 0 : index
    %21 = vector.load %arg10[%c1_42, %c2_43, %c0_44] : memref<20x18x8xbf16, #tpu.memory_space<vmem>>, vector<18x16x8xbf16>
    %c0_45 = arith.constant 0 : index
    %c0_46 = arith.constant 0 : index
    %c40 = arith.constant 40 : index
    %22 = vector.load %arg11[%c0_45, %c0_46, %c40] : memref<18x16x72xbf16, #tpu.memory_space<vmem>>, vector<18x16x8xbf16>
    tpu.vector_store %arg11[%c0_45, %c0_46, %c40], %21 {strides = array<i32>} : memref<18x16x72xbf16, #tpu.memory_space<vmem>>, vector<18x16x8xbf16>,
    %c2_47 = arith.constant 2 : index
    %c0_48 = arith.constant 0 : index
    %c0_49 = arith.constant 0 : index
    %23 = vector.load %arg10[%c2_47, %c0_48, %c0_49] : memref<20x18x8xbf16, #tpu.memory_space<vmem>>, vector<18x16x8xbf16>
    %c0_50 = arith.constant 0 : index
    %c0_51 = arith.constant 0 : index
    %c48 = arith.constant 48 : index
    %24 = vector.load %arg11[%c0_50, %c0_51, %c48] : memref<18x16x72xbf16, #tpu.memory_space<vmem>>, vector<18x16x8xbf16>
    tpu.vector_store %arg11[%c0_50, %c0_51, %c48], %23 {strides = array<i32>} : memref<18x16x72xbf16, #tpu.memory_space<vmem>>, vector<18x16x8xbf16>,
    %c2_52 = arith.constant 2 : index
    %c1_53 = arith.constant 1 : index
    %c0_54 = arith.constant 0 : index
    %25 = vector.load %arg10[%c2_52, %c1_53, %c0_54] : memref<20x18x8xbf16, #tpu.memory_space<vmem>>, vector<18x16x8xbf16>
    %c0_55 = arith.constant 0 : index
    %c0_56 = arith.constant 0 : index
    %c56 = arith.constant 56 : index
    %26 = vector.load %arg11[%c0_55, %c0_56, %c56] : memref<18x16x72xbf16, #tpu.memory_space<vmem>>, vector<18x16x8xbf16>
    tpu.vector_store %arg11[%c0_55, %c0_56, %c56], %25 {strides = array<i32>} : memref<18x16x72xbf16, #tpu.memory_space<vmem>>, vector<18x16x8xbf16>,
    %c2_57 = arith.constant 2 : index
    %c2_58 = arith.constant 2 : index
    %c0_59 = arith.constant 0 : index
    %27 = vector.load %arg10[%c2_57, %c2_58, %c0_59] : memref<20x18x8xbf16, #tpu.memory_space<vmem>>, vector<18x16x8xbf16>
    %c0_60 = arith.constant 0 : index
    %c0_61 = arith.constant 0 : index
    %c64 = arith.constant 64 : index
    %28 = vector.load %arg11[%c0_60, %c0_61, %c64] : memref<18x16x72xbf16, #tpu.memory_space<vmem>>, vector<18x16x8xbf16>
    tpu.vector_store %arg11[%c0_60, %c0_61, %c64], %27 {strides = array<i32>} : memref<18x16x72xbf16, #tpu.memory_space<vmem>>, vector<18x16x8xbf16>,
    %c0_62 = arith.constant 0 : index
    %c0_63 = arith.constant 0 : index
    %c0_64 = arith.constant 0 : index
    %29 = vector.load %arg11[%c0_62, %c0_63, %c0_64] : memref<18x16x72xbf16, #tpu.memory_space<vmem>>, vector<18x16x72xbf16>
    %c0_65 = arith.constant 0 : index
    %c0_66 = arith.constant 0 : index
    %30 = vector.load %arg3[%c0_65, %c0_66] : memref<72x8xbf16, #tpu.memory_space<vmem>>, vector<72x8xbf16>
    %cst_67 = arith.constant dense<0.000000e+00> : vector<18x16x8xf32>
    %31 = tpu.matmul %29, %30, %cst_67 {dimension_numbers = #tpu.dot_dimension_numbers<[2], [0], [0, 1], [1], [0, 0, 0, 1, 1, 1], [], []>} : vector<18x16x72xbf16>, vector<72x8xbf16>, vector<18x16x8xf32> -> vector<18x16x8xf32>
    %c0_68 = arith.constant 0 : index
    %c0_69 = arith.constant 0 : index
    %32 = vector.load %arg4[%c0_68, %c0_69] : memref<1x8xf32, #tpu.memory_space<vmem>>, vector<1x8xf32>
    %33 = vector.shape_cast %32 : vector<1x8xf32> to vector<8xf32>
    %34 = vector.shape_cast %33 : vector<8xf32> to vector<1x1x8xf32>
    %35 = vector.broadcast %34 : vector<1x1x8xf32> to vector<18x16x8xf32>
    %36 = arith.mulf %31, %35 : vector<18x16x8xf32>
    %c0_70 = arith.constant 0 : index
    %c0_71 = arith.constant 0 : index
    %37 = vector.load %arg5[%c0_70, %c0_71] : memref<1x8xf32, #tpu.memory_space<vmem>>, vector<1x8xf32>
    %38 = vector.shape_cast %37 : vector<1x8xf32> to vector<8xf32>
    %39 = vector.shape_cast %38 : vector<8xf32> to vector<1x1x8xf32>
    %40 = vector.broadcast %39 : vector<1x1x8xf32> to vector<18x16x8xf32>
    %41 = arith.addf %36, %40 : vector<18x16x8xf32>
    %cst_72 = arith.constant 0.000000e+00 : f32
    %42 = vector.broadcast %cst_72 : f32 to vector<18x16x8xf32>
    %43 = arith.maximumf %41, %42 : vector<18x16x8xf32>
    %cst_73 = arith.constant 0.000000e+00 : bf16
    %44 = vector.broadcast %cst_73 : bf16 to vector<18x1x8xbf16>
    %c0_74 = arith.constant 0 : index
    %c0_75 = arith.constant 0 : index
    %c0_76 = arith.constant 0 : index
    %45 = vector.load %arg12[%c0_74, %c0_75, %c0_76] : memref<18x18x8xbf16, #tpu.memory_space<vmem>>, vector<18x1x8xbf16>
    tpu.vector_store %arg12[%c0_74, %c0_75, %c0_76], %44 {strides = array<i32>} : memref<18x18x8xbf16, #tpu.memory_space<vmem>>, vector<18x1x8xbf16>,
    %cst_77 = arith.constant 0.000000e+00 : bf16
    %46 = vector.broadcast %cst_77 : bf16 to vector<18x1x8xbf16>
    %c0_78 = arith.constant 0 : index
    %c17_79 = arith.constant 17 : index
    %c0_80 = arith.constant 0 : index
    %47 = vector.load %arg12[%c0_78, %c17_79, %c0_80] : memref<18x18x8xbf16, #tpu.memory_space<vmem>>, vector<18x1x8xbf16>
    tpu.vector_store %arg12[%c0_78, %c17_79, %c0_80], %46 {strides = array<i32>} : memref<18x18x8xbf16, #tpu.memory_space<vmem>>, vector<18x1x8xbf16>,
    %48 = arith.truncf %43 : vector<18x16x8xf32> to vector<18x16x8xbf16>
    %c0_81 = arith.constant 0 : index
    %c1_82 = arith.constant 1 : index
    %c0_83 = arith.constant 0 : index
    %49 = vector.load %arg12[%c0_81, %c1_82, %c0_83] : memref<18x18x8xbf16, #tpu.memory_space<vmem>>, vector<18x16x8xbf16>
    tpu.vector_store %arg12[%c0_81, %c1_82, %c0_83], %48 {strides = array<i32>} : memref<18x18x8xbf16, #tpu.memory_space<vmem>>, vector<18x16x8xbf16>,
    %c0_i32 = arith.constant 0 : i32
    %50 = arith.cmpi eq, %arg1, %c0_i32 : i32
    %51 = arith.extui %50 : i1 to i32
    %c0_i32_84 = arith.constant 0 : i32
    %52 = arith.cmpi ne, %51, %c0_i32_84 : i32
    scf.if %52 {
      %cst_160 = arith.constant 0.000000e+00 : bf16
      %95 = vector.broadcast %cst_160 : bf16 to vector<1x18x8xbf16>
      %c0_161 = arith.constant 0 : index
      %c0_162 = arith.constant 0 : index
      %c0_163 = arith.constant 0 : index
      %96 = vector.load %arg12[%c0_161, %c0_162, %c0_163] : memref<18x18x8xbf16, #tpu.memory_space<vmem>>, vector<1x18x8xbf16>
      tpu.vector_store %arg12[%c0_161, %c0_162, %c0_163], %95 {strides = array<i32>} : memref<18x18x8xbf16, #tpu.memory_space<vmem>>, vector<1x18x8xbf16>,
    } else {
    }
    %c0_i32_85 = arith.constant 0 : i32
    %53 = arith.cmpi eq, %arg1, %c0_i32_85 : i32
    %54 = arith.extui %53 : i1 to i32
    %c0_i32_86 = arith.constant 0 : i32
    %55 = arith.cmpi ne, %54, %c0_i32_86 : i32
    scf.if %55 {
      %cst_160 = arith.constant 0.000000e+00 : bf16
      %95 = vector.broadcast %cst_160 : bf16 to vector<1x18x8xbf16>
      %c17_161 = arith.constant 17 : index
      %c0_162 = arith.constant 0 : index
      %c0_163 = arith.constant 0 : index
      %96 = vector.load %arg12[%c17_161, %c0_162, %c0_163] : memref<18x18x8xbf16, #tpu.memory_space<vmem>>, vector<1x18x8xbf16>
      tpu.vector_store %arg12[%c17_161, %c0_162, %c0_163], %95 {strides = array<i32>} : memref<18x18x8xbf16, #tpu.memory_space<vmem>>, vector<1x18x8xbf16>,
    } else {
    }
    %c0_87 = arith.constant 0 : index
    %c0_88 = arith.constant 0 : index
    %c0_89 = arith.constant 0 : index
    %56 = vector.load %arg12[%c0_87, %c0_88, %c0_89] : memref<18x18x8xbf16, #tpu.memory_space<vmem>>, vector<16x16x8xbf16>
    %c0_90 = arith.constant 0 : index
    %c0_91 = arith.constant 0 : index
    %c0_92 = arith.constant 0 : index
    %57 = vector.load %arg13[%c0_90, %c0_91, %c0_92] : memref<16x16x72xbf16, #tpu.memory_space<vmem>>, vector<16x16x8xbf16>
    tpu.vector_store %arg13[%c0_90, %c0_91, %c0_92], %56 {strides = array<i32>} : memref<16x16x72xbf16, #tpu.memory_space<vmem>>, vector<16x16x8xbf16>,
    %c0_93 = arith.constant 0 : index
    %c1_94 = arith.constant 1 : index
    %c0_95 = arith.constant 0 : index
    %58 = vector.load %arg12[%c0_93, %c1_94, %c0_95] : memref<18x18x8xbf16, #tpu.memory_space<vmem>>, vector<16x16x8xbf16>
    %c0_96 = arith.constant 0 : index
    %c0_97 = arith.constant 0 : index
    %c8_98 = arith.constant 8 : index
    %59 = vector.load %arg13[%c0_96, %c0_97, %c8_98] : memref<16x16x72xbf16, #tpu.memory_space<vmem>>, vector<16x16x8xbf16>
    tpu.vector_store %arg13[%c0_96, %c0_97, %c8_98], %58 {strides = array<i32>} : memref<16x16x72xbf16, #tpu.memory_space<vmem>>, vector<16x16x8xbf16>,
    %c0_99 = arith.constant 0 : index
    %c2_100 = arith.constant 2 : index
    %c0_101 = arith.constant 0 : index
    %60 = vector.load %arg12[%c0_99, %c2_100, %c0_101] : memref<18x18x8xbf16, #tpu.memory_space<vmem>>, vector<16x16x8xbf16>
    %c0_102 = arith.constant 0 : index
    %c0_103 = arith.constant 0 : index
    %c16_104 = arith.constant 16 : index
    %61 = vector.load %arg13[%c0_102, %c0_103, %c16_104] : memref<16x16x72xbf16, #tpu.memory_space<vmem>>, vector<16x16x8xbf16>
    tpu.vector_store %arg13[%c0_102, %c0_103, %c16_104], %60 {strides = array<i32>} : memref<16x16x72xbf16, #tpu.memory_space<vmem>>, vector<16x16x8xbf16>,
    %c1_105 = arith.constant 1 : index
    %c0_106 = arith.constant 0 : index
    %c0_107 = arith.constant 0 : index
    %62 = vector.load %arg12[%c1_105, %c0_106, %c0_107] : memref<18x18x8xbf16, #tpu.memory_space<vmem>>, vector<16x16x8xbf16>
    %c0_108 = arith.constant 0 : index
    %c0_109 = arith.constant 0 : index
    %c24_110 = arith.constant 24 : index
    %63 = vector.load %arg13[%c0_108, %c0_109, %c24_110] : memref<16x16x72xbf16, #tpu.memory_space<vmem>>, vector<16x16x8xbf16>
    tpu.vector_store %arg13[%c0_108, %c0_109, %c24_110], %62 {strides = array<i32>} : memref<16x16x72xbf16, #tpu.memory_space<vmem>>, vector<16x16x8xbf16>,
    %c1_111 = arith.constant 1 : index
    %c1_112 = arith.constant 1 : index
    %c0_113 = arith.constant 0 : index
    %64 = vector.load %arg12[%c1_111, %c1_112, %c0_113] : memref<18x18x8xbf16, #tpu.memory_space<vmem>>, vector<16x16x8xbf16>
    %c0_114 = arith.constant 0 : index
    %c0_115 = arith.constant 0 : index
    %c32_116 = arith.constant 32 : index
    %65 = vector.load %arg13[%c0_114, %c0_115, %c32_116] : memref<16x16x72xbf16, #tpu.memory_space<vmem>>, vector<16x16x8xbf16>
    tpu.vector_store %arg13[%c0_114, %c0_115, %c32_116], %64 {strides = array<i32>} : memref<16x16x72xbf16, #tpu.memory_space<vmem>>, vector<16x16x8xbf16>,
    %c1_117 = arith.constant 1 : index
    %c2_118 = arith.constant 2 : index
    %c0_119 = arith.constant 0 : index
    %66 = vector.load %arg12[%c1_117, %c2_118, %c0_119] : memref<18x18x8xbf16, #tpu.memory_space<vmem>>, vector<16x16x8xbf16>
    %c0_120 = arith.constant 0 : index
    %c0_121 = arith.constant 0 : index
    %c40_122 = arith.constant 40 : index
    %67 = vector.load %arg13[%c0_120, %c0_121, %c40_122] : memref<16x16x72xbf16, #tpu.memory_space<vmem>>, vector<16x16x8xbf16>
    tpu.vector_store %arg13[%c0_120, %c0_121, %c40_122], %66 {strides = array<i32>} : memref<16x16x72xbf16, #tpu.memory_space<vmem>>, vector<16x16x8xbf16>,
    %c2_123 = arith.constant 2 : index
    %c0_124 = arith.constant 0 : index
    %c0_125 = arith.constant 0 : index
    %68 = vector.load %arg12[%c2_123, %c0_124, %c0_125] : memref<18x18x8xbf16, #tpu.memory_space<vmem>>, vector<16x16x8xbf16>
    %c0_126 = arith.constant 0 : index
    %c0_127 = arith.constant 0 : index
    %c48_128 = arith.constant 48 : index
    %69 = vector.load %arg13[%c0_126, %c0_127, %c48_128] : memref<16x16x72xbf16, #tpu.memory_space<vmem>>, vector<16x16x8xbf16>
    tpu.vector_store %arg13[%c0_126, %c0_127, %c48_128], %68 {strides = array<i32>} : memref<16x16x72xbf16, #tpu.memory_space<vmem>>, vector<16x16x8xbf16>,
    %c2_129 = arith.constant 2 : index
    %c1_130 = arith.constant 1 : index
    %c0_131 = arith.constant 0 : index
    %70 = vector.load %arg12[%c2_129, %c1_130, %c0_131] : memref<18x18x8xbf16, #tpu.memory_space<vmem>>, vector<16x16x8xbf16>
    %c0_132 = arith.constant 0 : index
    %c0_133 = arith.constant 0 : index
    %c56_134 = arith.constant 56 : index
    %71 = vector.load %arg13[%c0_132, %c0_133, %c56_134] : memref<16x16x72xbf16, #tpu.memory_space<vmem>>, vector<16x16x8xbf16>
    tpu.vector_store %arg13[%c0_132, %c0_133, %c56_134], %70 {strides = array<i32>} : memref<16x16x72xbf16, #tpu.memory_space<vmem>>, vector<16x16x8xbf16>,
    %c2_135 = arith.constant 2 : index
    %c2_136 = arith.constant 2 : index
    %c0_137 = arith.constant 0 : index
    %72 = vector.load %arg12[%c2_135, %c2_136, %c0_137] : memref<18x18x8xbf16, #tpu.memory_space<vmem>>, vector<16x16x8xbf16>
    %c0_138 = arith.constant 0 : index
    %c0_139 = arith.constant 0 : index
    %c64_140 = arith.constant 64 : index
    %73 = vector.load %arg13[%c0_138, %c0_139, %c64_140] : memref<16x16x72xbf16, #tpu.memory_space<vmem>>, vector<16x16x8xbf16>
    tpu.vector_store %arg13[%c0_138, %c0_139, %c64_140], %72 {strides = array<i32>} : memref<16x16x72xbf16, #tpu.memory_space<vmem>>, vector<16x16x8xbf16>,
    %c0_141 = arith.constant 0 : index
    %c0_142 = arith.constant 0 : index
    %c0_143 = arith.constant 0 : index
    %74 = vector.load %arg13[%c0_141, %c0_142, %c0_143] : memref<16x16x72xbf16, #tpu.memory_space<vmem>>, vector<16x16x72xbf16>
    %c0_144 = arith.constant 0 : index
    %c0_145 = arith.constant 0 : index
    %75 = vector.load %arg6[%c0_144, %c0_145] : memref<72x8xbf16, #tpu.memory_space<vmem>>, vector<72x8xbf16>
    %cst_146 = arith.constant dense<0.000000e+00> : vector<16x16x8xf32>
    %76 = tpu.matmul %74, %75, %cst_146 {dimension_numbers = #tpu.dot_dimension_numbers<[2], [0], [0, 1], [1], [0, 0, 0, 1, 1, 1], [], []>} : vector<16x16x72xbf16>, vector<72x8xbf16>, vector<16x16x8xf32> -> vector<16x16x8xf32>
    %c0_147 = arith.constant 0 : index
    %c0_148 = arith.constant 0 : index
    %77 = vector.load %arg7[%c0_147, %c0_148] : memref<1x8xf32, #tpu.memory_space<vmem>>, vector<1x8xf32>
    %78 = vector.shape_cast %77 : vector<1x8xf32> to vector<8xf32>
    %79 = vector.shape_cast %78 : vector<8xf32> to vector<1x1x8xf32>
    %80 = vector.broadcast %79 : vector<1x1x8xf32> to vector<16x16x8xf32>
    %81 = arith.mulf %76, %80 : vector<16x16x8xf32>
    %c0_149 = arith.constant 0 : index
    %c0_150 = arith.constant 0 : index
    %82 = vector.load %arg8[%c0_149, %c0_150] : memref<1x8xf32, #tpu.memory_space<vmem>>, vector<1x8xf32>
    %83 = vector.shape_cast %82 : vector<1x8xf32> to vector<8xf32>
    %84 = vector.shape_cast %83 : vector<8xf32> to vector<1x1x8xf32>
    %85 = vector.broadcast %84 : vector<1x1x8xf32> to vector<16x16x8xf32>
    %86 = arith.addf %81, %85 : vector<16x16x8xf32>
    %c0_151 = arith.constant 0 : index
    %c0_152 = arith.constant 0 : index
    %c0_153 = arith.constant 0 : index
    %c0_154 = arith.constant 0 : index
    %87 = vector.load %arg2[%c0_151, %c0_152, %c0_153, %c0_154] : memref<1x16x16x8xf32, #tpu.memory_space<vmem>>, vector<1x16x16x8xf32>
    %88 = vector.shape_cast %87 : vector<1x16x16x8xf32> to vector<16x16x8xf32>
    %89 = arith.addf %86, %88 : vector<16x16x8xf32>
    %cst_155 = arith.constant 0.000000e+00 : f32
    %90 = vector.broadcast %cst_155 : f32 to vector<16x16x8xf32>
    %91 = arith.maximumf %89, %90 : vector<16x16x8xf32>
    %c0_156 = arith.constant 0 : index
    %c0_157 = arith.constant 0 : index
    %c0_158 = arith.constant 0 : index
    %c0_159 = arith.constant 0 : index
    %92 = vector.load %arg9[%c0_156, %c0_157, %c0_158, %c0_159] : memref<1x16x16x8xf32, #tpu.memory_space<vmem>>, vector<1x16x16x8xf32>
    %93 = vector.shape_cast %92 : vector<1x16x16x8xf32> to vector<16x16x8xf32>
    %94 = vector.shape_cast %91 : vector<16x16x8xf32> to vector<1x16x16x8xf32>
    tpu.vector_store %arg9[%c0_156, %c0_157, %c0_158, %c0_159], %94 {strides = array<i32>} : memref<1x16x16x8xf32, #tpu.memory_space<vmem>>, vector<1x16x16x8xf32>,
    return
  }
  func.func @transform_0(%arg0: i32, %arg1: i32) -> (i32, i32, i32, i32) {
    %c0_i32 = arith.constant 0 : i32
    %c0_i32_0 = arith.constant 0 : i32
    %c0_i32_1 = arith.constant 0 : i32
    %c0_i32_2 = arith.constant 0 : i32
    return %arg0, %c0_i32, %c0_i32_0, %c0_i32_1 : i32, i32, i32, i32
  }
  func.func @transform_1(%arg0: i32, %arg1: i32) -> (i32, i32) {
    %c0_i32 = arith.constant 0 : i32
    %c0_i32_0 = arith.constant 0 : i32
    %c0_i32_1 = arith.constant 0 : i32
    return %c0_i32, %c0_i32_0 : i32, i32
  }
  func.func @transform_2(%arg0: i32, %arg1: i32) -> (i32, i32) {
    %c0_i32 = arith.constant 0 : i32
    %c0_i32_0 = arith.constant 0 : i32
    %c0_i32_1 = arith.constant 0 : i32
    return %c0_i32, %c0_i32_0 : i32, i32
  }
  func.func @transform_3(%arg0: i32, %arg1: i32) -> (i32, i32) {
    %c0_i32 = arith.constant 0 : i32
    %c0_i32_0 = arith.constant 0 : i32
    %c0_i32_1 = arith.constant 0 : i32
    return %c0_i32, %c0_i32_0 : i32, i32
  }
  func.func @transform_4(%arg0: i32, %arg1: i32) -> (i32, i32) {
    %c0_i32 = arith.constant 0 : i32
    %c0_i32_0 = arith.constant 0 : i32
    %c0_i32_1 = arith.constant 0 : i32
    return %c0_i32, %c0_i32_0 : i32, i32
  }
  func.func @transform_5(%arg0: i32, %arg1: i32) -> (i32, i32) {
    %c0_i32 = arith.constant 0 : i32
    %c0_i32_0 = arith.constant 0 : i32
    %c0_i32_1 = arith.constant 0 : i32
    return %c0_i32, %c0_i32_0 : i32, i32
  }
  func.func @transform_6(%arg0: i32, %arg1: i32) -> (i32, i32) {
    %c0_i32 = arith.constant 0 : i32
    %c0_i32_0 = arith.constant 0 : i32
    %c0_i32_1 = arith.constant 0 : i32
    return %c0_i32, %c0_i32_0 : i32, i32
  }
  func.func @transform_7(%arg0: i32, %arg1: i32) -> (i32, i32, i32, i32) {
    %c0_i32 = arith.constant 0 : i32
    %c0_i32_0 = arith.constant 0 : i32
    %c0_i32_1 = arith.constant 0 : i32
    return %arg0, %arg1, %c0_i32, %c0_i32_0 : i32, i32, i32, i32
  }
}

</mosaic_0001>

<bundles_post_ra>
// kernel: tpu_custom_call.1
= control target key start
LH: loop header
LB: loop body
LE: loop exit
PB: predicated region body
PF: predicated region fallthrough
CT: control target
= control target key end

     0   :  { %s9779_s24 = smov 0   ;;  %s9781_s25 = smov 0   ;;  %s13420_s0 = inlined_call_operand.vmem [shape: f32[2,16,16,8], index: 0, kind: input, shape index: {}]   ;;  %s13421_s1 = inlined_call_operand.vmem [shape: bf16[72,8], index: 1, kind: input, shape index: {}]   ;;  %s13422_s2 = inlined_call_operand.vmem [shape: f32[1,8], index: 2, kind: input, shape index: {}]   ;;  %s13423_s3 = inlined_call_operand.vmem [shape: f32[1,8], index: 3, kind: input, shape index: {}]   ;;  %s13424_s4 = inlined_call_operand.vmem [shape: bf16[72,8], index: 4, kind: input, shape index: {}]   ;;  %s13425_s5 = inlined_call_operand.vmem [shape: f32[1,8], index: 5, kind: input, shape index: {}]   ;;  %s13426_s6 = inlined_call_operand.vmem [shape: f32[1,8], index: 6, kind: input, shape index: {}]   ;;  %s13427_s7 = inlined_call_operand.vmem [shape: f32[2,16,16,8], index: 7, kind: output, shape index: {}]  }
   0x1   :  { %s9783_s26 = smov 0  }
   0x2 LB: > { %s29_s27 = sadd.s32 1, %s9724_s25  ;;  %p9300_p0 = scmp.ge.s32.totalorder %s9728_s26, 1  ;;  %s9728_s26 = sphi %s9783_s26, %s17_s26   ;;  %s9724_s25 = sphi %s9781_s25, %s13475_s25   ;;  %s9720_s24 = sphi %s9779_s24, %s13474_s24  }
   0x3   : > { %p31_p1 = scmp.ge.s32.totalorder %s29_s27, 2  ;;  %p251_p2 = scmp.lt.s32.totalorder %s9728_s26, 3 }
   0x5   : > { %s13477_s27 = smov (%p31_p1, %s29_s27), 0  ;;  %p252_p3 = pnand %p9300_p0, %p251_p2 }
   0x6   : > { %p288_p4 = scmp.lt.s32.totalorder (!%p252_p3), %s9720_s24, 1  ;;  %s9731_s9 = smov (!%p252_p3), 8  }
   0x7   : > { %255 = sbr.rel (%p252_p3) target bundleno = 2063 (0x80f), region = 48  ;;  %s9732_s10 = smov (!%p252_p3), 16  }
   0x8   : > { %s9733_s11 = smov (!%p252_p3), 24   ;;  %s9734_s12 = smov (!%p252_p3), 32  }
   0x9   : > { %s9735_s13 = smov (!%p252_p3), 40   ;;  %s9736_s14 = smov (!%p252_p3), 48  }
   0xa   : > { %s9737_s15 = smov (!%p252_p3), 56   ;;  %s9738_s16 = smov (!%p252_p3), 64  }
   0xc   : > { %vm305_vm0 = vcmask 57344   ;;  %vm306_vm1 = vsmask.f32 256  ;;  %vm368_vm2 = vsmask.f32 7938  ;;  %vm430_vm3 = vcmask 60416  }
   0xd   : > { %vm9801_vm4 = vmand %vm305_vm0, %vm306_vm1  ;;  %v373_v1 = vld [vmem:[#allocation2 + $0x14] sm:$0x1]  ;;  %v9730_v3 = vmov 0   ;;  %v370_v4 = vld [vmem:[#allocation2 + $0x8] sm:$0x1]  ;;  %s13479_s24 = smov (!%p288_p4, %s9720_s24), 1 }
   0xe   : > { %vm9807_vm5 = vmand %vm305_vm0, %vm368_vm2  ;;  %443 = vst.msk [vmem:[#allocation2 + $0x10] sm:$0xf] %vm430_vm3, %v9730_v3  ;;  %v311_v6 = vld [vmem:[#allocation2 + $0xc] sm:$0x1]  ;;  %v308_v8 = vld [vmem:[#allocation2] sm:$0x1] }
   0xf   : > { %v374_v5 = vsel %vm9807_vm5, 0, %v373_v1  ;;  %436 = vst.msk [vmem:[#allocation2 + $0x4] sm:$0xf] %vm430_vm3, %v9730_v3  ;;  %v371_v7 = vsel %vm9807_vm5, 0, %v370_v4  ;;  %v312_v9 = vsel %vm9801_vm4, 0, %v311_v6  ;;  %v309_v11 = vsel %vm9801_vm4, 0, %v308_v8  ;;  %vm9854_vm9 = vmand %vm430_vm3, %vm368_vm2 }
  0x10   : > { %375 = vst [vmem:[#allocation2 + $0x14] sm:$0x1] %v374_v5  ;;  %v379_v10 = vld [vmem:[#allocation2 + $0x2c] sm:$0x1]  ;;  %v317_v13 = vld [vmem:[#allocation2 + $0x24] sm:$0x1] }
  0x11   : > { %950 = vst.msk [vmem:[#allocation2 + $0xdc] sm:$0xf] %vm430_vm3, %v9730_v3  ;;  %v380_v12 = vsel %vm9807_vm5, 0, %v379_v10  ;;  %v323_v14 = vld [vmem:[#allocation2 + $0x3c] sm:$0x1]  ;;  %s9611_s28 = sshll.u32 %s13479_s24, 8 }
  0x12   : > { %957 = vst.msk [vmem:[#allocation2 + $0xe8] sm:$0xf] %vm430_vm3, %v9730_v3  ;;  %vm511_vm6 = vsmask.f32 4368  ;;  %s9839_s8 = scalar_lea.vmem %s13420_s0, %s9611_s28  ;;  %v318_v16 = vsel %vm9801_vm4, 0, %v317_v13  ;;  %v324_v17 = vsel %vm9801_vm4, 0, %v323_v14  ;;  %s13187_s19 = scalar_lea.vmem %s13427_s7, %s9611_s28 }
  0x13   : > { %372 = vst [vmem:[#allocation2 + $0x8] sm:$0x1] %v371_v7  ;;  %vm1087_vm7 = vsmask.f32 3328  ;;  %vm1088_vm8 = vsmask.f32 7440  ;;  %vm9875_vm10 = vmor %vm306_vm1, %vm511_vm6 }
  0x14   : > { %313 = vst [vmem:[#allocation2 + $0xc] sm:$0x1] %v312_v9  ;;  %v449_v24 = vld [vmem:[%s9839_s8 + $0x10] sm:$0xff]  ;;  %v450_v25 = vld [vmem:[%s9839_s8 + $0x18] sm:$0xff]  ;;  %v451_v36 = vld [vmem:[%s9839_s8 + $0x20] sm:$0xff]  ;;  %vm1775_vm12 = vcmask 1042432  }
  0x15   : > { %v1037_v15 = vld [vmem:[#allocation2 + $0x10] sm:$0xf]  ;;  %310 = vst [vmem:[#allocation2] sm:$0x1] %v309_v11  ;;  %v481_v29 = vpack.c.bf16 %v449_v24, %v449_v24  ;;  %v482_v34 = vpack.c.bf16 %v450_v25, %v450_v25  ;;  %v454_v35 = vld [vmem:[%s9839_s8 + $0x38] sm:$0xff]  ;;  %v452_v48 = vld [vmem:[%s9839_s8 + $0x28] sm:$0xff]  ;;  %v9879_v61 = vpack.c.bf16 %v451_v36, %v451_v36 }
  0x16   : > { %v1124_v18 = vshll.u32 %v1037_v15, 16  ;;  %v1128_v19 = vshrl.u32 %v1037_v15, 16  ;;  %v1034_v20 = vld [vmem:[#allocation2 + $0x4] sm:$0xf]  ;;  %381 = vst [vmem:[#allocation2 + $0x2c] sm:$0x1] %v380_v12  ;;  %v486_v52 = vpack.c.bf16 %v454_v35, %v454_v35  ;;  %v9881_v62 = vpack.c.bf16 %v452_v48, %v452_v48  ;;  %vm9894_vm11 = vmor %vm1087_vm7, %vm1088_vm8 }
  0x17   : > { %v444_v21 = vld [vmem:[#allocation2 + $0x14] sm:$0x1]  ;;  %v1100_v22 = vshll.u32 %v1034_v20, 16  ;;  %v1104_v23 = vshrl.u32 %v1034_v20, 16  ;;  %319 = vst [vmem:[#allocation2 + $0x24] sm:$0x1] %v318_v16 }
  0x18   : > { %v445_v26 = vsel %vm9801_vm4, 0, %v444_v21  ;;  %v9849_v27 = vrot.slane %v1124_v18, 5  ;;  %v1130_v28 = vrot.slane %v1128_v19, 4  ;;  %v453_v30 = vld [vmem:[%s9839_s8 + $0x30] sm:$0xff]  ;;  %v531_v39 = vshrl.u32 %v481_v29, 16 }
  0x19   : > { %446 = vst [vmem:[#allocation2 + $0x14] sm:$0x1] %v445_v26  ;;  %v9858_v32 = vrot.slane %v1100_v22, 5  ;;  %v1106_v33 = vrot.slane %v1104_v23, 4  ;;  %v534_v40 = vshll.u32 %v481_v29, 16  ;;  %v485_v41 = vpack.c.bf16 %v453_v30, %v453_v30  ;;  %v456_v23 = vld [vmem:[%s9839_s8 + $0x48] sm:$0xff] }
  0x1a   : > { %v1131_v37 = vor.u32 %v1130_v28, %v9849_v27  ;;  %v437_v38 = vld [vmem:[#allocation2 + $0x8] sm:$0x1]  ;;  %325 = vst [vmem:[#allocation2 + $0x3c] sm:$0x1] %v324_v17  ;;  %v539_v45 = vshrl.u32 %v482_v34, 16  ;;  %v542_v46 = vshll.u32 %v482_v34, 16 }
  0x1b   : > { %v438_v42 = vsel %vm9801_vm4, 0, %v437_v38  ;;  %v1107_v43 = vor.u32 %v1106_v33, %v9858_v32  ;;  %v440_v44 = vld [vmem:[#allocation2 + $0xc] sm:$0xf]  ;;  %v382_v47 = vld [vmem:[#allocation2 + $0x38] sm:$0x1]  ;;  %v533_v55 = vrot.slane %v531_v39, 7 }
  0x1c   : > { %v1132_v49 = vrot.slane %v1131_v37, 4  ;;  %439 = vst [vmem:[#allocation2 + $0x8] sm:$0x1] %v438_v42  ;;  %v441_v50 = vsel %vm9854_vm9, 0, %v440_v44  ;;  %v432_v51 = vld [vmem:[#allocation2] sm:$0xf] }
  0x1d   : > { %v9869_v53 = vrot.slane %v1107_v43, 4  ;;  %442 = vst [vmem:[#allocation2 + $0xc] sm:$0xf] %v441_v50  ;;  %v433_v54 = vsel %vm9854_vm9, 0, %v432_v51  ;;  %v541_v56 = vrot.slane %v539_v45, 7  ;;  %v565_v59 = vshrl.u32 %v485_v41, 16 }
  0x1e   : > { %434 = vst [vmem:[#allocation2] sm:$0xf] %v433_v54  ;;  %v845_v58 = vld [vmem:[#allocation2 + $0x2c] sm:$0x1]  ;;  %v568_v60 = vshll.u32 %v485_v41, 16  ;;  %v537_v63 = vrot.slane %v533_v55, 4  ;;  %v536_v5 = vor.u32 %v534_v40, %v533_v55  ;;  %v9913_v40 = vpack.c.bf16 %v456_v23, %v456_v23 }
  0x1f   : > { %v544_v1 = vor.u32 %v542_v46, %v541_v56  ;;  %v546_v4 = vrot.slane %v541_v56, 4  ;;  %v841_v6 = vld [vmem:[#allocation2 + $0x24] sm:$0xf]  ;;  %v567_v8 = vrot.slane %v565_v59, 7  ;;  %v573_v9 = vshrl.u32 %v486_v52, 16 }
  0x20   : > { %v1038_v7 = vld [vmem:[#allocation2 + $0x14] sm:$0x1]  ;;  %v576_v10 = vshll.u32 %v486_v52, 16  ;;  %v383_v11 = vsel %vm9807_vm5, 0, %v382_v47  ;;  %v842_v15 = vsel %vm9854_vm9, %v536_v5, %v841_v6  ;;  %v455_v17 = vld [vmem:[%s9839_s8 + $0x40] sm:$0xff]  ;;  %v548_v22 = vshrl.u32 %v9879_v61, 16 }
  0x21   : > { %v1134_v12 = vshll.u32 %v1038_v7, 16  ;;  %v545_v13 = vsel %vm9875_vm10, %v537_v63, %v544_v1  ;;  %v846_v14 = vsel %vm9801_vm4, %v546_v4, %v845_v58  ;;  %v855_v16 = vld [vmem:[#allocation2 + $0x3c] sm:$0xf]  ;;  %384 = vst [vmem:[#allocation2 + $0x38] sm:$0x1] %v383_v11  ;;  %v570_v19 = vor.u32 %v568_v60, %v567_v8 }
  0x22   : > { %844 = vst.msk [vmem:[#allocation2 + $0x28] sm:$0xf] %vm430_vm3, %v545_v13  ;;  %v571_v20 = vrot.slane %v567_v8, 4  ;;  %v9899_v21 = vrot.slane %v573_v9, 7  ;;  %v556_v26 = vshrl.u32 %v9881_v62, 16  ;;  %v9904_v28 = vpack.c.bf16 %v455_v17, %v455_v17 }
  0x23   : > { %v1136_v24 = vrot.slane %v1134_v12, 5  ;;  %v1035_v25 = vld [vmem:[#allocation2 + $0x8] sm:$0x1]  ;;  %847 = vst [vmem:[#allocation2 + $0x2c] sm:$0x1] %v846_v14  ;;  %v856_v34 = vsel %vm9854_vm9, %v570_v19, %v855_v16  ;;  %v9909_v35 = vrot.slane %v548_v22, 7 }
  0x24   : > { %v1110_v29 = vshll.u32 %v1035_v25, 16  ;;  %v1036_v30 = vld [vmem:[#allocation2 + $0xc] sm:$0xf]  ;;  %843 = vst [vmem:[#allocation2 + $0x24] sm:$0xf] %v842_v15  ;;  %v578_v33 = vor.u32 %v576_v10, %v9899_v21  ;;  %v559_v54 = vshll.u32 %v9881_v62, 16 }
  0x25   : > { %v1137_v36 = vsel %vm9894_vm11, %v1132_v49, %v1136_v24  ;;  %v1115_v37 = vshrl.u32 %v1036_v30, 16  ;;  %v1118_v38 = vshll.u32 %v1036_v30, 16  ;;  %v1033_v39 = vld [vmem:[#allocation2] sm:$0xf]  ;;  %857 = vst [vmem:[#allocation2 + $0x3c] sm:$0xf] %v856_v34 }
  0x26   : > { %1528 = vrot.lane.b32.xlu1 %v1137_v36, %s9731_s9  ;;  %v1112_v41 = vrot.slane %v1110_v29, 5  ;;  %v1091_v42 = vshrl.u32 %v1033_v39, 16  ;;  %v1094_v43 = vshll.u32 %v1033_v39, 16  ;;  %v579_v44 = vsel %vm9875_vm10, %v571_v20, %v578_v33  ;;  %v388_v45 = vld [vmem:[#allocation2 + $0x50] sm:$0x1] }
  0x27   : > { %v1117_v46 = vrot.slane %v1115_v37, 4  ;;  %v1120_v47 = vrot.slane %v1118_v38, 5  ;;  %858 = vst.msk [vmem:[#allocation2 + $0x40] sm:$0xf] %vm430_vm3, %v579_v44  ;;  %v554_v48 = vrot.slane %v9909_v35, 4  ;;  %v558_v49 = vrot.slane %v556_v26, 7 }
  0x28   : > { %v1113_v50 = vsel %vm9894_vm11, %v9869_v53, %v1112_v41  ;;  %v1093_v51 = vrot.slane %v1091_v42, 4  ;;  %v1096_v52 = vrot.slane %v1094_v43, 5  ;;  %v852_v55 = vld [vmem:[#allocation2 + $0x38] sm:$0x1]  ;;  %v389_v60 = vsel %vm9807_vm5, 0, %v388_v45  ;;  %v447_v41 = vld [vmem:[%s9839_s8] sm:$0xff] }
  0x29   : > { %1524 = vrot.lane.b32.xlu0 %v1113_v50, %s9731_s9  ;;  %v1121_v56 = vor.u32 %v1120_v47, %v1117_v46  ;;  %v1043_v58 = vld [vmem:[#allocation2 + $0x28] sm:$0xf]  ;;  %v563_v59 = vrot.slane %v558_v49, 4  ;;  %v582_v63 = vshrl.u32 %v9904_v28, 16  ;;  %v561_v53 = vor.u32 %v559_v54, %v558_v49  ;;  %390 = vst [vmem:[#allocation2 + $0x50] sm:$0x1] %v389_v60 }
  0x2a   : > { %v1097_v1 = vor.u32 %v1096_v52, %v1093_v51  ;;  %v1044_v4 = vld [vmem:[#allocation2 + $0x2c] sm:$0x1]  ;;  %v1172_v5 = vshll.u32 %v1043_v58, 16  ;;  %v1176_v6 = vshrl.u32 %v1043_v58, 16  ;;  %v326_v29 = vld [vmem:[#allocation2 + $0x48] sm:$0x1] }
  0x2b   : > { %v1122_v7 = vrot.slane %v1121_v56, 4  ;;  %v1182_v8 = vshll.u32 %v1044_v4, 16  ;;  %v1042_v62 = vld [vmem:[#allocation2 + $0x24] sm:$0xf]  ;;  %v853_v9 = vsel %vm9801_vm4, %v563_v59, %v852_v55  ;;  %v9930_v10 = vrot.slane %v582_v63, 7  ;;  %v448_v47 = vld [vmem:[%s9839_s8 + $0x8] sm:$0xff] }
  0x2c   : > { %v1098_v11 = vrot.slane %v1097_v1, 4  ;;  %v9932_v12 = vrot.slane %v1172_v5, 5  ;;  %v1178_v13 = vrot.slane %v1176_v6, 4  ;;  %v1163_v14 = vshrl.u32 %v1042_v62, 16  ;;  %v1048_v15 = vld [vmem:[#allocation2 + $0x3c] sm:$0xf] }
  0x2d   : > { %v1127_v16 = vsel %vm9894_vm11, %v1122_v7, %v9849_v27  ;;  %v1184_v17 = vrot.slane %v1182_v8, 5  ;;  %v1166_v19 = vshll.u32 %v1042_v62, 16  ;;  %v1211_v20 = vshrl.u32 %v1048_v15, 16  ;;  %854 = vst [vmem:[#allocation2 + $0x38] sm:$0x1] %v853_v9  ;;  %v460_v7 = vld [vmem:[%s9839_s8 + $0x68] sm:$0xff] }
  0x2e   : > { %1526 = vrot.lane.b32.xlu1 %v1127_v16, %s9731_s9  ;;  %v1103_v22 = vsel %vm9894_vm11, %v1098_v11, %v9858_v32  ;;  %v1179_v23 = vor.u32 %v1178_v13, %v9932_v12  ;;  %v1165_v24 = vrot.slane %v1163_v14, 4  ;;  %v9942_v25 = vld [vmem:[#allocation2 + $0x40] sm:$0xf]  ;;  %v1214_v26 = vshll.u32 %v1048_v15, 16  ;;  %v314_v36 = vld [vmem:[#allocation2 + $0x18] sm:$0x1] }
  0x2f   : > { %v1168_v30 = vrot.slane %v1166_v19, 5  ;;  %v1213_v27 = vrot.slane %v1211_v20, 4  ;;  %v1220_v33 = vshll.u32 %v9942_v25, 16  ;;  %v1224_v34 = vshrl.u32 %v9942_v25, 16  ;;  %v332_v42 = vld [vmem:[#allocation2 + $0x60] sm:$0x1] }
  0x30   : > { %v1180_v37 = vrot.slane %v1179_v23, 4  ;;  %v1216_v38 = vrot.slane %v1214_v26, 5  ;;  %v562_v32 = vsel %vm9875_vm10, %v554_v48, %v561_v53  ;;  %v588_v39 = vrot.slane %v9930_v10, 4  ;;  %v866_v50 = vld [vmem:[#allocation2 + $0x50] sm:$0x1]  ;;  %v459_v53 = vld [vmem:[%s9839_s8 + $0x60] sm:$0xff] }
  0x31   : > { %1522 = vrot.lane.b32.xlu0 %v1103_v22, %s9731_s9  ;;  %v1169_v43 = vor.u32 %v1168_v30, %v1165_v24  ;;  %v9951_v44 = vrot.slane %v1220_v33, 5  ;;  %851 = vst.msk [vmem:[#allocation2 + $0x34] sm:$0xf] %vm430_vm3, %v562_v32  ;;  %v590_v45 = vshrl.u32 %v9913_v40, 16  ;;  %v593_v46 = vshll.u32 %v9913_v40, 16  ;;  %v457_v13 = vld [vmem:[%s9839_s8 + $0x50] sm:$0xff] }
  0x32   : > { %v1185_v49 = vsel %vm9894_vm11, %v1180_v37, %v1184_v17  ;;  %v1217_v48 = vor.u32 %v1216_v38, %v1213_v27  ;;  %v327_v51 = vsel %vm9801_vm4, 0, %v326_v29  ;;  %v585_v52 = vshll.u32 %v9904_v28, 16  ;;  %v391_v11 = vld [vmem:[#allocation2 + $0x5c] sm:$0x1]  ;;  %v376_v33 = vld [vmem:[#allocation2 + $0x20] sm:$0x1] }
  0x33   : > { %v1170_v54 = vrot.slane %v1169_v43, 4  ;;  %v592_v55 = vrot.slane %v590_v45, 7  ;;  %328 = vst [vmem:[#allocation2 + $0x48] sm:$0x1] %v327_v51  ;;  %v315_v56 = vsel %vm9801_vm4, 0, %v314_v36  ;;  %v479_v40 = vpack.c.bf16 %v447_v41, %v447_v41  ;;  %v458_v30 = vld [vmem:[%s9839_s8 + $0x58] sm:$0xff] }
  0x34   : > { %v1218_v58 = vrot.slane %v1217_v48, 4  ;;  %v1047_v59 = vld [vmem:[#allocation2 + $0x38] sm:$0x1]  ;;  %v587_v60 = vor.u32 %v585_v52, %v9930_v10  ;;  %316 = vst [vmem:[#allocation2 + $0x18] sm:$0x1] %v315_v56  ;;  %v480_v63 = vpack.c.bf16 %v448_v47, %v448_v47  ;;  %v333_v1 = vsel %vm9801_vm4, 0, %v332_v42 }
  0x35   : > { %v1175_v28 = vsel %vm9894_vm11, %v1170_v54, %v9932_v12  ;;  %v1206_v4 = vshll.u32 %v1047_v59, 16  ;;  %v595_v5 = vor.u32 %v593_v46, %v592_v55  ;;  %v597_v6 = vrot.slane %v592_v55, 4  ;;  %334 = vst [vmem:[#allocation2 + $0x60] sm:$0x1] %v333_v1 }
  0x36   : > { %1536 = vrot.lane.b32.xlu1 %v1185_v49, %s9731_s9  ;;  %v1223_v8 = vsel %vm9894_vm11, %v1218_v58, %v9951_v44  ;;  %v514_v62 = vshrl.u32 %v479_v40, 16  ;;  %v517_v9 = vshll.u32 %v479_v40, 16  ;;  %v522_v10 = vshrl.u32 %v480_v63, 16 }
  0x37   : > { %v9977_v14 = vrot.slane %v1206_v4, 5  ;;  %v596_v12 = vsel %vm9875_vm10, %v588_v39, %v595_v5  ;;  %v867_v15 = vsel %vm9801_vm4, %v597_v6, %v866_v50  ;;  %v525_v16 = vshll.u32 %v480_v63, 16  ;;  %v461_v63 = vld [vmem:[%s9839_s8 + $0x70] sm:$0xff] }
  0x38   : > { %v1046_v17 = vld [vmem:[#allocation2 + $0x34] sm:$0xf]  ;;  %865 = vst.msk [vmem:[#allocation2 + $0x4c] sm:$0xf] %vm430_vm3, %v596_v12  ;;  %v516_v19 = vrot.slane %v514_v62, 7  ;;  %v9984_v20 = vrot.slane %v522_v10, 7  ;;  %v491_v22 = vpack.c.bf16 %v459_v53, %v459_v53  ;;  %v492_v23 = vpack.c.bf16 %v460_v7, %v460_v7 }
  0x39   : > { %1534 = vrot.lane.b32.xlu0 %v1175_v28, %s9731_s9  ;;  %v1196_v24 = vshll.u32 %v1046_v17, 16  ;;  %v1200_v26 = vshrl.u32 %v1046_v17, 16  ;;  %868 = vst [vmem:[#allocation2 + $0x50] sm:$0x1] %v867_v15  ;;  %v392_v29 = vsel %vm9807_vm5, 0, %v391_v11  ;;  %v9990_v27 = vpack.c.bf16 %v457_v13, %v457_v13 }
  0x3a   : > { %v862_v36 = vld [vmem:[#allocation2 + $0x48] sm:$0xf]  ;;  %v519_v37 = vor.u32 %v517_v9, %v516_v19  ;;  %v520_v38 = vrot.slane %v516_v19, 4  ;;  %v527_v32 = vor.u32 %v525_v16, %v9984_v20  ;;  %v616_v39 = vshrl.u32 %v491_v22, 16  ;;  %393 = vst [vmem:[#allocation2 + $0x5c] sm:$0x1] %v392_v29 }
  0x3b   : > { %v9993_v41 = vrot.slane %v1196_v24, 5  ;;  %v1202_v42 = vrot.slane %v1200_v26, 4  ;;  %v863_v43 = vsel %vm9854_vm9, %v587_v60, %v862_v36  ;;  %v834_v45 = vld [vmem:[#allocation2 + $0x18] sm:$0xf]  ;;  %v619_v46 = vshll.u32 %v491_v22, 16 }
  0x3c   : > { %864 = vst [vmem:[#allocation2 + $0x48] sm:$0xf] %v863_v43  ;;  %v528_v47 = vsel %vm9875_vm10, %v520_v38, %v527_v32  ;;  %v835_v49 = vsel %vm9854_vm9, %v519_v37, %v834_v45  ;;  %v618_v48 = vrot.slane %v616_v39, 7  ;;  %v624_v50 = vshrl.u32 %v492_v23, 16  ;;  %v876_v54 = vld [vmem:[#allocation2 + $0x60] sm:$0xf] }
  0x3d   : > { %v1203_v51 = vor.u32 %v1202_v42, %v9993_v41  ;;  %836 = vst [vmem:[#allocation2 + $0x18] sm:$0xf] %v835_v49  ;;  %v627_v52 = vshll.u32 %v492_v23, 16  ;;  %v490_v55 = vpack.c.bf16 %v458_v30, %v458_v30  ;;  %v599_v56 = vshrl.u32 %v9990_v27, 16  ;;  %v397_v53 = vld [vmem:[#allocation2 + $0x74] sm:$0x1] }
  0x3e   : > { %1542 = vrot.lane.b32.xlu1 %v1223_v8, %s9731_s9  ;;  %837 = vst.msk [vmem:[#allocation2 + $0x1c] sm:$0xf] %vm430_vm3, %v528_v47  ;;  %v621_v40 = vor.u32 %v619_v46, %v618_v48  ;;  %v622_v58 = vrot.slane %v618_v48, 4  ;;  %v10005_v59 = vrot.slane %v624_v50, 7  ;;  %v377_v60 = vsel %vm9807_vm5, 0, %v376_v33  ;;  %v462_v39 = vld [vmem:[%s9839_s8 + $0x78] sm:$0xff] }
  0x3f   : > { %v1204_v1 = vrot.slane %v1203_v51, 4  ;;  %v1052_v28 = vld [vmem:[#allocation2 + $0x4c] sm:$0xf]  ;;  %v10010_v4 = vrot.slane %v599_v56, 7  ;;  %v607_v5 = vshrl.u32 %v490_v55, 16  ;;  %v610_v6 = vshll.u32 %v490_v55, 16 }
  0x40   : > { %v1053_v7 = vld [vmem:[#allocation2 + $0x50] sm:$0x1]  ;;  %v1244_v62 = vshll.u32 %v1052_v28, 16  ;;  %v1248_v8 = vshrl.u32 %v1052_v28, 16  ;;  %v629_v9 = vor.u32 %v627_v52, %v10005_v59  ;;  %v877_v10 = vsel %vm9854_vm9, %v621_v40, %v876_v54  ;;  %378 = vst [vmem:[#allocation2 + $0x20] sm:$0x1] %v377_v60 }
  0x41   : > { %v1209_v11 = vsel %vm9894_vm11, %v1204_v1, %v9977_v14  ;;  %v1254_v13 = vshll.u32 %v1053_v7, 16  ;;  %878 = vst [vmem:[#allocation2 + $0x60] sm:$0xf] %v877_v10  ;;  %v605_v12 = vrot.slane %v10010_v4, 4  ;;  %v609_v15 = vrot.slane %v607_v5, 7 }
  0x42   : > { %1540 = vrot.lane.b32.xlu0 %v1209_v11, %s9731_s9  ;;  %v1246_v16 = vrot.slane %v1244_v62, 5  ;;  %v1250_v17 = vrot.slane %v1248_v8, 4  ;;  %v630_v19 = vsel %vm9875_vm10, %v622_v58, %v629_v9  ;;  %v873_v22 = vld [vmem:[#allocation2 + $0x5c] sm:$0x1]  ;;  %v529_v23 = vrot.slane %v9984_v20, 4 }
  0x43   : > { %v1256_v24 = vrot.slane %v1254_v13, 5  ;;  %v1051_v26 = vld [vmem:[#allocation2 + $0x48] sm:$0xf]  ;;  %879 = vst.msk [vmem:[#allocation2 + $0x64] sm:$0xf] %vm430_vm3, %v630_v19  ;;  %v612_v14 = vor.u32 %v610_v6, %v609_v15  ;;  %v614_v29 = vrot.slane %v609_v15, 4  ;;  %v10024_v30 = vpack.c.bf16 %v461_v63, %v461_v63 }
  0x44   : > { %v1251_v33 = vor.u32 %v1250_v17, %v1246_v16  ;;  %v1235_v36 = vshrl.u32 %v1051_v26, 16  ;;  %v1238_v37 = vshll.u32 %v1051_v26, 16  ;;  %v1039_v38 = vld [vmem:[#allocation2 + $0x18] sm:$0xf]  ;;  %v398_v32 = vsel %vm9807_vm5, 0, %v397_v53 }
  0x45   : > { %v1040_v42 = vld [vmem:[#allocation2 + $0x1c] sm:$0xf]  ;;  %v1139_v43 = vshrl.u32 %v1039_v38, 16  ;;  %v1142_v45 = vshll.u32 %v1039_v38, 16  ;;  %v613_v20 = vsel %vm9875_vm10, %v605_v12, %v612_v14  ;;  %v874_v46 = vsel %vm9801_vm4, %v614_v29, %v873_v22  ;;  %399 = vst [vmem:[#allocation2 + $0x74] sm:$0x1] %v398_v32 }
  0x46   : > { %v1252_v47 = vrot.slane %v1251_v33, 4  ;;  %v1237_v49 = vrot.slane %v1235_v36, 4  ;;  %v1240_v48 = vrot.slane %v1238_v37, 5  ;;  %v1148_v50 = vshll.u32 %v1040_v42, 16  ;;  %872 = vst.msk [vmem:[#allocation2 + $0x58] sm:$0xf] %vm430_vm3, %v613_v20 }
  0x47   : > { %v1141_v51 = vrot.slane %v1139_v43, 4  ;;  %v1144_v52 = vrot.slane %v1142_v45, 5  ;;  %v1152_v54 = vshrl.u32 %v1040_v42, 16  ;;  %875 = vst [vmem:[#allocation2 + $0x5c] sm:$0x1] %v874_v46  ;;  %v494_v55 = vpack.c.bf16 %v462_v39, %v462_v39 }
  0x48   : > { %v1257_v56 = vsel %vm9894_vm11, %v1252_v47, %v1256_v24  ;;  %v1241_v40 = vor.u32 %v1240_v48, %v1237_v49  ;;  %v1150_v58 = vrot.slane %v1148_v50, 5  ;;  %v1057_v60 = vld [vmem:[#allocation2 + $0x60] sm:$0xf]  ;;  %v633_v1 = vshrl.u32 %v10024_v30, 16  ;;  %v335_v26 = vld [vmem:[#allocation2 + $0x6c] sm:$0x1] }
  0x49   : > { %v838_v63 = vld [vmem:[#allocation2 + $0x20] sm:$0x1]  ;;  %1548 = vrot.lane.b32.xlu1 %v1257_v56, %s9731_s9  ;;  %v1145_v28 = vor.u32 %v1144_v52, %v1141_v51  ;;  %v1154_v5 = vrot.slane %v1152_v54, 4  ;;  %v1283_v6 = vshrl.u32 %v1057_v60, 16  ;;  %v1286_v53 = vshll.u32 %v1057_v60, 16  ;;  %v465_v48 = vld [vmem:[%s9839_s8 + $0x90] sm:$0xff] }
  0x4a   : > { %v1242_v7 = vrot.slane %v1241_v40, 4  ;;  %v10038_v62 = vld [vmem:[#allocation2 + $0x64] sm:$0xf]  ;;  %v839_v8 = vsel %vm9801_vm4, %v529_v23, %v838_v63  ;;  %v635_v9 = vrot.slane %v633_v1, 7  ;;  %v641_v10 = vshrl.u32 %v494_v55, 16  ;;  %v466_v56 = vld [vmem:[%s9839_s8 + $0x98] sm:$0xff] }
  0x4b   : > { %v1146_v11 = vrot.slane %v1145_v28, 4  ;;  %v1285_v13 = vrot.slane %v1283_v6, 4  ;;  %v1288_v12 = vrot.slane %v1286_v53, 5  ;;  %v1292_v15 = vshll.u32 %v10038_v62, 16  ;;  %840 = vst [vmem:[#allocation2 + $0x20] sm:$0x1] %v839_v8 }
  0x4c   : > { %v1247_v17 = vsel %vm9894_vm11, %v1242_v7, %v1246_v16  ;;  %v1296_v19 = vshrl.u32 %v10038_v62, 16  ;;  %v1155_v22 = vor.u32 %v1154_v5, %v1150_v58  ;;  %v639_v24 = vrot.slane %v635_v9, 4  ;;  %v320_v14 = vld [vmem:[#allocation2 + $0x30] sm:$0x1]  ;;  %v887_v38 = vld [vmem:[#allocation2 + $0x74] sm:$0x1] }
  0x4d   : > { %1546 = vrot.lane.b32.xlu0 %v1247_v17, %s9731_s9  ;;  %v1151_v23 = vsel %vm9894_vm11, %v1146_v11, %v1150_v58  ;;  %v1289_v29 = vor.u32 %v1288_v12, %v1285_v13  ;;  %v10049_v33 = vrot.slane %v1292_v15, 5  ;;  %v1055_v36 = vld [vmem:[#allocation2 + $0x58] sm:$0xf]  ;;  %v643_v37 = vrot.slane %v641_v10, 7  ;;  %v341_v45 = vld [vmem:[#allocation2 + $0x84] sm:$0x1] }
  0x4e   : > { %1530 = vrot.lane.b32.xlu2 %v1151_v23, %s9731_s9  ;;  %v1056_v16 = vld [vmem:[#allocation2 + $0x5c] sm:$0x1]  ;;  %v1268_v32 = vshll.u32 %v1055_v36, 16  ;;  %v1272_v39 = vshrl.u32 %v1055_v36, 16  ;;  %v1156_v42 = vrot.slane %v1155_v22, 4  ;;  %v644_v43 = vshll.u32 %v494_v55, 16 }
  0x4f   : > { %v1290_v20 = vrot.slane %v1289_v29, 4  ;;  %v1278_v46 = vshll.u32 %v1056_v16, 16  ;;  %v648_v47 = vrot.slane %v643_v37, 4  ;;  %v336_v49 = vsel %vm9801_vm4, 0, %v335_v26  ;;  %v400_v63 = vld [vmem:[#allocation2 + $0x80] sm:$0x1] }
  0x50   : > { %v10055_v50 = vrot.slane %v1268_v32, 5  ;;  %v1274_v51 = vrot.slane %v1272_v39, 4  ;;  %v646_v52 = vor.u32 %v644_v43, %v643_v37  ;;  %337 = vst [vmem:[#allocation2 + $0x6c] sm:$0x1] %v336_v49  ;;  %v636_v54 = vshll.u32 %v10024_v30, 16  ;;  %v463_v1 = vld [vmem:[%s9839_s8 + $0x80] sm:$0xff] }
  0x51   : > { %v1295_v55 = vsel %vm9894_vm11, %v1290_v20, %v10049_v33  ;;  %v1280_v40 = vrot.slane %v1278_v46, 5  ;;  %v888_v58 = vsel %vm9801_vm4, %v648_v47, %v887_v38  ;;  %v321_v60 = vsel %vm9801_vm4, 0, %v320_v14  ;;  %v464_v13 = vld [vmem:[%s9839_s8 + $0x88] sm:$0xff] }
  0x52   : > { %1554 = vrot.lane.b32.xlu1 %v1295_v55, %s9731_s9  ;;  %v1275_v28 = vor.u32 %v1274_v51, %v10055_v50  ;;  %v1041_v30 = vld [vmem:[#allocation2 + $0x20] sm:$0x1]  ;;  %v647_v5 = vsel %vm9875_vm10, %v639_v24, %v646_v52  ;;  %889 = vst [vmem:[#allocation2 + $0x74] sm:$0x1] %v888_v58  ;;  %v638_v6 = vor.u32 %v636_v54, %v635_v9  ;;  %v551_v53 = vshll.u32 %v9879_v61, 16 }
  0x53   : > { %v1158_v7 = vshll.u32 %v1041_v30, 16  ;;  %886 = vst.msk [vmem:[#allocation2 + $0x70] sm:$0xf] %vm430_vm3, %v647_v5  ;;  %v342_v8 = vsel %vm9801_vm4, 0, %v341_v45  ;;  %v497_v10 = vpack.c.bf16 %v465_v48, %v465_v48  ;;  %v498_v11 = vpack.c.bf16 %v466_v56, %v466_v56  ;;  %v385_v9 = vld [vmem:[#allocation2 + $0x44] sm:$0x1] }
  0x54   : > { %v1276_v12 = vrot.slane %v1275_v28, 4  ;;  %322 = vst [vmem:[#allocation2 + $0x30] sm:$0x1] %v321_v60  ;;  %v553_v15 = vor.u32 %v551_v53, %v9909_v35  ;;  %v401_v17 = vsel %vm9807_vm5, 0, %v400_v63  ;;  %v10079_v22 = vpack.c.bf16 %v463_v1, %v463_v1  ;;  %v10084_v35 = vld [vmem:[#allocation2 + $0x98] sm:$0x1] }
  0x55   : > { %v1160_v61 = vrot.slane %v1158_v7, 5  ;;  %343 = vst [vmem:[#allocation2 + $0x84] sm:$0x1] %v342_v8  ;;  %v667_v24 = vshrl.u32 %v497_v10, 16  ;;  %v670_v26 = vshll.u32 %v497_v10, 16  ;;  %v675_v14 = vshrl.u32 %v498_v11, 16 }
  0x56   : > { %v1281_v23 = vsel %vm9894_vm11, %v1276_v12, %v1280_v40  ;;  %v678_v29 = vshll.u32 %v498_v11, 16  ;;  %402 = vst [vmem:[#allocation2 + $0x80] sm:$0x1] %v401_v17  ;;  %v496_v36 = vpack.c.bf16 %v464_v13, %v464_v13  ;;  %v650_v37 = vshrl.u32 %v10079_v22, 16  ;;  %v467_v54 = vld [vmem:[%s9839_s8 + $0xa0] sm:$0xff]  ;;  %v468_v56 = vld [vmem:[%s9839_s8 + $0xa8] sm:$0xff] }
  0x57   : > { %1552 = vrot.lane.b32.xlu0 %v1281_v23, %s9731_s9  ;;  %v1161_v38 = vsel %vm9894_vm11, %v1156_v42, %v1160_v61  ;;  %v883_v16 = vld [vmem:[#allocation2 + $0x6c] sm:$0xf]  ;;  %v669_v32 = vrot.slane %v667_v24, 7  ;;  %v10089_v39 = vrot.slane %v675_v14, 7  ;;  %v386_v43 = vsel %vm9807_vm5, 0, %v385_v9  ;;  %v471_v53 = vld [vmem:[%s9839_s8 + $0xc0] sm:$0xff] }
  0x58   : > { %1532 = vrot.lane.b32.xlu2 %v1161_v38, %s9731_s9  ;;  %v884_v45 = vsel %vm9854_vm9, %v638_v6, %v883_v16  ;;  %v10096_v20 = vrot.slane %v650_v37, 7  ;;  %v658_v46 = vshrl.u32 %v496_v36, 16  ;;  %v661_v47 = vshll.u32 %v496_v36, 16  ;;  %387 = vst [vmem:[#allocation2 + $0x44] sm:$0x1] %v386_v43  ;;  %v472_v23 = vld [vmem:[%s9839_s8 + $0xc8] sm:$0xff] }
  0x59   : > { %v1062_v42 = vld [vmem:[#allocation2 + $0x74] sm:$0x1]  ;;  %885 = vst [vmem:[#allocation2 + $0x6c] sm:$0xf] %v884_v45  ;;  %v672_v49 = vor.u32 %v670_v26, %v669_v32  ;;  %v673_v48 = vrot.slane %v669_v32, 4  ;;  %v680_v51 = vor.u32 %v678_v29, %v10089_v39  ;;  %v580_v52 = vrot.slane %v9899_v21, 4 }
  0x5a   : > { %v1061_v55 = vld [vmem:[#allocation2 + $0x70] sm:$0xf]  ;;  %v1326_v40 = vshll.u32 %v1062_v42, 16  ;;  %v656_v58 = vrot.slane %v10096_v20, 4  ;;  %v660_v60 = vrot.slane %v658_v46, 7  ;;  %v1226_v63 = vrot.slane %v1224_v34, 4 }
  0x5b   : > { %v344_v1 = vld [vmem:[#allocation2 + $0x90] sm:$0x1]  ;;  %v1316_v28 = vshll.u32 %v1061_v55, 16  ;;  %v1320_v30 = vshrl.u32 %v1061_v55, 16  ;;  %v681_v6 = vsel %vm9875_vm10, %v673_v48, %v680_v51  ;;  %v407_v21 = vsel %vm9807_vm5, 0, %v10084_v35 }
  0x5c   : > { %v848_v5 = vld [vmem:[#allocation2 + $0x30] sm:$0xf]  ;;  %v1328_v7 = vrot.slane %v1326_v40, 5  ;;  %v897_v10 = vld [vmem:[#allocation2 + $0x84] sm:$0xf]  ;;  %v663_v25 = vor.u32 %v661_v47, %v660_v60  ;;  %v665_v34 = vrot.slane %v660_v60, 4  ;;  %v1227_v9 = vor.u32 %v1226_v63, %v9951_v44 }
  0x5d   : > { %v849_v8 = vsel %vm9854_vm9, %v553_v15, %v848_v5  ;;  %900 = vst.msk [vmem:[#allocation2 + $0x88] sm:$0xf] %vm430_vm3, %v681_v6  ;;  %v10114_v11 = vrot.slane %v1316_v28, 5  ;;  %v1322_v13 = vrot.slane %v1320_v30, 4  ;;  %v898_v12 = vsel %vm9854_vm9, %v672_v49, %v897_v10  ;;  %v894_v17 = vld [vmem:[#allocation2 + $0x80] sm:$0x1] }
  0x5e   : > { %850 = vst [vmem:[#allocation2 + $0x30] sm:$0xf] %v849_v8  ;;  %v664_v15 = vsel %vm9875_vm10, %v656_v58, %v663_v25  ;;  %v895_v61 = vsel %vm9801_vm4, %v665_v34, %v894_v17  ;;  %v10123_v24 = vpack.c.bf16 %v467_v54, %v467_v54  ;;  %v500_v26 = vpack.c.bf16 %v468_v56, %v468_v56  ;;  %v10125_v14 = vld [vmem:[#allocation2 + $0x54] sm:$0x1] }
  0x5f   : > { %899 = vst [vmem:[#allocation2 + $0x84] sm:$0xf] %v898_v12  ;;  %v1323_v29 = vor.u32 %v1322_v13, %v10114_v11  ;;  %v859_v36 = vld [vmem:[#allocation2 + $0x44] sm:$0x1]  ;;  %v10130_v37 = vrot.slane %v1227_v9, 4  ;;  %v345_v44 = vsel %vm9801_vm4, 0, %v344_v1  ;;  %v10138_v45 = vpack.c.bf16 %v471_v53, %v471_v53 }
  0x60   : > { %893 = vst.msk [vmem:[#allocation2 + $0x7c] sm:$0xf] %vm430_vm3, %v664_v15  ;;  %v469_v35 = vld [vmem:[%s9839_s8 + $0xb0] sm:$0xff]  ;;  %v1060_v38 = vld [vmem:[#allocation2 + $0x6c] sm:$0xf]  ;;  %v860_v16 = vsel %vm9801_vm4, %v580_v52, %v859_v36  ;;  %v684_v32 = vshrl.u32 %v10123_v24, 16  ;;  %v10148_v60 = vpack.c.bf16 %v472_v23, %v472_v23 }
  0x61   : > { %896 = vst [vmem:[#allocation2 + $0x80] sm:$0x1] %v895_v61  ;;  %v692_v43 = vshrl.u32 %v500_v26, 16  ;;  %v1324_v46 = vrot.slane %v1323_v29, 4  ;;  %v1307_v47 = vshrl.u32 %v1060_v38, 16  ;;  %v1310_v42 = vshll.u32 %v1060_v38, 16 }
  0x62   : > { %861 = vst [vmem:[#allocation2 + $0x44] sm:$0x1] %v860_v16  ;;  %v695_v49 = vshll.u32 %v500_v26, 16  ;;  %v686_v48 = vrot.slane %v684_v32, 7  ;;  %v687_v54 = vshll.u32 %v10123_v24, 16  ;;  %v330_v56 = vsel %vm9801_vm4, 0, %v10125_v14 }
  0x63   : > { %408 = vst [vmem:[#allocation2 + $0x98] sm:$0x1] %v407_v21  ;;  %v694_v51 = vrot.slane %v692_v43, 7  ;;  %v1329_v52 = vsel %vm9894_vm11, %v1324_v46, %v1328_v7  ;;  %v1309_v55 = vrot.slane %v1307_v47, 4  ;;  %v1312_v40 = vrot.slane %v1310_v42, 5 }
  0x64   : > { %v10146_v58 = vld [vmem:[#allocation2 + $0x88] sm:$0xf]  ;;  %346 = vst [vmem:[#allocation2 + $0x90] sm:$0x1] %v345_v44  ;;  %1560 = vrot.lane.b32.xlu1 %v1329_v52, %s9731_s9  ;;  %v690_v28 = vrot.slane %v686_v48, 4  ;;  %v10152_v5 = vpack.c.bf16 %v469_v35, %v469_v35  ;;  %vm1776_vm13 = vcmask 1046532  }
  0x65   : > { %v1045_v63 = vld [vmem:[#allocation2 + $0x30] sm:$0xf]  ;;  %v1364_v1 = vshll.u32 %v10146_v58, 16  ;;  %v697_v30 = vor.u32 %v695_v49, %v694_v51  ;;  %v1313_v6 = vor.u32 %v1312_v40, %v1309_v55  ;;  %v699_v8 = vrot.slane %v694_v51, 4  ;;  %v350_v26 = vld [vmem:[#allocation2 + $0xa8] sm:$0x1]  ;;  %vm10365_vm15 = vmor %vm1775_vm12, %vm1776_vm13 }
  0x66   : > { %v1187_v21 = vshrl.u32 %v1045_v63, 16  ;;  %v1190_v53 = vshll.u32 %v1045_v63, 16  ;;  %v1066_v7 = vld [vmem:[#allocation2 + $0x84] sm:$0xf]  ;;  %331 = vst [vmem:[#allocation2 + $0x54] sm:$0x1] %v330_v56  ;;  %v689_v55 = vor.u32 %v687_v54, %v686_v48 }
  0x67   : > { %v1355_v10 = vshrl.u32 %v1066_v7, 16  ;;  %v1358_v25 = vshll.u32 %v1066_v7, 16  ;;  %v10154_v34 = vrot.slane %v1364_v1, 5  ;;  %v1064_v13 = vld [vmem:[#allocation2 + $0x7c] sm:$0xf]  ;;  %v698_v12 = vsel %vm9875_vm10, %v690_v28, %v697_v30 }
  0x68   : > { %v1314_v17 = vrot.slane %v1313_v6, 4  ;;  %v1189_v9 = vrot.slane %v1187_v21, 4  ;;  %v1192_v15 = vrot.slane %v1190_v53, 5  ;;  %v1065_v61 = vld [vmem:[#allocation2 + $0x80] sm:$0x1]  ;;  %v1340_v24 = vshll.u32 %v1064_v13, 16 }
  0x69   : > { %v1357_v14 = vrot.slane %v1355_v10, 4  ;;  %v1360_v23 = vrot.slane %v1358_v25, 5  ;;  %v1344_v29 = vshrl.u32 %v1064_v13, 16  ;;  %v1350_v36 = vshll.u32 %v1065_v61, 16  ;;  %v1050_v44 = vld [vmem:[#allocation2 + $0x44] sm:$0x1] }
  0x6a   : > { %v1319_v35 = vsel %vm9894_vm11, %v1314_v17, %v10114_v11  ;;  %v1193_v38 = vor.u32 %v1192_v15, %v1189_v9  ;;  %v10161_v16 = vrot.slane %v1340_v24, 5  ;;  %v1230_v32 = vshll.u32 %v1050_v44, 16  ;;  %907 = vst.msk [vmem:[#allocation2 + $0x94] sm:$0xf] %vm430_vm3, %v698_v12  ;;  %v908_v43 = vld [vmem:[#allocation2 + $0x98] sm:$0x1] }
  0x6b   : > { %1558 = vrot.lane.b32.xlu0 %v1319_v35, %s9731_s9  ;;  %v1361_v46 = vor.u32 %v1360_v23, %v1357_v14  ;;  %v1346_v47 = vrot.slane %v1344_v29, 4  ;;  %v1352_v42 = vrot.slane %v1350_v36, 5  ;;  %v909_v49 = vsel %vm9801_vm4, %v699_v8, %v908_v43  ;;  %v904_v51 = vld [vmem:[#allocation2 + $0x90] sm:$0xf]  ;;  %v409_v6 = vld [vmem:[#allocation2 + $0xa4] sm:$0x1] }
  0x6c   : > { %v1194_v52 = vrot.slane %v1193_v38, 4  ;;  %v10167_v11 = vrot.slane %v1230_v32, 5  ;;  %910 = vst [vmem:[#allocation2 + $0x98] sm:$0x1] %v909_v49  ;;  %v602_v40 = vshll.u32 %v9990_v27, 16  ;;  %v351_v28 = vsel %vm9801_vm4, 0, %v350_v26 }
  0x6d   : > { %v1362_v63 = vrot.slane %v1361_v46, 4  ;;  %v1347_v1 = vor.u32 %v1346_v47, %v10161_v16  ;;  %v718_v30 = vshrl.u32 %v10138_v45, 16  ;;  %v470_v21 = vld [vmem:[%s9839_s8 + $0xb8] sm:$0xff]  ;;  %v905_v27 = vsel %vm9854_vm9, %v689_v55, %v904_v51  ;;  %352 = vst [vmem:[#allocation2 + $0xa8] sm:$0x1] %v351_v28  ;;  %v473_v12 = vld [vmem:[%s9839_s8 + $0xd0] sm:$0xff] }
  0x6e   : > { %v1199_v56 = vsel %vm9894_vm11, %v1194_v52, %v9993_v41  ;;  %v1233_v48 = vsel %vm9894_vm11, %v10130_v37, %v10167_v11  ;;  %v604_v54 = vor.u32 %v602_v40, %v10010_v4  ;;  %v394_v53 = vld [vmem:[#allocation2 + $0x68] sm:$0x1]  ;;  %906 = vst [vmem:[#allocation2 + $0x90] sm:$0xf] %v905_v27  ;;  %v721_v37 = vshll.u32 %v10138_v45, 16  ;;  %v474_v17 = vld [vmem:[%s9839_s8 + $0xd8] sm:$0xff] }
  0x6f   : > { %1538 = vrot.lane.b32.xlu2 %v1199_v56, %s9731_s9  ;;  %v1367_v41 = vsel %vm9894_vm11, %v1362_v63, %v10154_v34  ;;  %v1348_v7 = vrot.slane %v1347_v1, 4  ;;  %v720_v8 = vrot.slane %v718_v30, 7  ;;  %v726_v10 = vshrl.u32 %v10148_v60, 16  ;;  %v869_v23 = vld [vmem:[#allocation2 + $0x54] sm:$0xf] }
  0x70   : > { %1566 = vrot.lane.b32.xlu1 %v1367_v41, %s9731_s9  ;;  %v729_v25 = vshll.u32 %v10148_v60, 16  ;;  %v410_v4 = vsel %vm9807_vm5, 0, %v409_v6  ;;  %v502_v13 = vpack.c.bf16 %v470_v21, %v470_v21  ;;  %v701_v45 = vshrl.u32 %v10152_v5, 16  ;;  %v415_v6 = vld [vmem:[#allocation2 + $0xbc] sm:$0x1] }
  0x71   : > { %v1353_v9 = vsel %vm9894_vm11, %v1348_v7, %v1352_v42  ;;  %v1070_v15 = vld [vmem:[#allocation2 + $0x94] sm:$0xf]  ;;  %v723_v61 = vor.u32 %v721_v37, %v720_v8  ;;  %v724_v24 = vrot.slane %v720_v8, 4  ;;  %411 = vst [vmem:[#allocation2 + $0xa4] sm:$0x1] %v410_v4  ;;  %v10200_v29 = vrot.slane %v726_v10, 7 }
  0x72   : > { %v1388_v26 = vshll.u32 %v1070_v15, 16  ;;  %v1392_v14 = vshrl.u32 %v1070_v15, 16  ;;  %v709_v60 = vshrl.u32 %v502_v13, 16  ;;  %v870_v44 = vsel %vm9854_vm9, %v604_v54, %v869_v23 }
  0x73   : > { %1564 = vrot.lane.b32.xlu0 %v1353_v9, %s9731_s9  ;;  %v1071_v36 = vld [vmem:[#allocation2 + $0x98] sm:$0x1]  ;;  %v10205_v35 = vrot.slane %v701_v45, 7  ;;  %v712_v38 = vshll.u32 %v502_v13, 16  ;;  %v395_v32 = vsel %vm9807_vm5, 0, %v394_v53  ;;  %v731_v42 = vor.u32 %v729_v25, %v10200_v29 }
  0x74   : > { %v1390_v43 = vrot.slane %v1388_v26, 5  ;;  %v1394_v46 = vrot.slane %v1392_v14, 4  ;;  %v1398_v47 = vshll.u32 %v1071_v36, 16  ;;  %871 = vst [vmem:[#allocation2 + $0x54] sm:$0xf] %v870_v44  ;;  %v711_v52 = vrot.slane %v709_v60, 7 }
  0x75   : > { %v918_v49 = vld [vmem:[#allocation2 + $0xa8] sm:$0xf]  ;;  %v707_v51 = vrot.slane %v10205_v35, 4  ;;  %396 = vst [vmem:[#allocation2 + $0x68] sm:$0x1] %v395_v32  ;;  %v10211_v11 = vpack.c.bf16 %v473_v12, %v473_v12  ;;  %v506_v55 = vpack.c.bf16 %v474_v17, %v474_v17  ;;  %v732_v28 = vsel %vm9875_vm10, %v724_v24, %v731_v42  ;;  %v477_v12 = vld [vmem:[%s9839_s8 + $0xf0] sm:$0xff] }
  0x76   : > { %v1395_v40 = vor.u32 %v1394_v46, %v1390_v43  ;;  %v1400_v63 = vrot.slane %v1398_v47, 5  ;;  %v1069_v1 = vld [vmem:[#allocation2 + $0x90] sm:$0xf]  ;;  %v919_v30 = vsel %vm9854_vm9, %v723_v61, %v918_v49  ;;  %v714_v27 = vor.u32 %v712_v38, %v711_v52  ;;  %921 = vst.msk [vmem:[#allocation2 + $0xac] sm:$0xf] %vm430_vm3, %v732_v28 }
  0x77   : > { %1544 = vrot.lane.b32.xlu2 %v1233_v48, %s9731_s9  ;;  %v1379_v21 = vshrl.u32 %v1069_v1, 16  ;;  %v1382_v56 = vshll.u32 %v1069_v1, 16  ;;  %920 = vst [vmem:[#allocation2 + $0xa8] sm:$0xf] %v919_v30  ;;  %v716_v54 = vrot.slane %v711_v52, 4  ;;  %v631_v7 = vrot.slane %v10005_v59, 4 }
  0x78   : > { %v1396_v53 = vrot.slane %v1395_v40, 4  ;;  %v915_v41 = vld [vmem:[#allocation2 + $0xa4] sm:$0x1]  ;;  %v715_v10 = vsel %vm9875_vm10, %v707_v51, %v714_v27  ;;  %v1298_v4 = vrot.slane %v1296_v19, 4  ;;  %v416_v13 = vsel %vm9807_vm5, 0, %v415_v6 }
  0x79   : > { %v1381_v8 = vrot.slane %v1379_v21, 4  ;;  %v1384_v37 = vrot.slane %v1382_v56, 5  ;;  %v916_v48 = vsel %vm9801_vm4, %v716_v54, %v915_v41  ;;  %914 = vst.msk [vmem:[#allocation2 + $0xa0] sm:$0xf] %vm430_vm3, %v715_v10  ;;  %v735_v59 = vshrl.u32 %v10211_v11, 16  ;;  %v478_v56 = vld [vmem:[%s9839_s8 + $0xf8] sm:$0xff] }
  0x7a   : > { %v1401_v25 = vsel %vm9894_vm11, %v1396_v53, %v1400_v63  ;;  %917 = vst [vmem:[#allocation2 + $0xa4] sm:$0x1] %v916_v48  ;;  %v743_v15 = vshrl.u32 %v506_v55, 16  ;;  %v746_v61 = vshll.u32 %v506_v55, 16  ;;  %v1299_v14 = vor.u32 %v1298_v4, %v10049_v33  ;;  %v353_v42 = vld [vmem:[#allocation2 + $0xb4] sm:$0x1] }
  0x7b   : > { %1572 = vrot.lane.b32.xlu1 %v1401_v25, %s9731_s9  ;;  %v1385_v17 = vor.u32 %v1384_v37, %v1381_v8  ;;  %v1054_v9 = vld [vmem:[#allocation2 + $0x54] sm:$0xf]  ;;  %417 = vst [vmem:[#allocation2 + $0xbc] sm:$0x1] %v416_v13  ;;  %v10237_v23 = vrot.slane %v735_v59, 7  ;;  %v10243_v49 = vpack.c.bf16 %v477_v12, %v477_v12  ;;  %v475_v63 = vld [vmem:[%s9839_s8 + $0xe0] sm:$0xff] }
  0x7c   : > { %v1259_v24 = vshrl.u32 %v1054_v9, 16  ;;  %v1262_v45 = vshll.u32 %v1054_v9, 16  ;;  %v880_v26 = vld [vmem:[#allocation2 + $0x68] sm:$0x1]  ;;  %v745_v60 = vrot.slane %v743_v15, 7  ;;  %v10247_v55 = vrot.slane %v1299_v14, 4 }
  0x7d   : > { %v1386_v62 = vrot.slane %v1385_v17, 4  ;;  %v881_v19 = vsel %vm9801_vm4, %v631_v7, %v880_v26  ;;  %v10241_v46 = vld [vmem:[#allocation2 + $0xac] sm:$0xf]  ;;  %v741_v40 = vrot.slane %v10237_v23, 4  ;;  %v338_v21 = vld [vmem:[#allocation2 + $0x78] sm:$0x1]  ;;  %v10268_v14 = vpack.c.bf16 %v475_v63, %v475_v63 }
  0x7e   : > { %v1261_v36 = vrot.slane %v1259_v24, 4  ;;  %v1264_v44 = vrot.slane %v1262_v45, 5  ;;  %v1075_v38 = vld [vmem:[#allocation2 + $0xa8] sm:$0xf]  ;;  %882 = vst [vmem:[#allocation2 + $0x68] sm:$0x1] %v881_v19  ;;  %v748_v30 = vor.u32 %v746_v61, %v745_v60  ;;  %v510_v45 = vpack.c.bf16 %v478_v56, %v478_v56 }
  0x7f   : > { %v1391_v32 = vsel %vm9894_vm11, %v1386_v62, %v1390_v43  ;;  %v1427_v47 = vshrl.u32 %v1075_v38, 16  ;;  %v1430_v33 = vshll.u32 %v1075_v38, 16  ;;  %v1436_v52 = vshll.u32 %v10241_v46, 16  ;;  %v359_v8 = vld [vmem:[#allocation2 + $0xcc] sm:$0x1] }
  0x80   : > { %1570 = vrot.lane.b32.xlu0 %v1391_v32, %s9731_s9  ;;  %v1265_v51 = vor.u32 %v1264_v44, %v1261_v36  ;;  %v1073_v28 = vld [vmem:[#allocation2 + $0xa0] sm:$0xf]  ;;  %v750_v6 = vrot.slane %v745_v60, 4  ;;  %v749_v48 = vsel %vm9875_vm10, %v741_v40, %v748_v30  ;;  %v354_v4 = vsel %vm9801_vm4, 0, %v353_v42  ;;  %v476_v13 = vld [vmem:[%s9839_s8 + $0xe8] sm:$0xff] }
  0x81   : > { %v1429_v1 = vrot.slane %v1427_v47, 4  ;;  %v1432_v43 = vrot.slane %v1430_v33, 5  ;;  %v10252_v54 = vrot.slane %v1436_v52, 5  ;;  %v1074_v53 = vld [vmem:[#allocation2 + $0xa4] sm:$0x1]  ;;  %v1412_v41 = vshll.u32 %v1073_v28, 16 }
  0x82   : > { %v1266_v27 = vrot.slane %v1265_v51, 4  ;;  %v1416_v7 = vshrl.u32 %v1073_v28, 16  ;;  %v1422_v10 = vshll.u32 %v1074_v53, 16  ;;  %v929_v25 = vld [vmem:[#allocation2 + $0xbc] sm:$0x1]  ;;  %v738_v19 = vshll.u32 %v10211_v11, 16 }
  0x83   : > { %v1433_v37 = vor.u32 %v1432_v43, %v1429_v1  ;;  %v10262_v12 = vrot.slane %v1412_v41, 5  ;;  %928 = vst.msk [vmem:[#allocation2 + $0xb8] sm:$0xf] %vm430_vm3, %v749_v48  ;;  %v930_v9 = vsel %vm9801_vm4, %v750_v6, %v929_v25  ;;  %v418_v26 = vld [vmem:[#allocation2 + $0xc8] sm:$0x1]  ;;  %v339_v60 = vsel %vm9801_vm4, 0, %v338_v21 }
  0x84   : > { %v1271_v59 = vsel %vm9894_vm11, %v1266_v27, %v10055_v50  ;;  %v1418_v17 = vrot.slane %v1416_v7, 4  ;;  %v1424_v61 = vrot.slane %v1422_v10, 5  ;;  %931 = vst [vmem:[#allocation2 + $0xbc] sm:$0x1] %v930_v9  ;;  %v653_v44 = vshll.u32 %v10079_v22, 16 }
  0x85   : > { %1550 = vrot.lane.b32.xlu2 %v1271_v59, %s9731_s9  ;;  %v1434_v15 = vrot.slane %v1433_v37, 4  ;;  %v1059_v24 = vld [vmem:[#allocation2 + $0x68] sm:$0x1]  ;;  %355 = vst [vmem:[#allocation2 + $0xb4] sm:$0x1] %v354_v4  ;;  %v360_v38 = vsel %vm9801_vm4, 0, %v359_v8  ;;  %v508_v42 = vpack.c.bf16 %v476_v13, %v476_v13  ;;  %v740_v51 = vor.u32 %v738_v19, %v10237_v23 }
  0x86   : > { %v1419_v50 = vor.u32 %v1418_v17, %v10262_v12  ;;  %v1302_v62 = vshll.u32 %v1059_v24, 16  ;;  %340 = vst [vmem:[#allocation2 + $0x78] sm:$0x1] %v339_v60  ;;  %v769_v32 = vshrl.u32 %v10243_v49, 16  ;;  %v772_v11 = vshll.u32 %v10243_v49, 16 }
  0x87   : > { %v1439_v36 = vsel %vm9894_vm11, %v1434_v15, %v10252_v54  ;;  %361 = vst [vmem:[#allocation2 + $0xcc] sm:$0x1] %v360_v38  ;;  %v777_v40 = vshrl.u32 %v510_v45, 16  ;;  %v780_v63 = vshll.u32 %v510_v45, 16  ;;  %v419_v43 = vsel %vm9807_vm5, 0, %v418_v26 }
  0x88   : > { %1578 = vrot.lane.b32.xlu1 %v1439_v36, %s9731_s9  ;;  %v1420_v47 = vrot.slane %v1419_v50, 4  ;;  %v1304_v33 = vrot.slane %v1302_v62, 5  ;;  %v771_v52 = vrot.slane %v769_v32, 7  ;;  %v752_v28 = vshrl.u32 %v10268_v14, 16  ;;  %420 = vst [vmem:[#allocation2 + $0xc8] sm:$0x1] %v419_v43 }
  0x89   : > { %v655_v23 = vor.u32 %v653_v44, %v10096_v20  ;;  %v10294_v21 = vrot.slane %v777_v40, 7  ;;  %v763_v10 = vshll.u32 %v508_v42, 16  ;;  %v403_v48 = vld [vmem:[#allocation2 + $0x8c] sm:$0x1]  ;;  %v347_v60 = vld [vmem:[#allocation2 + $0x9c] sm:$0x1] }
  0x8a   : > { %v1425_v22 = vsel %vm9894_vm11, %v1420_v47, %v1424_v61  ;;  %v1305_v1 = vsel %vm9894_vm11, %v10247_v55, %v1304_v33  ;;  %v1079_v49 = vld [vmem:[#allocation2 + $0xb8] sm:$0xf]  ;;  %v774_v30 = vor.u32 %v772_v11, %v771_v52  ;;  %v775_v6 = vrot.slane %v771_v52, 4 }
  0x8b   : > { %1576 = vrot.lane.b32.xlu0 %v1425_v22, %s9731_s9  ;;  %v1080_v56 = vld [vmem:[#allocation2 + $0xbc] sm:$0x1]  ;;  %v1460_v27 = vshll.u32 %v1079_v49, 16  ;;  %v1464_v53 = vshrl.u32 %v1079_v49, 16  ;;  %v10296_v41 = vrot.slane %v752_v28, 7  ;;  %v760_v55 = vshrl.u32 %v508_v42, 16 }
  0x8c   : > { %v1470_v7 = vshll.u32 %v1080_v56, 16  ;;  %v925_v8 = vld [vmem:[#allocation2 + $0xb4] sm:$0xf]  ;;  %v782_v37 = vor.u32 %v780_v63, %v10294_v21  ;;  %v404_v50 = vsel %vm9807_vm5, 0, %v403_v48  ;;  %v1368_v47 = vshrl.u32 %v10146_v58, 16 }
  0x8d   : > { %1556 = vrot.lane.b32.xlu2 %v1305_v1, %s9731_s9  ;;  %v10300_v20 = vrot.slane %v1460_v27, 5  ;;  %v1466_v25 = vrot.slane %v1464_v53, 4  ;;  %v926_v4 = vsel %vm9854_vm9, %v740_v51, %v925_v8  ;;  %v890_v13 = vld [vmem:[#allocation2 + $0x78] sm:$0xf]  ;;  %v758_v15 = vrot.slane %v10296_v41, 4 }
  0x8e   : > { %927 = vst [vmem:[#allocation2 + $0xb4] sm:$0xf] %v926_v4  ;;  %v891_v59 = vsel %vm9854_vm9, %v655_v23, %v890_v13  ;;  %v783_v17 = vsel %vm9875_vm10, %v775_v6, %v782_v37  ;;  %v939_v9 = vld [vmem:[#allocation2 + $0xcc] sm:$0xf]  ;;  %v762_v61 = vrot.slane %v760_v55, 7  ;;  %v1472_v45 = vrot.slane %v1470_v7, 5 }
  0x8f   : > { %v1467_v24 = vor.u32 %v1466_v25, %v10300_v20  ;;  %892 = vst [vmem:[#allocation2 + $0x78] sm:$0xf] %v891_v59  ;;  %v940_v26 = vsel %vm9854_vm9, %v774_v30, %v939_v9  ;;  %v936_v44 = vld [vmem:[#allocation2 + $0xc8] sm:$0x1]  ;;  %v348_v11 = vsel %vm9801_vm4, 0, %v347_v60  ;;  %v704_v52 = vshll.u32 %v10152_v5, 16 }
  0x90   : > { %941 = vst [vmem:[#allocation2 + $0xcc] sm:$0xf] %v940_v26  ;;  %v765_v62 = vor.u32 %v763_v10, %v762_v61  ;;  %v767_v19 = vrot.slane %v762_v61, 4  ;;  %v412_v42 = vld [vmem:[#allocation2 + $0xb0] sm:$0x1]  ;;  %v682_v58 = vrot.slane %v10089_v39, 4 }
  0x91   : > { %v1468_v36 = vrot.slane %v1467_v24, 4  ;;  %942 = vst.msk [vmem:[#allocation2 + $0xd0] sm:$0xf] %vm430_vm3, %v783_v17  ;;  %v1370_v49 = vrot.slane %v1368_v47, 4  ;;  %v413_v23 = vsel %vm9807_vm5, 0, %v412_v42  ;;  %v706_v39 = vor.u32 %v704_v52, %v10205_v35 }
  0x92   : > { %v766_v38 = vsel %vm9875_vm10, %v758_v15, %v765_v62  ;;  %v937_v32 = vsel %vm9801_vm4, %v767_v19, %v936_v44  ;;  %405 = vst [vmem:[#allocation2 + $0x8c] sm:$0x1] %v404_v50  ;;  %v10336_v13 = vld [vmem:[#allocation2 + $0x4] sm:$0xf]  ;;  %vm1630_vm14 = vcmask 126016   ;;  %vm2012_vm1 = vcmask 191616  }
  0x93   : > { %v1473_v33 = vsel %vm9894_vm11, %v1468_v36, %v1472_v45  ;;  %935 = vst.msk [vmem:[#allocation2 + $0xc4] sm:$0xf] %vm430_vm3, %v766_v38  ;;  %v1371_v38 = vor.u32 %v1370_v49, %v10154_v34  ;;  %v1780_v47 = vrot.slane %v10336_v13, 5  ;;  %vm2230_vm2 = vcmask 257216  }
  0x94   : > { %1584 = vrot.lane.b32.xlu1 %v1473_v33, %s9731_s9  ;;  %938 = vst [vmem:[#allocation2 + $0xc8] sm:$0x1] %v937_v32  ;;  %v1669_v32 = vld [vmem:[#allocation2 + $0x8] sm:$0x1]  ;;  %v1440_v33 = vshrl.u32 %v10241_v46, 16  ;;  %vm2861_vm6 = vcmask 322816  }
  0x95   : > { %v1078_v51 = vld [vmem:[#allocation2 + $0xb4] sm:$0xf]  ;;  %349 = vst [vmem:[#allocation2 + $0x9c] sm:$0x1] %v348_v11  ;;  %v356_v46 = vld [vmem:[#allocation2 + $0xc0] sm:$0x1] }
  0x96   : > { %v1451_v40 = vshrl.u32 %v1078_v51, 16  ;;  %v1454_v63 = vshll.u32 %v1078_v51, 16  ;;  %v1063_v22 = vld [vmem:[#allocation2 + $0x78] sm:$0xf]  ;;  %414 = vst [vmem:[#allocation2 + $0xb0] sm:$0x1] %v413_v23 }
  0x97   : > { %v1331_v1 = vshrl.u32 %v1063_v22, 16  ;;  %v1334_v43 = vshll.u32 %v1063_v22, 16  ;;  %v1084_v28 = vld [vmem:[#allocation2 + $0xcc] sm:$0xf]  ;;  %v964_v22 = vld [vmem:[#allocation2 + $0x10] sm:$0xf] }
  0x98   : > { %v1453_v30 = vrot.slane %v1451_v40, 4  ;;  %v1456_v6 = vrot.slane %v1454_v63, 5  ;;  %v10330_v56 = vld [vmem:[#allocation2 + $0xd0] sm:$0xf]  ;;  %v1499_v27 = vshrl.u32 %v1084_v28, 16  ;;  %v1502_v53 = vshll.u32 %v1084_v28, 16  ;;  %v1529_v51 = vpop.permute.xlu1 %1528 }
  0x99   : > { %v1333_v55 = vrot.slane %v1331_v1, 4  ;;  %v1336_v5 = vrot.slane %v1334_v43, 5  ;;  %v1508_v7 = vshll.u32 %v10330_v56, 16  ;;  %v901_v8 = vld [vmem:[#allocation2 + $0x8c] sm:$0x1]  ;;  %v1783_v63 = vrot.slane %v1669_v32, 5 }
  0x9a   : > { %v1457_v37 = vor.u32 %v1456_v6, %v1453_v30  ;;  %v1501_v10 = vrot.slane %v1499_v27, 4  ;;  %v1504_v48 = vrot.slane %v1502_v53, 5  ;;  %v1082_v25 = vld [vmem:[#allocation2 + $0xc4] sm:$0xf]  ;;  %v902_v4 = vsel %vm9801_vm4, %v682_v58, %v901_v8  ;;  %v1667_v43 = vld [vmem:[#allocation2] sm:$0xe] }
  0x9b   : > { %v1337_v59 = vor.u32 %v1336_v5, %v1333_v55  ;;  %v10338_v17 = vrot.slane %v1508_v7, 5  ;;  %v1083_v9 = vld [vmem:[#allocation2 + $0xc8] sm:$0x1]  ;;  %v1484_v15 = vshll.u32 %v1082_v25, 16  ;;  %v1488_v61 = vshrl.u32 %v1082_v25, 16  ;;  %v1525_v52 = vpop.permute.xlu0 %1524 }
  0x9c   : > { %v1458_v24 = vrot.slane %v1457_v37, 4  ;;  %v1505_v45 = vor.u32 %v1504_v48, %v1501_v10  ;;  %v1494_v26 = vshll.u32 %v1083_v9, 16  ;;  %903 = vst [vmem:[#allocation2 + $0x8c] sm:$0x1] %v902_v4  ;;  %v911_v35 = vld [vmem:[#allocation2 + $0x9c] sm:$0xf] }
  0x9d   : > { %v1338_v50 = vrot.slane %v1337_v59, 4  ;;  %v10340_v62 = vrot.slane %v1484_v15, 5  ;;  %v1490_v19 = vrot.slane %v1488_v61, 4  ;;  %v912_v60 = vsel %vm9854_vm9, %v706_v39, %v911_v35  ;;  %1000 = vst.msk [vmem:[#allocation3 + $0xc] sm:$0xf] %vm430_vm3, %v964_v22 }
  0x9e   : > { %v1463_v36 = vsel %vm9894_vm11, %v1458_v24, %v10300_v20  ;;  %v1506_v44 = vrot.slane %v1505_v45, 4  ;;  %913 = vst [vmem:[#allocation2 + $0x9c] sm:$0xf] %v912_v60  ;;  %v1496_v20 = vrot.slane %v1494_v26, 5  ;;  %v1372_v58 = vrot.slane %v1371_v38, 4 }
  0x9f   : > { %1582 = vrot.lane.b32.xlu0 %v1463_v36, %s9731_s9  ;;  %v1343_v11 = vsel %vm9894_vm11, %v1338_v50, %v10161_v16  ;;  %v1491_v42 = vor.u32 %v1490_v19, %v10340_v62  ;;  %v733_v16 = vrot.slane %v10200_v29, 4  ;;  %v1782_v1 = vrot.slane %v1780_v47, 4  ;;  %v962_v28 = vld [vmem:[#allocation2 + $0x4] sm:$0xf]  ;;  %v1673_v30 = vld [vmem:[#allocation2 + $0x18] sm:$0xe] }
  0xa0   : > { %1562 = vrot.lane.b32.xlu2 %v1343_v11, %s9731_s9  ;;  %v1511_v34 = vsel %vm9894_vm11, %v1506_v44, %v10338_v17  ;;  %1634 = vst.msk [vmem:[#allocation3 + $0xc] sm:$0xf] %vm1630_vm14, %v1529_v51  ;;  %v922_v27 = vld [vmem:[#allocation2 + $0xb0] sm:$0x1]  ;;  %v357_v53 = vsel %vm9801_vm4, 0, %v356_v46  ;;  %v9305_v48 = vrot.slane %v1667_v43, 9  ;;  %v1527_v4 = vpop.permute.xlu1 %1526 }
  0xa1   : > { %1590 = vrot.lane.b32.xlu1 %v1511_v34, %s9731_s9  ;;  %v1492_v40 = vrot.slane %v1491_v42, 4  ;;  %998 = vst.msk [vmem:[#allocation3 + $0x4] sm:$0xf] %vm430_vm3, %v962_v28  ;;  %v10375_v5 = vld [vmem:[#allocation2 + $0x1c] sm:$0xf]  ;;  %v923_v7 = vsel %vm9801_vm4, %v733_v16, %v922_v27  ;;  %v1784_v39 = vsel %vm10365_vm15, %v1782_v1, %v1783_v63  ;;  %v755_v25 = vshll.u32 %v10268_v14, 16 }
  0xa2   : > { %1632 = vst.msk [vmem:[#allocation3 + $0x4] sm:$0xf] %vm1630_vm14, %v1525_v52  ;;  %v10386_v24 = vld [vmem:[#allocation2 + $0x10] sm:$0xf]  ;;  %v9307_v45 = vrot.slane %v1673_v30, 9  ;;  %v1794_v26 = vrot.slane %v10375_v5, 5 }
  0xa3   : > { %v1068_v49 = vld [vmem:[#allocation2 + $0x8c] sm:$0x1]  ;;  %v1497_v29 = vsel %vm9894_vm11, %v1492_v40, %v1496_v20  ;;  %924 = vst [vmem:[#allocation2 + $0xb0] sm:$0x1] %v923_v7  ;;  %v1523_v59 = vpop.permute.xlu0 %1522  ;;  %v1442_v35 = vrot.slane %v1440_v33, 4  ;;  %v1787_v38 = vrot.slane %v10386_v24, 5  ;;  %v757_v32 = vor.u32 %v755_v25, %v10296_v41 }
  0xa4   : > { %v1374_v6 = vshll.u32 %v1068_v49, 16  ;;  %358 = vst [vmem:[#allocation2 + $0xc0] sm:$0x1] %v357_v53  ;;  %v10391_v50 = vld [vmem:[#allocation2 + $0x28] sm:$0xf]  ;;  %v1781_v33 = vsel %vm10365_vm15, %v9305_v48, %v1780_v47  ;;  %v1795_v13 = vsel %vm10365_vm15, %v9307_v45, %v1794_v26  ;;  %v1512_v7 = vshrl.u32 %v10330_v56, 16 }
  0xa5   : > { %v1072_v55 = vld [vmem:[#allocation2 + $0x9c] sm:$0xf]  ;;  %v963_v14 = vld [vmem:[#allocation2 + $0xc] sm:$0xf]  ;;  %v961_v60 = vld [vmem:[#allocation2] sm:$0xf]  ;;  %v1443_v47 = vor.u32 %v1442_v35, %v10252_v54 }
  0xa6   : > { %v1376_v8 = vrot.slane %v1374_v6, 5  ;;  %v1403_v37 = vshrl.u32 %v1072_v55, 16  ;;  %v1406_v10 = vshll.u32 %v1072_v55, 16  ;;  %999 = vst.msk [vmem:[#allocation3 + $0x8] sm:$0xf] %vm430_vm3, %v963_v14  ;;  %v1801_v51 = vrot.slane %v10391_v50, 5 }
  0xa7   : > { %1588 = vrot.lane.b32.xlu0 %v1497_v29, %s9731_s9  ;;  %v421_v36 = vld [vmem:[#allocation2 + $0xd4] sm:$0x1]  ;;  %1633 = vst.msk [vmem:[#allocation3 + $0x8] sm:$0xf] %vm1630_vm14, %v1527_v4  ;;  %v965_v34 = vld [vmem:[#allocation2 + $0x18] sm:$0xf] }
  0xa8   : > { %v1377_v9 = vsel %vm9894_vm11, %v1372_v58, %v1376_v8  ;;  %v1405_v15 = vrot.slane %v1403_v37, 4  ;;  %v1408_v61 = vrot.slane %v1406_v10, 5  ;;  %v1672_v44 = vld [vmem:[#allocation2 + $0x14] sm:$0x1]  ;;  %v422_v11 = vsel %vm9807_vm5, 0, %v421_v36  ;;  %v1531_v52 = vpop.permute.xlu2 %1530  ;;  %v1537_v22 = vpop.permute.xlu1 %1536 }
  0xa9   : > { %1568 = vrot.lane.b32.xlu2 %v1377_v9, %s9731_s9  ;;  %1906 = vrot.lane.b32.xlu1 %v1784_v39, %s9732_s10  ;;  %997 = vst.msk [vmem:[#allocation3] sm:$0xf] %vm430_vm3, %v961_v60  ;;  %v1678_v46 = vld [vmem:[#allocation2 + $0x2c] sm:$0x1]  ;;  %v1790_v1 = vrot.slane %v1672_v44, 5  ;;  %v1444_v49 = vrot.slane %v1443_v47, 4 }
  0xaa   : > { %v1409_v19 = vor.u32 %v1408_v61, %v1405_v15  ;;  %v1077_v20 = vld [vmem:[#allocation2 + $0xb0] sm:$0x1]  ;;  %1631 = vst.msk [vmem:[#allocation3] sm:$0xf] %vm1630_vm14, %v1523_v59  ;;  %v1804_v43 = vrot.slane %v1678_v46, 5  ;;  %v1803_v29 = vrot.slane %v1801_v51, 4 }
  0xab   : > { %v1446_v40 = vshll.u32 %v1077_v20, 16  ;;  %v932_v63 = vld [vmem:[#allocation2 + $0xc0] sm:$0xf]  ;;  %423 = vst [vmem:[#allocation2 + $0xd4] sm:$0x1] %v422_v11  ;;  %v1535_v58 = vpop.permute.xlu0 %1534  ;;  %v784_v6 = vrot.slane %v10294_v21, 4 }
  0xac   : > { %v1410_v42 = vrot.slane %v1409_v19, 4  ;;  %v933_v16 = vsel %vm9854_vm9, %v757_v32, %v932_v63  ;;  %1001 = vst.msk [vmem:[#allocation3 + $0x10] sm:$0xf] %vm430_vm3, %v965_v34  ;;  %v968_v54 = vld [vmem:[#allocation2 + $0x28] sm:$0xf]  ;;  %v1805_v37 = vsel %vm10365_vm15, %v1803_v29, %v1804_v43  ;;  %v1514_v32 = vrot.slane %v1512_v7, 4 }
  0xad   : > { %934 = vst [vmem:[#allocation2 + $0xc0] sm:$0xf] %v933_v16  ;;  %v967_v28 = vld [vmem:[#allocation2 + $0x24] sm:$0xf]  ;;  %v1448_v30 = vrot.slane %v1446_v40, 5  ;;  %vm3240_vm7 = vcmask 388416  }
  0xae   : > { %v1415_v41 = vsel %vm9894_vm11, %v1410_v42, %v10262_v12  ;;  %v1789_v12 = vrot.slane %v1787_v38, 4  ;;  %1635 = vst.msk [vmem:[#allocation3 + $0x10] sm:$0xf] %vm1630_vm14, %v1531_v52  ;;  %v1676_v27 = vld [vmem:[#allocation2 + $0x24] sm:$0xe]  ;;  %v1515_v50 = vor.u32 %v1514_v32, %v10338_v17  ;;  %vm13428_vm8 = vcmask 454016  }
  0xaf   : > { %1904 = vrot.lane.b32.xlu0 %v1781_v33, %s9732_s10  ;;  %1004 = vst.msk [vmem:[#allocation3 + $0x1c] sm:$0xf] %vm430_vm3, %v968_v54  ;;  %v966_v53 = vld [vmem:[#allocation2 + $0x1c] sm:$0xf]  ;;  %v1449_v39 = vsel %vm9894_vm11, %v1444_v49, %v1448_v30  ;;  %v9308_v21 = vrot.slane %v1676_v27, 9  ;;  %vm4088_vm12 = vcmask 519616  }
  0xb0   : > { %1638 = vst.msk [vmem:[#allocation3 + $0x1c] sm:$0xf] %vm1630_vm14, %v1537_v22  ;;  %v1791_v55 = vsel %vm10365_vm15, %v1789_v12, %v1790_v1  ;;  %v1682_v10 = vld [vmem:[#allocation2 + $0x3c] sm:$0xe]  ;;  %v10441_v4 = vld [vmem:[#allocation2 + $0x40] sm:$0xf]  ;;  %v1543_v59 = vpop.permute.xlu1 %1542 }
  0xb1   : > { %1574 = vrot.lane.b32.xlu2 %v1415_v41, %s9731_s9  ;;  %1912 = vrot.lane.b32.xlu1 %v1795_v13, %s9732_s10  ;;  %1003 = vst.msk [vmem:[#allocation3 + $0x18] sm:$0xf] %vm430_vm3, %v967_v28  ;;  %v10443_v45 = vld [vmem:[#allocation2 + $0x34] sm:$0xf]  ;;  %v9310_v35 = vrot.slane %v1682_v10, 9  ;;  %v1815_v44 = vrot.slane %v10441_v4, 5  ;;  %v1802_v42 = vsel %vm10365_vm15, %v9308_v21, %v1801_v51 }
  0xb2   : > { %v943_v8 = vld [vmem:[#allocation2 + $0xd4] sm:$0x1]  ;;  %1637 = vst.msk [vmem:[#allocation3 + $0x18] sm:$0xf] %vm1630_vm14, %v1535_v58  ;;  %v1533_v25 = vpop.permute.xlu2 %1532  ;;  %v971_v14 = vld [vmem:[#allocation2 + $0x3c] sm:$0xf] }
  0xb3   : > { %v944_v48 = vsel %vm9801_vm4, %v784_v6, %v943_v8  ;;  %1002 = vst.msk [vmem:[#allocation3 + $0x14] sm:$0xf] %vm430_vm3, %v966_v53  ;;  %v970_v19 = vld [vmem:[#allocation2 + $0x34] sm:$0xf]  ;;  %v10450_v11 = vld [vmem:[#allocation2 + $0x4c] sm:$0xf]  ;;  %v1816_v13 = vsel %vm10365_vm15, %v9310_v35, %v1815_v44 }
  0xb4   : > { %v1081_v56 = vld [vmem:[#allocation2 + $0xc0] sm:$0xf]  ;;  %945 = vst [vmem:[#allocation2 + $0xd4] sm:$0x1] %v944_v48  ;;  %v1541_v9 = vpop.permute.xlu0 %1540  ;;  %v969_v33 = vld [vmem:[#allocation2 + $0x30] sm:$0xf] }
  0xb5   : > { %v1475_v15 = vshrl.u32 %v1081_v56, 16  ;;  %v1478_v61 = vshll.u32 %v1081_v56, 16  ;;  %1636 = vst.msk [vmem:[#allocation3 + $0x14] sm:$0xf] %vm1630_vm14, %v1533_v25  ;;  %v1808_v34 = vrot.slane %v10443_v45, 5  ;;  %v1822_v51 = vrot.slane %v10450_v11, 5 }
  0xb6   : > { %1007 = vst.msk [vmem:[#allocation3 + $0x28] sm:$0xf] %vm430_vm3, %v971_v14  ;;  %v1681_v20 = vld [vmem:[#allocation2 + $0x38] sm:$0x1]  ;;  %v1687_v46 = vld [vmem:[#allocation2 + $0x50] sm:$0x1] }
  0xb7   : > { %1910 = vrot.lane.b32.xlu0 %v1791_v55, %s9732_s10  ;;  %v1477_v60 = vrot.slane %v1475_v15, 4  ;;  %v1480_v36 = vrot.slane %v1478_v61, 5  ;;  %1641 = vst.msk [vmem:[#allocation3 + $0x28] sm:$0xf] %vm1630_vm14, %v1543_v59  ;;  %v974_v63 = vld [vmem:[#allocation2 + $0x4c] sm:$0xf] }
  0xb8   : > { %1006 = vst.msk [vmem:[#allocation3 + $0x24] sm:$0xf] %vm430_vm3, %v970_v19  ;;  %v973_v22 = vld [vmem:[#allocation2 + $0x48] sm:$0xf]  ;;  %v1810_v1 = vrot.slane %v1808_v34, 4  ;;  %v1811_v43 = vrot.slane %v1681_v20, 5 }
  0xb9   : > { %1580 = vrot.lane.b32.xlu2 %v1449_v39, %s9731_s9  ;;  %1918 = vrot.lane.b32.xlu1 %v1805_v37, %s9732_s10  ;;  %v1481_v52 = vor.u32 %v1480_v36, %v1477_v60  ;;  %1640 = vst.msk [vmem:[#allocation3 + $0x24] sm:$0xf] %vm1630_vm14, %v1541_v9  ;;  %v972_v17 = vld [vmem:[#allocation2 + $0x40] sm:$0xf]  ;;  %v1516_v54 = vrot.slane %v1515_v50, 4  ;;  %v1824_v49 = vrot.slane %v1822_v51, 4 }
  0xba   : > { %1005 = vst.msk [vmem:[#allocation3 + $0x20] sm:$0xf] %vm430_vm3, %v969_v33  ;;  %v1825_v30 = vrot.slane %v1687_v46, 5  ;;  %v1685_v29 = vld [vmem:[#allocation2 + $0x48] sm:$0xe]  ;;  %vm13429_vm13 = vcmask 1043456  }
  0xbb   : > { %v1482_v41 = vrot.slane %v1481_v52, 4  ;;  %v1086_v47 = vld [vmem:[#allocation2 + $0xd4] sm:$0x1]  ;;  %v1549_v16 = vpop.permute.xlu1 %1548  ;;  %1010 = vst.msk [vmem:[#allocation3 + $0x34] sm:$0xf] %vm430_vm3, %v974_v63  ;;  %v9311_v21 = vrot.slane %v1685_v29, 9 }
  0xbc   : > { %v1518_v40 = vshll.u32 %v1086_v47, 16  ;;  %1644 = vst.msk [vmem:[#allocation3 + $0x34] sm:$0xf] %vm1630_vm14, %v1549_v16  ;;  %v1826_v27 = vsel %vm10365_vm15, %v1824_v49, %v1825_v30  ;;  %v1670_v53 = vld [vmem:[#allocation2 + $0xc] sm:$0xe] }
  0xbd   : > { %v1487_v12 = vsel %vm9894_vm11, %v1482_v41, %v10340_v62  ;;  %1009 = vst.msk [vmem:[#allocation3 + $0x30] sm:$0xf] %vm430_vm3, %v973_v22  ;;  %v1812_v62 = vsel %vm10365_vm15, %v1810_v1, %v1811_v43  ;;  %v1691_v55 = vld [vmem:[#allocation2 + $0x60] sm:$0xe]  ;;  %v10487_v7 = vld [vmem:[#allocation2 + $0x64] sm:$0xf]  ;;  %v1823_v35 = vsel %vm10365_vm15, %v9311_v21, %v1822_v51 }
  0xbe   : > { %v1520_v28 = vrot.slane %v1518_v40, 5  ;;  %1008 = vst.msk [vmem:[#allocation3 + $0x2c] sm:$0xf] %vm430_vm3, %v972_v17  ;;  %v977_v8 = vld [vmem:[#allocation2 + $0x60] sm:$0xf]  ;;  %v9306_v48 = vrot.slane %v1670_v53, 9 }
  0xbf   : > { %1916 = vrot.lane.b32.xlu0 %v1802_v42, %s9732_s10  ;;  %v1547_v58 = vpop.permute.xlu0 %1546  ;;  %1013 = vst.msk [vmem:[#allocation3 + $0x40] sm:$0xf] %vm430_vm3, %v977_v8  ;;  %v976_v10 = vld [vmem:[#allocation2 + $0x58] sm:$0xf]  ;;  %v9313_v59 = vrot.slane %v1691_v55, 9  ;;  %v1836_v9 = vrot.slane %v10487_v7, 5 }
  0xc0   : > { %1643 = vst.msk [vmem:[#allocation3 + $0x30] sm:$0xf] %vm1630_vm14, %v1547_v58  ;;  %v1521_v6 = vsel %vm9894_vm11, %v1516_v54, %v1520_v28  ;;  %v10492_v25 = vld [vmem:[#allocation2 + $0x58] sm:$0xf]  ;;  %v975_v15 = vld [vmem:[#allocation2 + $0x54] sm:$0xf]  ;;  %v1788_v60 = vsel %vm10365_vm15, %v9306_v48, %v1787_v38 }
  0xc1   : > { %1586 = vrot.lane.b32.xlu2 %v1487_v12, %s9731_s9  ;;  %1924 = vrot.lane.b32.xlu1 %v1816_v13, %s9732_s10  ;;  %v1695_v61 = vld [vmem:[#allocation2 + $0x70] sm:$0xf]  ;;  %1012 = vst.msk [vmem:[#allocation3 + $0x3c] sm:$0xf] %vm430_vm3, %v976_v10  ;;  %v1829_v14 = vrot.slane %v10492_v25, 5  ;;  %v1837_v36 = vsel %vm10365_vm15, %v9313_v59, %v1836_v9  ;;  %v1796_v41 = vrot.slane %v1794_v26, 4 }
  0xc2   : > { %v1690_v19 = vld [vmem:[#allocation2 + $0x5c] sm:$0x1]  ;;  %1011 = vst.msk [vmem:[#allocation3 + $0x38] sm:$0xf] %vm430_vm3, %v975_v15  ;;  %v1675_v32 = vld [vmem:[#allocation2 + $0x20] sm:$0x1] }
  0xc3   : > { %v1843_v11 = vrot.slane %v1695_v61, 5  ;;  %v1696_v33 = vld [vmem:[#allocation2 + $0x74] sm:$0x1]  ;;  %v980_v42 = vld [vmem:[#allocation2 + $0x70] sm:$0xf]  ;;  %v1831_v20 = vrot.slane %v1829_v14, 4 }
  0xc4   : > { %v1555_v39 = vpop.permute.xlu1 %1554  ;;  %v979_v52 = vld [vmem:[#allocation2 + $0x6c] sm:$0xf]  ;;  %v1832_v46 = vrot.slane %v1690_v19, 5  ;;  %1016 = vst.msk [vmem:[#allocation3 + $0x4c] sm:$0xf] %vm430_vm3, %v980_v42  ;;  %v1797_v13 = vrot.slane %v1675_v32, 5 }
  0xc5   : > { %1647 = vst.msk [vmem:[#allocation3 + $0x40] sm:$0xf] %vm1630_vm14, %v1555_v39  ;;  %v978_v38 = vld [vmem:[#allocation2 + $0x64] sm:$0xf]  ;;  %v1845_v47 = vrot.slane %v1843_v11, 4  ;;  %v1846_v50 = vrot.slane %v1696_v33, 5 }
  0xc6   : > { %1015 = vst.msk [vmem:[#allocation3 + $0x48] sm:$0xf] %vm430_vm3, %v979_v52  ;;  %v1833_v51 = vsel %vm10365_vm15, %v1831_v20, %v1832_v46  ;;  %v1694_v40 = vld [vmem:[#allocation2 + $0x6c] sm:$0xe]  ;;  %v1798_v63 = vsel %vm10365_vm15, %v1796_v41, %v1797_v13  ;;  %v1679_v22 = vld [vmem:[#allocation2 + $0x30] sm:$0xe] }
  0xc7   : > { %1922 = vrot.lane.b32.xlu0 %v1812_v62, %s9732_s10  ;;  %1014 = vst.msk [vmem:[#allocation3 + $0x44] sm:$0xf] %vm430_vm3, %v978_v38  ;;  %v1847_v16 = vsel %vm10365_vm15, %v1845_v47, %v1846_v50  ;;  %v1700_v5 = vld [vmem:[#allocation2 + $0x84] sm:$0xe]  ;;  %v10528_v26 = vld [vmem:[#allocation2 + $0x88] sm:$0xf] }
  0xc8   : > { %v983_v12 = vld [vmem:[#allocation2 + $0x84] sm:$0xf]  ;;  %v982_v1 = vld [vmem:[#allocation2 + $0x7c] sm:$0xf]  ;;  %v9314_v43 = vrot.slane %v1694_v40, 9  ;;  %v9309_v28 = vrot.slane %v1679_v22, 9 }
  0xc9   : > { %v1539_v37 = vpop.permute.xlu2 %1538  ;;  %1592 = vrot.lane.b32.xlu2 %v1521_v6, %s9731_s9  ;;  %1930 = vrot.lane.b32.xlu1 %v1826_v27, %s9732_s10  ;;  %v1553_v56 = vpop.permute.xlu0 %1552  ;;  %1019 = vst.msk [vmem:[#allocation3 + $0x58] sm:$0xf] %vm430_vm3, %v983_v12  ;;  %v10535_v17 = vld [vmem:[#allocation2 + $0x7c] sm:$0xf]  ;;  %v981_v54 = vld [vmem:[#allocation2 + $0x78] sm:$0xf] }
  0xca   : > { %1639 = vst.msk [vmem:[#allocation3 + $0x20] sm:$0xf] %vm1630_vm14, %v1539_v37  ;;  %v9316_v49 = vrot.slane %v1700_v5, 9  ;;  %v1857_v30 = vrot.slane %v10528_v26, 5  ;;  %v1704_v62 = vld [vmem:[#allocation2 + $0x94] sm:$0xf]  ;;  %v1844_v29 = vsel %vm10365_vm15, %v9314_v43, %v1843_v11  ;;  %v1809_v55 = vsel %vm10365_vm15, %v9309_v28, %v1808_v34 }
  0xcb   : > { %1646 = vst.msk [vmem:[#allocation3 + $0x3c] sm:$0xf] %vm1630_vm14, %v1553_v56  ;;  %v1850_v6 = vrot.slane %v10535_v17, 5  ;;  %v1699_v53 = vld [vmem:[#allocation2 + $0x80] sm:$0x1]  ;;  %v1864_v37 = vrot.slane %v1704_v62, 5 }
  0xcc   : > { %1018 = vst.msk [vmem:[#allocation3 + $0x54] sm:$0xf] %vm430_vm3, %v982_v1  ;;  %v1858_v8 = vsel %vm10365_vm15, %v9316_v49, %v1857_v30  ;;  %v1684_v39 = vld [vmem:[#allocation2 + $0x44] sm:$0x1]  ;;  %v1705_v10 = vld [vmem:[#allocation2 + $0x98] sm:$0x1] }
  0xcd   : > { %1017 = vst.msk [vmem:[#allocation3 + $0x50] sm:$0xf] %vm430_vm3, %v981_v54  ;;  %v986_v48 = vld [vmem:[#allocation2 + $0x94] sm:$0xf]  ;;  %v985_v56 = vld [vmem:[#allocation2 + $0x90] sm:$0xf] }
  0xce   : > { %v1852_v45 = vrot.slane %v1850_v6, 4  ;;  %v1853_v59 = vrot.slane %v1699_v53, 5  ;;  %1022 = vst.msk [vmem:[#allocation3 + $0x64] sm:$0xf] %vm430_vm3, %v986_v48  ;;  %v984_v15 = vld [vmem:[#allocation2 + $0x88] sm:$0xf] }
  0xcf   : > { %1928 = vrot.lane.b32.xlu0 %v1823_v35, %s9732_s10  ;;  %1021 = vst.msk [vmem:[#allocation3 + $0x60] sm:$0xf] %vm430_vm3, %v985_v56  ;;  %v1817_v61 = vrot.slane %v1815_v44, 4  ;;  %v1818_v35 = vrot.slane %v1684_v39, 5  ;;  %v1866_v19 = vrot.slane %v1864_v37, 4  ;;  %v1838_v25 = vrot.slane %v1836_v9, 4 }
  0xd0   : > { %1020 = vst.msk [vmem:[#allocation3 + $0x5c] sm:$0xf] %vm430_vm3, %v984_v15  ;;  %v1703_v11 = vld [vmem:[#allocation2 + $0x90] sm:$0xe]  ;;  %v1688_v44 = vld [vmem:[#allocation2 + $0x54] sm:$0xe] }
  0xd1   : > { %v1545_v24 = vpop.permute.xlu2 %1544  ;;  %1908 = vrot.lane.b32.xlu2 %v1788_v60, %s9732_s10  ;;  %1936 = vrot.lane.b32.xlu1 %v1837_v36, %s9732_s10  ;;  %v1867_v60 = vrot.slane %v1705_v10, 5  ;;  %v1854_v36 = vsel %vm10365_vm15, %v1852_v45, %v1853_v59  ;;  %v1819_v33 = vsel %vm10365_vm15, %v1817_v61, %v1818_v35  ;;  %v1709_v52 = vld [vmem:[#allocation2 + $0xa8] sm:$0xe]  ;;  %v10571_v20 = vld [vmem:[#allocation2 + $0xac] sm:$0xf]  ;;  %v9317_v38 = vrot.slane %v1703_v11, 9 }
  0xd2   : > { %1642 = vst.msk [vmem:[#allocation3 + $0x2c] sm:$0xf] %vm1630_vm14, %v1545_v24  ;;  %v989_v46 = vld [vmem:[#allocation2 + $0xa8] sm:$0xf]  ;;  %v988_v24 = vld [vmem:[#allocation2 + $0xa0] sm:$0xf] }
  0xd3   : > { %v1868_v4 = vsel %vm10365_vm15, %v1866_v19, %v1867_v60  ;;  %1025 = vst.msk [vmem:[#allocation3 + $0x70] sm:$0xf] %vm430_vm3, %v989_v46  ;;  %v10578_v41 = vld [vmem:[#allocation2 + $0xa0] sm:$0xf]  ;;  %v987_v13 = vld [vmem:[#allocation2 + $0x9c] sm:$0xf] }
  0xd4   : > { %1024 = vst.msk [vmem:[#allocation3 + $0x6c] sm:$0xf] %vm430_vm3, %v988_v24  ;;  %v9312_v47 = vrot.slane %v1688_v44, 9  ;;  %v9319_v50 = vrot.slane %v1709_v52, 9  ;;  %v1713_v40 = vld [vmem:[#allocation2 + $0xb8] sm:$0xf] }
  0xd5   : > { %1023 = vst.msk [vmem:[#allocation3 + $0x68] sm:$0xf] %vm430_vm3, %v987_v13  ;;  %v1708_v5 = vld [vmem:[#allocation2 + $0xa4] sm:$0x1]  ;;  %v1693_v1 = vld [vmem:[#allocation2 + $0x68] sm:$0x1] }
  0xd6   : > { %v1561_v58 = vpop.permute.xlu1 %1560  ;;  %v1885_v43 = vrot.slane %v1713_v40, 5  ;;  %v1714_v54 = vld [vmem:[#allocation2 + $0xbc] sm:$0x1]  ;;  %v992_v28 = vld [vmem:[#allocation2 + $0xb8] sm:$0xf]  ;;  %v1859_v17 = vrot.slane %v1857_v30, 4 }
  0xd7   : > { %1934 = vrot.lane.b32.xlu0 %v1833_v51, %s9732_s10  ;;  %1650 = vst.msk [vmem:[#allocation3 + $0x4c] sm:$0xf] %vm1630_vm14, %v1561_v58  ;;  %v1878_v51 = vrot.slane %v10571_v20, 5  ;;  %v1830_v58 = vsel %vm10365_vm15, %v9312_v47, %v1829_v14  ;;  %v991_v49 = vld [vmem:[#allocation2 + $0xb4] sm:$0xf]  ;;  %v1839_v14 = vrot.slane %v1693_v1, 5 }
  0xd8   : > { %1028 = vst.msk [vmem:[#allocation3 + $0x7c] sm:$0xf] %vm430_vm3, %v992_v28  ;;  %v1887_v53 = vrot.slane %v1885_v43, 4  ;;  %v1697_v9 = vld [vmem:[#allocation2 + $0x78] sm:$0xe] }
  0xd9   : > { %1914 = vrot.lane.b32.xlu2 %v1798_v63, %s9732_s10  ;;  %1942 = vrot.lane.b32.xlu1 %v1847_v16, %s9732_s10  ;;  %v1865_v63 = vsel %vm10365_vm15, %v9317_v38, %v1864_v37  ;;  %v1871_v16 = vrot.slane %v10578_v41, 5  ;;  %v1879_v12 = vsel %vm10365_vm15, %v9319_v50, %v1878_v51  ;;  %1027 = vst.msk [vmem:[#allocation3 + $0x78] sm:$0xf] %vm430_vm3, %v991_v49  ;;  %v1718_v10 = vld [vmem:[#allocation2 + $0xcc] sm:$0xe] }
  0xda   : > { %v1840_v37 = vsel %vm10365_vm15, %v1838_v25, %v1839_v14  ;;  %v10613_v48 = vld [vmem:[#allocation2 + $0xd0] sm:$0xf]  ;;  %v995_v56 = vld [vmem:[#allocation2 + $0xcc] sm:$0xf]  ;;  %v994_v45 = vld [vmem:[#allocation2 + $0xc4] sm:$0xf] }
  0xdb   : > { %v1873_v62 = vrot.slane %v1871_v16, 4  ;;  %1031 = vst.msk [vmem:[#allocation3 + $0x88] sm:$0xf] %vm430_vm3, %v995_v56  ;;  %v10618_v15 = vld [vmem:[#allocation2 + $0xc4] sm:$0xf]  ;;  %v9322_v19 = vrot.slane %v1718_v10, 9 }
  0xdc   : > { %1030 = vst.msk [vmem:[#allocation3 + $0x84] sm:$0xf] %vm430_vm3, %v994_v45  ;;  %v1899_v60 = vrot.slane %v10613_v48, 5  ;;  %v1892_v11 = vrot.slane %v10618_v15, 5  ;;  %v1702_v52 = vld [vmem:[#allocation2 + $0x8c] sm:$0x1] }
  0xdd   : > { %v1559_v27 = vpop.permute.xlu0 %1558  ;;  %v996_v38 = vld [vmem:[#allocation2 + $0xd0] sm:$0xf]  ;;  %v1706_v26 = vld [vmem:[#allocation2 + $0x9c] sm:$0xe]  ;;  %v1715_v25 = vld [vmem:[#allocation2 + $0xc0] sm:$0xe] }
  0xde   : > { %1649 = vst.msk [vmem:[#allocation3 + $0x48] sm:$0xf] %vm1630_vm14, %v1559_v27  ;;  %v1894_v46 = vrot.slane %v1892_v11, 4  ;;  %v2051_v40 = vld [vmem:[#allocation2 + $0x10] sm:$0xf]  ;;  %v9318_v30 = vrot.slane %v1706_v26, 9 }
  0xdf   : > { %v1551_v21 = vpop.permute.xlu2 %1550  ;;  %1940 = vrot.lane.b32.xlu0 %v1844_v29, %s9732_s10  ;;  %v1874_v29 = vrot.slane %v1708_v5, 5  ;;  %1032 = vst.msk [vmem:[#allocation3 + $0x8c] sm:$0xf] %vm430_vm3, %v996_v38  ;;  %v2050_v5 = vld [vmem:[#allocation2 + $0xc] sm:$0xf]  ;;  %v9321_v20 = vrot.slane %v1715_v25, 9 }
  0xe0   : > { %1645 = vst.msk [vmem:[#allocation3 + $0x38] sm:$0xf] %vm1630_vm14, %v1551_v21  ;;  %v1712_v21 = vld [vmem:[#allocation2 + $0xb4] sm:$0xe]  ;;  %v1711_v1 = vld [vmem:[#allocation2 + $0xb0] sm:$0x1] }
  0xe1   : > { %1920 = vrot.lane.b32.xlu2 %v1809_v55, %s9732_s10  ;;  %1948 = vrot.lane.b32.xlu1 %v1858_v8, %s9732_s10  ;;  %v1888_v55 = vrot.slane %v1714_v54, 5  ;;  %v990_v8 = vld [vmem:[#allocation2 + $0xac] sm:$0xf]  ;;  %v1875_v39 = vsel %vm10365_vm15, %v1873_v62, %v1874_v29  ;;  %v9320_v59 = vrot.slane %v1712_v21, 9  ;;  %v1880_v54 = vrot.slane %v1878_v51, 4 }
  0xe2   : > { %v1567_v34 = vpop.permute.xlu1 %1566  ;;  %1026 = vst.msk [vmem:[#allocation3 + $0x74] sm:$0xf] %vm430_vm3, %v990_v8  ;;  %v1881_v28 = vrot.slane %v1711_v1, 5  ;;  %v2057_v29 = vld [vmem:[#allocation2 + $0x34] sm:$0xf] }
  0xe3   : > { %1653 = vst.msk [vmem:[#allocation3 + $0x58] sm:$0xf] %vm1630_vm14, %v1567_v34  ;;  %v1889_v7 = vsel %vm10365_vm15, %v1887_v53, %v1888_v55  ;;  %v9315_v34 = vrot.slane %v1697_v9, 9  ;;  %v2056_v53 = vld [vmem:[#allocation2 + $0x30] sm:$0xf]  ;;  %v1893_v55 = vsel %vm10365_vm15, %v9321_v20, %v1892_v11 }
  0xe4   : > { %v1882_v62 = vsel %vm10365_vm15, %v1880_v54, %v1881_v28  ;;  %v2060_v8 = vld [vmem:[#allocation2 + $0x48] sm:$0xf]  ;;  %v2059_v56 = vld [vmem:[#allocation2 + $0x40] sm:$0xf]  ;;  %v2065_v11 = vld [vmem:[#allocation2 + $0x64] sm:$0xf] }
  0xe5   : > { %v1565_v32 = vpop.permute.xlu0 %1564  ;;  %v1851_v44 = vsel %vm10365_vm15, %v9315_v34, %v1850_v6  ;;  %v1860_v6 = vrot.slane %v1702_v52, 5  ;;  %v2058_v38 = vld [vmem:[#allocation2 + $0x3c] sm:$0xf]  ;;  %v2071_v26 = vld [vmem:[#allocation2 + $0x88] sm:$0xf] }
  0xe6   : > { %1652 = vst.msk [vmem:[#allocation3 + $0x54] sm:$0xf] %vm1630_vm14, %v1565_v32  ;;  %v1886_v32 = vsel %vm10365_vm15, %v9320_v59, %v1885_v43  ;;  %v2063_v59 = vld [vmem:[#allocation2 + $0x58] sm:$0xf]  ;;  %v2074_v1 = vld [vmem:[#allocation2 + $0x9c] sm:$0xf] }
  0xe7   : > { %v1557_v42 = vpop.permute.xlu2 %1556  ;;  %1946 = vrot.lane.b32.xlu0 %v1854_v36, %s9732_s10  ;;  %v993_v36 = vld [vmem:[#allocation2 + $0xc0] sm:$0xf]  ;;  %v1861_v50 = vsel %vm10365_vm15, %v1859_v17, %v1860_v6  ;;  %v2068_v17 = vld [vmem:[#allocation2 + $0x78] sm:$0xf]  ;;  %v2078_v54 = vld [vmem:[#allocation2 + $0xb4] sm:$0xf] }
  0xe8   : > { %1648 = vst.msk [vmem:[#allocation3 + $0x44] sm:$0xf] %vm1630_vm14, %v1557_v42  ;;  %v1900_v42 = vsel %vm10365_vm15, %v9322_v19, %v1899_v60  ;;  %v2066_v19 = vld [vmem:[#allocation2 + $0x6c] sm:$0xf]  ;;  %v2081_v20 = vld [vmem:[#allocation2 + $0xc4] sm:$0xf] }
  0xe9   : > { %1926 = vrot.lane.b32.xlu2 %v1819_v33, %s9732_s10  ;;  %1954 = vrot.lane.b32.xlu1 %v1868_v4, %s9732_s10  ;;  %1029 = vst.msk [vmem:[#allocation3 + $0x80] sm:$0xf] %vm430_vm3, %v993_v36  ;;  %v1717_v4 = vld [vmem:[#allocation2 + $0xc8] sm:$0x1] }
  0xea   : > { %v1895_v24 = vrot.slane %v1717_v4, 5 }
  0xec   : > { %v1896_v47 = vsel %vm10365_vm15, %v1894_v46, %v1895_v24 }
  0xed   : > { %v1573_v22 = vpop.permute.xlu1 %1572 }
  0xee   : > { %1656 = vst.msk [vmem:[#allocation3 + $0x64] sm:$0xf] %vm1630_vm14, %v1573_v22 }
  0xef   : > { %1952 = vrot.lane.b32.xlu0 %v1865_v63, %s9732_s10 }
  0xf1   : > { %1932 = vrot.lane.b32.xlu2 %v1830_v58, %s9732_s10  ;;  %1960 = vrot.lane.b32.xlu1 %v1879_v12, %s9732_s10  ;;  %v1872_v58 = vsel %vm10365_vm15, %v9318_v30, %v1871_v16  ;;  %v2054_v12 = vld [vmem:[#allocation2 + $0x24] sm:$0xf]  ;;  %v2053_v16 = vld [vmem:[#allocation2 + $0x1c] sm:$0xf]  ;;  %v2061_v30 = vld [vmem:[#allocation2 + $0x4c] sm:$0xf] }
  0xf2   : > { %v1571_v27 = vpop.permute.xlu0 %1570 }
  0xf3   : > { %1655 = vst.msk [vmem:[#allocation3 + $0x60] sm:$0xf] %vm1630_vm14, %v1571_v27 }
  0xf7   : > { %1958 = vrot.lane.b32.xlu0 %v1875_v39, %s9732_s10  ;;  %v1720_v39 = vld [vmem:[#allocation2 + $0xd4] sm:$0x1] }
  0xf9   : > { %1938 = vrot.lane.b32.xlu2 %v1840_v37, %s9732_s10  ;;  %1966 = vrot.lane.b32.xlu1 %v1889_v7, %s9732_s10  ;;  %v1901_v37 = vrot.slane %v1899_v60, 4  ;;  %v1902_v7 = vrot.slane %v1720_v39, 5 }
  0xfa   : > { %v1579_v61 = vpop.permute.xlu1 %1578  ;;  %v1563_v35 = vpop.permute.xlu2 %1562 }
  0xfb   : > { %1659 = vst.msk [vmem:[#allocation3 + $0x70] sm:$0xf] %vm1630_vm14, %v1579_v61  ;;  %v1903_v45 = vsel %vm10365_vm15, %v1901_v37, %v1902_v7  ;;  %v2062_v61 = vld [vmem:[#allocation2 + $0x54] sm:$0xf]  ;;  %v2273_v37 = vld [vmem:[#allocation2 + $0x24] sm:$0xf] }
  0xfc   : > { %1651 = vst.msk [vmem:[#allocation3 + $0x50] sm:$0xf] %vm1630_vm14, %v1563_v35  ;;  %v2052_v35 = vld [vmem:[#allocation2 + $0x18] sm:$0xf]  ;;  %v2080_v7 = vld [vmem:[#allocation2 + $0xc0] sm:$0xf] }
  0xfd   : > { %v1577_v33 = vpop.permute.xlu0 %1576 }
  0xfe   : > { %1658 = vst.msk [vmem:[#allocation3 + $0x6c] sm:$0xf] %vm1630_vm14, %v1577_v33  ;;  %v362_v33 = vld [vmem:[#allocation2 + $0xd8] sm:$0x1] }
  0xff   : > { %1964 = vrot.lane.b32.xlu0 %v1886_v32, %s9732_s10  ;;  %v363_v4 = vsel %vm9801_vm4, 0, %v362_v33 }
 0x100   : > { %364 = vst [vmem:[#allocation2 + $0xd8] sm:$0x1] %v363_v4  ;;  %v2277_v4 = vld [vmem:[#allocation2 + $0x34] sm:$0xf] }
 0x101   : > { %1944 = vrot.lane.b32.xlu2 %v1851_v44, %s9732_s10  ;;  %1972 = vrot.lane.b32.xlu1 %v1900_v42, %s9732_s10  ;;  %v2055_v44 = vld [vmem:[#allocation2 + $0x28] sm:$0xf]  ;;  %v2069_v42 = vld [vmem:[#allocation2 + $0x7c] sm:$0xf] }
 0x103   : > { %v1569_v13 = vpop.permute.xlu2 %1568 }
 0x104   : > { %1654 = vst.msk [vmem:[#allocation3 + $0x5c] sm:$0xf] %vm1630_vm14, %v1569_v13  ;;  %v2072_v13 = vld [vmem:[#allocation2 + $0x90] sm:$0xf] }
 0x106   : > { %v1585_v63 = vpop.permute.xlu1 %1584 }
 0x107   : > { %1970 = vrot.lane.b32.xlu0 %v1896_v47, %s9732_s10  ;;  %1662 = vst.msk [vmem:[#allocation3 + $0x7c] sm:$0xf] %vm1630_vm14, %v1585_v63  ;;  %v947_v6 = vld [vmem:[#allocation2 + $0xd8] sm:$0xf] }
 0x108   : > { %v948_v47 = vsel %vm9854_vm9, 0, %v947_v6 }
 0x109   : > { %1950 = vrot.lane.b32.xlu2 %v1861_v50, %s9732_s10  ;;  %2124 = vrot.lane.b32.xlu1 %v2051_v40, %s9733_s11  ;;  %949 = vst [vmem:[#allocation2 + $0xd8] sm:$0xf] %v948_v47  ;;  %v2073_v47 = vld [vmem:[#allocation2 + $0x94] sm:$0xf] }
 0x10b   : > { %v1575_v22 = vpop.permute.xlu2 %1574 }
 0x10c   : > { %1657 = vst.msk [vmem:[#allocation3 + $0x68] sm:$0xf] %vm1630_vm14, %v1575_v22  ;;  %v2075_v22 = vld [vmem:[#allocation2 + $0xa0] sm:$0xf] }
 0x10f   : > { %2122 = vrot.lane.b32.xlu0 %v2050_v5, %s9733_s11 }
 0x111   : > { %v1583_v43 = vpop.permute.xlu0 %1582  ;;  %1956 = vrot.lane.b32.xlu2 %v1872_v58, %s9732_s10  ;;  %2130 = vrot.lane.b32.xlu1 %v2054_v12, %s9733_s11 }
 0x112   : > { %1661 = vst.msk [vmem:[#allocation3 + $0x78] sm:$0xf] %vm1630_vm14, %v1583_v43  ;;  %v2064_v43 = vld [vmem:[#allocation2 + $0x60] sm:$0xf] }
 0x113   : > { %v1581_v49 = vpop.permute.xlu2 %1580  ;;  %v1591_v41 = vpop.permute.xlu1 %1590 }
 0x114   : > { %1660 = vst.msk [vmem:[#allocation3 + $0x74] sm:$0xf] %vm1630_vm14, %v1581_v49  ;;  %v2268_v49 = vld [vmem:[#allocation2 + $0x10] sm:$0xf] }
 0x115   : > { %1665 = vst.msk [vmem:[#allocation3 + $0x88] sm:$0xf] %vm1630_vm14, %v1591_v41  ;;  %v2335_v25 = vshrl.u32 %v2268_v49, 16 }
 0x117   : > { %2128 = vrot.lane.b32.xlu0 %v2053_v16, %s9733_s11 }
 0x119   : > { %v1589_v14 = vpop.permute.xlu0 %1588  ;;  %1962 = vrot.lane.b32.xlu2 %v1882_v62, %s9732_s10  ;;  %2136 = vrot.lane.b32.xlu1 %v2057_v29, %s9733_s11  ;;  %v2077_v62 = vld [vmem:[#allocation2 + $0xac] sm:$0xf]  ;;  %v2331_v29 = vshll.u32 %v2268_v49, 16 }
 0x11a   : > { %1664 = vst.msk [vmem:[#allocation3 + $0x84] sm:$0xf] %vm1630_vm14, %v1589_v14  ;;  %v2067_v14 = vld [vmem:[#allocation2 + $0x70] sm:$0xf] }
 0x11b   : > { %v1587_v51 = vpop.permute.xlu2 %1586  ;;  %v1907_v27 = vpop.permute.xlu1 %1906 }
 0x11c   : > { %1663 = vst.msk [vmem:[#allocation3 + $0x80] sm:$0xf] %vm1630_vm14, %v1587_v51 }
 0x11d   : > { %2014 = vst.msk [vmem:[#allocation3 + $0x4] sm:$0xf] %vm2012_vm1, %v1907_v27  ;;  %v2267_v27 = vld [vmem:[#allocation2 + $0xc] sm:$0xf] }
 0x11f   : > { %2134 = vrot.lane.b32.xlu0 %v2056_v53, %s9733_s11  ;;  %v10732_v53 = vrot.slane %v2331_v29, 5 }
 0x121   : > { %v1905_v21 = vpop.permute.xlu0 %1904  ;;  %1968 = vrot.lane.b32.xlu2 %v1893_v55, %s9732_s10  ;;  %2142 = vrot.lane.b32.xlu1 %v2060_v8, %s9733_s11  ;;  %v2337_v55 = vrot.slane %v2335_v25, 4  ;;  %v2269_v8 = vld [vmem:[#allocation2 + $0x14] sm:$0x1]  ;;  %v2282_v25 = vld [vmem:[#allocation2 + $0x48] sm:$0xf] }
 0x122   : > { %2013 = vst.msk [vmem:[#allocation3] sm:$0xf] %vm2012_vm1, %v1905_v21 }
 0x123   : > { %v1593_v9 = vpop.permute.xlu2 %1592  ;;  %v1913_v10 = vpop.permute.xlu1 %1912 }
 0x124   : > { %1666 = vst.msk [vmem:[#allocation3 + $0x8c] sm:$0xf] %vm1630_vm14, %v1593_v9  ;;  %v2322_v9 = vshrl.u32 %v2267_v27, 16 }
 0x125   : > { %2017 = vst.msk [vmem:[#allocation3 + $0x10] sm:$0xf] %vm2012_vm1, %v1913_v10  ;;  %v2325_v10 = vshll.u32 %v2267_v27, 16 }
 0x127   : > { %2140 = vrot.lane.b32.xlu0 %v2059_v56, %s9733_s11  ;;  %v2338_v56 = vor.u32 %v2337_v55, %v10732_v53 }
 0x129   : > { %v1911_v34 = vpop.permute.xlu0 %1910  ;;  %1974 = vrot.lane.b32.xlu2 %v1903_v45, %s9732_s10  ;;  %2148 = vrot.lane.b32.xlu1 %v2063_v59, %s9733_s11  ;;  %v2341_v45 = vshll.u32 %v2269_v8, 16  ;;  %v2070_v59 = vld [vmem:[#allocation2 + $0x84] sm:$0xf] }
 0x12a   : > { %2016 = vst.msk [vmem:[#allocation3 + $0xc] sm:$0xf] %vm2012_vm1, %v1911_v34  ;;  %v2084_v34 = vld [vmem:[#allocation2 + $0xd8] sm:$0xf] }
 0x12b   : > { %v1909_v48 = vpop.permute.xlu2 %1908  ;;  %v1919_v15 = vpop.permute.xlu1 %1918 }
 0x12c   : > { %2015 = vst.msk [vmem:[#allocation3 + $0x8] sm:$0xf] %vm2012_vm1, %v1909_v48  ;;  %v2370_v48 = vshrl.u32 %v2273_v37, 16 }
 0x12d   : > { %2020 = vst.msk [vmem:[#allocation3 + $0x1c] sm:$0xf] %vm2012_vm1, %v1919_v15  ;;  %v2373_v15 = vshll.u32 %v2273_v37, 16 }
 0x12f   : > { %2146 = vrot.lane.b32.xlu0 %v2062_v61, %s9733_s11  ;;  %v2324_v61 = vrot.slane %v2322_v9, 4  ;;  %v2375_v33 = vrot.slane %v2373_v15, 5  ;;  %v2445_v9 = vshll.u32 %v2282_v25, 16 }
 0x131   : > { %v1917_v60 = vpop.permute.xlu0 %1916  ;;  %2126 = vrot.lane.b32.xlu2 %v2052_v35, %s9733_s11  ;;  %2154 = vrot.lane.b32.xlu1 %v2066_v19, %s9733_s11  ;;  %v2327_v35 = vrot.slane %v2325_v10, 5 }
 0x132   : > { %2019 = vst.msk [vmem:[#allocation3 + $0x18] sm:$0xf] %vm2012_vm1, %v1917_v60  ;;  %v2339_v60 = vrot.slane %v2338_v56, 4 }
 0x133   : > { %v1915_v36 = vpop.permute.xlu2 %1914  ;;  %v1925_v32 = vpop.permute.xlu1 %1924 }
 0x134   : > { %2018 = vst.msk [vmem:[#allocation3 + $0x14] sm:$0xf] %vm2012_vm1, %v1915_v36  ;;  %v2343_v36 = vrot.slane %v2341_v45, 5 }
 0x135   : > { %2023 = vst.msk [vmem:[#allocation3 + $0x28] sm:$0xf] %vm2012_vm1, %v1925_v32  ;;  %v2271_v32 = vld [vmem:[#allocation2 + $0x1c] sm:$0xf] }
 0x136   : > { %v2359_v6 = vshrl.u32 %v2271_v32, 16 }
 0x137   : > { %2152 = vrot.lane.b32.xlu0 %v2065_v11, %s9733_s11  ;;  %v2372_v11 = vrot.slane %v2370_v48, 4  ;;  %v2280_v48 = vld [vmem:[#allocation2 + $0x40] sm:$0xf] }
 0x139   : > { %v1923_v52 = vpop.permute.xlu0 %1922  ;;  %2132 = vrot.lane.b32.xlu2 %v2055_v44, %s9733_s11  ;;  %2160 = vrot.lane.b32.xlu1 %v2069_v42, %s9733_s11 }
 0x13a   : > { %2022 = vst.msk [vmem:[#allocation3 + $0x24] sm:$0xf] %vm2012_vm1, %v1923_v52  ;;  %v10742_v52 = vld [vmem:[#allocation2 + $0x28] sm:$0xf] }
 0x13b   : > { %v1921_v46 = vpop.permute.xlu2 %1920  ;;  %v1931_v24 = vpop.permute.xlu1 %1930 }
 0x13c   : > { %2021 = vst.msk [vmem:[#allocation3 + $0x20] sm:$0xf] %vm2012_vm1, %v1921_v46  ;;  %v2083_v46 = vld [vmem:[#allocation2 + $0xd0] sm:$0xf] }
 0x13d   : > { %2026 = vst.msk [vmem:[#allocation3 + $0x34] sm:$0xf] %vm2012_vm1, %v1931_v24  ;;  %v2328_v24 = vor.u32 %v2327_v35, %v2324_v61  ;;  %v2447_v61 = vrot.slane %v2445_v9, 5 }
 0x13f   : > { %2158 = vrot.lane.b32.xlu0 %v2068_v17, %s9733_s11  ;;  %v2355_v17 = vshll.u32 %v2271_v32, 16 }
 0x141   : > { %v1929_v50 = vpop.permute.xlu0 %1928  ;;  %2138 = vrot.lane.b32.xlu2 %v2058_v38, %s9733_s11  ;;  %2166 = vrot.lane.b32.xlu1 %v2072_v13, %s9733_s11  ;;  %v2403_v38 = vshll.u32 %v2277_v4, 16  ;;  %v2407_v13 = vshrl.u32 %v2277_v4, 16 }
 0x142   : > { %2025 = vst.msk [vmem:[#allocation3 + $0x30] sm:$0xf] %vm2012_vm1, %v1929_v50  ;;  %v2344_v50 = vsel %vm9894_vm11, %v2339_v60, %v2343_v36  ;;  %v10773_v60 = vld [vmem:[#allocation2 + $0x4c] sm:$0xf]  ;;  %v2286_v36 = vld [vmem:[#allocation2 + $0x58] sm:$0xf] }
 0x143   : > { %v1927_v40 = vpop.permute.xlu2 %1926  ;;  %v1937_v63 = vpop.permute.xlu1 %1936 }
 0x144   : > { %2024 = vst.msk [vmem:[#allocation3 + $0x2c] sm:$0xf] %vm2012_vm1, %v1927_v40  ;;  %v2376_v40 = vor.u32 %v2375_v33, %v2372_v11  ;;  %v2427_v11 = vshll.u32 %v2280_v48, 16  ;;  %v2431_v33 = vshrl.u32 %v2280_v48, 16  ;;  %v10805_v48 = vld [vmem:[#allocation2 + $0x70] sm:$0xf] }
 0x145   : > { %2029 = vst.msk [vmem:[#allocation3 + $0x40] sm:$0xf] %vm2012_vm1, %v1937_v63  ;;  %v2379_v63 = vshll.u32 %v10742_v52, 16 }
 0x146   : > { %v2377_v49 = vrot.slane %v2376_v40, 4 }
 0x147   : > { %2164 = vrot.lane.b32.xlu0 %v2071_v26, %s9733_s11  ;;  %v2276_v26 = vld [vmem:[#allocation2 + $0x30] sm:$0xf] }
 0x149   : > { %v1935_v5 = vpop.permute.xlu0 %1934  ;;  %2144 = vrot.lane.b32.xlu2 %v2061_v30, %s9733_s11  ;;  %2172 = vrot.lane.b32.xlu1 %v2075_v22, %s9733_s11  ;;  %v2329_v30 = vrot.slane %v2328_v24, 4  ;;  %v10750_v22 = vrot.slane %v2355_v17, 5  ;;  %v2451_v24 = vshll.u32 %v10773_v60, 16  ;;  %v2475_v17 = vshll.u32 %v2286_v36, 16 }
 0x14a   : > { %2028 = vst.msk [vmem:[#allocation3 + $0x3c] sm:$0xf] %vm2012_vm1, %v1935_v5  ;;  %v2361_v5 = vrot.slane %v2359_v6, 4  ;;  %v2479_v6 = vshrl.u32 %v2286_v36, 16 }
 0x14b   : > { %v1933_v58 = vpop.permute.xlu2 %1932  ;;  %v1943_v12 = vpop.permute.xlu1 %1942 }
 0x14c   : > { %2027 = vst.msk [vmem:[#allocation3 + $0x38] sm:$0xf] %vm2012_vm1, %v1933_v58 }
 0x14d   : > { %2032 = vst.msk [vmem:[#allocation3 + $0x4c] sm:$0xf] %vm2012_vm1, %v1943_v12  ;;  %v2272_v12 = vld [vmem:[#allocation2 + $0x20] sm:$0x1] }
 0x14f   : > { %2170 = vrot.lane.b32.xlu0 %v2074_v1, %s9733_s11  ;;  %v2394_v1 = vshrl.u32 %v2276_v26, 16 }
 0x151   : > { %v1941_v28 = vpop.permute.xlu0 %1940  ;;  %2150 = vrot.lane.b32.xlu2 %v2064_v43, %s9733_s11  ;;  %2178 = vrot.lane.b32.xlu1 %v2078_v54, %s9733_s11  ;;  %v2397_v43 = vshll.u32 %v2276_v26, 16  ;;  %v10754_v54 = vrot.slane %v2403_v38, 5  ;;  %v2396_v27 = vrot.slane %v2394_v1, 4  ;;  %v10783_v38 = vrot.slane %v2427_v11, 5  ;;  %v2281_v26 = vld [vmem:[#allocation2 + $0x44] sm:$0x1] }
 0x152   : > { %2031 = vst.msk [vmem:[#allocation3 + $0x48] sm:$0xf] %vm2012_vm1, %v1941_v28  ;;  %v2409_v28 = vrot.slane %v2407_v13, 4  ;;  %v2433_v13 = vrot.slane %v2431_v33, 4  ;;  %v2481_v1 = vrot.slane %v2479_v6, 4 }
 0x153   : > { %v1939_v41 = vpop.permute.xlu2 %1938  ;;  %v1949_v16 = vpop.permute.xlu1 %1948  ;;  %v2399_v55 = vrot.slane %v2397_v43, 5 }
 0x154   : > { %2030 = vst.msk [vmem:[#allocation3 + $0x44] sm:$0xf] %vm2012_vm1, %v1939_v41  ;;  %v10757_v41 = vrot.slane %v2379_v63, 5  ;;  %v2410_v8 = vor.u32 %v2409_v28, %v10754_v54 }
 0x155   : > { %2035 = vst.msk [vmem:[#allocation3 + $0x58] sm:$0xf] %vm2012_vm1, %v1949_v16  ;;  %v2278_v16 = vld [vmem:[#allocation2 + $0x38] sm:$0x1]  ;;  %v2400_v45 = vor.u32 %v2399_v55, %v2396_v27  ;;  %v2082_v27 = vld [vmem:[#allocation2 + $0xcc] sm:$0xf] }
 0x156   : > { %v2382_v37 = vsel %vm9894_vm11, %v2377_v49, %v10757_v41 }
 0x157   : > { %2176 = vrot.lane.b32.xlu0 %v2077_v62, %s9733_s11  ;;  %v2401_v4 = vrot.slane %v2400_v45, 4 }
 0x159   : > { %v1947_v51 = vpop.permute.xlu0 %1946  ;;  %2156 = vrot.lane.b32.xlu2 %v2067_v14, %s9733_s11  ;;  %2184 = vrot.lane.b32.xlu1 %v2081_v20, %s9733_s11  ;;  %v2334_v14 = vsel %vm9894_vm11, %v2329_v30, %v10732_v53  ;;  %v2362_v20 = vor.u32 %v2361_v5, %v10750_v22  ;;  %v2406_v63 = vsel %vm9894_vm11, %v2401_v4, %v10754_v54  ;;  %v2291_v30 = vld [vmem:[#allocation2 + $0x6c] sm:$0xf]  ;;  %v2295_v4 = vld [vmem:[#allocation2 + $0x7c] sm:$0xf] }
 0x15a   : > { %2034 = vst.msk [vmem:[#allocation3 + $0x54] sm:$0xf] %vm2012_vm1, %v1947_v51  ;;  %v2365_v51 = vshll.u32 %v2272_v12, 16  ;;  %v10793_v12 = vrot.slane %v2475_v17, 5  ;;  %v2085_v17 = vld [vmem:[#allocation2 + $0xdc] sm:$0xf] }
 0x15b   : > { %v1945_v39 = vpop.permute.xlu2 %1944  ;;  %v1955_v21 = vpop.permute.xlu1 %1954  ;;  %v2363_v53 = vrot.slane %v2362_v20, 4  ;;  %v2514_v20 = vshrl.u32 %v2291_v30, 16 }
 0x15c   : > { %2033 = vst.msk [vmem:[#allocation3 + $0x50] sm:$0xf] %vm2012_vm1, %v1945_v39  ;;  %v2413_v39 = vshll.u32 %v2278_v16, 16  ;;  %v2367_v10 = vrot.slane %v2365_v51, 5  ;;  %v2517_v51 = vshll.u32 %v2291_v30, 16 }
 0x15d   : > { %2038 = vst.msk [vmem:[#allocation3 + $0x64] sm:$0xf] %vm2012_vm1, %v1955_v21  ;;  %v2076_v21 = vld [vmem:[#allocation2 + $0xa8] sm:$0xf]  ;;  %v2516_v45 = vrot.slane %v2514_v20, 4 }
 0x15e   : > { %v2368_v32 = vsel %vm9894_vm11, %v2363_v53, %v2367_v10  ;;  %v2290_v30 = vld [vmem:[#allocation2 + $0x68] sm:$0x1] }
 0x15f   : > { %2182 = vrot.lane.b32.xlu0 %v2080_v7, %s9733_s11  ;;  %v2442_v7 = vshrl.u32 %v2282_v25, 16  ;;  %v2434_v25 = vor.u32 %v2433_v13, %v10783_v38  ;;  %v2294_v13 = vld [vmem:[#allocation2 + $0x78] sm:$0xf] }
 0x161   : > { %v1953_v19 = vpop.permute.xlu0 %1952  ;;  %2162 = vrot.lane.b32.xlu2 %v2070_v59, %s9733_s11  ;;  %2190 = vrot.lane.b32.xlu1 %v2084_v34, %s9733_s11  ;;  %v2411_v59 = vrot.slane %v2410_v8, 4  ;;  %v2415_v34 = vrot.slane %v2413_v39, 5  ;;  %v2444_v15 = vrot.slane %v2442_v7, 4  ;;  %v2482_v8 = vor.u32 %v2481_v1, %v10793_v12 }
 0x162   : > { %2037 = vst.msk [vmem:[#allocation3 + $0x60] sm:$0xf] %vm2012_vm1, %v1953_v19  ;;  %v2435_v53 = vrot.slane %v2434_v25, 4 }
 0x163   : > { %v1951_v44 = vpop.permute.xlu2 %1950  ;;  %v1961_v42 = vpop.permute.xlu1 %1960 }
 0x164   : > { %2036 = vst.msk [vmem:[#allocation3 + $0x5c] sm:$0xf] %vm2012_vm1, %v1951_v44  ;;  %v2416_v44 = vsel %vm9894_vm11, %v2411_v59, %v2415_v34  ;;  %v2519_v59 = vrot.slane %v2517_v51, 5 }
 0x165   : > { %2041 = vst.msk [vmem:[#allocation3 + $0x70] sm:$0xf] %vm2012_vm1, %v1961_v42  ;;  %v2079_v42 = vld [vmem:[#allocation2 + $0xb8] sm:$0xf] }
 0x167   : > { %2188 = vrot.lane.b32.xlu0 %v2083_v46, %s9733_s11  ;;  %v2448_v46 = vor.u32 %v2447_v61, %v2444_v15  ;;  %v2483_v15 = vrot.slane %v2482_v8, 4 }
 0x169   : > { %v1959_v58 = vpop.permute.xlu0 %1958  ;;  %2168 = vrot.lane.b32.xlu2 %v2073_v47, %s9733_s11  ;;  %2755 = vrot.lane.b32.xlu1 %v2344_v50, %s9734_s12  ;;  %v2285_v47 = vld [vmem:[#allocation2 + $0x54] sm:$0xf]  ;;  %v2270_v50 = vld [vmem:[#allocation2 + $0x18] sm:$0xf]  ;;  %v2449_v5 = vrot.slane %v2448_v46, 4  ;;  %v2520_v46 = vor.u32 %v2519_v59, %v2516_v45 }
 0x16a   : > { %2040 = vst.msk [vmem:[#allocation3 + $0x6c] sm:$0xf] %vm2012_vm1, %v1959_v58  ;;  %v10791_v58 = vrot.slane %v2451_v24, 5  ;;  %v2466_v49 = vshrl.u32 %v2285_v47, 16  ;;  %v2469_v16 = vshll.u32 %v2285_v47, 16  ;;  %v2349_v54 = vshll.u32 %v2270_v50, 16 }
 0x16b   : > { %v1957_v62 = vpop.permute.xlu2 %1956  ;;  %v1967_v29 = vpop.permute.xlu1 %1966  ;;  %v2523_v24 = vshll.u32 %v10805_v48, 16  ;;  %v2547_v47 = vshll.u32 %v2295_v4, 16 }
 0x16c   : > { %2039 = vst.msk [vmem:[#allocation3 + $0x68] sm:$0xf] %vm2012_vm1, %v1957_v62  ;;  %v2287_v62 = vld [vmem:[#allocation2 + $0x5c] sm:$0x1]  ;;  %v2454_v55 = vsel %vm9894_vm11, %v2449_v5, %v10791_v58  ;;  %v2351_v9 = vrot.slane %v2349_v54, 5  ;;  %v2521_v5 = vrot.slane %v2520_v46, 4 }
 0x16d   : > { %2044 = vst.msk [vmem:[#allocation3 + $0x7c] sm:$0xf] %vm2012_vm1, %v1967_v29  ;;  %v2346_v29 = vshrl.u32 %v2270_v50, 16  ;;  %v2485_v39 = vshll.u32 %v2287_v62, 16  ;;  %v2551_v50 = vshrl.u32 %v2295_v4, 16  ;;  %v10819_v1 = vrot.slane %v2523_v24, 5 }
 0x16e   : > { %v2541_v62 = vshll.u32 %v2294_v13, 16  ;;  %v10824_v54 = vrot.slane %v2547_v47, 5  ;;  %v10844_v24 = vld [vmem:[#allocation2 + $0x94] sm:$0xf] }
 0x16f   : > { %2753 = vrot.lane.b32.xlu0 %v2334_v14, %s9734_s12  ;;  %v2437_v14 = vshll.u32 %v2281_v26, 16  ;;  %v2348_v7 = vrot.slane %v2346_v29, 4  ;;  %v2487_v61 = vrot.slane %v2485_v39, 5  ;;  %v2279_v29 = vld [vmem:[#allocation2 + $0x3c] sm:$0xf]  ;;  %v2553_v25 = vrot.slane %v2551_v50, 4 }
 0x170   : > { %v2296_v39 = vld [vmem:[#allocation2 + $0x80] sm:$0x1]  ;;  %v2543_v45 = vrot.slane %v2541_v62, 5 }
 0x171   : > { %v1965_v56 = vpop.permute.xlu0 %1964  ;;  %2174 = vrot.lane.b32.xlu2 %v2076_v21, %s9733_s11  ;;  %2761 = vrot.lane.b32.xlu1 %v2382_v37, %s9734_s12  ;;  %v2468_v21 = vrot.slane %v2466_v49, 4  ;;  %v2471_v37 = vrot.slane %v2469_v16, 5  ;;  %v2439_v10 = vrot.slane %v2437_v14, 5  ;;  %v2488_v6 = vsel %vm9894_vm11, %v2483_v15, %v2487_v61  ;;  %v2275_v49 = vld [vmem:[#allocation2 + $0x2c] sm:$0x1] }
 0x172   : > { %2043 = vst.msk [vmem:[#allocation3 + $0x78] sm:$0xf] %vm2012_vm1, %v1965_v56  ;;  %v2289_v56 = vld [vmem:[#allocation2 + $0x64] sm:$0xf]  ;;  %v2538_v16 = vshrl.u32 %v2294_v13, 16  ;;  %v2554_v59 = vor.u32 %v2553_v25, %v10824_v54 }
 0x173   : > { %v1963_v35 = vpop.permute.xlu2 %1962  ;;  %v1973_v19 = vpop.permute.xlu1 %1972  ;;  %v2472_v36 = vor.u32 %v2471_v37, %v2468_v21  ;;  %v2499_v11 = vshll.u32 %v2289_v56, 16  ;;  %v2503_v33 = vshrl.u32 %v2289_v56, 16  ;;  %v2300_v14 = vld [vmem:[#allocation2 + $0x90] sm:$0xf]  ;;  %v2509_v21 = vshll.u32 %v2290_v30, 16 }
 0x174   : > { %2042 = vst.msk [vmem:[#allocation3 + $0x74] sm:$0xf] %vm2012_vm1, %v1963_v35  ;;  %v2589_v56 = vshll.u32 %v2300_v14, 16  ;;  %v2304_v50 = vld [vmem:[#allocation2 + $0xa0] sm:$0xf] }
 0x175   : > { %2047 = vst.msk [vmem:[#allocation3 + $0x88] sm:$0xf] %vm2012_vm1, %v1973_v19  ;;  %v2505_v26 = vrot.slane %v2503_v33, 4 }
 0x176   : > { %v2591_v4 = vrot.slane %v2589_v56, 5 }
 0x177   : > { %2759 = vrot.lane.b32.xlu0 %v2368_v32, %s9734_s12  ;;  %v2352_v32 = vor.u32 %v2351_v9, %v2348_v7  ;;  %v2418_v7 = vshrl.u32 %v2279_v29, 16  ;;  %v2421_v9 = vshll.u32 %v2279_v29, 16 }
 0x179   : > { %v1971_v40 = vpop.permute.xlu0 %1970  ;;  %2180 = vrot.lane.b32.xlu2 %v2079_v42, %s9733_s11  ;;  %2767 = vrot.lane.b32.xlu1 %v2416_v44, %s9734_s12  ;;  %v2383_v44 = vshrl.u32 %v10742_v52, 16  ;;  %v2440_v42 = vsel %vm9894_vm11, %v2435_v53, %v2439_v10  ;;  %v2473_v52 = vrot.slane %v2472_v36, 4  ;;  %v2389_v53 = vshll.u32 %v2275_v49, 16 }
 0x17a   : > { %2046 = vst.msk [vmem:[#allocation3 + $0x84] sm:$0xf] %vm2012_vm1, %v1971_v40  ;;  %v2353_v40 = vrot.slane %v2352_v32, 4  ;;  %v2586_v10 = vshrl.u32 %v2300_v14, 16  ;;  %v2420_v61 = vrot.slane %v2418_v7, 4 }
 0x17b   : > { %v1969_v43 = vpop.permute.xlu2 %1968  ;;  %v2125_v28 = vpop.permute.xlu1 %2124  ;;  %v2478_v51 = vsel %vm9894_vm11, %v2473_v52, %v10793_v12  ;;  %v2526_v12 = vsel %vm9894_vm11, %v2521_v5, %v10819_v1  ;;  %v2455_v52 = vshrl.u32 %v10773_v60, 16  ;;  %v2623_v60 = vshrl.u32 %v2304_v50, 16  ;;  %v2299_v14 = vld [vmem:[#allocation2 + $0x8c] sm:$0x1]  ;;  %v2284_v7 = vld [vmem:[#allocation2 + $0x50] sm:$0x1] }
 0x17c   : > { %2045 = vst.msk [vmem:[#allocation3 + $0x80] sm:$0xf] %vm2012_vm1, %v1969_v43  ;;  %v2385_v43 = vrot.slane %v2383_v44, 4  ;;  %v2588_v33 = vrot.slane %v2586_v10, 4 }
 0x17d   : > { %2232 = vst.msk [vmem:[#allocation3 + $0x4] sm:$0xf] %vm2230_vm2, %v2125_v28 }
 0x17e   : > { %v2386_v37 = vor.u32 %v2385_v43, %v10757_v41  ;;  %v2511_v41 = vrot.slane %v2509_v21, 5  ;;  %v2592_v5 = vor.u32 %v2591_v4, %v2588_v33  ;;  %v2595_v43 = vshll.u32 %v10844_v24, 16  ;;  %v2309_v21 = vld [vmem:[#allocation2 + $0xb4] sm:$0xf] }
 0x17f   : > { %2765 = vrot.lane.b32.xlu0 %v2406_v63, %s9734_s12  ;;  %v10817_v63 = vrot.slane %v2499_v11, 5  ;;  %v2391_v11 = vrot.slane %v2389_v53, 5 }
 0x180   : > { %v2387_v32 = vrot.slane %v2386_v37, 4 }
 0x181   : > { %v2123_v34 = vpop.permute.xlu0 %2122  ;;  %2186 = vrot.lane.b32.xlu2 %v2082_v27, %s9733_s11  ;;  %2773 = vrot.lane.b32.xlu1 %v2454_v55, %s9734_s12  ;;  %v2358_v55 = vsel %vm9894_vm11, %v2353_v40, %v10750_v22  ;;  %v2506_v8 = vor.u32 %v2505_v26, %v10817_v63  ;;  %v2540_v22 = vrot.slane %v2538_v16, 4  ;;  %v2619_v16 = vshll.u32 %v2304_v50, 16 }
 0x182   : > { %2231 = vst.msk [vmem:[#allocation3] sm:$0xf] %vm2230_vm2, %v2123_v34  ;;  %v2557_v34 = vshll.u32 %v2296_v39, 16  ;;  %v2392_v30 = vsel %vm9894_vm11, %v2387_v32, %v2391_v11  ;;  %v2288_v39 = vld [vmem:[#allocation2 + $0x60] sm:$0xf] }
 0x183   : > { %v1975_v35 = vpop.permute.xlu2 %1974  ;;  %v2131_v19 = vpop.permute.xlu1 %2130  ;;  %v2507_v15 = vrot.slane %v2506_v8, 4  ;;  %v2544_v44 = vor.u32 %v2543_v45, %v2540_v22  ;;  %v10861_v8 = vrot.slane %v2595_v43, 5  ;;  %v2581_v22 = vshll.u32 %v2299_v14, 16 }
 0x184   : > { %2048 = vst.msk [vmem:[#allocation3 + $0x8c] sm:$0xf] %vm2012_vm1, %v1975_v35  ;;  %v2423_v35 = vrot.slane %v2421_v9, 5  ;;  %v2559_v46 = vrot.slane %v2557_v34, 5  ;;  %v10867_v9 = vrot.slane %v2619_v16, 5  ;;  %v2527_v43 = vshrl.u32 %v10805_v48, 16 }
 0x185   : > { %2235 = vst.msk [vmem:[#allocation3 + $0x10] sm:$0xf] %vm2230_vm2, %v2131_v19  ;;  %v2298_v19 = vld [vmem:[#allocation2 + $0x88] sm:$0xf]  ;;  %v2512_v40 = vsel %vm9894_vm11, %v2507_v15, %v2511_v41  ;;  %v2305_v34 = vld [vmem:[#allocation2 + $0xa4] sm:$0x1] }
 0x186   : > { %v2571_v13 = vshll.u32 %v2298_v19, 16  ;;  %v2575_v47 = vshrl.u32 %v2298_v19, 16  ;;  %v2424_v26 = vor.u32 %v2423_v35, %v2420_v61  ;;  %v2490_v15 = vshrl.u32 %v2288_v39, 16 }
 0x187   : > { %2771 = vrot.lane.b32.xlu0 %v2440_v42, %s9734_s12  ;;  %v2555_v42 = vrot.slane %v2554_v59, 4  ;;  %v2493_v41 = vshll.u32 %v2288_v39, 16  ;;  %v2658_v61 = vshrl.u32 %v2309_v21, 16  ;;  %v2661_v35 = vshll.u32 %v2309_v21, 16 }
 0x188   : > { %v10857_v62 = vrot.slane %v2571_v13, 5  ;;  %v2577_v29 = vrot.slane %v2575_v47, 4  ;;  %v2425_v25 = vrot.slane %v2424_v26, 4  ;;  %v2461_v19 = vshll.u32 %v2284_v7, 16 }
 0x189   : > { %v2129_v28 = vpop.permute.xlu0 %2128  ;;  %2192 = vrot.lane.b32.xlu2 %v2085_v17, %s9733_s11  ;;  %2779 = vrot.lane.b32.xlu1 %v2488_v6, %s9734_s12  ;;  %v2560_v49 = vsel %vm9894_vm11, %v2555_v42, %v2559_v46  ;;  %v2629_v33 = vshll.u32 %v2305_v34, 16  ;;  %v2660_v13 = vrot.slane %v2658_v61, 4  ;;  %v2663_v47 = vrot.slane %v2661_v35, 5  ;;  %v2312_v34 = vld [vmem:[#allocation2 + $0xc0] sm:$0xf] }
 0x18a   : > { %2234 = vst.msk [vmem:[#allocation3 + $0xc] sm:$0xf] %vm2230_vm2, %v2129_v28  ;;  %v2545_v28 = vrot.slane %v2544_v44, 4  ;;  %v2578_v56 = vor.u32 %v2577_v29, %v10857_v62  ;;  %v2583_v44 = vrot.slane %v2581_v22, 5  ;;  %v2529_v22 = vrot.slane %v2527_v43, 4 }
 0x18b   : > { %v2127_v20 = vpop.permute.xlu2 %2126  ;;  %v2137_v27 = vpop.permute.xlu1 %2136  ;;  %v2314_v61 = vld [vmem:[#allocation2 + $0xc8] sm:$0x1]  ;;  %v2297_v35 = vld [vmem:[#allocation2 + $0x84] sm:$0xf] }
 0x18c   : > { %2233 = vst.msk [vmem:[#allocation3 + $0x8] sm:$0xf] %vm2230_vm2, %v2127_v20  ;;  %v2457_v20 = vrot.slane %v2455_v52, 4  ;;  %v2550_v37 = vsel %vm9894_vm11, %v2545_v28, %v10824_v54  ;;  %v2579_v4 = vrot.slane %v2578_v56, 4  ;;  %v2463_v52 = vrot.slane %v2461_v19, 5 }
 0x18d   : > { %2238 = vst.msk [vmem:[#allocation3 + $0x1c] sm:$0xf] %vm2230_vm2, %v2137_v27 }
 0x18e   : > { %v2458_v54 = vor.u32 %v2457_v20, %v10791_v58  ;;  %v2495_v58 = vrot.slane %v2493_v41, 5  ;;  %v2664_v20 = vor.u32 %v2663_v47, %v2660_v13  ;;  %v2565_v13 = vshll.u32 %v2297_v35, 16 }
 0x18f   : > { %2777 = vrot.lane.b32.xlu0 %v2478_v51, %s9734_s12  ;;  %v2303_v51 = vld [vmem:[#allocation2 + $0x9c] sm:$0xf] }
 0x190   : > { %v2610_v45 = vshrl.u32 %v2303_v51, 16  ;;  %v2613_v59 = vshll.u32 %v2303_v51, 16 }
 0x191   : > { %v2135_v36 = vpop.permute.xlu0 %2134  ;;  %2757 = vrot.lane.b32.xlu2 %v2358_v55, %s9734_s12  ;;  %2785 = vrot.lane.b32.xlu1 %v2526_v12, %s9734_s12  ;;  %v2593_v55 = vrot.slane %v2592_v5, 4  ;;  %v2625_v12 = vrot.slane %v2623_v60, 4  ;;  %v2313_v5 = vld [vmem:[#allocation2 + $0xc4] sm:$0xf] }
 0x192   : > { %2237 = vst.msk [vmem:[#allocation3 + $0x18] sm:$0xf] %vm2230_vm2, %v2135_v36  ;;  %v2430_v36 = vsel %vm9894_vm11, %v2425_v25, %v10783_v38  ;;  %v2612_v42 = vrot.slane %v2610_v45, 4  ;;  %v2615_v46 = vrot.slane %v2613_v59, 5  ;;  %v2459_v38 = vrot.slane %v2458_v54, 4 }
 0x193   : > { %v2133_v17 = vpop.permute.xlu2 %2132  ;;  %v2143_v6 = vpop.permute.xlu1 %2142  ;;  %v2598_v32 = vsel %vm9894_vm11, %v2593_v55, %v10861_v8  ;;  %v2626_v11 = vor.u32 %v2625_v12, %v10867_v9  ;;  %v2584_v25 = vsel %vm9894_vm11, %v2579_v4, %v2583_v44  ;;  %v2695_v55 = vshrl.u32 %v2313_v5, 16  ;;  %v2293_v59 = vld [vmem:[#allocation2 + $0x74] sm:$0x1] }
 0x194   : > { %2236 = vst.msk [vmem:[#allocation3 + $0x14] sm:$0xf] %vm2230_vm2, %v2133_v17  ;;  %v2492_v17 = vrot.slane %v2490_v15, 4  ;;  %v2616_v16 = vor.u32 %v2615_v46, %v2612_v42  ;;  %v2464_v48 = vsel %vm9894_vm11, %v2459_v38, %v2463_v52  ;;  %v2530_v4 = vor.u32 %v2529_v22, %v10819_v1 }
 0x195   : > { %2241 = vst.msk [vmem:[#allocation3 + $0x28] sm:$0xf] %vm2230_vm2, %v2143_v6  ;;  %v2307_v6 = vld [vmem:[#allocation2 + $0xac] sm:$0xf]  ;;  %v2627_v26 = vrot.slane %v2626_v11, 4  ;;  %v2697_v41 = vrot.slane %v2695_v55, 4 }
 0x196   : > { %v2643_v60 = vshll.u32 %v2307_v6, 16  ;;  %v2647_v29 = vshrl.u32 %v2307_v6, 16  ;;  %v2496_v14 = vor.u32 %v2495_v58, %v2492_v17  ;;  %v2617_v21 = vrot.slane %v2616_v16, 4  ;;  %v10924_v55 = vld [vmem:[#allocation2 + $0xdc] sm:$0xf] }
 0x197   : > { %2783 = vrot.lane.b32.xlu0 %v2512_v40, %s9734_s12  ;;  %v10883_v40 = vld [vmem:[#allocation2 + $0xb8] sm:$0xf]  ;;  %v2533_v44 = vshll.u32 %v2293_v59, 16  ;;  %v2682_v42 = vshrl.u32 %v2312_v34, 16  ;;  %v2685_v46 = vshll.u32 %v2312_v34, 16  ;;  %v2701_v58 = vshll.u32 %v2314_v61, 16 }
 0x198   : > { %v2667_v51 = vshll.u32 %v10883_v40, 16  ;;  %v2649_v7 = vrot.slane %v2647_v29, 4  ;;  %v2497_v12 = vrot.slane %v2496_v14, 4  ;;  %v2622_v19 = vsel %vm9894_vm11, %v2617_v21, %v10867_v9  ;;  %v2316_v29 = vld [vmem:[#allocation2 + $0xd0] sm:$0xf] }
 0x199   : > { %v2141_v27 = vpop.permute.xlu0 %2140  ;;  %2763 = vrot.lane.b32.xlu2 %v2392_v30, %s9734_s12  ;;  %2791 = vrot.lane.b32.xlu1 %v2560_v49, %s9734_s12  ;;  %v2631_v30 = vrot.slane %v2629_v33, 5  ;;  %v2318_v33 = vld [vmem:[#allocation2 + $0xd8] sm:$0xf]  ;;  %v2562_v6 = vshrl.u32 %v2297_v35, 16  ;;  %v2687_v43 = vrot.slane %v2685_v46, 5  ;;  %v2715_v21 = vshll.u32 %v2316_v29, 16 }
 0x19a   : > { %2240 = vst.msk [vmem:[#allocation3 + $0x24] sm:$0xf] %vm2230_vm2, %v2141_v27  ;;  %v2691_v27 = vshll.u32 %v2313_v5, 16  ;;  %v10899_v56 = vrot.slane %v2667_v51, 5  ;;  %v2502_v9 = vsel %vm9894_vm11, %v2497_v12, %v10817_v63  ;;  %v2733_v1 = vshll.u32 %v2318_v33, 16 }
 0x19b   : > { %v2139_v53 = vpop.permute.xlu2 %2138  ;;  %v2149_v10 = vpop.permute.xlu1 %2148  ;;  %v2632_v39 = vsel %vm9894_vm11, %v2627_v26, %v2631_v30  ;;  %v2531_v26 = vrot.slane %v2530_v4, 4  ;;  %v2535_v30 = vrot.slane %v2533_v44, 5  ;;  %v2684_v5 = vrot.slane %v2682_v42, 4  ;;  %v2302_v42 = vld [vmem:[#allocation2 + $0x98] sm:$0x1] }
 0x19c   : > { %2239 = vst.msk [vmem:[#allocation3 + $0x20] sm:$0xf] %vm2230_vm2, %v2139_v53  ;;  %v2308_v53 = vld [vmem:[#allocation2 + $0xb0] sm:$0x1]  ;;  %v10903_v15 = vrot.slane %v2691_v27, 5  ;;  %v2564_v16 = vrot.slane %v2562_v6, 4 }
 0x19d   : > { %2244 = vst.msk [vmem:[#allocation3 + $0x34] sm:$0xf] %vm2230_vm2, %v2149_v10  ;;  %v2665_v10 = vrot.slane %v2664_v20, 4  ;;  %v2653_v11 = vshll.u32 %v2308_v53, 16  ;;  %v2735_v14 = vrot.slane %v2733_v1, 5  ;;  %v2599_v12 = vshrl.u32 %v10844_v24, 16 }
 0x19e   : > { %v2698_v17 = vor.u32 %v2697_v41, %v10903_v15  ;;  %v424_v20 = vld [vmem:[#allocation2 + $0xe0] sm:$0x1]  ;;  %v2536_v22 = vsel %vm9894_vm11, %v2531_v26, %v2535_v30  ;;  %v2739_v34 = vshll.u32 %v10924_v55, 16  ;;  %v10939_v24 = vrot.slane %v2715_v21, 5  ;;  %v2899_v46 = vld [vmem:[#allocation2 + $0x10] sm:$0xf] }
 0x19f   : > { %2789 = vrot.lane.b32.xlu0 %v2550_v37, %s9734_s12  ;;  %v10897_v37 = vrot.slane %v2643_v60, 5  ;;  %v2670_v47 = vsel %vm9894_vm11, %v2665_v10, %v10899_v56  ;;  %v2655_v52 = vrot.slane %v2653_v11, 5  ;;  %v2567_v60 = vrot.slane %v2565_v13, 5  ;;  %v2900_v30 = vld [vmem:[#allocation2 + $0x14] sm:$0x1] }
 0x1a0   : > { %v2699_v63 = vrot.slane %v2698_v17, 4  ;;  %v425_v10 = vsel %vm9807_vm5, 0, %v424_v20  ;;  %v10944_v11 = vrot.slane %v2739_v34, 5  ;;  %v2898_v20 = vld [vmem:[#allocation2 + $0xc] sm:$0xe] }
 0x1a1   : > { %v2147_v50 = vpop.permute.xlu0 %2146  ;;  %2769 = vrot.lane.b32.xlu2 %v2430_v36, %s9734_s12  ;;  %2797 = vrot.lane.b32.xlu1 %v2598_v32, %s9734_s12  ;;  %v2650_v32 = vor.u32 %v2649_v7, %v10897_v37  ;;  %v2719_v7 = vshrl.u32 %v2316_v29, 16  ;;  %v2568_v53 = vor.u32 %v2567_v60, %v2564_v16  ;;  %426 = vst [vmem:[#allocation2 + $0xe0] sm:$0x1] %v425_v10  ;;  %v3011_v60 = vrot.slane %v2900_v30, 5  ;;  %v2904_v21 = vld [vmem:[#allocation2 + $0x24] sm:$0xe] }
 0x1a2   : > { %2243 = vst.msk [vmem:[#allocation3 + $0x30] sm:$0xf] %vm2230_vm2, %v2147_v50  ;;  %v2730_v50 = vshrl.u32 %v2318_v33, 16  ;;  %v2306_v33 = vld [vmem:[#allocation2 + $0xa8] sm:$0xf] }
 0x1a3   : > { %v2145_v28 = vpop.permute.xlu2 %2144  ;;  %v2155_v49 = vpop.permute.xlu1 %2154  ;;  %v2651_v38 = vrot.slane %v2650_v32, 4  ;;  %v2721_v61 = vrot.slane %v2719_v7, 4  ;;  %v10975_v7 = vld [vmem:[#allocation2 + $0x28] sm:$0xf]  ;;  %v2315_v34 = vld [vmem:[#allocation2 + $0xcc] sm:$0xf] }
 0x1a4   : > { %2242 = vst.msk [vmem:[#allocation3 + $0x2c] sm:$0xf] %vm2230_vm2, %v2145_v28 }
 0x1a5   : > { %2247 = vst.msk [vmem:[#allocation3 + $0x40] sm:$0xf] %vm2230_vm2, %v2155_v49  ;;  %v2703_v49 = vrot.slane %v2701_v58, 5  ;;  %v2722_v58 = vor.u32 %v2721_v61, %v10939_v24 }
 0x1a7   : > { %2795 = vrot.lane.b32.xlu0 %v2584_v25, %s9734_s12  ;;  %v2732_v25 = vrot.slane %v2730_v50, 4  ;;  %v2637_v50 = vshll.u32 %v2306_v33, 16 }
 0x1a8   : > { %v951_v1 = vld [vmem:[#allocation2 + $0xe0] sm:$0x1] }
 0x1a9   : > { %v2153_v45 = vpop.permute.xlu0 %2152  ;;  %2775 = vrot.lane.b32.xlu2 %v2464_v48, %s9734_s12  ;;  %2803 = vrot.lane.b32.xlu1 %v2632_v39, %s9734_s12  ;;  %v2656_v48 = vsel %vm9894_vm11, %v2651_v38, %v2655_v52  ;;  %v2688_v39 = vor.u32 %v2687_v43, %v2684_v5  ;;  %v2736_v59 = vor.u32 %v2735_v14, %v2732_v25  ;;  %v2605_v52 = vshll.u32 %v2302_v42, 16 }
 0x1aa   : > { %2246 = vst.msk [vmem:[#allocation3 + $0x3c] sm:$0xf] %vm2230_vm2, %v2153_v45  ;;  %v2704_v45 = vsel %vm9894_vm11, %v2699_v63, %v2703_v49  ;;  %v952_v26 = vsel %vm9801_vm4, 0, %v951_v1  ;;  %v2723_v5 = vrot.slane %v2722_v58, 4 }
 0x1ab   : > { %v2151_v54 = vpop.permute.xlu2 %2150  ;;  %v2161_v36 = vpop.permute.xlu1 %2160  ;;  %v2689_v41 = vrot.slane %v2688_v39, 4  ;;  %v2737_v32 = vrot.slane %v2736_v59, 4  ;;  %953 = vst [vmem:[#allocation2 + $0xe0] sm:$0x1] %v952_v26  ;;  %v2607_v49 = vrot.slane %v2605_v52, 5 }
 0x1ac   : > { %2245 = vst.msk [vmem:[#allocation3 + $0x38] sm:$0xf] %vm2230_vm2, %v2151_v54  ;;  %v2569_v54 = vrot.slane %v2568_v53, 4 }
 0x1ad   : > { %2250 = vst.msk [vmem:[#allocation3 + $0x4c] sm:$0xf] %vm2230_vm2, %v2161_v36  ;;  %v2601_v36 = vrot.slane %v2599_v12, 4  ;;  %v2694_v17 = vsel %vm9894_vm11, %v2689_v41, %v10903_v15  ;;  %v2742_v38 = vsel %vm9894_vm11, %v2737_v32, %v10944_v11  ;;  %v3008_v15 = vrot.slane %v2899_v46, 5 }
 0x1ae   : > { %v2574_v13 = vsel %vm9894_vm11, %v2569_v54, %v10857_v62  ;;  %v9323_v12 = vrot.slane %v2898_v20, 9  ;;  %v2908_v54 = vld [vmem:[#allocation2 + $0x34] sm:$0xf] }
 0x1af   : > { %2801 = vrot.lane.b32.xlu0 %v2622_v19, %s9734_s12  ;;  %v2317_v19 = vld [vmem:[#allocation2 + $0xd4] sm:$0x1]  ;;  %v3010_v16 = vrot.slane %v3008_v15, 4  ;;  %v3029_v58 = vrot.slane %v2908_v54, 5 }
 0x1b0   : > { %v2725_v6 = vshll.u32 %v2317_v19, 16  ;;  %v3009_v19 = vsel %vm10365_vm15, %v9323_v12, %v3008_v15 }
 0x1b1   : > { %v2159_v28 = vpop.permute.xlu0 %2158  ;;  %2781 = vrot.lane.b32.xlu2 %v2502_v9, %s9734_s12  ;;  %2809 = vrot.lane.b32.xlu1 %v2670_v47, %s9734_s12  ;;  %v2602_v9 = vor.u32 %v2601_v36, %v10861_v8  ;;  %v2634_v47 = vshrl.u32 %v2306_v33, 16  ;;  %v3012_v39 = vsel %vm10365_vm15, %v3010_v16, %v3011_v60  ;;  %v2903_v33 = vld [vmem:[#allocation2 + $0x20] sm:$0x1] }
 0x1b2   : > { %2249 = vst.msk [vmem:[#allocation3 + $0x48] sm:$0xf] %vm2230_vm2, %v2159_v28  ;;  %v2727_v62 = vrot.slane %v2725_v6, 5  ;;  %v2639_v28 = vrot.slane %v2637_v50, 5  ;;  %v2909_v6 = vld [vmem:[#allocation2 + $0x38] sm:$0x1] }
 0x1b3   : > { %v2157_v51 = vpop.permute.xlu2 %2156  ;;  %v2167_v27 = vpop.permute.xlu1 %2166  ;;  %v2636_v8 = vrot.slane %v2634_v47, 4  ;;  %v2603_v63 = vrot.slane %v2602_v9, 4  ;;  %v3018_v9 = vrot.slane %v2903_v33, 5  ;;  %v3032_v52 = vrot.slane %v2909_v6, 5  ;;  %v2901_v6 = vld [vmem:[#allocation2 + $0x18] sm:$0xe] }
 0x1b4   : > { %2248 = vst.msk [vmem:[#allocation3 + $0x44] sm:$0xf] %vm2230_vm2, %v2157_v51  ;;  %v2728_v14 = vsel %vm9894_vm11, %v2723_v5, %v2727_v62  ;;  %v2907_v5 = vld [vmem:[#allocation2 + $0x30] sm:$0xe] }
 0x1b5   : > { %2253 = vst.msk [vmem:[#allocation3 + $0x58] sm:$0xf] %vm2230_vm2, %v2167_v27  ;;  %v2640_v51 = vor.u32 %v2639_v28, %v2636_v8  ;;  %v2671_v27 = vshrl.u32 %v10883_v40, 16  ;;  %v10979_v40 = vld [vmem:[#allocation2 + $0x1c] sm:$0xf]  ;;  %v9326_v16 = vrot.slane %v2907_v5, 9 }
 0x1b6   : > { %v3015_v36 = vrot.slane %v10979_v40, 5 }
 0x1b7   : > { %2807 = vrot.lane.b32.xlu0 %v2656_v48, %s9734_s12  ;;  %v2608_v48 = vsel %vm9894_vm11, %v2603_v63, %v2607_v49  ;;  %v2641_v10 = vrot.slane %v2640_v51, 4  ;;  %v2673_v59 = vrot.slane %v2671_v27, 4  ;;  %v2913_v63 = vld [vmem:[#allocation2 + $0x48] sm:$0xe]  ;;  %v11012_v49 = vld [vmem:[#allocation2 + $0x4c] sm:$0xf] }
 0x1b9   : > { %v2165_v35 = vpop.permute.xlu0 %2164  ;;  %2787 = vrot.lane.b32.xlu2 %v2536_v22, %s9734_s12  ;;  %2815 = vrot.lane.b32.xlu1 %v2704_v45, %s9734_s12  ;;  %v9325_v22 = vrot.slane %v2904_v21, 9  ;;  %v3022_v45 = vrot.slane %v10975_v7, 5  ;;  %v2646_v32 = vsel %vm9894_vm11, %v2641_v10, %v10897_v37  ;;  %v2674_v46 = vor.u32 %v2673_v59, %v10899_v56  ;;  %v2912_v10 = vld [vmem:[#allocation2 + $0x44] sm:$0x1] }
 0x1ba   : > { %2252 = vst.msk [vmem:[#allocation3 + $0x54] sm:$0xf] %vm2230_vm2, %v2165_v35  ;;  %v2311_v35 = vld [vmem:[#allocation2 + $0xbc] sm:$0x1]  ;;  %v3030_v21 = vsel %vm10365_vm15, %v9326_v16, %v3029_v58  ;;  %v3039_v54 = vrot.slane %v2912_v10, 5 }
 0x1bb   : > { %v2163_v4 = vpop.permute.xlu2 %2162  ;;  %v2173_v44 = vpop.permute.xlu1 %2172  ;;  %v3023_v42 = vsel %vm10365_vm15, %v9325_v22, %v3022_v45  ;;  %v2675_v1 = vrot.slane %v2674_v46, 4  ;;  %v2916_v46 = vld [vmem:[#allocation2 + $0x54] sm:$0xe]  ;;  %v2927_v16 = vld [vmem:[#allocation2 + $0x80] sm:$0x1]  ;;  %v3024_v40 = vrot.slane %v3022_v45, 4 }
 0x1bc   : > { %2251 = vst.msk [vmem:[#allocation3 + $0x50] sm:$0xf] %vm2230_vm2, %v2163_v4  ;;  %v2706_v4 = vshrl.u32 %v2315_v34, 16  ;;  %v2910_v45 = vld [vmem:[#allocation2 + $0x3c] sm:$0xe] }
 0x1bd   : > { %2256 = vst.msk [vmem:[#allocation3 + $0x64] sm:$0xf] %vm2230_vm2, %v2173_v44  ;;  %v2709_v44 = vshll.u32 %v2315_v34, 16  ;;  %v2931_v10 = vld [vmem:[#allocation2 + $0x90] sm:$0xe] }
 0x1be   : > { %v2708_v47 = vrot.slane %v2706_v4, 4 }
 0x1bf   : > { %2813 = vrot.lane.b32.xlu0 %v2694_v17, %s9734_s12  ;;  %v2677_v17 = vshll.u32 %v2311_v35, 16  ;;  %v2711_v50 = vrot.slane %v2709_v44, 5 }
 0x1c1   : > { %v2171_v43 = vpop.permute.xlu0 %2170  ;;  %2793 = vrot.lane.b32.xlu2 %v2574_v13, %s9734_s12  ;;  %2821 = vrot.lane.b32.xlu1 %v2742_v38, %s9734_s12  ;;  %v3017_v13 = vrot.slane %v3015_v36, 4  ;;  %v2679_v56 = vrot.slane %v2677_v17, 5  ;;  %v3031_v38 = vrot.slane %v3029_v58, 4  ;;  %v2712_v62 = vor.u32 %v2711_v50, %v2708_v47  ;;  %v11052_v50 = vld [vmem:[#allocation2 + $0x64] sm:$0xf] }
 0x1c2   : > { %2255 = vst.msk [vmem:[#allocation3 + $0x60] sm:$0xf] %vm2230_vm2, %v2171_v43  ;;  %v2743_v43 = vshrl.u32 %v10924_v55, 16  ;;  %v9328_v55 = vrot.slane %v2913_v63, 9  ;;  %v3057_v5 = vrot.slane %v11052_v50, 5 }
 0x1c3   : > { %v2169_v29 = vpop.permute.xlu2 %2168  ;;  %v2179_v25 = vpop.permute.xlu1 %2178  ;;  %v3019_v30 = vsel %vm10365_vm15, %v3017_v13, %v3018_v9  ;;  %v2680_v8 = vsel %vm9894_vm11, %v2675_v1, %v2679_v56  ;;  %v3033_v28 = vsel %vm10365_vm15, %v3031_v38, %v3032_v52  ;;  %v2922_v13 = vld [vmem:[#allocation2 + $0x6c] sm:$0xe]  ;;  %v11048_v9 = vld [vmem:[#allocation2 + $0x70] sm:$0xf]  ;;  %v9324_v1 = vrot.slane %v2901_v6, 9 }
 0x1c4   : > { %2254 = vst.msk [vmem:[#allocation3 + $0x5c] sm:$0xf] %vm2230_vm2, %v2169_v29  ;;  %v2713_v29 = vrot.slane %v2712_v62, 4  ;;  %v2745_v20 = vrot.slane %v2743_v43, 4  ;;  %v9331_v56 = vrot.slane %v2922_v13, 9  ;;  %v3064_v38 = vrot.slane %v11048_v9, 5 }
 0x1c5   : > { %2259 = vst.msk [vmem:[#allocation3 + $0x70] sm:$0xf] %vm2230_vm2, %v2179_v25  ;;  %v11016_v25 = vld [vmem:[#allocation2 + $0x40] sm:$0xf]  ;;  %v2921_v62 = vld [vmem:[#allocation2 + $0x68] sm:$0x1]  ;;  %v3016_v43 = vsel %vm10365_vm15, %v9324_v1, %v3015_v36 }
 0x1c6   : > { %v3036_v12 = vrot.slane %v11016_v25, 5  ;;  %v2746_v59 = vor.u32 %v2745_v20, %v10944_v11  ;;  %v2906_v63 = vld [vmem:[#allocation2 + $0x2c] sm:$0x1]  ;;  %v3066_v50 = vrot.slane %v3064_v38, 4 }
 0x1c7   : > { %2819 = vrot.lane.b32.xlu0 %v2728_v14, %s9734_s12  ;;  %v3043_v14 = vrot.slane %v11012_v49, 5  ;;  %v3025_v36 = vrot.slane %v2906_v63, 5  ;;  %v11128_v63 = vld [vmem:[#allocation2 + $0xac] sm:$0xf] }
 0x1c8   : > { %v3038_v35 = vrot.slane %v3036_v12, 4 }
 0x1c9   : > { %v2177_v53 = vpop.permute.xlu0 %2176  ;;  %2799 = vrot.lane.b32.xlu2 %v2608_v48, %s9734_s12  ;;  %3134 = vrot.lane.b32.xlu1 %v3012_v39, %s9735_s13  ;;  %v2320_v48 = vld [vmem:[#allocation2 + $0xe0] sm:$0x1]  ;;  %v2917_v39 = vld [vmem:[#allocation2 + $0x58] sm:$0xf]  ;;  %v3044_v22 = vsel %vm10365_vm15, %v9328_v55, %v3043_v14  ;;  %v3045_v25 = vrot.slane %v3043_v14, 4 }
 0x1ca   : > { %2258 = vst.msk [vmem:[#allocation3 + $0x6c] sm:$0xf] %vm2230_vm2, %v2177_v53  ;;  %v2718_v53 = vsel %vm9894_vm11, %v2713_v29, %v10939_v24  ;;  %v2749_v34 = vshll.u32 %v2320_v48, 16  ;;  %v2747_v24 = vrot.slane %v2746_v59, 4  ;;  %v3060_v29 = vrot.slane %v2921_v62, 5 }
 0x1cb   : > { %v2175_v41 = vpop.permute.xlu2 %2174  ;;  %v2185_v61 = vpop.permute.xlu1 %2184  ;;  %v2919_v14 = vld [vmem:[#allocation2 + $0x60] sm:$0xe]  ;;  %v2940_v62 = vld [vmem:[#allocation2 + $0xb4] sm:$0xe] }
 0x1cc   : > { %2257 = vst.msk [vmem:[#allocation3 + $0x68] sm:$0xf] %vm2230_vm2, %v2175_v41  ;;  %v3050_v41 = vrot.slane %v2917_v39, 5 }
 0x1cd   : > { %2262 = vst.msk [vmem:[#allocation3 + $0x7c] sm:$0xf] %vm2230_vm2, %v2185_v61  ;;  %v2918_v61 = vld [vmem:[#allocation2 + $0x5c] sm:$0x1] }
 0x1ce   : > { %v3052_v33 = vrot.slane %v3050_v41, 4  ;;  %v3053_v11 = vrot.slane %v2918_v61, 5  ;;  %v9327_v61 = vrot.slane %v2910_v45, 9 }
 0x1cf   : > { %3132 = vrot.lane.b32.xlu0 %v3009_v19, %s9735_s13 }
 0x1d0   : > { %v3054_v58 = vsel %vm10365_vm15, %v3052_v33, %v3053_v11 }
 0x1d1   : > { %v2183_v37 = vpop.permute.xlu0 %2182  ;;  %2805 = vrot.lane.b32.xlu2 %v2646_v32, %s9734_s12  ;;  %3140 = vrot.lane.b32.xlu1 %v3023_v42, %s9735_s13  ;;  %v2751_v32 = vrot.slane %v2749_v34, 5  ;;  %v3040_v42 = vsel %vm10365_vm15, %v3038_v35, %v3039_v54  ;;  %v9334_v35 = vrot.slane %v2931_v10, 9 }
 0x1d2   : > { %2261 = vst.msk [vmem:[#allocation3 + $0x78] sm:$0xf] %vm2230_vm2, %v2183_v37  ;;  %v9329_v37 = vrot.slane %v2916_v46, 9 }
 0x1d3   : > { %v2181_v15 = vpop.permute.xlu2 %2180  ;;  %v2191_v26 = vpop.permute.xlu1 %2190  ;;  %v2752_v17 = vsel %vm9894_vm11, %v2747_v24, %v2751_v32  ;;  %v2935_v32 = vld [vmem:[#allocation2 + $0xa0] sm:$0xf] }
 0x1d4   : > { %2260 = vst.msk [vmem:[#allocation3 + $0x74] sm:$0xf] %vm2230_vm2, %v2181_v15  ;;  %v3092_v46 = vrot.slane %v2935_v32, 5  ;;  %v2943_v32 = vld [vmem:[#allocation2 + $0xc0] sm:$0xe] }
 0x1d5   : > { %2265 = vst.msk [vmem:[#allocation3 + $0x88] sm:$0xf] %vm2230_vm2, %v2191_v26  ;;  %v2926_v26 = vld [vmem:[#allocation2 + $0x7c] sm:$0xf] }
 0x1d7   : > { %3138 = vrot.lane.b32.xlu0 %v3019_v30, %s9735_s13  ;;  %v3051_v30 = vsel %vm10365_vm15, %v9329_v37, %v3050_v41  ;;  %v11090_v41 = vld [vmem:[#allocation2 + $0x88] sm:$0xf] }
 0x1d8   : > { %v3078_v11 = vrot.slane %v11090_v41, 5 }
 0x1d9   : > { %v2189_v60 = vpop.permute.xlu0 %2188  ;;  %2811 = vrot.lane.b32.xlu2 %v2680_v8, %s9734_s12  ;;  %3146 = vrot.lane.b32.xlu1 %v3033_v28, %s9735_s13  ;;  %v3065_v8 = vsel %vm10365_vm15, %v9331_v56, %v3064_v38  ;;  %v3071_v28 = vrot.slane %v2926_v26, 5  ;;  %v2934_v26 = vld [vmem:[#allocation2 + $0x9c] sm:$0xe]  ;;  %v2928_v38 = vld [vmem:[#allocation2 + $0x84] sm:$0xe] }
 0x1da   : > { %2264 = vst.msk [vmem:[#allocation3 + $0x84] sm:$0xf] %vm2230_vm2, %v2189_v60  ;;  %v3059_v60 = vrot.slane %v3057_v5, 4  ;;  %v3080_v6 = vrot.slane %v3078_v11, 4 }
 0x1db   : > { %v2187_v51 = vpop.permute.xlu2 %2186  ;;  %v2756_v27 = vpop.permute.xlu1 %2755  ;;  %v3073_v20 = vrot.slane %v3071_v28, 4 }
 0x1dc   : > { %2263 = vst.msk [vmem:[#allocation3 + $0x80] sm:$0xf] %vm2230_vm2, %v2187_v51  ;;  %v3074_v51 = vrot.slane %v2927_v16, 5  ;;  %v3061_v39 = vsel %vm10365_vm15, %v3059_v60, %v3060_v29  ;;  %v9330_v16 = vrot.slane %v2919_v14, 9  ;;  %v9337_v60 = vrot.slane %v2940_v62, 9 }
 0x1dd   : > { %2863 = vst.msk [vmem:[#allocation3 + $0x4] sm:$0xf] %vm2861_vm6, %v2756_v27 }
 0x1de   : > { %v3075_v7 = vsel %vm10365_vm15, %v3073_v20, %v3074_v51  ;;  %v3099_v51 = vrot.slane %v11128_v63, 5 }
 0x1df   : > { %3144 = vrot.lane.b32.xlu0 %v3030_v21, %s9735_s13  ;;  %v2925_v21 = vld [vmem:[#allocation2 + $0x78] sm:$0xe] }
 0x1e0   : > { %v9332_v59 = vrot.slane %v2925_v21, 9  ;;  %v3101_v45 = vrot.slane %v3099_v51, 4 }
 0x1e1   : > { %v2754_v19 = vpop.permute.xlu0 %2753  ;;  %2817 = vrot.lane.b32.xlu2 %v2718_v53, %s9734_s12  ;;  %3152 = vrot.lane.b32.xlu1 %v3044_v22, %s9735_s13  ;;  %v3026_v53 = vsel %vm10365_vm15, %v3024_v40, %v3025_v36  ;;  %v11086_v22 = vld [vmem:[#allocation2 + $0x94] sm:$0xf]  ;;  %v2944_v36 = vld [vmem:[#allocation2 + $0xc4] sm:$0xf] }
 0x1e2   : > { %2862 = vst.msk [vmem:[#allocation3] sm:$0xf] %vm2861_vm6, %v2754_v19  ;;  %v3085_v54 = vrot.slane %v11086_v22, 5  ;;  %v3072_v33 = vsel %vm10365_vm15, %v9332_v59, %v3071_v28  ;;  %v3113_v21 = vrot.slane %v2944_v36, 5  ;;  %v3277_v36 = vld [vmem:[#allocation2 + $0x18] sm:$0xf] }
 0x1e3   : > { %v2193_v4 = vpop.permute.xlu2 %2192  ;;  %v2762_v44 = vpop.permute.xlu1 %2761 }
 0x1e4   : > { %2266 = vst.msk [vmem:[#allocation3 + $0x8c] sm:$0xf] %vm2230_vm2, %v2193_v4  ;;  %v2930_v4 = vld [vmem:[#allocation2 + $0x8c] sm:$0x1]  ;;  %v3087_v41 = vrot.slane %v3085_v54, 4 }
 0x1e5   : > { %2866 = vst.msk [vmem:[#allocation3 + $0x10] sm:$0xf] %vm2861_vm6, %v2762_v44  ;;  %v3037_v44 = vsel %vm10365_vm15, %v9327_v61, %v3036_v12  ;;  %v3081_v13 = vrot.slane %v2930_v4, 5  ;;  %v2949_v4 = vld [vmem:[#allocation2 + $0xd8] sm:$0xe] }
 0x1e7   : > { %3150 = vrot.lane.b32.xlu0 %v3040_v42, %s9735_s13  ;;  %v3086_v42 = vsel %vm10365_vm15, %v9334_v35, %v3085_v54 }
 0x1e9   : > { %v2760_v47 = vpop.permute.xlu0 %2759  ;;  %2823 = vrot.lane.b32.xlu2 %v2752_v17, %s9734_s12  ;;  %3158 = vrot.lane.b32.xlu1 %v3054_v58, %s9735_s13  ;;  %v2915_v17 = vld [vmem:[#allocation2 + $0x50] sm:$0x1]  ;;  %v2936_v58 = vld [vmem:[#allocation2 + $0xa4] sm:$0x1] }
 0x1ea   : > { %2865 = vst.msk [vmem:[#allocation3 + $0xc] sm:$0xf] %vm2861_vm6, %v2760_v47  ;;  %v3046_v12 = vrot.slane %v2915_v17, 5  ;;  %v3094_v47 = vrot.slane %v3092_v46, 4  ;;  %v3095_v1 = vrot.slane %v2936_v58, 5  ;;  %v9333_v58 = vrot.slane %v2928_v38, 9 }
 0x1eb   : > { %v2758_v52 = vpop.permute.xlu2 %2757  ;;  %v2768_v15 = vpop.permute.xlu1 %2767  ;;  %v11166_v17 = vld [vmem:[#allocation2 + $0xd0] sm:$0xf] }
 0x1ec   : > { %2864 = vst.msk [vmem:[#allocation3 + $0x8] sm:$0xf] %vm2861_vm6, %v2758_v52  ;;  %v3096_v49 = vsel %vm10365_vm15, %v3094_v47, %v3095_v1  ;;  %v3120_v47 = vrot.slane %v11166_v17, 5  ;;  %v2948_v1 = vld [vmem:[#allocation2 + $0xd4] sm:$0x1] }
 0x1ed   : > { %2869 = vst.msk [vmem:[#allocation3 + $0x1c] sm:$0xf] %vm2861_vm6, %v2768_v15  ;;  %v3082_v15 = vsel %vm10365_vm15, %v3080_v6, %v3081_v13  ;;  %v9340_v6 = vrot.slane %v2949_v4, 9  ;;  %v3286_v4 = vld [vmem:[#allocation2 + $0x4c] sm:$0xf] }
 0x1ef   : > { %3156 = vrot.lane.b32.xlu0 %v3051_v30, %s9735_s13  ;;  %v3047_v30 = vsel %vm10365_vm15, %v3045_v25, %v3046_v12 }
 0x1f1   : > { %v2766_v55 = vpop.permute.xlu0 %2765  ;;  %3136 = vrot.lane.b32.xlu2 %v3016_v43, %s9735_s13  ;;  %3164 = vrot.lane.b32.xlu1 %v3065_v8, %s9735_s13  ;;  %v11124_v43 = vld [vmem:[#allocation2 + $0xb8] sm:$0xf]  ;;  %v9335_v8 = vrot.slane %v2934_v26, 9  ;;  %v3122_v26 = vrot.slane %v3120_v47, 4 }
 0x1f2   : > { %2868 = vst.msk [vmem:[#allocation3 + $0x18] sm:$0xf] %vm2861_vm6, %v2766_v55  ;;  %v3106_v29 = vrot.slane %v11124_v43, 5 }
 0x1f3   : > { %v2764_v27 = vpop.permute.xlu2 %2763  ;;  %v2774_v48 = vpop.permute.xlu1 %2773  ;;  %v3093_v20 = vsel %vm10365_vm15, %v9335_v8, %v3092_v46 }
 0x1f4   : > { %2867 = vst.msk [vmem:[#allocation3 + $0x14] sm:$0xf] %vm2861_vm6, %v2764_v27  ;;  %v2939_v27 = vld [vmem:[#allocation2 + $0xb0] sm:$0x1] }
 0x1f5   : > { %2872 = vst.msk [vmem:[#allocation3 + $0x28] sm:$0xf] %vm2861_vm6, %v2774_v48  ;;  %v3058_v48 = vsel %vm10365_vm15, %v9330_v16, %v3057_v5  ;;  %v3102_v10 = vrot.slane %v2939_v27, 5  ;;  %v3278_v16 = vld [vmem:[#allocation2 + $0x1c] sm:$0xf] }
 0x1f6   : > { %v3281_v27 = vld [vmem:[#allocation2 + $0x30] sm:$0xf] }
 0x1f7   : > { %3162 = vrot.lane.b32.xlu0 %v3061_v39, %s9735_s13  ;;  %v3107_v39 = vsel %vm10365_vm15, %v9337_v60, %v3106_v29  ;;  %v2937_v60 = vld [vmem:[#allocation2 + $0xa8] sm:$0xe] }
 0x1f8   : > { %v9336_v22 = vrot.slane %v2937_v60, 9 }
 0x1f9   : > { %v2772_v34 = vpop.permute.xlu0 %2771  ;;  %3142 = vrot.lane.b32.xlu2 %v3026_v53, %s9735_s13  ;;  %3170 = vrot.lane.b32.xlu1 %v3075_v7, %s9735_s13  ;;  %v2924_v53 = vld [vmem:[#allocation2 + $0x74] sm:$0x1]  ;;  %v2945_v7 = vld [vmem:[#allocation2 + $0xc8] sm:$0x1] }
 0x1fa   : > { %2871 = vst.msk [vmem:[#allocation3 + $0x24] sm:$0xf] %vm2861_vm6, %v2772_v34  ;;  %v3067_v5 = vrot.slane %v2924_v53, 5  ;;  %v3115_v34 = vrot.slane %v3113_v21, 4  ;;  %v3116_v61 = vrot.slane %v2945_v7, 5 }
 0x1fb   : > { %v2770_v19 = vpop.permute.xlu2 %2769  ;;  %v2780_v24 = vpop.permute.xlu1 %2779 }
 0x1fc   : > { %2870 = vst.msk [vmem:[#allocation3 + $0x20] sm:$0xf] %vm2861_vm6, %v2770_v19  ;;  %v3117_v9 = vsel %vm10365_vm15, %v3115_v34, %v3116_v61  ;;  %v3283_v34 = vld [vmem:[#allocation2 + $0x3c] sm:$0xf] }
 0x1fd   : > { %2875 = vst.msk [vmem:[#allocation3 + $0x34] sm:$0xf] %vm2861_vm6, %v2780_v24  ;;  %v3103_v24 = vsel %vm10365_vm15, %v3101_v45, %v3102_v10  ;;  %v3284_v10 = vld [vmem:[#allocation2 + $0x40] sm:$0xf] }
 0x1ff   : > { %3168 = vrot.lane.b32.xlu0 %v3072_v33, %s9735_s13  ;;  %v3068_v33 = vsel %vm10365_vm15, %v3066_v50, %v3067_v5 }
 0x201   : > { %v2778_v37 = vpop.permute.xlu0 %2777  ;;  %3148 = vrot.lane.b32.xlu2 %v3037_v44, %s9735_s13  ;;  %3176 = vrot.lane.b32.xlu1 %v3086_v42, %s9735_s13  ;;  %v11162_v44 = vld [vmem:[#allocation2 + $0xdc] sm:$0xf]  ;;  %v9338_v42 = vrot.slane %v2943_v32, 9 }
 0x202   : > { %2874 = vst.msk [vmem:[#allocation3 + $0x30] sm:$0xf] %vm2861_vm6, %v2778_v37  ;;  %v3127_v13 = vrot.slane %v11162_v44, 5 }
 0x203   : > { %v2776_v56 = vpop.permute.xlu2 %2775  ;;  %v2786_v52 = vpop.permute.xlu1 %2785  ;;  %v3114_v12 = vsel %vm10365_vm15, %v9338_v42, %v3113_v21  ;;  %v3108_v21 = vrot.slane %v3106_v29, 4 }
 0x204   : > { %2873 = vst.msk [vmem:[#allocation3 + $0x2c] sm:$0xf] %vm2861_vm6, %v2776_v56  ;;  %v3079_v56 = vsel %vm10365_vm15, %v9333_v58, %v3078_v11  ;;  %v3129_v32 = vrot.slane %v3127_v13, 4 }
 0x205   : > { %2878 = vst.msk [vmem:[#allocation3 + $0x40] sm:$0xf] %vm2861_vm6, %v2786_v52  ;;  %v3128_v52 = vsel %vm10365_vm15, %v9340_v6, %v3127_v13  ;;  %v3289_v6 = vld [vmem:[#allocation2 + $0x60] sm:$0xf]  ;;  %v3279_v13 = vld [vmem:[#allocation2 + $0x24] sm:$0xf] }
 0x207   : > { %3174 = vrot.lane.b32.xlu0 %v3082_v15, %s9735_s13  ;;  %v2933_v15 = vld [vmem:[#allocation2 + $0x98] sm:$0x1] }
 0x208   : > { %v3088_v11 = vrot.slane %v2933_v15, 5  ;;  %v3282_v15 = vld [vmem:[#allocation2 + $0x34] sm:$0xf] }
 0x209   : > { %v2784_v28 = vpop.permute.xlu0 %2783  ;;  %3154 = vrot.lane.b32.xlu2 %v3047_v30, %s9735_s13  ;;  %3182 = vrot.lane.b32.xlu1 %v3096_v49, %s9735_s13  ;;  %v3123_v30 = vrot.slane %v2948_v1, 5  ;;  %v3292_v1 = vld [vmem:[#allocation2 + $0x70] sm:$0xf] }
 0x20a   : > { %2877 = vst.msk [vmem:[#allocation3 + $0x3c] sm:$0xf] %vm2861_vm6, %v2784_v28  ;;  %v3089_v28 = vsel %vm10365_vm15, %v3087_v41, %v3088_v11  ;;  %v3295_v11 = vld [vmem:[#allocation2 + $0x84] sm:$0xf] }
 0x20b   : > { %v2782_v55 = vpop.permute.xlu2 %2781  ;;  %v2792_v40 = vpop.permute.xlu1 %2791  ;;  %v3124_v8 = vsel %vm10365_vm15, %v3122_v26, %v3123_v30  ;;  %v3296_v26 = vld [vmem:[#allocation2 + $0x88] sm:$0xf] }
 0x20c   : > { %2876 = vst.msk [vmem:[#allocation3 + $0x38] sm:$0xf] %vm2861_vm6, %v2782_v55 }
 0x20d   : > { %2881 = vst.msk [vmem:[#allocation3 + $0x4c] sm:$0xf] %vm2861_vm6, %v2792_v40 }
 0x20f   : > { %3180 = vrot.lane.b32.xlu0 %v3093_v20, %s9735_s13  ;;  %v3100_v20 = vsel %vm10365_vm15, %v9336_v22, %v3099_v51  ;;  %v3280_v51 = vld [vmem:[#allocation2 + $0x28] sm:$0xf]  ;;  %v3298_v22 = vld [vmem:[#allocation2 + $0x94] sm:$0xf] }
 0x211   : > { %v2790_v59 = vpop.permute.xlu0 %2789  ;;  %3160 = vrot.lane.b32.xlu2 %v3058_v48, %s9735_s13  ;;  %3188 = vrot.lane.b32.xlu1 %v3107_v39, %s9735_s13  ;;  %v2942_v48 = vld [vmem:[#allocation2 + $0xbc] sm:$0x1] }
 0x212   : > { %2880 = vst.msk [vmem:[#allocation3 + $0x48] sm:$0xf] %vm2861_vm6, %v2790_v59  ;;  %v3109_v53 = vrot.slane %v2942_v48, 5  ;;  %v2946_v59 = vld [vmem:[#allocation2 + $0xcc] sm:$0xe] }
 0x213   : > { %v2788_v35 = vpop.permute.xlu2 %2787  ;;  %v2798_v19 = vpop.permute.xlu1 %2797  ;;  %v9339_v43 = vrot.slane %v2946_v59, 9  ;;  %v3301_v48 = vld [vmem:[#allocation2 + $0xa8] sm:$0xf] }
 0x214   : > { %2879 = vst.msk [vmem:[#allocation3 + $0x44] sm:$0xf] %vm2861_vm6, %v2788_v35  ;;  %v3110_v45 = vsel %vm10365_vm15, %v3108_v21, %v3109_v53  ;;  %v3287_v35 = vld [vmem:[#allocation2 + $0x54] sm:$0xf]  ;;  %v3305_v21 = vld [vmem:[#allocation2 + $0xc0] sm:$0xf] }
 0x215   : > { %2884 = vst.msk [vmem:[#allocation3 + $0x58] sm:$0xf] %vm2861_vm6, %v2798_v19  ;;  %v3121_v61 = vsel %vm10365_vm15, %v9339_v43, %v3120_v47  ;;  %v2951_v19 = vld [vmem:[#allocation2 + $0xe0] sm:$0x1]  ;;  %v3308_v43 = vld [vmem:[#allocation2 + $0xd0] sm:$0xf] }
 0x217   : > { %3186 = vrot.lane.b32.xlu0 %v3103_v24, %s9735_s13 }
 0x219   : > { %v2796_v46 = vpop.permute.xlu0 %2795  ;;  %3166 = vrot.lane.b32.xlu2 %v3068_v33, %s9735_s13  ;;  %3194 = vrot.lane.b32.xlu1 %v3117_v9, %s9735_s13  ;;  %v3130_v33 = vrot.slane %v2951_v19, 5 }
 0x21a   : > { %2883 = vst.msk [vmem:[#allocation3 + $0x54] sm:$0xf] %vm2861_vm6, %v2796_v46  ;;  %v3290_v46 = vld [vmem:[#allocation2 + $0x64] sm:$0xf] }
 0x21b   : > { %v2794_v37 = vpop.permute.xlu2 %2793  ;;  %v2804_v25 = vpop.permute.xlu1 %2803  ;;  %v3131_v42 = vsel %vm10365_vm15, %v3129_v32, %v3130_v33  ;;  %v3500_v32 = vld [vmem:[#allocation2 + $0x30] sm:$0xf]  ;;  %v3307_v33 = vld [vmem:[#allocation2 + $0xcc] sm:$0xf] }
 0x21c   : > { %2882 = vst.msk [vmem:[#allocation3 + $0x50] sm:$0xf] %vm2861_vm6, %v2794_v37  ;;  %v3293_v37 = vld [vmem:[#allocation2 + $0x78] sm:$0xf] }
 0x21d   : > { %2887 = vst.msk [vmem:[#allocation3 + $0x64] sm:$0xf] %vm2861_vm6, %v2804_v25 }
 0x21f   : > { %3192 = vrot.lane.b32.xlu0 %v3114_v12, %s9735_s13 }
 0x221   : > { %v2802_v49 = vpop.permute.xlu0 %2801  ;;  %3172 = vrot.lane.b32.xlu2 %v3079_v56, %s9735_s13  ;;  %3200 = vrot.lane.b32.xlu1 %v3128_v52, %s9735_s13  ;;  %v365_v56 = vld [vmem:[#allocation2 + $0xe4] sm:$0x1] }
 0x222   : > { %2886 = vst.msk [vmem:[#allocation3 + $0x60] sm:$0xf] %vm2861_vm6, %v2802_v49  ;;  %v366_v52 = vsel %vm9801_vm4, 0, %v365_v56 }
 0x223   : > { %v2800_v14 = vpop.permute.xlu2 %2799  ;;  %v2810_v62 = vpop.permute.xlu1 %2809  ;;  %367 = vst [vmem:[#allocation2 + $0xe4] sm:$0x1] %v366_v52  ;;  %v3504_v52 = vld [vmem:[#allocation2 + $0x40] sm:$0xf] }
 0x224   : > { %2885 = vst.msk [vmem:[#allocation3 + $0x5c] sm:$0xf] %vm2861_vm6, %v2800_v14 }
 0x225   : > { %2890 = vst.msk [vmem:[#allocation3 + $0x70] sm:$0xf] %vm2861_vm6, %v2810_v62  ;;  %v3285_v62 = vld [vmem:[#allocation2 + $0x48] sm:$0xf] }
 0x227   : > { %3198 = vrot.lane.b32.xlu0 %v3124_v8, %s9735_s13  ;;  %v3299_v8 = vld [vmem:[#allocation2 + $0x9c] sm:$0xf] }
 0x229   : > { %v2808_v55 = vpop.permute.xlu0 %2807  ;;  %3178 = vrot.lane.b32.xlu2 %v3089_v28, %s9735_s13  ;;  %3351 = vrot.lane.b32.xlu1 %v3278_v16, %s9736_s14 }
 0x22a   : > { %2889 = vst.msk [vmem:[#allocation3 + $0x6c] sm:$0xf] %vm2861_vm6, %v2808_v55  ;;  %v954_v14 = vld [vmem:[#allocation2 + $0xe4] sm:$0xf] }
 0x22b   : > { %v2806_v54 = vpop.permute.xlu2 %2805  ;;  %v2816_v40 = vpop.permute.xlu1 %2815  ;;  %v955_v28 = vsel %vm9854_vm9, 0, %v954_v14 }
 0x22c   : > { %2888 = vst.msk [vmem:[#allocation3 + $0x68] sm:$0xf] %vm2861_vm6, %v2806_v54  ;;  %v3288_v54 = vld [vmem:[#allocation2 + $0x58] sm:$0xf] }
 0x22d   : > { %2893 = vst.msk [vmem:[#allocation3 + $0x7c] sm:$0xf] %vm2861_vm6, %v2816_v40  ;;  %v3302_v40 = vld [vmem:[#allocation2 + $0xac] sm:$0xf] }
 0x22e   : > { %956 = vst [vmem:[#allocation2 + $0xe4] sm:$0xf] %v955_v28  ;;  %v3300_v28 = vld [vmem:[#allocation2 + $0xa0] sm:$0xf] }
 0x22f   : > { %3349 = vrot.lane.b32.xlu0 %v3277_v36, %s9736_s14 }
 0x231   : > { %v2814_v39 = vpop.permute.xlu0 %2813  ;;  %3184 = vrot.lane.b32.xlu2 %v3100_v20, %s9735_s13  ;;  %3357 = vrot.lane.b32.xlu1 %v3281_v27, %s9736_s14 }
 0x232   : > { %2892 = vst.msk [vmem:[#allocation3 + $0x78] sm:$0xf] %vm2861_vm6, %v2814_v39  ;;  %v3291_v39 = vld [vmem:[#allocation2 + $0x6c] sm:$0xf] }
 0x233   : > { %v2812_v7 = vpop.permute.xlu2 %2811  ;;  %v2822_v63 = vpop.permute.xlu1 %2821 }
 0x234   : > { %2891 = vst.msk [vmem:[#allocation3 + $0x74] sm:$0xf] %vm2861_vm6, %v2812_v7  ;;  %v3495_v7 = vld [vmem:[#allocation2 + $0x1c] sm:$0xf] }
 0x235   : > { %2896 = vst.msk [vmem:[#allocation3 + $0x88] sm:$0xf] %vm2861_vm6, %v2822_v63  ;;  %v3562_v59 = vshrl.u32 %v3495_v7, 16 }
 0x237   : > { %3355 = vrot.lane.b32.xlu0 %v3280_v51, %s9736_s14 }
 0x239   : > { %v2820_v50 = vpop.permute.xlu0 %2819  ;;  %3190 = vrot.lane.b32.xlu2 %v3110_v45, %s9735_s13  ;;  %3363 = vrot.lane.b32.xlu1 %v3284_v10, %s9736_s14  ;;  %v3304_v45 = vld [vmem:[#allocation2 + $0xb8] sm:$0xf]  ;;  %v3558_v10 = vshll.u32 %v3495_v7, 16 }
 0x23a   : > { %2895 = vst.msk [vmem:[#allocation3 + $0x84] sm:$0xf] %vm2861_vm6, %v2820_v50  ;;  %v3294_v50 = vld [vmem:[#allocation2 + $0x7c] sm:$0xf] }
 0x23b   : > { %v2818_v29 = vpop.permute.xlu2 %2817  ;;  %v3135_v5 = vpop.permute.xlu1 %3134 }
 0x23c   : > { %2894 = vst.msk [vmem:[#allocation3 + $0x80] sm:$0xf] %vm2861_vm6, %v2818_v29 }
 0x23d   : > { %3242 = vst.msk [vmem:[#allocation3 + $0x4] sm:$0xf] %vm3240_vm7, %v3135_v5  ;;  %v3494_v5 = vld [vmem:[#allocation2 + $0x18] sm:$0xf] }
 0x23f   : > { %3361 = vrot.lane.b32.xlu0 %v3283_v34, %s9736_s14  ;;  %v11280_v34 = vrot.slane %v3558_v10, 5 }
 0x241   : > { %v3133_v24 = vpop.permute.xlu0 %3132  ;;  %3196 = vrot.lane.b32.xlu2 %v3121_v61, %s9735_s13  ;;  %3369 = vrot.lane.b32.xlu1 %v3287_v35, %s9736_s14  ;;  %v3564_v61 = vrot.slane %v3562_v59, 4  ;;  %v3496_v35 = vld [vmem:[#allocation2 + $0x20] sm:$0x1]  ;;  %v3509_v59 = vld [vmem:[#allocation2 + $0x54] sm:$0xf] }
 0x242   : > { %3241 = vst.msk [vmem:[#allocation3] sm:$0xf] %vm3240_vm7, %v3133_v24 }
 0x243   : > { %v2824_v9 = vpop.permute.xlu2 %2823  ;;  %v3141_v38 = vpop.permute.xlu1 %3140 }
 0x244   : > { %2897 = vst.msk [vmem:[#allocation3 + $0x8c] sm:$0xf] %vm2861_vm6, %v2824_v9  ;;  %v3549_v9 = vshrl.u32 %v3494_v5, 16 }
 0x245   : > { %3245 = vst.msk [vmem:[#allocation3 + $0x10] sm:$0xf] %vm3240_vm7, %v3141_v38  ;;  %v3552_v38 = vshll.u32 %v3494_v5, 16 }
 0x247   : > { %3367 = vrot.lane.b32.xlu0 %v3286_v4, %s9736_s14  ;;  %v3565_v4 = vor.u32 %v3564_v61, %v11280_v34 }
 0x249   : > { %v3139_v17 = vpop.permute.xlu0 %3138  ;;  %3202 = vrot.lane.b32.xlu2 %v3131_v42, %s9735_s13  ;;  %3375 = vrot.lane.b32.xlu1 %v3290_v46, %s9736_s14  ;;  %v3568_v42 = vshll.u32 %v3496_v35, 16  ;;  %v3297_v46 = vld [vmem:[#allocation2 + $0x90] sm:$0xf] }
 0x24a   : > { %3244 = vst.msk [vmem:[#allocation3 + $0xc] sm:$0xf] %vm3240_vm7, %v3139_v17  ;;  %v3311_v17 = vld [vmem:[#allocation2 + $0xe4] sm:$0xf] }
 0x24b   : > { %v3137_v44 = vpop.permute.xlu2 %3136  ;;  %v3147_v58 = vpop.permute.xlu1 %3146 }
 0x24c   : > { %3243 = vst.msk [vmem:[#allocation3 + $0x8] sm:$0xf] %vm3240_vm7, %v3137_v44  ;;  %v3597_v44 = vshrl.u32 %v3500_v32, 16 }
 0x24d   : > { %3248 = vst.msk [vmem:[#allocation3 + $0x1c] sm:$0xf] %vm3240_vm7, %v3147_v58  ;;  %v3600_v58 = vshll.u32 %v3500_v32, 16 }
 0x24f   : > { %3373 = vrot.lane.b32.xlu0 %v3289_v6, %s9736_s14  ;;  %v3551_v6 = vrot.slane %v3549_v9, 4  ;;  %v3602_v56 = vrot.slane %v3600_v58, 5  ;;  %v3672_v9 = vshll.u32 %v3509_v59, 16 }
 0x251   : > { %v3145_v25 = vpop.permute.xlu0 %3144  ;;  %3353 = vrot.lane.b32.xlu2 %v3279_v13, %s9736_s14  ;;  %3381 = vrot.lane.b32.xlu1 %v3293_v37, %s9736_s14  ;;  %v3554_v13 = vrot.slane %v3552_v38, 5 }
 0x252   : > { %3247 = vst.msk [vmem:[#allocation3 + $0x18] sm:$0xf] %vm3240_vm7, %v3145_v25  ;;  %v3566_v25 = vrot.slane %v3565_v4, 4 }
 0x253   : > { %v3143_v12 = vpop.permute.xlu2 %3142  ;;  %v3153_v47 = vpop.permute.xlu1 %3152 }
 0x254   : > { %3246 = vst.msk [vmem:[#allocation3 + $0x14] sm:$0xf] %vm3240_vm7, %v3143_v12  ;;  %v3570_v12 = vrot.slane %v3568_v42, 5 }
 0x255   : > { %3251 = vst.msk [vmem:[#allocation3 + $0x28] sm:$0xf] %vm3240_vm7, %v3153_v47  ;;  %v3498_v47 = vld [vmem:[#allocation2 + $0x28] sm:$0xf] }
 0x256   : > { %v3586_v14 = vshrl.u32 %v3498_v47, 16 }
 0x257   : > { %3379 = vrot.lane.b32.xlu0 %v3292_v1, %s9736_s14  ;;  %v3599_v1 = vrot.slane %v3597_v44, 4  ;;  %v3507_v44 = vld [vmem:[#allocation2 + $0x4c] sm:$0xf] }
 0x259   : > { %v3151_v30 = vpop.permute.xlu0 %3150  ;;  %3359 = vrot.lane.b32.xlu2 %v3282_v15, %s9736_s14  ;;  %3387 = vrot.lane.b32.xlu1 %v3296_v26, %s9736_s14 }
 0x25a   : > { %3250 = vst.msk [vmem:[#allocation3 + $0x24] sm:$0xf] %vm3240_vm7, %v3151_v30  ;;  %v11290_v30 = vld [vmem:[#allocation2 + $0x34] sm:$0xf] }
 0x25b   : > { %v3149_v49 = vpop.permute.xlu2 %3148  ;;  %v3159_v41 = vpop.permute.xlu1 %3158 }
 0x25c   : > { %3249 = vst.msk [vmem:[#allocation3 + $0x20] sm:$0xf] %vm3240_vm7, %v3149_v49  ;;  %v3310_v49 = vld [vmem:[#allocation2 + $0xdc] sm:$0xf] }
 0x25d   : > { %3254 = vst.msk [vmem:[#allocation3 + $0x34] sm:$0xf] %vm3240_vm7, %v3159_v41  ;;  %v3555_v41 = vor.u32 %v3554_v13, %v3551_v6  ;;  %v3674_v6 = vrot.slane %v3672_v9, 5 }
 0x25f   : > { %3385 = vrot.lane.b32.xlu0 %v3295_v11, %s9736_s14  ;;  %v3582_v11 = vshll.u32 %v3498_v47, 16 }
 0x261   : > { %v3157_v16 = vpop.permute.xlu0 %3156  ;;  %3365 = vrot.lane.b32.xlu2 %v3285_v62, %s9736_s14  ;;  %3393 = vrot.lane.b32.xlu1 %v3299_v8, %s9736_s14  ;;  %v3630_v62 = vshll.u32 %v3504_v52, 16  ;;  %v3634_v8 = vshrl.u32 %v3504_v52, 16 }
 0x262   : > { %3253 = vst.msk [vmem:[#allocation3 + $0x30] sm:$0xf] %vm3240_vm7, %v3157_v16  ;;  %v3571_v16 = vsel %vm9894_vm11, %v3566_v25, %v3570_v12  ;;  %v11321_v25 = vld [vmem:[#allocation2 + $0x58] sm:$0xf]  ;;  %v3513_v12 = vld [vmem:[#allocation2 + $0x64] sm:$0xf] }
 0x263   : > { %v3155_v60 = vpop.permute.xlu2 %3154  ;;  %v3165_v55 = vpop.permute.xlu1 %3164 }
 0x264   : > { %3252 = vst.msk [vmem:[#allocation3 + $0x2c] sm:$0xf] %vm3240_vm7, %v3155_v60  ;;  %v3603_v60 = vor.u32 %v3602_v56, %v3599_v1  ;;  %v3654_v1 = vshll.u32 %v3507_v44, 16  ;;  %v3658_v56 = vshrl.u32 %v3507_v44, 16  ;;  %v11353_v44 = vld [vmem:[#allocation2 + $0x7c] sm:$0xf] }
 0x265   : > { %3257 = vst.msk [vmem:[#allocation3 + $0x40] sm:$0xf] %vm3240_vm7, %v3165_v55  ;;  %v3606_v55 = vshll.u32 %v11290_v30, 16 }
 0x266   : > { %v3604_v7 = vrot.slane %v3603_v60, 4 }
 0x267   : > { %3391 = vrot.lane.b32.xlu0 %v3298_v22, %s9736_s14  ;;  %v3503_v22 = vld [vmem:[#allocation2 + $0x3c] sm:$0xf] }
 0x269   : > { %v3163_v36 = vpop.permute.xlu0 %3162  ;;  %3371 = vrot.lane.b32.xlu2 %v3288_v54, %s9736_s14  ;;  %3399 = vrot.lane.b32.xlu1 %v3302_v40, %s9736_s14  ;;  %v3556_v54 = vrot.slane %v3555_v41, 4  ;;  %v11298_v40 = vrot.slane %v3582_v11, 5  ;;  %v3678_v41 = vshll.u32 %v11321_v25, 16  ;;  %v3702_v11 = vshll.u32 %v3513_v12, 16 }
 0x26a   : > { %3256 = vst.msk [vmem:[#allocation3 + $0x3c] sm:$0xf] %vm3240_vm7, %v3163_v36  ;;  %v3588_v36 = vrot.slane %v3586_v14, 4  ;;  %v3706_v14 = vshrl.u32 %v3513_v12, 16 }
 0x26b   : > { %v3161_v20 = vpop.permute.xlu2 %3160  ;;  %v3171_v27 = vpop.permute.xlu1 %3170 }
 0x26c   : > { %3255 = vst.msk [vmem:[#allocation3 + $0x38] sm:$0xf] %vm3240_vm7, %v3161_v20 }
 0x26d   : > { %3260 = vst.msk [vmem:[#allocation3 + $0x4c] sm:$0xf] %vm3240_vm7, %v3171_v27  ;;  %v3499_v27 = vld [vmem:[#allocation2 + $0x2c] sm:$0x1] }
 0x26f   : > { %3397 = vrot.lane.b32.xlu0 %v3301_v48, %s9736_s14  ;;  %v3621_v48 = vshrl.u32 %v3503_v22, 16 }
 0x271   : > { %v3169_v53 = vpop.permute.xlu0 %3168  ;;  %3377 = vrot.lane.b32.xlu2 %v3291_v39, %s9736_s14  ;;  %3405 = vrot.lane.b32.xlu1 %v3305_v21, %s9736_s14  ;;  %v3624_v39 = vshll.u32 %v3503_v22, 16  ;;  %v11302_v21 = vrot.slane %v3630_v62, 5  ;;  %v3623_v5 = vrot.slane %v3621_v48, 4  ;;  %v11331_v62 = vrot.slane %v3654_v1, 5  ;;  %v3508_v22 = vld [vmem:[#allocation2 + $0x50] sm:$0x1] }
 0x272   : > { %3259 = vst.msk [vmem:[#allocation3 + $0x48] sm:$0xf] %vm3240_vm7, %v3169_v53  ;;  %v3636_v53 = vrot.slane %v3634_v8, 4  ;;  %v3660_v8 = vrot.slane %v3658_v56, 4  ;;  %v3708_v48 = vrot.slane %v3706_v14, 4 }
 0x273   : > { %v3167_v63 = vpop.permute.xlu2 %3166  ;;  %v3177_v51 = vpop.permute.xlu1 %3176  ;;  %v3626_v61 = vrot.slane %v3624_v39, 5 }
 0x274   : > { %3258 = vst.msk [vmem:[#allocation3 + $0x44] sm:$0xf] %vm3240_vm7, %v3167_v63  ;;  %v11305_v63 = vrot.slane %v3606_v55, 5  ;;  %v3637_v35 = vor.u32 %v3636_v53, %v11302_v21 }
 0x275   : > { %3263 = vst.msk [vmem:[#allocation3 + $0x58] sm:$0xf] %vm3240_vm7, %v3177_v51  ;;  %v3505_v51 = vld [vmem:[#allocation2 + $0x44] sm:$0x1]  ;;  %v3627_v42 = vor.u32 %v3626_v61, %v3623_v5  ;;  %v3309_v5 = vld [vmem:[#allocation2 + $0xd8] sm:$0xf] }
 0x276   : > { %v3609_v32 = vsel %vm9894_vm11, %v3604_v7, %v11305_v63 }
 0x277   : > { %3403 = vrot.lane.b32.xlu0 %v3304_v45, %s9736_s14  ;;  %v3628_v52 = vrot.slane %v3627_v42, 4 }
 0x279   : > { %v3175_v29 = vpop.permute.xlu0 %3174  ;;  %3383 = vrot.lane.b32.xlu2 %v3294_v50, %s9736_s14  ;;  %3411 = vrot.lane.b32.xlu1 %v3308_v43, %s9736_s14  ;;  %v3561_v50 = vsel %vm9894_vm11, %v3556_v54, %v11280_v34  ;;  %v3589_v43 = vor.u32 %v3588_v36, %v11298_v40  ;;  %v3633_v55 = vsel %vm9894_vm11, %v3628_v52, %v11302_v21  ;;  %v3518_v54 = vld [vmem:[#allocation2 + $0x78] sm:$0xf]  ;;  %v3522_v52 = vld [vmem:[#allocation2 + $0x88] sm:$0xf] }
 0x27a   : > { %3262 = vst.msk [vmem:[#allocation3 + $0x54] sm:$0xf] %vm3240_vm7, %v3175_v29  ;;  %v3592_v29 = vshll.u32 %v3499_v27, 16  ;;  %v11341_v27 = vrot.slane %v3702_v11, 5  ;;  %v3312_v11 = vld [vmem:[#allocation2 + $0xe8] sm:$0xf] }
 0x27b   : > { %v3173_v19 = vpop.permute.xlu2 %3172  ;;  %v3183_v24 = vpop.permute.xlu1 %3182  ;;  %v3590_v34 = vrot.slane %v3589_v43, 4  ;;  %v3741_v43 = vshrl.u32 %v3518_v54, 16 }
 0x27c   : > { %3261 = vst.msk [vmem:[#allocation3 + $0x50] sm:$0xf] %vm3240_vm7, %v3173_v19  ;;  %v3640_v19 = vshll.u32 %v3505_v51, 16  ;;  %v3594_v38 = vrot.slane %v3592_v29, 5  ;;  %v3744_v29 = vshll.u32 %v3518_v54, 16 }
 0x27d   : > { %3266 = vst.msk [vmem:[#allocation3 + $0x64] sm:$0xf] %vm3240_vm7, %v3183_v24  ;;  %v3303_v24 = vld [vmem:[#allocation2 + $0xb4] sm:$0xf]  ;;  %v3743_v42 = vrot.slane %v3741_v43, 4 }
 0x27e   : > { %v3595_v47 = vsel %vm9894_vm11, %v3590_v34, %v3594_v38  ;;  %v3517_v54 = vld [vmem:[#allocation2 + $0x74] sm:$0x1] }
 0x27f   : > { %3409 = vrot.lane.b32.xlu0 %v3307_v33, %s9736_s14  ;;  %v3669_v33 = vshrl.u32 %v3509_v59, 16  ;;  %v3661_v59 = vor.u32 %v3660_v8, %v11331_v62  ;;  %v3521_v8 = vld [vmem:[#allocation2 + $0x84] sm:$0xf] }
 0x281   : > { %v3181_v37 = vpop.permute.xlu0 %3180  ;;  %3389 = vrot.lane.b32.xlu2 %v3297_v46, %s9736_s14  ;;  %3417 = vrot.lane.b32.xlu1 %v3311_v17, %s9736_s14  ;;  %v3638_v46 = vrot.slane %v3637_v35, 4  ;;  %v3642_v17 = vrot.slane %v3640_v19, 5  ;;  %v3671_v58 = vrot.slane %v3669_v33, 4  ;;  %v3709_v35 = vor.u32 %v3708_v48, %v11341_v27 }
 0x282   : > { %3265 = vst.msk [vmem:[#allocation3 + $0x60] sm:$0xf] %vm3240_vm7, %v3181_v37  ;;  %v3662_v34 = vrot.slane %v3661_v59, 4 }
 0x283   : > { %v3179_v15 = vpop.permute.xlu2 %3178  ;;  %v3189_v26 = vpop.permute.xlu1 %3188 }
 0x284   : > { %3264 = vst.msk [vmem:[#allocation3 + $0x5c] sm:$0xf] %vm3240_vm7, %v3179_v15  ;;  %v3643_v15 = vsel %vm9894_vm11, %v3638_v46, %v3642_v17  ;;  %v3746_v46 = vrot.slane %v3744_v29, 5 }
 0x285   : > { %3269 = vst.msk [vmem:[#allocation3 + $0x70] sm:$0xf] %vm3240_vm7, %v3189_v26  ;;  %v3306_v26 = vld [vmem:[#allocation2 + $0xc4] sm:$0xf] }
 0x287   : > { %3415 = vrot.lane.b32.xlu0 %v3310_v49, %s9736_s14  ;;  %v3675_v49 = vor.u32 %v3674_v6, %v3671_v58  ;;  %v3710_v58 = vrot.slane %v3709_v35, 4 }
 0x289   : > { %v3187_v20 = vpop.permute.xlu0 %3186  ;;  %3395 = vrot.lane.b32.xlu2 %v3300_v28, %s9736_s14  ;;  %3982 = vrot.lane.b32.xlu1 %v3571_v16, %s9737_s15  ;;  %v3512_v28 = vld [vmem:[#allocation2 + $0x60] sm:$0xf]  ;;  %v3497_v16 = vld [vmem:[#allocation2 + $0x24] sm:$0xf]  ;;  %v3676_v36 = vrot.slane %v3675_v49, 4  ;;  %v3747_v49 = vor.u32 %v3746_v46, %v3743_v42 }
 0x28a   : > { %3268 = vst.msk [vmem:[#allocation3 + $0x6c] sm:$0xf] %vm3240_vm7, %v3187_v20  ;;  %v11339_v20 = vrot.slane %v3678_v41, 5  ;;  %v3693_v7 = vshrl.u32 %v3512_v28, 16  ;;  %v3696_v51 = vshll.u32 %v3512_v28, 16  ;;  %v3576_v21 = vshll.u32 %v3497_v16, 16 }
 0x28b   : > { %v3185_v45 = vpop.permute.xlu2 %3184  ;;  %v3195_v10 = vpop.permute.xlu1 %3194  ;;  %v3750_v41 = vshll.u32 %v11353_v44, 16  ;;  %v3774_v28 = vshll.u32 %v3522_v52, 16 }
 0x28c   : > { %3267 = vst.msk [vmem:[#allocation3 + $0x68] sm:$0xf] %vm3240_vm7, %v3185_v45  ;;  %v3514_v45 = vld [vmem:[#allocation2 + $0x68] sm:$0x1]  ;;  %v3681_v61 = vsel %vm9894_vm11, %v3676_v36, %v11339_v20  ;;  %v3578_v9 = vrot.slane %v3576_v21, 5  ;;  %v3748_v36 = vrot.slane %v3747_v49, 4 }
 0x28d   : > { %3272 = vst.msk [vmem:[#allocation3 + $0x7c] sm:$0xf] %vm3240_vm7, %v3195_v10  ;;  %v3573_v10 = vshrl.u32 %v3497_v16, 16  ;;  %v3712_v19 = vshll.u32 %v3514_v45, 16  ;;  %v3778_v16 = vshrl.u32 %v3522_v52, 16  ;;  %v11367_v48 = vrot.slane %v3750_v41, 5 }
 0x28e   : > { %v3768_v45 = vshll.u32 %v3521_v8, 16  ;;  %v11372_v21 = vrot.slane %v3774_v28, 5  ;;  %v11392_v41 = vld [vmem:[#allocation2 + $0xa0] sm:$0xf] }
 0x28f   : > { %3980 = vrot.lane.b32.xlu0 %v3561_v50, %s9737_s15  ;;  %v3664_v50 = vshll.u32 %v3508_v22, 16  ;;  %v3575_v33 = vrot.slane %v3573_v10, 4  ;;  %v3714_v6 = vrot.slane %v3712_v19, 5  ;;  %v3506_v10 = vld [vmem:[#allocation2 + $0x48] sm:$0xf]  ;;  %v3780_v59 = vrot.slane %v3778_v16, 4 }
 0x290   : > { %v3523_v19 = vld [vmem:[#allocation2 + $0x8c] sm:$0x1]  ;;  %v3770_v42 = vrot.slane %v3768_v45, 5 }
 0x291   : > { %v3193_v4 = vpop.permute.xlu0 %3192  ;;  %3401 = vrot.lane.b32.xlu2 %v3303_v24, %s9736_s14  ;;  %3988 = vrot.lane.b32.xlu1 %v3609_v32, %s9737_s15  ;;  %v3695_v24 = vrot.slane %v3693_v7, 4  ;;  %v3698_v32 = vrot.slane %v3696_v51, 5  ;;  %v3666_v38 = vrot.slane %v3664_v50, 5  ;;  %v3715_v14 = vsel %vm9894_vm11, %v3710_v58, %v3714_v6  ;;  %v3502_v7 = vld [vmem:[#allocation2 + $0x38] sm:$0x1] }
 0x292   : > { %3271 = vst.msk [vmem:[#allocation3 + $0x78] sm:$0xf] %vm3240_vm7, %v3193_v4  ;;  %v3516_v4 = vld [vmem:[#allocation2 + $0x70] sm:$0xf]  ;;  %v3765_v51 = vshrl.u32 %v3521_v8, 16  ;;  %v3781_v46 = vor.u32 %v3780_v59, %v11372_v21 }
 0x293   : > { %v3191_v13 = vpop.permute.xlu2 %3190  ;;  %v3201_v37 = vpop.permute.xlu1 %3200  ;;  %v3699_v12 = vor.u32 %v3698_v32, %v3695_v24  ;;  %v3726_v1 = vshll.u32 %v3516_v4, 16  ;;  %v3730_v56 = vshrl.u32 %v3516_v4, 16  ;;  %v3527_v50 = vld [vmem:[#allocation2 + $0x9c] sm:$0xf]  ;;  %v3736_v24 = vshll.u32 %v3517_v54, 16 }
 0x294   : > { %3270 = vst.msk [vmem:[#allocation3 + $0x74] sm:$0xf] %vm3240_vm7, %v3191_v13  ;;  %v3816_v4 = vshll.u32 %v3527_v50, 16  ;;  %v3531_v16 = vld [vmem:[#allocation2 + $0xac] sm:$0xf] }
 0x295   : > { %3275 = vst.msk [vmem:[#allocation3 + $0x88] sm:$0xf] %vm3240_vm7, %v3201_v37  ;;  %v3732_v22 = vrot.slane %v3730_v56, 4 }
 0x296   : > { %v3818_v52 = vrot.slane %v3816_v4, 5 }
 0x297   : > { %3986 = vrot.lane.b32.xlu0 %v3595_v47, %s9737_s15  ;;  %v3579_v47 = vor.u32 %v3578_v9, %v3575_v33  ;;  %v3645_v33 = vshrl.u32 %v3506_v10, 16  ;;  %v3648_v9 = vshll.u32 %v3506_v10, 16 }
 0x299   : > { %v3199_v60 = vpop.permute.xlu0 %3198  ;;  %3407 = vrot.lane.b32.xlu2 %v3306_v26, %s9736_s14  ;;  %3994 = vrot.lane.b32.xlu1 %v3643_v15, %s9737_s15  ;;  %v3610_v15 = vshrl.u32 %v11290_v30, 16  ;;  %v3667_v26 = vsel %vm9894_vm11, %v3662_v34, %v3666_v38  ;;  %v3700_v30 = vrot.slane %v3699_v12, 4  ;;  %v3616_v34 = vshll.u32 %v3502_v7, 16 }
 0x29a   : > { %3274 = vst.msk [vmem:[#allocation3 + $0x84] sm:$0xf] %vm3240_vm7, %v3199_v60  ;;  %v3580_v60 = vrot.slane %v3579_v47, 4  ;;  %v3813_v38 = vshrl.u32 %v3527_v50, 16  ;;  %v3647_v6 = vrot.slane %v3645_v33, 4 }
 0x29b   : > { %v3197_v39 = vpop.permute.xlu2 %3196  ;;  %v3352_v53 = vpop.permute.xlu1 %3351  ;;  %v3705_v29 = vsel %vm9894_vm11, %v3700_v30, %v11341_v27  ;;  %v3753_v27 = vsel %vm9894_vm11, %v3748_v36, %v11367_v48  ;;  %v3682_v30 = vshrl.u32 %v11321_v25, 16  ;;  %v3850_v25 = vshrl.u32 %v3531_v16, 16  ;;  %v3526_v50 = vld [vmem:[#allocation2 + $0x98] sm:$0x1]  ;;  %v3511_v33 = vld [vmem:[#allocation2 + $0x5c] sm:$0x1] }
 0x29c   : > { %3273 = vst.msk [vmem:[#allocation3 + $0x80] sm:$0xf] %vm3240_vm7, %v3197_v39  ;;  %v3612_v39 = vrot.slane %v3610_v15, 4  ;;  %v3815_v56 = vrot.slane %v3813_v38, 4 }
 0x29d   : > { %3459 = vst.msk [vmem:[#allocation3 + $0x4] sm:$0xf] %vm13428_vm8, %v3352_v53 }
 0x29e   : > { %v3613_v32 = vor.u32 %v3612_v39, %v11305_v63  ;;  %v3738_v63 = vrot.slane %v3736_v24, 5  ;;  %v3819_v36 = vor.u32 %v3818_v52, %v3815_v56  ;;  %v3822_v39 = vshll.u32 %v11392_v41, 16  ;;  %v3536_v24 = vld [vmem:[#allocation2 + $0xc0] sm:$0xf] }
 0x29f   : > { %3992 = vrot.lane.b32.xlu0 %v3633_v55, %s9737_s15  ;;  %v11365_v55 = vrot.slane %v3726_v1, 5  ;;  %v3618_v1 = vrot.slane %v3616_v34, 5 }
 0x2a0   : > { %v3614_v47 = vrot.slane %v3613_v32, 4 }
 0x2a1   : > { %v3350_v17 = vpop.permute.xlu0 %3349  ;;  %3413 = vrot.lane.b32.xlu2 %v3309_v5, %s9736_s14  ;;  %4000 = vrot.lane.b32.xlu1 %v3681_v61, %s9737_s15  ;;  %v3585_v61 = vsel %vm9894_vm11, %v3580_v60, %v11298_v40  ;;  %v3733_v35 = vor.u32 %v3732_v22, %v11365_v55  ;;  %v3767_v40 = vrot.slane %v3765_v51, 4  ;;  %v3846_v51 = vshll.u32 %v3531_v16, 16 }
 0x2a2   : > { %3458 = vst.msk [vmem:[#allocation3] sm:$0xf] %vm13428_vm8, %v3350_v17  ;;  %v3784_v17 = vshll.u32 %v3523_v19, 16  ;;  %v3619_v54 = vsel %vm9894_vm11, %v3614_v47, %v3618_v1  ;;  %v3515_v19 = vld [vmem:[#allocation2 + $0x6c] sm:$0xf] }
 0x2a3   : > { %v3203_v13 = vpop.permute.xlu2 %3202  ;;  %v3358_v37 = vpop.permute.xlu1 %3357  ;;  %v3734_v58 = vrot.slane %v3733_v35, 4  ;;  %v3771_v15 = vor.u32 %v3770_v42, %v3767_v40  ;;  %v11409_v35 = vrot.slane %v3822_v39, 5  ;;  %v3808_v40 = vshll.u32 %v3526_v50, 16 }
 0x2a4   : > { %3276 = vst.msk [vmem:[#allocation3 + $0x8c] sm:$0xf] %vm3240_vm7, %v3203_v13  ;;  %v3650_v13 = vrot.slane %v3648_v9, 5  ;;  %v3786_v49 = vrot.slane %v3784_v17, 5  ;;  %v11415_v9 = vrot.slane %v3846_v51, 5  ;;  %v3754_v39 = vshrl.u32 %v11353_v44, 16 }
 0x2a5   : > { %3462 = vst.msk [vmem:[#allocation3 + $0x10] sm:$0xf] %vm13428_vm8, %v3358_v37  ;;  %v3525_v37 = vld [vmem:[#allocation2 + $0x94] sm:$0xf]  ;;  %v3739_v60 = vsel %vm9894_vm11, %v3734_v58, %v3738_v63  ;;  %v3532_v17 = vld [vmem:[#allocation2 + $0xb0] sm:$0x1] }
 0x2a6   : > { %v3798_v8 = vshll.u32 %v3525_v37, 16  ;;  %v3802_v28 = vshrl.u32 %v3525_v37, 16  ;;  %v3651_v22 = vor.u32 %v3650_v13, %v3647_v6  ;;  %v3717_v58 = vshrl.u32 %v3515_v19, 16 }
 0x2a7   : > { %3998 = vrot.lane.b32.xlu0 %v3667_v26, %s9737_s15  ;;  %v3782_v26 = vrot.slane %v3781_v46, 4  ;;  %v3720_v63 = vshll.u32 %v3515_v19, 16  ;;  %v3885_v6 = vshrl.u32 %v3536_v24, 16  ;;  %v3888_v13 = vshll.u32 %v3536_v24, 16 }
 0x2a8   : > { %v11405_v45 = vrot.slane %v3798_v8, 5  ;;  %v3804_v10 = vrot.slane %v3802_v28, 4  ;;  %v3652_v59 = vrot.slane %v3651_v22, 4  ;;  %v3688_v37 = vshll.u32 %v3511_v33, 16 }
 0x2a9   : > { %v3356_v53 = vpop.permute.xlu0 %3355  ;;  %3419 = vrot.lane.b32.xlu2 %v3312_v11, %s9736_s14  ;;  %4006 = vrot.lane.b32.xlu1 %v3715_v14, %s9737_s15  ;;  %v3787_v7 = vsel %vm9894_vm11, %v3782_v26, %v3786_v49  ;;  %v3856_v56 = vshll.u32 %v3532_v17, 16  ;;  %v3887_v8 = vrot.slane %v3885_v6, 4  ;;  %v3890_v28 = vrot.slane %v3888_v13, 5  ;;  %v3539_v17 = vld [vmem:[#allocation2 + $0xcc] sm:$0xf] }
 0x2aa   : > { %3461 = vst.msk [vmem:[#allocation3 + $0xc] sm:$0xf] %vm13428_vm8, %v3356_v53  ;;  %v3772_v53 = vrot.slane %v3771_v15, 4  ;;  %v3805_v4 = vor.u32 %v3804_v10, %v11405_v45  ;;  %v3810_v15 = vrot.slane %v3808_v40, 5  ;;  %v3756_v40 = vrot.slane %v3754_v39, 4 }
 0x2ab   : > { %v3354_v43 = vpop.permute.xlu2 %3353  ;;  %v3364_v5 = vpop.permute.xlu1 %3363  ;;  %v3541_v6 = vld [vmem:[#allocation2 + $0xd4] sm:$0x1]  ;;  %v3524_v13 = vld [vmem:[#allocation2 + $0x90] sm:$0xf] }
 0x2ac   : > { %3460 = vst.msk [vmem:[#allocation3 + $0x8] sm:$0xf] %vm13428_vm8, %v3354_v43  ;;  %v3684_v43 = vrot.slane %v3682_v30, 4  ;;  %v3777_v32 = vsel %vm9894_vm11, %v3772_v53, %v11372_v21  ;;  %v3806_v52 = vrot.slane %v3805_v4, 4  ;;  %v3690_v30 = vrot.slane %v3688_v37, 5 }
 0x2ad   : > { %3465 = vst.msk [vmem:[#allocation3 + $0x1c] sm:$0xf] %vm13428_vm8, %v3364_v5 }
 0x2ae   : > { %v3685_v21 = vor.u32 %v3684_v43, %v11339_v20  ;;  %v3722_v20 = vrot.slane %v3720_v63, 5  ;;  %v3891_v43 = vor.u32 %v3890_v28, %v3887_v8  ;;  %v3792_v8 = vshll.u32 %v3524_v13, 16 }
 0x2af   : > { %4004 = vrot.lane.b32.xlu0 %v3705_v29, %s9737_s15  ;;  %v3530_v29 = vld [vmem:[#allocation2 + $0xa8] sm:$0xf] }
 0x2b0   : > { %v3837_v42 = vshrl.u32 %v3530_v29, 16  ;;  %v3840_v46 = vshll.u32 %v3530_v29, 16 }
 0x2b1   : > { %v3362_v12 = vpop.permute.xlu0 %3361  ;;  %3984 = vrot.lane.b32.xlu2 %v3585_v61, %s9737_s15  ;;  %4012 = vrot.lane.b32.xlu1 %v3753_v27, %s9737_s15  ;;  %v3820_v61 = vrot.slane %v3819_v36, 4  ;;  %v3852_v27 = vrot.slane %v3850_v25, 4  ;;  %v3540_v36 = vld [vmem:[#allocation2 + $0xd0] sm:$0xf] }
 0x2b2   : > { %3464 = vst.msk [vmem:[#allocation3 + $0x18] sm:$0xf] %vm13428_vm8, %v3362_v12  ;;  %v3657_v12 = vsel %vm9894_vm11, %v3652_v59, %v11331_v62  ;;  %v3839_v26 = vrot.slane %v3837_v42, 4  ;;  %v3842_v49 = vrot.slane %v3840_v46, 5  ;;  %v3686_v62 = vrot.slane %v3685_v21, 4 }
 0x2b3   : > { %v3360_v11 = vpop.permute.xlu2 %3359  ;;  %v3370_v14 = vpop.permute.xlu1 %3369  ;;  %v3825_v47 = vsel %vm9894_vm11, %v3820_v61, %v11409_v35  ;;  %v3853_v1 = vor.u32 %v3852_v27, %v11415_v9  ;;  %v3811_v59 = vsel %vm9894_vm11, %v3806_v52, %v3810_v15  ;;  %v3922_v61 = vshrl.u32 %v3540_v36, 16  ;;  %v3520_v46 = vld [vmem:[#allocation2 + $0x80] sm:$0x1] }
 0x2b4   : > { %3463 = vst.msk [vmem:[#allocation3 + $0x14] sm:$0xf] %vm13428_vm8, %v3360_v11  ;;  %v3719_v11 = vrot.slane %v3717_v58, 4  ;;  %v3843_v51 = vor.u32 %v3842_v49, %v3839_v26  ;;  %v3691_v44 = vsel %vm9894_vm11, %v3686_v62, %v3690_v30  ;;  %v3757_v52 = vor.u32 %v3756_v40, %v11367_v48 }
 0x2b5   : > { %3468 = vst.msk [vmem:[#allocation3 + $0x28] sm:$0xf] %vm13428_vm8, %v3370_v14  ;;  %v3534_v14 = vld [vmem:[#allocation2 + $0xb8] sm:$0xf]  ;;  %v3854_v22 = vrot.slane %v3853_v1, 4  ;;  %v3924_v63 = vrot.slane %v3922_v61, 4 }
 0x2b6   : > { %v3870_v25 = vshll.u32 %v3534_v14, 16  ;;  %v3874_v10 = vshrl.u32 %v3534_v14, 16  ;;  %v3723_v50 = vor.u32 %v3722_v20, %v3719_v11  ;;  %v3844_v24 = vrot.slane %v3843_v51, 4  ;;  %v11472_v61 = vld [vmem:[#allocation2 + $0xe8] sm:$0xf] }
 0x2b7   : > { %4010 = vrot.lane.b32.xlu0 %v3739_v60, %s9737_s15  ;;  %v11431_v60 = vld [vmem:[#allocation2 + $0xc4] sm:$0xf]  ;;  %v3760_v15 = vshll.u32 %v3520_v46, 16  ;;  %v3909_v26 = vshrl.u32 %v3539_v17, 16  ;;  %v3912_v49 = vshll.u32 %v3539_v17, 16  ;;  %v3928_v20 = vshll.u32 %v3541_v6, 16 }
 0x2b8   : > { %v3894_v29 = vshll.u32 %v11431_v60, 16  ;;  %v3876_v33 = vrot.slane %v3874_v10, 4  ;;  %v3724_v27 = vrot.slane %v3723_v50, 4  ;;  %v3849_v37 = vsel %vm9894_vm11, %v3844_v24, %v11415_v9  ;;  %v3543_v10 = vld [vmem:[#allocation2 + $0xdc] sm:$0xf] }
 0x2b9   : > { %v3368_v5 = vpop.permute.xlu0 %3367  ;;  %3990 = vrot.lane.b32.xlu2 %v3619_v54, %s9737_s15  ;;  %4018 = vrot.lane.b32.xlu1 %v3787_v7, %s9737_s15  ;;  %v3858_v54 = vrot.slane %v3856_v56, 5  ;;  %v3545_v56 = vld [vmem:[#allocation2 + $0xe4] sm:$0xf]  ;;  %v3789_v14 = vshrl.u32 %v3524_v13, 16  ;;  %v3914_v39 = vrot.slane %v3912_v49, 5  ;;  %v3942_v24 = vshll.u32 %v3543_v10, 16 }
 0x2ba   : > { %3467 = vst.msk [vmem:[#allocation3 + $0x24] sm:$0xf] %vm13428_vm8, %v3368_v5  ;;  %v3918_v5 = vshll.u32 %v3540_v36, 16  ;;  %v11447_v4 = vrot.slane %v3894_v29, 5  ;;  %v3729_v9 = vsel %vm9894_vm11, %v3724_v27, %v11365_v55  ;;  %v3960_v48 = vshll.u32 %v3545_v56, 16 }
 0x2bb   : > { %v3366_v34 = vpop.permute.xlu2 %3365  ;;  %v3376_v38 = vpop.permute.xlu1 %3375  ;;  %v3859_v19 = vsel %vm9894_vm11, %v3854_v22, %v3858_v54  ;;  %v3758_v22 = vrot.slane %v3757_v52, 4  ;;  %v3762_v54 = vrot.slane %v3760_v15, 5  ;;  %v3911_v36 = vrot.slane %v3909_v26, 4  ;;  %v3529_v26 = vld [vmem:[#allocation2 + $0xa4] sm:$0x1] }
 0x2bc   : > { %3466 = vst.msk [vmem:[#allocation3 + $0x20] sm:$0xf] %vm13428_vm8, %v3366_v34  ;;  %v3535_v34 = vld [vmem:[#allocation2 + $0xbc] sm:$0x1]  ;;  %v11451_v58 = vrot.slane %v3918_v5, 5  ;;  %v3791_v51 = vrot.slane %v3789_v14, 4 }
 0x2bd   : > { %3471 = vst.msk [vmem:[#allocation3 + $0x34] sm:$0xf] %vm13428_vm8, %v3376_v38  ;;  %v3892_v38 = vrot.slane %v3891_v43, 4  ;;  %v3880_v1 = vshll.u32 %v3535_v34, 16  ;;  %v3962_v50 = vrot.slane %v3960_v48, 5  ;;  %v3826_v27 = vshrl.u32 %v11392_v41, 16 }
 0x2be   : > { %v3925_v11 = vor.u32 %v3924_v63, %v11451_v58  ;;  %v427_v43 = vld [vmem:[#allocation2 + $0xec] sm:$0x1]  ;;  %v3763_v40 = vsel %vm9894_vm11, %v3758_v22, %v3762_v54  ;;  %v3966_v17 = vshll.u32 %v11472_v61, 16  ;;  %v11487_v41 = vrot.slane %v3942_v24, 5  ;;  %v4126_v49 = vld [vmem:[#allocation2 + $0x1c] sm:$0xf] }
 0x2bf   : > { %4016 = vrot.lane.b32.xlu0 %v3777_v32, %s9737_s15  ;;  %v11445_v32 = vrot.slane %v3870_v25, 5  ;;  %v3897_v28 = vsel %vm9894_vm11, %v3892_v38, %v11447_v4  ;;  %v3882_v30 = vrot.slane %v3880_v1, 5  ;;  %v3794_v25 = vrot.slane %v3792_v8, 5  ;;  %v4127_v54 = vld [vmem:[#allocation2 + $0x20] sm:$0x1] }
 0x2c0   : > { %v3926_v55 = vrot.slane %v3925_v11, 4  ;;  %v428_v38 = vsel %vm9807_vm5, 0, %v427_v43  ;;  %v11492_v1 = vrot.slane %v3966_v17, 5  ;;  %v4125_v43 = vld [vmem:[#allocation2 + $0x18] sm:$0xe] }
 0x2c1   : > { %v3374_v16 = vpop.permute.xlu0 %3373  ;;  %3996 = vrot.lane.b32.xlu2 %v3657_v12, %s9737_s15  ;;  %4024 = vrot.lane.b32.xlu1 %v3825_v47, %s9737_s15  ;;  %v3877_v47 = vor.u32 %v3876_v33, %v11445_v32  ;;  %v3946_v33 = vshrl.u32 %v3543_v10, 16  ;;  %v3795_v34 = vor.u32 %v3794_v25, %v3791_v51  ;;  %429 = vst [vmem:[#allocation2 + $0xec] sm:$0x1] %v428_v38  ;;  %v4238_v25 = vrot.slane %v4127_v54, 5  ;;  %v4131_v24 = vld [vmem:[#allocation2 + $0x30] sm:$0xe] }
 0x2c2   : > { %3470 = vst.msk [vmem:[#allocation3 + $0x30] sm:$0xf] %vm13428_vm8, %v3374_v16  ;;  %v3957_v16 = vshrl.u32 %v3545_v56, 16  ;;  %v3533_v56 = vld [vmem:[#allocation2 + $0xb4] sm:$0xf] }
 0x2c3   : > { %v3372_v53 = vpop.permute.xlu2 %3371  ;;  %v3382_v7 = vpop.permute.xlu1 %3381  ;;  %v3878_v62 = vrot.slane %v3877_v47, 4  ;;  %v3948_v6 = vrot.slane %v3946_v33, 4  ;;  %v11523_v33 = vld [vmem:[#allocation2 + $0x34] sm:$0xf]  ;;  %v3542_v17 = vld [vmem:[#allocation2 + $0xd8] sm:$0xf] }
 0x2c4   : > { %3469 = vst.msk [vmem:[#allocation3 + $0x2c] sm:$0xf] %vm13428_vm8, %v3372_v53 }
 0x2c5   : > { %3474 = vst.msk [vmem:[#allocation3 + $0x40] sm:$0xf] %vm13428_vm8, %v3382_v7  ;;  %v3930_v7 = vrot.slane %v3928_v20, 5  ;;  %v3949_v20 = vor.u32 %v3948_v6, %v11487_v41 }
 0x2c7   : > { %4022 = vrot.lane.b32.xlu0 %v3811_v59, %s9737_s15  ;;  %v3959_v59 = vrot.slane %v3957_v16, 4  ;;  %v3864_v16 = vshll.u32 %v3533_v56, 16 }
 0x2c8   : > { %v958_v48 = vld [vmem:[#allocation2 + $0xec] sm:$0x1] }
 0x2c9   : > { %v3380_v42 = vpop.permute.xlu0 %3379  ;;  %4002 = vrot.lane.b32.xlu2 %v3691_v44, %s9737_s15  ;;  %4030 = vrot.lane.b32.xlu1 %v3859_v19, %s9737_s15  ;;  %v3883_v44 = vsel %vm9894_vm11, %v3878_v62, %v3882_v30  ;;  %v3915_v19 = vor.u32 %v3914_v39, %v3911_v36  ;;  %v3963_v46 = vor.u32 %v3962_v50, %v3959_v59  ;;  %v3832_v30 = vshll.u32 %v3529_v26, 16 }
 0x2ca   : > { %3473 = vst.msk [vmem:[#allocation3 + $0x3c] sm:$0xf] %vm13428_vm8, %v3380_v42  ;;  %v3931_v42 = vsel %vm9894_vm11, %v3926_v55, %v3930_v7  ;;  %v959_v22 = vsel %vm9801_vm4, 0, %v958_v48  ;;  %v3950_v36 = vrot.slane %v3949_v20, 4 }
 0x2cb   : > { %v3378_v21 = vpop.permute.xlu2 %3377  ;;  %v3388_v12 = vpop.permute.xlu1 %3387  ;;  %v3916_v63 = vrot.slane %v3915_v19, 4  ;;  %v3964_v47 = vrot.slane %v3963_v46, 4  ;;  %960 = vst [vmem:[#allocation2 + $0xec] sm:$0x1] %v959_v22  ;;  %v3834_v7 = vrot.slane %v3832_v30, 5 }
 0x2cc   : > { %3472 = vst.msk [vmem:[#allocation3 + $0x38] sm:$0xf] %vm13428_vm8, %v3378_v21  ;;  %v3796_v21 = vrot.slane %v3795_v34, 4 }
 0x2cd   : > { %3477 = vst.msk [vmem:[#allocation3 + $0x4c] sm:$0xf] %vm13428_vm8, %v3388_v12  ;;  %v3828_v12 = vrot.slane %v3826_v27, 4  ;;  %v3921_v11 = vsel %vm9894_vm11, %v3916_v63, %v11451_v58  ;;  %v3969_v62 = vsel %vm9894_vm11, %v3964_v47, %v11492_v1  ;;  %v4235_v58 = vrot.slane %v4126_v49, 5 }
 0x2ce   : > { %v3801_v8 = vsel %vm9894_vm11, %v3796_v21, %v11405_v45  ;;  %v9341_v27 = vrot.slane %v4125_v43, 9  ;;  %v4135_v21 = vld [vmem:[#allocation2 + $0x40] sm:$0xf] }
 0x2cf   : > { %4028 = vrot.lane.b32.xlu0 %v3849_v37, %s9737_s15  ;;  %v3544_v37 = vld [vmem:[#allocation2 + $0xe0] sm:$0x1]  ;;  %v4237_v51 = vrot.slane %v4235_v58, 4  ;;  %v4256_v20 = vrot.slane %v4135_v21, 5 }
 0x2d0   : > { %v3952_v14 = vshll.u32 %v3544_v37, 16  ;;  %v4236_v37 = vsel %vm10365_vm15, %v9341_v27, %v4235_v58 }
 0x2d1   : > { %v3386_v53 = vpop.permute.xlu0 %3385  ;;  %4008 = vrot.lane.b32.xlu2 %v3729_v9, %s9737_s15  ;;  %4036 = vrot.lane.b32.xlu1 %v3897_v28, %s9737_s15  ;;  %v3829_v9 = vor.u32 %v3828_v12, %v11409_v35  ;;  %v3861_v28 = vshrl.u32 %v3533_v56, 16  ;;  %v4239_v19 = vsel %vm10365_vm15, %v4237_v51, %v4238_v25  ;;  %v4130_v56 = vld [vmem:[#allocation2 + $0x2c] sm:$0x1] }
 0x2d2   : > { %3476 = vst.msk [vmem:[#allocation3 + $0x48] sm:$0xf] %vm13428_vm8, %v3386_v53  ;;  %v3954_v45 = vrot.slane %v3952_v14, 5  ;;  %v3866_v53 = vrot.slane %v3864_v16, 5  ;;  %v4136_v14 = vld [vmem:[#allocation2 + $0x44] sm:$0x1] }
 0x2d3   : > { %v3384_v29 = vpop.permute.xlu2 %3383  ;;  %v3394_v5 = vpop.permute.xlu1 %3393  ;;  %v3863_v35 = vrot.slane %v3861_v28, 4  ;;  %v3830_v55 = vrot.slane %v3829_v9, 4  ;;  %v4245_v9 = vrot.slane %v4130_v56, 5  ;;  %v4259_v30 = vrot.slane %v4136_v14, 5  ;;  %v4128_v14 = vld [vmem:[#allocation2 + $0x24] sm:$0xe] }
 0x2d4   : > { %3475 = vst.msk [vmem:[#allocation3 + $0x44] sm:$0xf] %vm13428_vm8, %v3384_v29  ;;  %v3955_v50 = vsel %vm9894_vm11, %v3950_v36, %v3954_v45  ;;  %v4134_v36 = vld [vmem:[#allocation2 + $0x3c] sm:$0xe] }
 0x2d5   : > { %3480 = vst.msk [vmem:[#allocation3 + $0x58] sm:$0xf] %vm13428_vm8, %v3394_v5  ;;  %v3867_v29 = vor.u32 %v3866_v53, %v3863_v35  ;;  %v3898_v5 = vshrl.u32 %v11431_v60, 16  ;;  %v11527_v60 = vld [vmem:[#allocation2 + $0x28] sm:$0xf]  ;;  %v9344_v51 = vrot.slane %v4134_v36, 9 }
 0x2d6   : > { %v4242_v12 = vrot.slane %v11527_v60, 5 }
 0x2d7   : > { %4034 = vrot.lane.b32.xlu0 %v3883_v44, %s9737_s15  ;;  %v3835_v44 = vsel %vm9894_vm11, %v3830_v55, %v3834_v7  ;;  %v3868_v38 = vrot.slane %v3867_v29, 4  ;;  %v3900_v46 = vrot.slane %v3898_v5, 4  ;;  %v4140_v55 = vld [vmem:[#allocation2 + $0x54] sm:$0xe]  ;;  %v11560_v7 = vld [vmem:[#allocation2 + $0x58] sm:$0xf] }
 0x2d9   : > { %v3392_v13 = vpop.permute.xlu0 %3391  ;;  %4014 = vrot.lane.b32.xlu2 %v3763_v40, %s9737_s15  ;;  %4042 = vrot.lane.b32.xlu1 %v3931_v42, %s9737_s15  ;;  %v9343_v40 = vrot.slane %v4131_v24, 9  ;;  %v4249_v42 = vrot.slane %v11523_v33, 5  ;;  %v3873_v47 = vsel %vm9894_vm11, %v3868_v38, %v11445_v32  ;;  %v3901_v49 = vor.u32 %v3900_v46, %v11447_v4  ;;  %v4139_v38 = vld [vmem:[#allocation2 + $0x50] sm:$0x1] }
 0x2da   : > { %3479 = vst.msk [vmem:[#allocation3 + $0x54] sm:$0xf] %vm13428_vm8, %v3392_v13  ;;  %v3538_v13 = vld [vmem:[#allocation2 + $0xc8] sm:$0x1]  ;;  %v4257_v24 = vsel %vm10365_vm15, %v9344_v51, %v4256_v20  ;;  %v4266_v21 = vrot.slane %v4139_v38, 5 }
 0x2db   : > { %v3390_v52 = vpop.permute.xlu2 %3389  ;;  %v3400_v15 = vpop.permute.xlu1 %3399  ;;  %v4250_v26 = vsel %vm10365_vm15, %v9343_v40, %v4249_v42  ;;  %v3902_v48 = vrot.slane %v3901_v49, 4  ;;  %v4143_v49 = vld [vmem:[#allocation2 + $0x60] sm:$0xe]  ;;  %v4154_v51 = vld [vmem:[#allocation2 + $0x8c] sm:$0x1]  ;;  %v4251_v60 = vrot.slane %v4249_v42, 4 }
 0x2dc   : > { %3478 = vst.msk [vmem:[#allocation3 + $0x50] sm:$0xf] %vm13428_vm8, %v3390_v52  ;;  %v3933_v52 = vshrl.u32 %v3542_v17, 16  ;;  %v4137_v42 = vld [vmem:[#allocation2 + $0x48] sm:$0xe] }
 0x2dd   : > { %3483 = vst.msk [vmem:[#allocation3 + $0x64] sm:$0xf] %vm13428_vm8, %v3400_v15  ;;  %v3936_v15 = vshll.u32 %v3542_v17, 16 }
 0x2de   : > { %v3935_v28 = vrot.slane %v3933_v52, 4 }
 0x2df   : > { %4040 = vrot.lane.b32.xlu0 %v3921_v11, %s9737_s15  ;;  %v3904_v11 = vshll.u32 %v3538_v13, 16  ;;  %v3938_v16 = vrot.slane %v3936_v15, 5 }
 0x2e1   : > { %v3398_v39 = vpop.permute.xlu0 %3397  ;;  %4020 = vrot.lane.b32.xlu2 %v3801_v8, %s9737_s15  ;;  %4048 = vrot.lane.b32.xlu1 %v3969_v62, %s9737_s15  ;;  %v4244_v8 = vrot.slane %v4242_v12, 4  ;;  %v3906_v4 = vrot.slane %v3904_v11, 5  ;;  %v4258_v62 = vrot.slane %v4256_v20, 4  ;;  %v3939_v45 = vor.u32 %v3938_v16, %v3935_v28  ;;  %v11600_v16 = vld [vmem:[#allocation2 + $0x70] sm:$0xf] }
 0x2e2   : > { %3482 = vst.msk [vmem:[#allocation3 + $0x60] sm:$0xf] %vm13428_vm8, %v3398_v39  ;;  %v3970_v39 = vshrl.u32 %v11472_v61, 16  ;;  %v9346_v61 = vrot.slane %v4140_v55, 9  ;;  %v4284_v36 = vrot.slane %v11600_v16, 5 }
 0x2e3   : > { %v3396_v10 = vpop.permute.xlu2 %3395  ;;  %v3406_v59 = vpop.permute.xlu1 %3405  ;;  %v4246_v54 = vsel %vm10365_vm15, %v4244_v8, %v4245_v9  ;;  %v3907_v35 = vsel %vm9894_vm11, %v3902_v48, %v3906_v4  ;;  %v4260_v53 = vsel %vm10365_vm15, %v4258_v62, %v4259_v30  ;;  %v4149_v8 = vld [vmem:[#allocation2 + $0x78] sm:$0xe]  ;;  %v11596_v9 = vld [vmem:[#allocation2 + $0x7c] sm:$0xf]  ;;  %v9342_v48 = vrot.slane %v4128_v14, 9 }
 0x2e4   : > { %3481 = vst.msk [vmem:[#allocation3 + $0x5c] sm:$0xf] %vm13428_vm8, %v3396_v10  ;;  %v3940_v10 = vrot.slane %v3939_v45, 4  ;;  %v3972_v43 = vrot.slane %v3970_v39, 4  ;;  %v9349_v4 = vrot.slane %v4149_v8, 9  ;;  %v4291_v62 = vrot.slane %v11596_v9, 5 }
 0x2e5   : > { %3486 = vst.msk [vmem:[#allocation3 + $0x70] sm:$0xf] %vm13428_vm8, %v3406_v59  ;;  %v11564_v59 = vld [vmem:[#allocation2 + $0x4c] sm:$0xf]  ;;  %v4148_v45 = vld [vmem:[#allocation2 + $0x74] sm:$0x1]  ;;  %v4243_v39 = vsel %vm10365_vm15, %v9342_v48, %v4242_v12 }
 0x2e6   : > { %v4263_v27 = vrot.slane %v11564_v59, 5  ;;  %v3973_v46 = vor.u32 %v3972_v43, %v11492_v1  ;;  %v4133_v55 = vld [vmem:[#allocation2 + $0x38] sm:$0x1]  ;;  %v4146_v48 = vld [vmem:[#allocation2 + $0x6c] sm:$0xe]  ;;  %v4293_v16 = vrot.slane %v4291_v62, 4 }
 0x2e7   : > { %4046 = vrot.lane.b32.xlu0 %v3955_v50, %s9737_s15  ;;  %v4270_v50 = vrot.slane %v11560_v7, 5  ;;  %v4252_v12 = vrot.slane %v4133_v55, 5  ;;  %v4162_v7 = vld [vmem:[#allocation2 + $0xac] sm:$0xf] }
 0x2e8   : > { %v4265_v13 = vrot.slane %v4263_v27, 4 }
 0x2e9   : > { %v3404_v34 = vpop.permute.xlu0 %3403  ;;  %4026 = vrot.lane.b32.xlu2 %v3835_v44, %s9737_s15  ;;  %4361 = vrot.lane.b32.xlu1 %v4239_v19, %s9738_s16  ;;  %v3547_v44 = vld [vmem:[#allocation2 + $0xec] sm:$0x1]  ;;  %v4144_v19 = vld [vmem:[#allocation2 + $0x64] sm:$0xf]  ;;  %v4271_v40 = vsel %vm10365_vm15, %v9346_v61, %v4270_v50  ;;  %v4272_v59 = vrot.slane %v4270_v50, 4  ;;  %v9348_v50 = vrot.slane %v4146_v48, 9 }
 0x2ea   : > { %3485 = vst.msk [vmem:[#allocation3 + $0x6c] sm:$0xf] %vm13428_vm8, %v3404_v34  ;;  %v3945_v34 = vsel %vm9894_vm11, %v3940_v10, %v11487_v41  ;;  %v3976_v17 = vshll.u32 %v3547_v44, 16  ;;  %v3974_v41 = vrot.slane %v3973_v46, 4  ;;  %v4287_v10 = vrot.slane %v4148_v45, 5 }
 0x2eb   : > { %v3402_v63 = vpop.permute.xlu2 %3401  ;;  %v3412_v6 = vpop.permute.xlu1 %3411  ;;  %v11636_v46 = vld [vmem:[#allocation2 + $0x94] sm:$0xf]  ;;  %v4163_v45 = vld [vmem:[#allocation2 + $0xb0] sm:$0x1]  ;;  %v4285_v55 = vsel %vm10365_vm15, %v9348_v50, %v4284_v36 }
 0x2ec   : > { %3484 = vst.msk [vmem:[#allocation3 + $0x68] sm:$0xf] %vm13428_vm8, %v3402_v63  ;;  %v4277_v63 = vrot.slane %v4144_v19, 5  ;;  %v4164_v50 = vld [vmem:[#allocation2 + $0xb4] sm:$0xe] }
 0x2ed   : > { %3489 = vst.msk [vmem:[#allocation3 + $0x7c] sm:$0xf] %vm13428_vm8, %v3412_v6  ;;  %v4145_v6 = vld [vmem:[#allocation2 + $0x68] sm:$0x1] }
 0x2ee   : > { %v4279_v56 = vrot.slane %v4277_v63, 4  ;;  %v4280_v1 = vrot.slane %v4145_v6, 5 }
 0x2ef   : > { %4359 = vrot.lane.b32.xlu0 %v4236_v37, %s9738_s16 }
 0x2f0   : > { %v4281_v20 = vsel %vm10365_vm15, %v4279_v56, %v4280_v1  ;;  %v4157_v1 = vld [vmem:[#allocation2 + $0x98] sm:$0x1] }
 0x2f1   : > { %v3410_v32 = vpop.permute.xlu0 %3409  ;;  %4032 = vrot.lane.b32.xlu2 %v3873_v47, %s9737_s15  ;;  %4367 = vrot.lane.b32.xlu1 %v4250_v26, %s9738_s16  ;;  %v3978_v47 = vrot.slane %v3976_v17, 5  ;;  %v4267_v26 = vsel %vm10365_vm15, %v4265_v13, %v4266_v21  ;;  %v9345_v17 = vrot.slane %v4137_v42, 9  ;;  %v4158_v13 = vld [vmem:[#allocation2 + $0x9c] sm:$0xe]  ;;  %v11639_v21 = vld [vmem:[#allocation2 + $0xa0] sm:$0xf] }
 0x2f2   : > { %3488 = vst.msk [vmem:[#allocation3 + $0x78] sm:$0xf] %vm13428_vm8, %v3410_v32  ;;  %v9347_v32 = vrot.slane %v4143_v49, 9  ;;  %v4312_v56 = vrot.slane %v11639_v21, 5 }
 0x2f3   : > { %v3408_v58 = vpop.permute.xlu2 %3407  ;;  %v3418_v22 = vpop.permute.xlu1 %3417  ;;  %v3979_v11 = vsel %vm9894_vm11, %v3974_v41, %v3978_v47  ;;  %v4305_v41 = vrot.slane %v11636_v46, 5  ;;  %v9352_v47 = vrot.slane %v4158_v13, 9  ;;  %v9633_v13 = vld [vmem:[%s13421_s1 + $0x10] sm:$0xff] }
 0x2f4   : > { %3487 = vst.msk [vmem:[#allocation3 + $0x74] sm:$0xf] %vm13428_vm8, %v3408_v58 }
 0x2f5   : > { %3492 = vst.msk [vmem:[#allocation3 + $0x88] sm:$0xf] %vm13428_vm8, %v3418_v22  ;;  %v4153_v22 = vld [vmem:[#allocation2 + $0x88] sm:$0xf]  ;;  %v4307_v49 = vrot.slane %v4305_v41, 4 }
 0x2f7   : > { %4365 = vrot.lane.b32.xlu0 %v4246_v54, %s9738_s16  ;;  %v4278_v54 = vsel %vm10365_vm15, %v9347_v32, %v4277_v63 }
 0x2f9   : > { %v3416_v25 = vpop.permute.xlu0 %3415  ;;  %4038 = vrot.lane.b32.xlu2 %v3907_v35, %s9737_s15  ;;  %4373 = vrot.lane.b32.xlu1 %v4260_v53, %s9738_s16  ;;  %v4292_v35 = vsel %vm10365_vm15, %v9349_v4, %v4291_v62  ;;  %v4298_v53 = vrot.slane %v4153_v22, 5 }
 0x2fa   : > { %3491 = vst.msk [vmem:[#allocation3 + $0x84] sm:$0xf] %vm13428_vm8, %v3416_v25  ;;  %v4286_v25 = vrot.slane %v4284_v36, 4 }
 0x2fb   : > { %v3414_v29 = vpop.permute.xlu2 %3413  ;;  %v3983_v5 = vpop.permute.xlu1 %3982  ;;  %v4300_v43 = vrot.slane %v4298_v53, 4 }
 0x2fc   : > { %3490 = vst.msk [vmem:[#allocation3 + $0x80] sm:$0xf] %vm13428_vm8, %v3414_v29  ;;  %v4301_v29 = vrot.slane %v4154_v51, 5  ;;  %v4288_v19 = vsel %vm10365_vm15, %v4286_v25, %v4287_v10  ;;  %v4151_v10 = vld [vmem:[#allocation2 + $0x80] sm:$0x1] }
 0x2fd   : > { %4090 = vst.msk [vmem:[#allocation3 + $0x4] sm:$0xf] %vm4088_vm12, %v3983_v5  ;;  %v4294_v36 = vrot.slane %v4151_v10, 5 }
 0x2fe   : > { %v4302_v33 = vsel %vm10365_vm15, %v4300_v43, %v4301_v29 }
 0x2ff   : > { %4371 = vrot.lane.b32.xlu0 %v4257_v24, %s9738_s16  ;;  %v4152_v24 = vld [vmem:[#allocation2 + $0x84] sm:$0xe] }
 0x300   : > { %v9350_v38 = vrot.slane %v4152_v24, 9  ;;  %v4165_v24 = vld [vmem:[#allocation2 + $0xb8] sm:$0xf] }
 0x301   : > { %v3981_v37 = vpop.permute.xlu0 %3980  ;;  %4044 = vrot.lane.b32.xlu2 %v3945_v34, %s9737_s15  ;;  %4379 = vrot.lane.b32.xlu1 %v4271_v40, %s9738_s16  ;;  %v4253_v34 = vsel %vm10365_vm15, %v4251_v60, %v4252_v12  ;;  %v4548_v60 = vld [vmem:[%s13421_s1 + $0x20] sm:$0xf]  ;;  %v4326_v42 = vrot.slane %v4165_v24, 5 }
 0x302   : > { %4089 = vst.msk [vmem:[#allocation3] sm:$0xf] %vm4088_vm12, %v3981_v37  ;;  %v4299_v37 = vsel %vm10365_vm15, %v9350_v38, %v4298_v53  ;;  %v4322_v53 = vrot.slane %v4163_v45, 5  ;;  %v4656_v29 = vunpack.c.l.b16 %v4548_v60 }
 0x303   : > { %v3420_v52 = vpop.permute.xlu2 %3419  ;;  %v3989_v15 = vpop.permute.xlu1 %3988 }
 0x304   : > { %3493 = vst.msk [vmem:[#allocation3 + $0x8c] sm:$0xf] %vm13428_vm8, %v3420_v52  ;;  %v4264_v52 = vsel %vm10365_vm15, %v9345_v17, %v4263_v27  ;;  %v4166_v17 = vld [vmem:[#allocation2 + $0xbc] sm:$0x1]  ;;  %vm4467_vm8 = vcmask 585216  }
 0x305   : > { %4093 = vst.msk [vmem:[#allocation3 + $0x10] sm:$0xf] %vm4088_vm12, %v3989_v15  ;;  %v4313_v15 = vsel %vm10365_vm15, %v9352_v47, %v4312_v56 }
 0x307   : > { %4377 = vrot.lane.b32.xlu0 %v4267_v26, %s9738_s16  ;;  %v4142_v26 = vld [vmem:[#allocation2 + $0x5c] sm:$0x1] }
 0x308   : > { %v4273_v27 = vrot.slane %v4142_v26, 5 }
 0x309   : > { %v3987_v28 = vpop.permute.xlu0 %3986  ;;  %4050 = vrot.lane.b32.xlu2 %v3979_v11, %s9737_s15  ;;  %4385 = vrot.lane.b32.xlu1 %v4281_v20, %s9738_s16  ;;  %v4308_v11 = vrot.slane %v4157_v1, 5  ;;  %v4160_v1 = vld [vmem:[#allocation2 + $0xa4] sm:$0x1] }
 0x30a   : > { %4092 = vst.msk [vmem:[#allocation3 + $0xc] sm:$0xf] %vm4088_vm12, %v3987_v28  ;;  %v4274_v28 = vsel %vm10365_vm15, %v4272_v59, %v4273_v27  ;;  %v4315_v46 = vrot.slane %v4160_v1, 5  ;;  %v4167_v27 = vld [vmem:[#allocation2 + $0xc0] sm:$0xe] }
 0x30b   : > { %v3985_v30 = vpop.permute.xlu2 %3984  ;;  %v3995_v58 = vpop.permute.xlu1 %3994  ;;  %v4309_v32 = vsel %vm10365_vm15, %v4307_v49, %v4308_v11  ;;  %v9631_v11 = vld [vmem:[%s13421_s1] sm:$0xff] }
 0x30c   : > { %4091 = vst.msk [vmem:[#allocation3 + $0x8] sm:$0xf] %vm4088_vm12, %v3985_v30  ;;  %v4319_v30 = vrot.slane %v4162_v7, 5 }
 0x30d   : > { %4096 = vst.msk [vmem:[#allocation3 + $0x1c] sm:$0xf] %vm4088_vm12, %v3995_v58 }
 0x30f   : > { %4383 = vrot.lane.b32.xlu0 %v4278_v54, %s9738_s16  ;;  %v4161_v54 = vld [vmem:[#allocation2 + $0xa8] sm:$0xe] }
 0x311   : > { %v3993_v61 = vpop.permute.xlu0 %3992  ;;  %4363 = vrot.lane.b32.xlu2 %v4243_v39, %s9738_s16  ;;  %4391 = vrot.lane.b32.xlu1 %v4292_v35, %s9738_s16  ;;  %v9353_v39 = vrot.slane %v4161_v54, 9  ;;  %v4321_v35 = vrot.slane %v4319_v30, 4  ;;  %v4171_v54 = vld [vmem:[#allocation2 + $0xd0] sm:$0xf] }
 0x312   : > { %4095 = vst.msk [vmem:[#allocation3 + $0x18] sm:$0xf] %vm4088_vm12, %v3993_v61  ;;  %v4340_v45 = vrot.slane %v4171_v54, 5 }
 0x313   : > { %v3991_v5 = vpop.permute.xlu2 %3990  ;;  %v4001_v44 = vpop.permute.xlu1 %4000  ;;  %v4320_v51 = vsel %vm10365_vm15, %v9353_v39, %v4319_v30  ;;  %v4323_v25 = vsel %vm10365_vm15, %v4321_v35, %v4322_v53  ;;  %v9354_v30 = vrot.slane %v4164_v50, 9  ;;  %v4170_v53 = vld [vmem:[#allocation2 + $0xcc] sm:$0xe] }
 0x314   : > { %4094 = vst.msk [vmem:[#allocation3 + $0x14] sm:$0xf] %vm4088_vm12, %v3991_v5  ;;  %v4661_v5 = vpack.c.b16 %v4656_v29, %v4656_v29 }
 0x315   : > { %4099 = vst.msk [vmem:[#allocation3 + $0x28] sm:$0xf] %vm4088_vm12, %v4001_v44  ;;  %v4295_v44 = vsel %vm10365_vm15, %v4293_v16, %v4294_v36 }
 0x316   : > { %v4723_v9 = vsel %vm13429_vm13, %v4661_v5, 0  ;;  %vm4666_vm13 = vcmask 588800  }
 0x317   : > { %4389 = vrot.lane.b32.xlu0 %v4288_v19, %s9738_s16  ;;  %v4155_v19 = vld [vmem:[#allocation2 + $0x90] sm:$0xe]  ;;  %4728 = vmatpush.bf16.msra.mxu0 %v4723_v9 }
 0x318   : > { %9655 = vmatpush.bf16.msra.mxu2 %v4723_v9 }
 0x319   : > { %v3999_v40 = vpop.permute.xlu0 %3998  ;;  %4369 = vrot.lane.b32.xlu2 %v4253_v34, %s9738_s16  ;;  %4397 = vrot.lane.b32.xlu1 %v4302_v33, %s9738_s16  ;;  %v9351_v34 = vrot.slane %v4155_v19, 9  ;;  %v9634_v33 = vld [vmem:[%s13421_s1 + $0x18] sm:$0xff] }
 0x31a   : > { %4098 = vst.msk [vmem:[#allocation3 + $0x24] sm:$0xf] %vm4088_vm12, %v3999_v40 }
 0x31b   : > { %v3997_v63 = vpop.permute.xlu2 %3996  ;;  %v4007_v6 = vpop.permute.xlu1 %4006  ;;  %4729 = vmatpush.bf16.msra.mxu0 %v9634_v33 }
 0x31c   : > { %4097 = vst.msk [vmem:[#allocation3 + $0x20] sm:$0xf] %vm4088_vm12, %v3997_v63  ;;  %v4328_v63 = vrot.slane %v4326_v42, 4  ;;  %9656 = vmatpush.bf16.msra.mxu2 %v9634_v33 }
 0x31d   : > { %4102 = vst.msk [vmem:[#allocation3 + $0x34] sm:$0xf] %vm4088_vm12, %v4007_v6  ;;  %v4329_v6 = vrot.slane %v4166_v17, 5 }
 0x31f   : > { %4395 = vrot.lane.b32.xlu0 %v4299_v37, %s9738_s16  ;;  %v4306_v37 = vsel %vm10365_vm15, %v9351_v34, %v4305_v41  ;;  %v4330_v47 = vsel %vm10365_vm15, %v4328_v63, %v4329_v6  ;;  %4730 = vmatpush.bf16.msra.mxu0 %v9633_v13  ;;  %v9632_v41 = vld [vmem:[%s13421_s1 + $0x8] sm:$0xff] }
 0x320   : > { %9657 = vmatpush.bf16.msra.mxu2 %v9633_v13 }
 0x321   : > { %v4005_v20 = vpop.permute.xlu0 %4004  ;;  %4375 = vrot.lane.b32.xlu2 %v4264_v52, %s9738_s16  ;;  %4403 = vrot.lane.b32.xlu1 %v4313_v15, %s9738_s16  ;;  %v4314_v15 = vrot.slane %v4312_v56, 4 }
 0x322   : > { %4101 = vst.msk [vmem:[#allocation3 + $0x30] sm:$0xf] %vm4088_vm12, %v4005_v20 }
 0x323   : > { %v4003_v14 = vpop.permute.xlu2 %4002  ;;  %v4013_v8 = vpop.permute.xlu1 %4012  ;;  %4731 = vmatpush.bf16.msra.mxu0 %v9632_v41  ;;  %v4316_v21 = vsel %vm10365_vm15, %v4314_v15, %v4315_v46 }
 0x324   : > { %4100 = vst.msk [vmem:[#allocation3 + $0x2c] sm:$0xf] %vm4088_vm12, %v4003_v14  ;;  %9658 = vmatpush.bf16.msra.mxu2 %v9632_v41  ;;  %v4168_v14 = vld [vmem:[#allocation2 + $0xc4] sm:$0xf] }
 0x325   : > { %4105 = vst.msk [vmem:[#allocation3 + $0x40] sm:$0xf] %vm4088_vm12, %v4013_v8  ;;  %v9355_v8 = vrot.slane %v4167_v27, 9 }
 0x327   : > { %4401 = vrot.lane.b32.xlu0 %v4309_v32, %s9738_s16  ;;  %4732 = vmatpush.bf16.msra.mxu0 %v9631_v11  ;;  %v4333_v32 = vrot.slane %v4168_v14, 5 }
 0x328   : > { %9659 = vmatpush.bf16.msra.mxu2 %v9631_v11 }
 0x329   : > { %v4011_v4 = vpop.permute.xlu0 %4010  ;;  %4381 = vrot.lane.b32.xlu2 %v4274_v28, %s9738_s16  ;;  %4409 = vrot.lane.b32.xlu1 %v4323_v25, %s9738_s16  ;;  %v4334_v28 = vsel %vm10365_vm15, %v9355_v8, %v4333_v32  ;;  %v4342_v25 = vrot.slane %v4340_v45, 4  ;;  %v4335_v29 = vrot.slane %v4333_v32, 4 }
 0x32a   : > { %4104 = vst.msk [vmem:[#allocation3 + $0x3c] sm:$0xf] %vm4088_vm12, %v4011_v4 }
 0x32b   : > { %v4009_v58 = vpop.permute.xlu2 %4008  ;;  %v4019_v22 = vpop.permute.xlu1 %4018 }
 0x32c   : > { %4103 = vst.msk [vmem:[#allocation3 + $0x38] sm:$0xf] %vm4088_vm12, %v4009_v58  ;;  %v4327_v58 = vsel %vm10365_vm15, %v9354_v30, %v4326_v42 }
 0x32d   : > { %4108 = vst.msk [vmem:[#allocation3 + $0x4c] sm:$0xf] %vm4088_vm12, %v4019_v22 }
 0x32f   : > { %4407 = vrot.lane.b32.xlu0 %v4320_v51, %s9738_s16  ;;  %v9356_v51 = vrot.slane %v4170_v53, 9 }
 0x331   : > { %v4017_v61 = vpop.permute.xlu0 %4016  ;;  %4387 = vrot.lane.b32.xlu2 %v4285_v55, %s9738_s16  ;;  %4415 = vrot.lane.b32.xlu1 %v4334_v28, %s9738_s16  ;;  %v4172_v55 = vld [vmem:[#allocation2 + $0xd4] sm:$0x1] }
 0x332   : > { %4107 = vst.msk [vmem:[#allocation3 + $0x48] sm:$0xf] %vm4088_vm12, %v4017_v61  ;;  %v4343_v10 = vrot.slane %v4172_v55, 5  ;;  %v4341_v61 = vsel %vm10365_vm15, %v9356_v51, %v4340_v45 }
 0x333   : > { %v4015_v12 = vpop.permute.xlu2 %4014  ;;  %v4025_v43 = vpop.permute.xlu1 %4024 }
 0x334   : > { %4106 = vst.msk [vmem:[#allocation3 + $0x44] sm:$0xf] %vm4088_vm12, %v4015_v12  ;;  %v4344_v16 = vsel %vm10365_vm15, %v4342_v25, %v4343_v10  ;;  %v4943_v25 = vld [vmem:[#allocation4 + $0xc] sm:$0x1] }
 0x335   : > { %4111 = vst.msk [vmem:[#allocation3 + $0x58] sm:$0xf] %vm4088_vm12, %v4025_v43  ;;  %v4169_v43 = vld [vmem:[#allocation2 + $0xc8] sm:$0x1]  ;;  %v4944_v10 = vsel %vm9801_vm4, 0, %v4943_v25 }
 0x336   : > { %v4336_v5 = vrot.slane %v4169_v43, 5  ;;  %4945 = vst [vmem:[#allocation4 + $0xc] sm:$0x1] %v4944_v10  ;;  %v4949_v10 = vld [vmem:[#allocation4 + $0x24] sm:$0x1] }
 0x337   : > { %4413 = vrot.lane.b32.xlu0 %v4330_v47, %s9738_s16 }
 0x339   : > { %v4023_v62 = vpop.permute.xlu0 %4022  ;;  %4393 = vrot.lane.b32.xlu2 %v4295_v44, %s9738_s16  ;;  %4421 = vrot.lane.b32.xlu1 %v4344_v16, %s9738_s16  ;;  %v4337_v44 = vsel %vm10365_vm15, %v4335_v29, %v4336_v5  ;;  %v4997_v16 = vld [vmem:[#allocation4 + $0x14] sm:$0x1] }
 0x33a   : > { %4110 = vst.msk [vmem:[#allocation3 + $0x54] sm:$0xf] %vm4088_vm12, %v4023_v62 }
 0x33b   : > { %v4021_v38 = vpop.permute.xlu2 %4020  ;;  %v4031_v40 = vpop.permute.xlu1 %4030 }
 0x33c   : > { %4109 = vst.msk [vmem:[#allocation3 + $0x50] sm:$0xf] %vm4088_vm12, %v4021_v38 }
 0x33d   : > { %4114 = vst.msk [vmem:[#allocation3 + $0x64] sm:$0xf] %vm4088_vm12, %v4031_v40 }
 0x33f   : > { %4419 = vrot.lane.b32.xlu0 %v4341_v61, %s9738_s16  ;;  %v11806_v61 = vld [vmem:[%s13422_s2] ss:$0 sm:$0xff] }
 0x341   : > { %v4029_v52 = vpop.permute.xlu0 %4028  ;;  %4399 = vrot.lane.b32.xlu2 %v4306_v37, %s9738_s16 }
 0x342   : > { %4113 = vst.msk [vmem:[#allocation3 + $0x60] sm:$0xf] %vm4088_vm12, %v4029_v52 }
 0x343   : > { %v4027_v26 = vpop.permute.xlu2 %4026  ;;  %v4037_v49 = vpop.permute.xlu1 %4036 }
 0x344   : > { %4112 = vst.msk [vmem:[#allocation3 + $0x5c] sm:$0xf] %vm4088_vm12, %v4027_v26 }
 0x345   : > { %4117 = vst.msk [vmem:[#allocation3 + $0x70] sm:$0xf] %vm4088_vm12, %v4037_v49 }
 0x349   : > { %v4035_v56 = vpop.permute.xlu0 %4034  ;;  %4405 = vrot.lane.b32.xlu2 %v4316_v21, %s9738_s16 }
 0x34a   : > { %4116 = vst.msk [vmem:[#allocation3 + $0x6c] sm:$0xf] %vm4088_vm12, %v4035_v56 }
 0x34b   : > { %v4033_v20 = vpop.permute.xlu2 %4032  ;;  %v4043_v59 = vpop.permute.xlu1 %4042 }
 0x34c   : > { %4115 = vst.msk [vmem:[#allocation3 + $0x68] sm:$0xf] %vm4088_vm12, %v4033_v20 }
 0x34d   : > { %4120 = vst.msk [vmem:[#allocation3 + $0x7c] sm:$0xf] %vm4088_vm12, %v4043_v59 }
 0x351   : > { %v4041_v48 = vpop.permute.xlu0 %4040  ;;  %4411 = vrot.lane.b32.xlu2 %v4327_v58, %s9738_s16 }
 0x352   : > { %4119 = vst.msk [vmem:[#allocation3 + $0x78] sm:$0xf] %vm4088_vm12, %v4041_v48 }
 0x353   : > { %v4039_v4 = vpop.permute.xlu2 %4038  ;;  %v4049_v7 = vpop.permute.xlu1 %4048 }
 0x354   : > { %4118 = vst.msk [vmem:[#allocation3 + $0x74] sm:$0xf] %vm4088_vm12, %v4039_v4 }
 0x355   : > { %4123 = vst.msk [vmem:[#allocation3 + $0x88] sm:$0xf] %vm4088_vm12, %v4049_v7 }
 0x359   : > { %v4047_v22 = vpop.permute.xlu0 %4046  ;;  %4417 = vrot.lane.b32.xlu2 %v4337_v44, %s9738_s16  ;;  %v4173_v44 = vld [vmem:[#allocation2 + $0xd8] sm:$0xe] }
 0x35a   : > { %4122 = vst.msk [vmem:[#allocation3 + $0x84] sm:$0xf] %vm4088_vm12, %v4047_v22  ;;  %v4940_v22 = vld [vmem:[#allocation4] sm:$0x1] }
 0x35b   : > { %v4045_v39 = vpop.permute.xlu2 %4044  ;;  %v4362_v35 = vpop.permute.xlu1 %4361  ;;  %v4941_v54 = vsel %vm9801_vm4, 0, %v4940_v22 }
 0x35c   : > { %4121 = vst.msk [vmem:[#allocation3 + $0x80] sm:$0xf] %vm4088_vm12, %v4045_v39 }
 0x35d   : > { %4469 = vst.msk [vmem:[#allocation3 + $0x4] sm:$0xf] %vm4467_vm8, %v4362_v35  ;;  %v4994_v35 = vld [vmem:[#allocation4 + $0x8] sm:$0x1] }
 0x35e   : > { %4942 = vst [vmem:[#allocation4] sm:$0x1] %v4941_v54  ;;  %v4995_v53 = vsel %vm9807_vm5, 0, %v4994_v35 }
 0x35f   : > { %4996 = vst [vmem:[#allocation4 + $0x8] sm:$0x1] %v4995_v53 }
 0x361   : > { %v4360_v36 = vpop.permute.xlu0 %4359 }
 0x362   : > { %4468 = vst.msk [vmem:[#allocation3] sm:$0xf] %vm4467_vm8, %v4360_v36  ;;  %v11811_v36 = vld [vmem:[%s13423_s3] ss:$0 sm:$0xff] }
 0x363   : > { %v4051_v60 = vpop.permute.xlu2 %4050  ;;  %v4368_v12 = vpop.permute.xlu1 %4367 }
 0x364   : > { %4124 = vst.msk [vmem:[#allocation3 + $0x8c] sm:$0xf] %vm4088_vm12, %v4051_v60 }
 0x365   : > { %4472 = vst.msk [vmem:[#allocation3 + $0x10] sm:$0xf] %vm4467_vm8, %v4368_v12  ;;  %v4998_v12 = vsel %vm9807_vm5, 0, %v4997_v16 }
 0x366   : > { %4999 = vst [vmem:[#allocation4 + $0x14] sm:$0x1] %v4998_v12  ;;  %v5448_v35 = vld [vmem:[#allocation4 + $0x8] sm:$0x1] }
 0x369   : > { %v4366_v19 = vpop.permute.xlu0 %4365  ;;  %v9613_v9 = vld [vmem:[#allocation3] sm:$0xff] }
 0x36a   : > { %4471 = vst.msk [vmem:[#allocation3 + $0xc] sm:$0xf] %vm4467_vm8, %v4366_v19  ;;  %9447 = vmatmul.msk.bf16.vlgmr.msra.gmra.mxu0 %vm4666_vm13, %v9613_v9  ;;  %v4174_v19 = vld [vmem:[#allocation2 + $0xdc] sm:$0xf] }
 0x36b   : > { %v4364_v62 = vpop.permute.xlu2 %4363  ;;  %v4374_v24 = vpop.permute.xlu1 %4373 }
 0x36c   : > { %4470 = vst.msk [vmem:[#allocation3 + $0x8] sm:$0xf] %vm4467_vm8, %v4364_v62  ;;  %v9357_v62 = vrot.slane %v4173_v44, 9 }
 0x36d   : > { %4475 = vst.msk [vmem:[#allocation3 + $0x1c] sm:$0xf] %vm4467_vm8, %v4374_v24  ;;  %v4347_v24 = vrot.slane %v4174_v19, 5  ;;  %v4950_v19 = vsel %vm9801_vm4, 0, %v4949_v10 }
 0x36e   : > { %4951 = vst [vmem:[#allocation4 + $0x24] sm:$0x1] %v4950_v19 }
 0x371   : > { %v4372_v34 = vpop.permute.xlu0 %4371 }
 0x372   : > { %4474 = vst.msk [vmem:[#allocation3 + $0x18] sm:$0xf] %vm4467_vm8, %v4372_v34 }
 0x373   : > { %v4370_v33 = vpop.permute.xlu2 %4369  ;;  %v4380_v42 = vpop.permute.xlu1 %4379  ;;  %v9614_v38 = vld [vmem:[#allocation3 + $0x8] sm:$0xff] }
 0x374   : > { %4473 = vst.msk [vmem:[#allocation3 + $0x14] sm:$0xf] %vm4467_vm8, %v4370_v33  ;;  %v4348_v33 = vsel %vm10365_vm15, %v9357_v62, %v4347_v24 }
 0x375   : > { %4478 = vst.msk [vmem:[#allocation3 + $0x28] sm:$0xf] %vm4467_vm8, %v4380_v42  ;;  %v4946_v42 = vld [vmem:[#allocation4 + $0x18] sm:$0x1]  ;;  %4423 = vrot.lane.b32.xlu2 %v4348_v33, %s9738_s16 }
 0x379   : > { %v4378_v40 = vpop.permute.xlu0 %4377  ;;  %v9616_v49 = vld [vmem:[#allocation3 + $0x18] sm:$0xff] }
 0x37a   : > { %4477 = vst.msk [vmem:[#allocation3 + $0x24] sm:$0xf] %vm4467_vm8, %v4378_v40  ;;  %9448 = vmatmul.msk.bf16.gmra.mxu0 %vm4666_vm13, %v9614_v38  ;;  %v4175_v38 = vld [vmem:[#allocation2 + $0xe0] sm:$0x1] }
 0x37b   : > { %v4376_v17 = vpop.permute.xlu2 %4375  ;;  %v4386_v63 = vpop.permute.xlu1 %4385  ;;  %v9615_v1 = vld [vmem:[#allocation3 + $0x10] sm:$0xff] }
 0x37c   : > { %4476 = vst.msk [vmem:[#allocation3 + $0x20] sm:$0xf] %vm4467_vm8, %v4376_v17  ;;  %v4947_v17 = vsel %vm9801_vm4, 0, %v4946_v42  ;;  %v5451_v42 = vld [vmem:[#allocation4 + $0xc] sm:$0xf] }
 0x37d   : > { %4481 = vst.msk [vmem:[#allocation3 + $0x34] sm:$0xf] %vm4467_vm8, %v4386_v63  ;;  %v4349_v63 = vrot.slane %v4347_v24, 4 }
 0x37e   : > { %4948 = vst [vmem:[#allocation4 + $0x18] sm:$0x1] %v4947_v17 }
 0x381   : > { %v4384_v6 = vpop.permute.xlu0 %4383 }
 0x382   : > { %4480 = vst.msk [vmem:[#allocation3 + $0x30] sm:$0xf] %vm4467_vm8, %v4384_v6  ;;  %v4350_v6 = vrot.slane %v4175_v38, 5 }
 0x383   : > { %v4382_v13 = vpop.permute.xlu2 %4381  ;;  %v4392_v37 = vpop.permute.xlu1 %4391  ;;  %v9617_v8 = vld [vmem:[#allocation3 + $0x20] sm:$0xff] }
 0x384   : > { %4479 = vst.msk [vmem:[#allocation3 + $0x2c] sm:$0xf] %vm4467_vm8, %v4382_v13 }
 0x385   : > { %4484 = vst.msk [vmem:[#allocation3 + $0x40] sm:$0xf] %vm4467_vm8, %v4392_v37  ;;  %v4177_v37 = vld [vmem:[#allocation2 + $0xe8] sm:$0xf] }
 0x389   : > { %v4390_v47 = vpop.permute.xlu0 %4389  ;;  %v9619_v58 = vld [vmem:[#allocation3 + $0x30] sm:$0xff] }
 0x38a   : > { %4483 = vst.msk [vmem:[#allocation3 + $0x3c] sm:$0xf] %vm4467_vm8, %v4390_v47  ;;  %9449 = vmatmul.msk.bf16.gmra.mxu0 %vm4666_vm13, %v9615_v1 }
 0x38b   : > { %v4388_v52 = vpop.permute.xlu2 %4387  ;;  %v4398_v15 = vpop.permute.xlu1 %4397  ;;  %v9618_v4 = vld [vmem:[#allocation3 + $0x28] sm:$0xff] }
 0x38c   : > { %4482 = vst.msk [vmem:[#allocation3 + $0x38] sm:$0xf] %vm4467_vm8, %v4388_v52  ;;  %v4351_v52 = vsel %vm10365_vm15, %v4349_v63, %v4350_v6 }
 0x38d   : > { %4487 = vst.msk [vmem:[#allocation3 + $0x4c] sm:$0xf] %vm4467_vm8, %v4398_v15  ;;  %4425 = vrot.lane.b32.xlu0 %v4351_v52, %s9738_s16  ;;  %v4178_v15 = vld [vmem:[#allocation2 + $0xec] sm:$0x1] }
 0x38e   : > { %v4967_v52 = vld [vmem:[#allocation4 + $0x6c] sm:$0x1] }
 0x391   : > { %v4396_v46 = vpop.permute.xlu0 %4395 }
 0x392   : > { %4486 = vst.msk [vmem:[#allocation3 + $0x48] sm:$0xf] %vm4467_vm8, %v4396_v46  ;;  %v4354_v46 = vrot.slane %v4177_v37, 5 }
 0x393   : > { %v4394_v41 = vpop.permute.xlu2 %4393  ;;  %v4404_v26 = vpop.permute.xlu1 %4403  ;;  %v9620_v51 = vld [vmem:[#allocation3 + $0x38] sm:$0xff] }
 0x394   : > { %4485 = vst.msk [vmem:[#allocation3 + $0x44] sm:$0xf] %vm4467_vm8, %v4394_v41 }
 0x395   : > { %4490 = vst.msk [vmem:[#allocation3 + $0x58] sm:$0xf] %vm4467_vm8, %v4404_v26 }
 0x399   : > { %v9622_v11 = vld [vmem:[#allocation3 + $0x48] sm:$0xff]  ;;  %v4402_v21 = vpop.permute.xlu0 %4401 }
 0x39a   : > { %4489 = vst.msk [vmem:[#allocation3 + $0x54] sm:$0xf] %vm4467_vm8, %v4402_v21  ;;  %9450 = vmatmul.msk.bf16.gmra.mxu0 %vm4666_vm13, %v9616_v49  ;;  %9456 = vmatmul.msk.bf16.vlgmr.msra.gmra.mxu2 %vm4666_vm13, %v9622_v11  ;;  %v4357_v11 = vrot.slane %v4178_v15, 5  ;;  %v5444_v21 = vld [vmem:[#allocation4] sm:$0xf] }
 0x39b   : > { %v4400_v56 = vpop.permute.xlu2 %4399  ;;  %v4410_v59 = vpop.permute.xlu1 %4409  ;;  %v9621_v5 = vld [vmem:[#allocation3 + $0x40] sm:$0xff] }
 0x39c   : > { %4488 = vst.msk [vmem:[#allocation3 + $0x50] sm:$0xf] %vm4467_vm8, %v4400_v56  ;;  %v4356_v56 = vrot.slane %v4354_v46, 4 }
 0x39d   : > { %4493 = vst.msk [vmem:[#allocation3 + $0x64] sm:$0xf] %vm4467_vm8, %v4410_v59 }
 0x3a1   : > { %v4408_v20 = vpop.permute.xlu0 %4407 }
 0x3a2   : > { %4492 = vst.msk [vmem:[#allocation3 + $0x60] sm:$0xf] %vm4467_vm8, %v4408_v20 }
 0x3a3   : > { %v4406_v27 = vpop.permute.xlu2 %4405  ;;  %v9623_v14 = vld [vmem:[#allocation3 + $0x50] sm:$0xff]  ;;  %v4416_v7 = vpop.permute.xlu1 %4415 }
 0x3a4   : > { %4491 = vst.msk [vmem:[#allocation3 + $0x5c] sm:$0xf] %vm4467_vm8, %v4406_v27  ;;  %v5000_v27 = vld [vmem:[#allocation4 + $0x20] sm:$0x1] }
 0x3a5   : > { %4496 = vst.msk [vmem:[#allocation3 + $0x70] sm:$0xf] %vm4467_vm8, %v4416_v7 }
 0x3a9   : > { %v4414_v32 = vpop.permute.xlu0 %4413  ;;  %v9625_v30 = vld [vmem:[#allocation3 + $0x60] sm:$0xff] }
 0x3aa   : > { %9451 = vmatmul.msk.bf16.gmra.mxu0 %vm4666_vm13, %v9617_v8  ;;  %9457 = vmatmul.msk.bf16.gmra.mxu2 %vm4666_vm13, %v9623_v14  ;;  %4495 = vst.msk [vmem:[#allocation3 + $0x6c] sm:$0xf] %vm4467_vm8, %v4414_v32  ;;  %v4358_v14 = vsel %vm10365_vm15, %v4356_v56, %v4357_v11  ;;  %v4968_v11 = vsel %vm9801_vm4, 0, %v4967_v52 }
 0x3ab   : > { %v4412_v28 = vpop.permute.xlu2 %4411  ;;  %v9624_v48 = vld [vmem:[#allocation3 + $0x58] sm:$0xff]  ;;  %v4422_v39 = vpop.permute.xlu1 %4421  ;;  %4429 = vrot.lane.b32.xlu2 %v4358_v14, %s9738_s16  ;;  %4969 = vst [vmem:[#allocation4 + $0x6c] sm:$0x1] %v4968_v11 }
 0x3ac   : > { %4494 = vst.msk [vmem:[#allocation3 + $0x68] sm:$0xf] %vm4467_vm8, %v4412_v28 }
 0x3ad   : > { %4499 = vst.msk [vmem:[#allocation3 + $0x7c] sm:$0xf] %vm4467_vm8, %v4422_v39 }
 0x3b1   : > { %v4420_v45 = vpop.permute.xlu0 %4419 }
 0x3b2   : > { %4498 = vst.msk [vmem:[#allocation3 + $0x78] sm:$0xf] %vm4467_vm8, %v4420_v45 }
 0x3b3   : > { %v4418_v50 = vpop.permute.xlu2 %4417  ;;  %v9626_v55 = vld [vmem:[#allocation3 + $0x68] sm:$0xff] }
 0x3b4   : > { %4497 = vst.msk [vmem:[#allocation3 + $0x74] sm:$0xf] %vm4467_vm8, %v4418_v50 }
 0x3b9   : > { %v9628_v28 = vld [vmem:[#allocation3 + $0x78] sm:$0xff] }
 0x3ba   : > { %9452 = vmatmul.msk.bf16.gmra.mxu0 %vm4666_vm13, %v9618_v4  ;;  %9458 = vmatmul.msk.bf16.gmra.mxu2 %vm4666_vm13, %v9624_v48  ;;  %v5001_v48 = vsel %vm9807_vm5, 0, %v5000_v27 }
 0x3bb   : > { %v9627_v60 = vld [vmem:[#allocation3 + $0x70] sm:$0xff]  ;;  %5002 = vst [vmem:[#allocation4 + $0x20] sm:$0x1] %v5001_v48 }
 0x3ca   : > { %9453 = vmatmul.msk.bf16.gmra.mxu0 %vm4666_vm13, %v9619_v58  ;;  %9459 = vmatmul.msk.bf16.gmra.mxu2 %vm4666_vm13, %v9625_v30  ;;  %v4176_v30 = vld [vmem:[#allocation2 + $0xe4] sm:$0xe] }
 0x3cb   : > { %v9358_v45 = vrot.slane %v4176_v30, 9 }
 0x3cd   : > { %v4355_v25 = vsel %vm10365_vm15, %v9358_v45, %v4354_v46  ;;  %v4952_v45 = vld [vmem:[#allocation4 + $0x30] sm:$0x1] }
 0x3ce   : > { %4427 = vrot.lane.b32.xlu1 %v4355_v25, %s9738_s16  ;;  %v4953_v25 = vsel %vm9801_vm4, 0, %v4952_v45 }
 0x3cf   : > { %4954 = vst [vmem:[#allocation4 + $0x30] sm:$0x1] %v4953_v25 }
 0x3da   : > { %9454 = vmatmul.msk.bf16.gmra.mxu0 %vm4666_vm13, %v9620_v51  ;;  %9460 = vmatmul.msk.bf16.gmra.mxu2 %vm4666_vm13, %v9626_v55 }
 0x3e7   : > { %v4734_v43 = vpop.f32.mrf.mxu0 }
 0x3e8   : > { %v4828_v29 = vmul.f32 %v11806_v61, %v4734_v43 }
 0x3ea   : > { %v4868_v9 = vadd.f32 %v11811_v36, %v4828_v29  ;;  %9455 = vmatmul.msk.bf16.gmra.mxu0 %vm4666_vm13, %v9621_v5  ;;  %9461 = vmatmul.msk.bf16.gmra.mxu2 %vm4666_vm13, %v9627_v60 }
 0x3ec   : > { %v4904_v34 = vmax.f32 %v4868_v9, 0.0 }
 0x3ee   : > { %v5048_v40 = vpack.c.bf16 %v4904_v34, %v4904_v34 }
 0x3ef   : > { %v4736_v13 = vpop.f32.mrf.mxu0 }
 0x3f0   : > { %v5085_v47 = vshrl.u32 %v5048_v40, 16  ;;  %v4829_v1 = vmul.f32 %v11806_v61, %v4736_v13  ;;  %v5088_v26 = vshll.u32 %v5048_v40, 16  ;;  %v5003_v13 = vld [vmem:[#allocation4 + $0x2c] sm:$0x1] }
 0x3f1   : > { %v5004_v15 = vsel %vm9807_vm5, 0, %v5003_v13 }
 0x3f2   : > { %v5087_v41 = vrot.slane %v5085_v47, 7  ;;  %v4869_v49 = vadd.f32 %v11811_v36, %v4829_v1  ;;  %5005 = vst [vmem:[#allocation4 + $0x2c] sm:$0x1] %v5004_v15 }
 0x3f4   : > { %v5090_v20 = vor.u32 %v5088_v26, %v5087_v41  ;;  %v4905_v59 = vmax.f32 %v4869_v49, 0.0  ;;  %v5091_v39 = vrot.slane %v5087_v41, 4 }
 0x3f6   : > { %v5445_v8 = vsel %vm9854_vm9, %v5090_v20, %v5444_v21  ;;  %v5049_v32 = vpack.c.bf16 %v4905_v59, %v4905_v59 }
 0x3f7   : > { %5446 = vst [vmem:[#allocation4] sm:$0xf] %v5445_v8  ;;  %v4739_v4 = vpop.f32.mrf.mxu0 }
 0x3f8   : > { %5574 = vst.msk [vmem:[#allocation4] sm:$0xf] %vm430_vm3, %v9730_v3  ;;  %v5093_v7 = vshrl.u32 %v5049_v32, 16  ;;  %v4830_v50 = vmul.f32 %v11806_v61, %v4739_v4  ;;  %v5096_v22 = vshll.u32 %v5049_v32, 16  ;;  %v5455_v32 = vld [vmem:[#allocation4 + $0x14] sm:$0x1] }
 0x3fa   : > { %v5095_v58 = vrot.slane %v5093_v7, 7  ;;  %v4870_v54 = vadd.f32 %v11811_v36, %v4830_v50  ;;  %9462 = vmatmul.msk.bf16.gmra.mxu2 %vm4666_vm13, %v9628_v28 }
 0x3fc   : > { %v5098_v53 = vor.u32 %v5096_v22, %v5095_v58  ;;  %v5100_v55 = vrot.slane %v5095_v58, 4  ;;  %v4906_v51 = vmax.f32 %v4870_v54, 0.0 }
 0x3fe   : > { %v5099_v16 = vsel %vm9875_vm10, %v5091_v39, %v5098_v53  ;;  %v5449_v60 = vsel %vm9801_vm4, %v5100_v55, %v5448_v35  ;;  %v5050_v12 = vpack.c.bf16 %v4906_v51, %v4906_v51  ;;  %v5021_v51 = vld [vmem:[#allocation4 + $0x74] sm:$0x1] }
 0x3ff   : > { %5447 = vst.msk [vmem:[#allocation4 + $0x4] sm:$0xf] %vm430_vm3, %v5099_v16  ;;  %v4741_v43 = vpop.f32.mrf.mxu0  ;;  %v5646_v29 = vld [vmem:[#allocation4] sm:$0xf] }
 0x400   : > { %5450 = vst [vmem:[#allocation4 + $0x8] sm:$0x1] %v5449_v60  ;;  %v5102_v5 = vshrl.u32 %v5050_v12, 16  ;;  %v4831_v44 = vmul.f32 %v11806_v61, %v4741_v43  ;;  %v5695_v9 = vshrl.u32 %v5646_v29, 16  ;;  %v5698_v62 = vshll.u32 %v5646_v29, 16 }
 0x401   : > { %5575 = vst.msk [vmem:[#allocation4 + $0x4] sm:$0xf] %vm430_vm3, %v9730_v3  ;;  %v5105_v34 = vshll.u32 %v5050_v12, 16  ;;  %v5022_v43 = vsel %vm9807_vm5, 0, %v5021_v51  ;;  %v4955_v51 = vld [vmem:[#allocation4 + $0x3c] sm:$0x1] }
 0x402   : > { %5577 = vst.msk [vmem:[#allocation4 + $0x8] sm:$0x1] %vm305_vm0, %v9730_v3  ;;  %v5104_v24 = vrot.slane %v5102_v5, 7  ;;  %v4871_v33 = vadd.f32 %v11811_v36, %v4831_v44  ;;  %v5697_v38 = vrot.slane %v5695_v9, 4  ;;  %v5700_v40 = vrot.slane %v5698_v62, 5 }
 0x403   : > { %5023 = vst [vmem:[#allocation4 + $0x74] sm:$0x1] %v5022_v43 }
 0x404   : > { %v5107_v17 = vor.u32 %v5105_v34, %v5104_v24  ;;  %v4907_v63 = vmax.f32 %v4871_v33, 0.0  ;;  %v5701_v6 = vor.u32 %v5700_v40, %v5697_v38  ;;  %v5108_v4 = vrot.slane %v5104_v24, 4 }
 0x406   : > { %v5452_v37 = vsel %vm9854_vm9, %v5107_v17, %v5451_v42  ;;  %v5051_v47 = vpack.c.bf16 %v4907_v63, %v4907_v63  ;;  %v5702_v49 = vrot.slane %v5701_v6, 4  ;;  %v5458_v42 = vld [vmem:[#allocation4 + $0x18] sm:$0xf] }
 0x407   : > { %5453 = vst [vmem:[#allocation4 + $0xc] sm:$0xf] %v5452_v37  ;;  %v4744_v1 = vpop.f32.mrf.mxu0  ;;  %v5006_v63 = vld [vmem:[#allocation4 + $0x38] sm:$0x1] }
 0x408   : > { %v5110_v46 = vshrl.u32 %v5051_v47, 16  ;;  %v4832_v41 = vmul.f32 %v11806_v61, %v4744_v1  ;;  %v5647_v26 = vld [vmem:[#allocation4 + $0x4] sm:$0xf]  ;;  %v5113_v27 = vshll.u32 %v5051_v47, 16  ;;  %v5007_v47 = vsel %vm9807_vm5, 0, %v5006_v63 }
 0x409   : > { %v5704_v21 = vshll.u32 %v5647_v26, 16  ;;  %v5708_v56 = vshrl.u32 %v5647_v26, 16  ;;  %v5648_v20 = vld [vmem:[#allocation4 + $0x8] sm:$0x1]  ;;  %5008 = vst [vmem:[#allocation4 + $0x38] sm:$0x1] %v5007_v47 }
 0x40a   : > { %v5112_v59 = vrot.slane %v5110_v46, 7  ;;  %v4872_v14 = vadd.f32 %v11811_v36, %v4832_v41  ;;  %v5714_v8 = vshll.u32 %v5648_v20, 16  ;;  %v4970_v20 = vld [vmem:[#allocation4 + $0x78] sm:$0x1] }
 0x40b   : > { %v5706_v28 = vrot.slane %v5704_v21, 5  ;;  %v5710_v48 = vrot.slane %v5708_v56, 4 }
 0x40c   : > { %v5115_v7 = vor.u32 %v5113_v27, %v5112_v59  ;;  %v5117_v50 = vrot.slane %v5112_v59, 4  ;;  %v4908_v30 = vmax.f32 %v4872_v14, 0.0  ;;  %v5716_v54 = vrot.slane %v5714_v8, 5 }
 0x40d   : > { %v5707_v58 = vsel %vm9894_vm11, %v5702_v49, %v5706_v28  ;;  %v5711_v22 = vor.u32 %v5710_v48, %v5706_v28  ;;  %v4971_v8 = vsel %vm9801_vm4, 0, %v4970_v20 }
 0x40e   : > { %v5116_v39 = vsel %vm9875_vm10, %v5108_v4, %v5115_v7  ;;  %v5456_v35 = vsel %vm9801_vm4, %v5117_v50, %v5455_v32  ;;  %v5052_v53 = vpack.c.bf16 %v4908_v30, %v4908_v30  ;;  %6078 = vrot.lane.b32.xlu0 %v5707_v58, %s9731_s9  ;;  %v5649_v55 = vld [vmem:[#allocation4 + $0xc] sm:$0xf]  ;;  %v5462_v32 = vld [vmem:[#allocation4 + $0x20] sm:$0x1]  ;;  %4972 = vst [vmem:[#allocation4 + $0x78] sm:$0x1] %v4971_v8 }
 0x40f   : > { %5454 = vst.msk [vmem:[#allocation4 + $0x10] sm:$0xf] %vm430_vm3, %v5116_v39  ;;  %v4746_v10 = vpop.f32.mrf.mxu0  ;;  %v5719_v16 = vshrl.u32 %v5649_v55, 16  ;;  %v5722_v60 = vshll.u32 %v5649_v55, 16  ;;  %v5712_v12 = vrot.slane %v5711_v22, 4 }
 0x410   : > { %5457 = vst [vmem:[#allocation4 + $0x14] sm:$0x1] %v5456_v35  ;;  %v5119_v29 = vshrl.u32 %v5052_v53, 16  ;;  %v4833_v5 = vmul.f32 %v11806_v61, %v4746_v10  ;;  %v5122_v24 = vshll.u32 %v5052_v53, 16  ;;  %v5584_v33 = vld [vmem:[#allocation4 + $0xc] sm:$0xf] }
 0x411   : > { %v5721_v44 = vrot.slane %v5719_v16, 4  ;;  %v5724_v19 = vrot.slane %v5722_v60, 5  ;;  %v5717_v9 = vsel %vm9894_vm11, %v5712_v12, %v5716_v54  ;;  %5616 = vst.msk [vmem:[#allocation5 + $0x8] sm:$0xf] %vm430_vm3, %v5584_v33  ;;  %v5024_v12 = vld [vmem:[#allocation4 + $0x80] sm:$0x1] }
 0x412   : > { %v5121_v62 = vrot.slane %v5119_v29, 7  ;;  %v4873_v34 = vadd.f32 %v11811_v36, %v4833_v5  ;;  %6080 = vrot.lane.b32.xlu1 %v5717_v9, %s9731_s9  ;;  %v5025_v9 = vsel %vm9807_vm5, 0, %v5024_v12  ;;  %v5507_v8 = vld [vmem:[#allocation4 + $0x6c] sm:$0xf] }
 0x413   : > { %v5725_v17 = vor.u32 %v5724_v19, %v5721_v44  ;;  %5026 = vst [vmem:[#allocation4 + $0x80] sm:$0x1] %v5025_v9 }
 0x414   : > { %v5124_v38 = vor.u32 %v5122_v24, %v5121_v62  ;;  %v4909_v40 = vmax.f32 %v4873_v34, 0.0  ;;  %v5125_v4 = vrot.slane %v5121_v62, 4  ;;  %v4956_v62 = vsel %vm9801_vm4, 0, %v4955_v51 }
 0x415   : > { %v5726_v49 = vrot.slane %v5725_v17, 4  ;;  %4957 = vst [vmem:[#allocation4 + $0x3c] sm:$0x1] %v4956_v62 }
 0x416   : > { %v5459_v6 = vsel %vm9854_vm9, %v5124_v38, %v5458_v42  ;;  %v5053_v13 = vpack.c.bf16 %v4909_v40, %v4909_v40  ;;  %v5650_v37 = vld [vmem:[#allocation4 + $0x10] sm:$0xf]  ;;  %v5465_v38 = vld [vmem:[#allocation4 + $0x24] sm:$0xf] }
 0x417   : > { %5460 = vst [vmem:[#allocation4 + $0x18] sm:$0xf] %v5459_v6  ;;  %v4749_v1 = vpop.f32.mrf.mxu0  ;;  %v5728_v52 = vshll.u32 %v5650_v37, 16  ;;  %v5732_v15 = vshrl.u32 %v5650_v37, 16  ;;  %v5651_v46 = vld [vmem:[#allocation4 + $0x14] sm:$0x1] }
 0x418   : > { %v5127_v41 = vshrl.u32 %v5053_v13, 16  ;;  %v4834_v26 = vmul.f32 %v11806_v61, %v4749_v1  ;;  %v5738_v56 = vshll.u32 %v5651_v46, 16  ;;  %v5130_v27 = vshll.u32 %v5053_v13, 16 }
 0x419   : > { %v5730_v11 = vrot.slane %v5728_v52, 5  ;;  %v5734_v21 = vrot.slane %v5732_v15, 4 }
 0x41a   : > { %v5129_v59 = vrot.slane %v5127_v41, 7  ;;  %v4874_v14 = vadd.f32 %v11811_v36, %v4834_v26  ;;  %v5740_v54 = vrot.slane %v5738_v56, 5 }
 0x41b   : > { %v5731_v28 = vsel %vm9894_vm11, %v5726_v49, %v5730_v11  ;;  %v5735_v48 = vor.u32 %v5734_v21, %v5730_v11 }
 0x41c   : > { %v5132_v7 = vor.u32 %v5130_v27, %v5129_v59  ;;  %v5134_v50 = vrot.slane %v5129_v59, 4  ;;  %v4910_v30 = vmax.f32 %v4874_v14, 0.0  ;;  %6082 = vrot.lane.b32.xlu2 %v5731_v28, %s9731_s9 }
 0x41d   : > { %v4779_v58 = vpop.f32.mrf.mxu2  ;;  %v5736_v22 = vrot.slane %v5735_v48, 4 }
 0x41e   : > { %v5133_v45 = vsel %vm9875_vm10, %v5125_v4, %v5132_v7  ;;  %v5463_v39 = vsel %vm9801_vm4, %v5134_v50, %v5462_v32  ;;  %v5054_v35 = vpack.c.bf16 %v4910_v30, %v4910_v30  ;;  %v4846_v53 = vmul.f32 %v11806_v61, %v4779_v58  ;;  %v5652_v55 = vld [vmem:[#allocation4 + $0x18] sm:$0xf] }
 0x41f   : > { %5461 = vst.msk [vmem:[#allocation4 + $0x1c] sm:$0xf] %vm430_vm3, %v5133_v45  ;;  %v4751_v25 = vpop.f32.mrf.mxu0  ;;  %v5741_v10 = vsel %vm9894_vm11, %v5736_v22, %v5740_v54  ;;  %v5743_v16 = vshrl.u32 %v5652_v55, 16  ;;  %v5746_v60 = vshll.u32 %v5652_v55, 16  ;;  %v4973_v22 = vld [vmem:[#allocation4 + $0x84] sm:$0x1] }
 0x420   : > { %5464 = vst [vmem:[#allocation4 + $0x20] sm:$0x1] %v5463_v39  ;;  %v5136_v43 = vshrl.u32 %v5054_v35, 16  ;;  %v4886_v29 = vadd.f32 %v11811_v36, %v4846_v53  ;;  %v4835_v5 = vmul.f32 %v11806_v61, %v4751_v25  ;;  %6084 = vrot.lane.b32.xlu0 %v5741_v10, %s9731_s9  ;;  %v5139_v34 = vshll.u32 %v5054_v35, 16  ;;  %v5009_v54 = vld [vmem:[#allocation4 + $0x44] sm:$0x1] }
 0x421   : > { %v5745_v44 = vrot.slane %v5743_v16, 4  ;;  %v5748_v19 = vrot.slane %v5746_v60, 5  ;;  %v5469_v45 = vld [vmem:[#allocation4 + $0x2c] sm:$0x1] }
 0x422   : > { %v5138_v24 = vrot.slane %v5136_v43, 7  ;;  %v4922_v33 = vmax.f32 %v4886_v29, 0.0  ;;  %v4875_v42 = vadd.f32 %v11811_v36, %v4835_v5  ;;  %v4974_v29 = vsel %vm9801_vm4, 0, %v4973_v22 }
 0x423   : > { %v5749_v40 = vor.u32 %v5748_v19, %v5745_v44  ;;  %v5010_v5 = vsel %vm9807_vm5, 0, %v5009_v54  ;;  %4975 = vst [vmem:[#allocation4 + $0x84] sm:$0x1] %v4974_v29 }
 0x424   : > { %v5141_v17 = vor.u32 %v5139_v34, %v5138_v24  ;;  %v5066_v63 = vpack.c.bf16 %v4922_v33, %v4922_v33  ;;  %v4911_v6 = vmax.f32 %v4875_v42, 0.0  ;;  %v5142_v13 = vrot.slane %v5138_v24, 4  ;;  %5011 = vst [vmem:[#allocation4 + $0x44] sm:$0x1] %v5010_v5 }
 0x425   : > { %v4781_v37 = vpop.f32.mrf.mxu2  ;;  %v5750_v47 = vrot.slane %v5749_v40, 4 }
 0x426   : > { %v5466_v1 = vsel %vm9854_vm9, %v5141_v17, %v5465_v38  ;;  %v5238_v52 = vshrl.u32 %v5066_v63, 16  ;;  %v5241_v15 = vshll.u32 %v5066_v63, 16  ;;  %v5055_v46 = vpack.c.bf16 %v4911_v6, %v4911_v6  ;;  %v5653_v41 = vld [vmem:[#allocation4 + $0x1c] sm:$0xf]  ;;  %v5511_v17 = vld [vmem:[#allocation4 + $0x74] sm:$0x1] }
 0x427   : > { %5467 = vst [vmem:[#allocation4 + $0x24] sm:$0xf] %v5466_v1  ;;  %v4847_v26 = vmul.f32 %v11806_v61, %v4781_v37  ;;  %v4754_v49 = vpop.f32.mrf.mxu0  ;;  %v5752_v11 = vshll.u32 %v5653_v41, 16  ;;  %v5756_v21 = vshrl.u32 %v5653_v41, 16  ;;  %v5654_v56 = vld [vmem:[#allocation4 + $0x20] sm:$0x1] }
 0x428   : > { %v11913_v20 = vrot.slane %v5238_v52, 7  ;;  %v5144_v59 = vshrl.u32 %v5055_v46, 16  ;;  %v5147_v27 = vshll.u32 %v5055_v46, 16  ;;  %v4836_v14 = vmul.f32 %v11806_v61, %v4754_v49 }
 0x429   : > { %v4887_v32 = vadd.f32 %v11811_v36, %v4847_v26  ;;  %v5754_v28 = vrot.slane %v5752_v11, 5  ;;  %v5758_v48 = vrot.slane %v5756_v21, 4  ;;  %v5762_v4 = vshll.u32 %v5654_v56, 16  ;;  %v4958_v11 = vld [vmem:[#allocation4 + $0x48] sm:$0x1] }
 0x42a   : > { %v5243_v7 = vor.u32 %v5241_v15, %v11913_v20  ;;  %v5244_v50 = vrot.slane %v11913_v20, 4  ;;  %v5146_v30 = vrot.slane %v5144_v59, 7  ;;  %v4876_v58 = vadd.f32 %v11811_v36, %v4836_v14  ;;  %v5472_v20 = vld [vmem:[#allocation4 + $0x30] sm:$0xf] }
 0x42b   : > { %v4923_v39 = vmax.f32 %v4887_v32, 0.0  ;;  %v5755_v35 = vsel %vm9894_vm11, %v5750_v47, %v5754_v28  ;;  %v5759_v53 = vor.u32 %v5758_v48, %v5754_v28  ;;  %v5764_v55 = vrot.slane %v5762_v4, 5  ;;  %v5027_v47 = vld [vmem:[#allocation4 + $0x8c] sm:$0x1] }
 0x42c   : > { %v5508_v51 = vsel %vm9854_vm9, %v5243_v7, %v5507_v8  ;;  %v5149_v25 = vor.u32 %v5147_v27, %v5146_v30  ;;  %v5151_v10 = vrot.slane %v5146_v30, 4  ;;  %v4912_v16 = vmax.f32 %v4876_v58, 0.0  ;;  %6086 = vrot.lane.b32.xlu1 %v5755_v35, %s9731_s9  ;;  %v5514_v35 = vld [vmem:[#allocation4 + $0x78] sm:$0xf] }
 0x42d   : > { %5509 = vst [vmem:[#allocation4 + $0x6c] sm:$0xf] %v5508_v51  ;;  %v5067_v60 = vpack.c.bf16 %v4923_v39, %v4923_v39  ;;  %v4784_v12 = vpop.f32.mrf.mxu2  ;;  %v5760_v43 = vrot.slane %v5759_v53, 4  ;;  %v5028_v46 = vsel %vm9807_vm5, 0, %v5027_v47  ;;  %v4959_v27 = vsel %vm9801_vm4, 0, %v4958_v11 }
 0x42e   : > { %v5150_v44 = vsel %vm9875_vm10, %v5142_v13, %v5149_v25  ;;  %v5470_v19 = vsel %vm9801_vm4, %v5151_v10, %v5469_v45  ;;  %v5056_v9 = vpack.c.bf16 %v4912_v16, %v4912_v16  ;;  %v4848_v62 = vmul.f32 %v11806_v61, %v4784_v12  ;;  %v5655_v24 = vld [vmem:[#allocation4 + $0x24] sm:$0xf]  ;;  %5029 = vst [vmem:[#allocation4 + $0x8c] sm:$0x1] %v5028_v46 }
 0x42f   : > { %5468 = vst.msk [vmem:[#allocation4 + $0x28] sm:$0xf] %vm430_vm3, %v5150_v44  ;;  %v5246_v34 = vshrl.u32 %v5067_v60, 16  ;;  %v5249_v33 = vshll.u32 %v5067_v60, 16  ;;  %v4756_v42 = vpop.f32.mrf.mxu0  ;;  %v5765_v38 = vsel %vm9894_vm11, %v5760_v43, %v5764_v55  ;;  %v5767_v40 = vshrl.u32 %v5655_v24, 16 }
 0x430   : > { %5471 = vst [vmem:[#allocation4 + $0x2c] sm:$0x1] %v5470_v19  ;;  %v5153_v63 = vshrl.u32 %v5056_v9, 16  ;;  %v5156_v6 = vshll.u32 %v5056_v9, 16  ;;  %v4888_v13 = vadd.f32 %v11811_v36, %v4848_v62  ;;  %v4837_v37 = vmul.f32 %v11806_v61, %v4756_v42  ;;  %6088 = vrot.lane.b32.xlu2 %v5765_v38, %s9731_s9 }
 0x431   : > { %v5248_v1 = vrot.slane %v5246_v34, 7  ;;  %v5769_v52 = vrot.slane %v5767_v40, 4  ;;  %v5770_v15 = vshll.u32 %v5655_v24, 16  ;;  %4960 = vst [vmem:[#allocation4 + $0x48] sm:$0x1] %v4959_v27 }
 0x432   : > { %v11942_v41 = vrot.slane %v5153_v63, 7  ;;  %v4924_v26 = vmax.f32 %v4888_v13, 0.0  ;;  %v4877_v49 = vadd.f32 %v11811_v36, %v4837_v37  ;;  %v4976_v34 = vld [vmem:[#allocation4 + $0x90] sm:$0x1] }
 0x433   : > { %v5251_v21 = vor.u32 %v5249_v33, %v5248_v1  ;;  %v5253_v56 = vrot.slane %v5248_v1, 4  ;;  %v5772_v59 = vrot.slane %v5770_v15, 5  ;;  %v5476_v33 = vld [vmem:[#allocation4 + $0x38] sm:$0x1]  ;;  %v4977_v46 = vsel %vm9801_vm4, 0, %v4976_v34 }
 0x434   : > { %v5158_v14 = vor.u32 %v5156_v6, %v11942_v41  ;;  %v5068_v8 = vpack.c.bf16 %v4924_v26, %v4924_v26  ;;  %v4913_v32 = vmax.f32 %v4877_v49, 0.0  ;;  %v5159_v39 = vrot.slane %v11942_v41, 4  ;;  %4978 = vst [vmem:[#allocation4 + $0x90] sm:$0x1] %v4977_v46 }
 0x435   : > { %v5252_v28 = vsel %vm9875_vm10, %v5244_v50, %v5251_v21  ;;  %v5512_v48 = vsel %vm9801_vm4, %v5253_v56, %v5511_v17  ;;  %v4786_v4 = vpop.f32.mrf.mxu2  ;;  %v5773_v7 = vor.u32 %v5772_v59, %v5769_v52  ;;  %v5012_v21 = vld [vmem:[#allocation4 + $0x50] sm:$0x1] }
 0x436   : > { %5510 = vst.msk [vmem:[#allocation4 + $0x70] sm:$0xf] %vm430_vm3, %v5252_v28  ;;  %v5473_v30 = vsel %vm9854_vm9, %v5158_v14, %v5472_v20  ;;  %v5255_v58 = vshrl.u32 %v5068_v8, 16  ;;  %v5258_v22 = vshll.u32 %v5068_v8, 16  ;;  %v5057_v54 = vpack.c.bf16 %v4913_v32, %v4913_v32  ;;  %v5656_v45 = vld [vmem:[#allocation4 + $0x28] sm:$0xf] }
 0x437   : > { %5513 = vst [vmem:[#allocation4 + $0x74] sm:$0x1] %v5512_v48  ;;  %v4849_v50 = vmul.f32 %v11806_v61, %v4786_v4  ;;  %v4759_v53 = vpop.f32.mrf.mxu0  ;;  %v5776_v55 = vshll.u32 %v5656_v45, 16  ;;  %v5780_v51 = vshrl.u32 %v5656_v45, 16  ;;  %v5774_v60 = vrot.slane %v5773_v7, 4 }
 0x438   : > { %5474 = vst [vmem:[#allocation4 + $0x30] sm:$0xf] %v5473_v30  ;;  %v11957_v25 = vrot.slane %v5255_v58, 7  ;;  %v5161_v10 = vshrl.u32 %v5057_v54, 16  ;;  %v4838_v16 = vmul.f32 %v11806_v61, %v4759_v53  ;;  %v5164_v12 = vshll.u32 %v5057_v54, 16 }
 0x439   : > { %v4889_v43 = vadd.f32 %v11811_v36, %v4849_v50  ;;  %v5778_v29 = vrot.slane %v5776_v55, 5  ;;  %v5657_v5 = vld [vmem:[#allocation4 + $0x2c] sm:$0x1]  ;;  %v5782_v44 = vrot.slane %v5780_v51, 4  ;;  %v5518_v8 = vld [vmem:[#allocation4 + $0x80] sm:$0x1] }
 0x43a   : > { %v5260_v19 = vor.u32 %v5258_v22, %v11957_v25  ;;  %v5261_v9 = vrot.slane %v11957_v25, 4  ;;  %v5163_v62 = vrot.slane %v5161_v10, 7  ;;  %v4878_v24 = vadd.f32 %v11811_v36, %v4838_v16  ;;  %v5030_v7 = vld [vmem:[#allocation4 + $0x98] sm:$0x1]  ;;  %v5479_v58 = vld [vmem:[#allocation4 + $0x3c] sm:$0xf] }
 0x43b   : > { %v4925_v42 = vmax.f32 %v4889_v43, 0.0  ;;  %v5779_v38 = vsel %vm9894_vm11, %v5774_v60, %v5778_v29  ;;  %v5783_v40 = vor.u32 %v5782_v44, %v5778_v29  ;;  %v5786_v17 = vshll.u32 %v5657_v5, 16  ;;  %v4961_v51 = vld [vmem:[#allocation4 + $0x54] sm:$0x1]  ;;  %v5586_v44 = vld [vmem:[#allocation4 + $0x18] sm:$0xf] }
 0x43c   : > { %v5515_v63 = vsel %vm9854_vm9, %v5260_v19, %v5514_v35  ;;  %v5166_v6 = vor.u32 %v5164_v12, %v5163_v62  ;;  %v5168_v13 = vrot.slane %v5163_v62, 4  ;;  %v4914_v37 = vmax.f32 %v4878_v24, 0.0  ;;  %6090 = vrot.lane.b32.xlu0 %v5779_v38, %s9731_s9  ;;  %5618 = vst.msk [vmem:[#allocation5 + $0x10] sm:$0xf] %vm430_vm3, %v5586_v44 }
 0x43d   : > { %5516 = vst [vmem:[#allocation4 + $0x78] sm:$0xf] %v5515_v63  ;;  %v5069_v47 = vpack.c.bf16 %v4925_v42, %v4925_v42  ;;  %v4789_v1 = vpop.f32.mrf.mxu2  ;;  %v5784_v52 = vrot.slane %v5783_v40, 4  ;;  %v5788_v15 = vrot.slane %v5786_v17, 5  ;;  %v5013_v45 = vsel %vm9807_vm5, 0, %v5012_v21 }
 0x43e   : > { %v5167_v41 = vsel %vm9875_vm10, %v5159_v39, %v5166_v6  ;;  %v5477_v26 = vsel %vm9801_vm4, %v5168_v13, %v5476_v33  ;;  %v5058_v49 = vpack.c.bf16 %v4914_v37, %v4914_v37  ;;  %v4850_v11 = vmul.f32 %v11806_v61, %v4789_v1  ;;  %v5585_v39 = vld [vmem:[#allocation4 + $0x10] sm:$0xf]  ;;  %5014 = vst [vmem:[#allocation4 + $0x50] sm:$0x1] %v5013_v45 }
 0x43f   : > { %5475 = vst.msk [vmem:[#allocation4 + $0x34] sm:$0xf] %vm430_vm3, %v5167_v41  ;;  %v5263_v56 = vshrl.u32 %v5069_v47, 16  ;;  %v5266_v20 = vshll.u32 %v5069_v47, 16  ;;  %v4761_v59 = vpop.f32.mrf.mxu0  ;;  %v5789_v27 = vsel %vm9894_vm11, %v5784_v52, %v5788_v15  ;;  %v5658_v14 = vld [vmem:[#allocation4 + $0x30] sm:$0xf] }
 0x440   : > { %5478 = vst [vmem:[#allocation4 + $0x38] sm:$0x1] %v5477_v26  ;;  %v5170_v32 = vshrl.u32 %v5058_v49, 16  ;;  %v5173_v28 = vshll.u32 %v5058_v49, 16  ;;  %v4890_v48 = vadd.f32 %v11811_v36, %v4850_v11  ;;  %v4839_v4 = vmul.f32 %v11806_v61, %v4761_v59  ;;  %6092 = vrot.lane.b32.xlu1 %v5789_v27, %s9731_s9 }
 0x441   : > { %v5265_v30 = vrot.slane %v5263_v56, 7  ;;  %v5791_v22 = vshrl.u32 %v5658_v14, 16  ;;  %v5794_v54 = vshll.u32 %v5658_v14, 16  ;;  %v5031_v55 = vsel %vm9807_vm5, 0, %v5030_v7  ;;  %5617 = vst.msk [vmem:[#allocation5 + $0xc] sm:$0xf] %vm430_vm3, %v5585_v39  ;;  %v4424_v14 = vpop.permute.xlu2 %4423 }
 0x442   : > { %v11984_v35 = vrot.slane %v5170_v32, 7  ;;  %v4926_v50 = vmax.f32 %v4890_v48, 0.0  ;;  %v4879_v53 = vadd.f32 %v11811_v36, %v4839_v4  ;;  %5032 = vst [vmem:[#allocation4 + $0x98] sm:$0x1] %v5031_v55  ;;  %v4962_v47 = vsel %vm9801_vm4, 0, %v4961_v51 }
 0x443   : > { %v5268_v10 = vor.u32 %v5266_v20, %v5265_v30  ;;  %v5270_v16 = vrot.slane %v5265_v30, 4  ;;  %v5793_v60 = vrot.slane %v5791_v22, 4  ;;  %v5796_v12 = vrot.slane %v5794_v54, 5  ;;  %4963 = vst [vmem:[#allocation4 + $0x54] sm:$0x1] %v4962_v47 }
 0x444   : > { %v5175_v43 = vor.u32 %v5173_v28, %v11984_v35  ;;  %v5070_v29 = vpack.c.bf16 %v4926_v50, %v4926_v50  ;;  %v4915_v5 = vmax.f32 %v4879_v53, 0.0  ;;  %v5176_v24 = vrot.slane %v11984_v35, 4  ;;  %v4979_v7 = vld [vmem:[#allocation4 + $0x9c] sm:$0x1]  ;;  %4500 = vst.msk [vmem:[#allocation3 + $0x80] sm:$0xf] %vm4467_vm8, %v4424_v14 }
 0x445   : > { %v5269_v19 = vsel %vm9875_vm10, %v5261_v9, %v5268_v10  ;;  %v5519_v62 = vsel %vm9801_vm4, %v5270_v16, %v5518_v8  ;;  %v4791_v34 = vpop.f32.mrf.mxu2  ;;  %v5797_v33 = vor.u32 %v5796_v12, %v5793_v60  ;;  %v5521_v9 = vld [vmem:[#allocation4 + $0x84] sm:$0xf]  ;;  %v4980_v53 = vsel %vm9801_vm4, 0, %v4979_v7  ;;  %v5015_v60 = vld [vmem:[#allocation4 + $0x5c] sm:$0x1] }
 0x446   : > { %5517 = vst.msk [vmem:[#allocation4 + $0x7c] sm:$0xf] %vm430_vm3, %v5269_v19  ;;  %v5480_v42 = vsel %vm9854_vm9, %v5175_v43, %v5479_v58  ;;  %v5272_v38 = vshrl.u32 %v5070_v29, 16  ;;  %v5275_v40 = vshll.u32 %v5070_v29, 16  ;;  %v5059_v25 = vpack.c.bf16 %v4915_v5, %v4915_v5  ;;  %v5659_v17 = vld [vmem:[#allocation4 + $0x34] sm:$0xf] }
 0x447   : > { %5520 = vst [vmem:[#allocation4 + $0x80] sm:$0x1] %v5519_v62  ;;  %v4851_v63 = vmul.f32 %v11806_v61, %v4791_v34  ;;  %v4764_v6 = vpop.f32.mrf.mxu0  ;;  %v5800_v13 = vshll.u32 %v5659_v17, 16  ;;  %v5804_v37 = vshrl.u32 %v5659_v17, 16  ;;  %v5798_v46 = vrot.slane %v5797_v33, 4 }
 0x448   : > { %5481 = vst [vmem:[#allocation4 + $0x3c] sm:$0xf] %v5480_v42  ;;  %v12005_v1 = vrot.slane %v5272_v38, 7  ;;  %v5178_v52 = vshrl.u32 %v5059_v25, 16  ;;  %v4840_v15 = vmul.f32 %v11806_v61, %v4764_v6  ;;  %v5181_v41 = vshll.u32 %v5059_v25, 16 }
 0x449   : > { %v4891_v26 = vadd.f32 %v11811_v36, %v4851_v63  ;;  %v5802_v49 = vrot.slane %v5800_v13, 5  ;;  %v5660_v11 = vld [vmem:[#allocation4 + $0x38] sm:$0x1]  ;;  %v5806_v21 = vrot.slane %v5804_v37, 4  ;;  %v5483_v8 = vld [vmem:[#allocation4 + $0x44] sm:$0x1] }
 0x44a   : > { %v5277_v56 = vor.u32 %v5275_v40, %v12005_v1  ;;  %v5278_v20 = vrot.slane %v12005_v1, 4  ;;  %v5180_v59 = vrot.slane %v5178_v52, 7  ;;  %v4880_v27 = vadd.f32 %v11811_v36, %v4840_v15  ;;  %4981 = vst [vmem:[#allocation4 + $0x9c] sm:$0x1] %v4980_v53  ;;  %v5525_v19 = vld [vmem:[#allocation4 + $0x8c] sm:$0x1] }
 0x44b   : > { %v4927_v32 = vmax.f32 %v4891_v26, 0.0  ;;  %v5803_v28 = vsel %vm9894_vm11, %v5798_v46, %v5802_v49  ;;  %v5807_v48 = vor.u32 %v5806_v21, %v5802_v49  ;;  %v5810_v4 = vshll.u32 %v5660_v11, 16  ;;  %v5033_v42 = vld [vmem:[#allocation4 + $0xa4] sm:$0x1]  ;;  %v5486_v40 = vld [vmem:[#allocation4 + $0x48] sm:$0xf]  ;;  %v4430_v26 = vpop.permute.xlu2 %4429 }
 0x44c   : > { %v5522_v30 = vsel %vm9854_vm9, %v5277_v56, %v5521_v9  ;;  %v5183_v58 = vor.u32 %v5181_v41, %v5180_v59  ;;  %v5185_v22 = vrot.slane %v5180_v59, 4  ;;  %v4916_v54 = vmax.f32 %v4880_v27, 0.0  ;;  %6094 = vrot.lane.b32.xlu2 %v5803_v28, %s9731_s9  ;;  %v5587_v63 = vld [vmem:[#allocation4 + $0x1c] sm:$0xf]  ;;  %v4964_v56 = vld [vmem:[#allocation4 + $0x60] sm:$0x1] }
 0x44d   : > { %5523 = vst [vmem:[#allocation4 + $0x84] sm:$0xf] %v5522_v30  ;;  %v5071_v45 = vpack.c.bf16 %v4927_v32, %v4927_v32  ;;  %v4794_v39 = vpop.f32.mrf.mxu2  ;;  %v5808_v35 = vrot.slane %v5807_v48, 4  ;;  %v5812_v50 = vrot.slane %v5810_v4, 5  ;;  %v5016_v9 = vsel %vm9807_vm5, 0, %v5015_v60 }
 0x44e   : > { %v5184_v55 = vsel %vm9875_vm10, %v5176_v24, %v5183_v58  ;;  %v5484_v51 = vsel %vm9801_vm4, %v5185_v22, %v5483_v8  ;;  %v5060_v10 = vpack.c.bf16 %v4916_v54, %v4916_v54  ;;  %v4852_v16 = vmul.f32 %v11806_v61, %v4794_v39  ;;  %5017 = vst [vmem:[#allocation4 + $0x5c] sm:$0x1] %v5016_v9 }
 0x44f   : > { %5482 = vst.msk [vmem:[#allocation4 + $0x40] sm:$0xf] %vm430_vm3, %v5184_v55  ;;  %v5280_v12 = vshrl.u32 %v5071_v45, 16  ;;  %v5283_v43 = vshll.u32 %v5071_v45, 16  ;;  %v4766_v29 = vpop.f32.mrf.mxu0  ;;  %v5813_v5 = vsel %vm9894_vm11, %v5808_v35, %v5812_v50  ;;  %v5661_v44 = vld [vmem:[#allocation4 + $0x3c] sm:$0xf] }
 0x450   : > { %5485 = vst [vmem:[#allocation4 + $0x44] sm:$0x1] %v5484_v51  ;;  %v5187_v62 = vshrl.u32 %v5060_v10, 16  ;;  %v5190_v24 = vshll.u32 %v5060_v10, 16  ;;  %v4892_v34 = vadd.f32 %v11811_v36, %v4852_v16  ;;  %v4841_v33 = vmul.f32 %v11806_v61, %v4766_v29  ;;  %6096 = vrot.lane.b32.xlu0 %v5813_v5, %s9731_s9  ;;  %v12059_v35 = vld [vmem:[%s13422_s2] ss:$0 sm:$0xff] }
 0x451   : > { %v5282_v38 = vrot.slane %v5280_v12, 7  ;;  %v5815_v25 = vshrl.u32 %v5661_v44, 16  ;;  %v5818_v17 = vshll.u32 %v5661_v44, 16  ;;  %v5034_v47 = vsel %vm9807_vm5, 0, %v5033_v42  ;;  %4503 = vst.msk [vmem:[#allocation3 + $0x8c] sm:$0xf] %vm4467_vm8, %v4430_v26 }
 0x452   : > { %v12033_v6 = vrot.slane %v5187_v62, 7  ;;  %v4928_v13 = vmax.f32 %v4892_v34, 0.0  ;;  %v4881_v37 = vadd.f32 %v11811_v36, %v4841_v33  ;;  %5035 = vst [vmem:[#allocation4 + $0xa4] sm:$0x1] %v5034_v47  ;;  %v4965_v54 = vsel %vm9801_vm4, 0, %v4964_v56 }
 0x453   : > { %v5285_v52 = vor.u32 %v5283_v43, %v5282_v38  ;;  %v5287_v15 = vrot.slane %v5282_v38, 4  ;;  %v5817_v46 = vrot.slane %v5815_v25, 4  ;;  %v5820_v41 = vrot.slane %v5818_v17, 5  ;;  %5619 = vst.msk [vmem:[#allocation5 + $0x14] sm:$0xf] %vm430_vm3, %v5587_v63 }
 0x454   : > { %v5192_v49 = vor.u32 %v5190_v24, %v12033_v6  ;;  %v5072_v11 = vpack.c.bf16 %v4928_v13, %v4928_v13  ;;  %v4917_v21 = vmax.f32 %v4881_v37, 0.0  ;;  %v5193_v27 = vrot.slane %v12033_v6, 4  ;;  %4966 = vst [vmem:[#allocation4 + $0x60] sm:$0x1] %v4965_v54  ;;  %v5490_v44 = vld [vmem:[#allocation4 + $0x50] sm:$0x1] }
 0x455   : > { %v5286_v36 = vsel %vm9875_vm10, %v5278_v20, %v5285_v52  ;;  %v5526_v59 = vsel %vm9801_vm4, %v5287_v15, %v5525_v19  ;;  %v4796_v14 = vpop.f32.mrf.mxu2  ;;  %v5821_v8 = vor.u32 %v5820_v41, %v5817_v46  ;;  %v5528_v20 = vld [vmem:[#allocation4 + $0x90] sm:$0xf]  ;;  %v4982_v33 = vld [vmem:[#allocation4 + $0xa8] sm:$0x1]  ;;  %v5532_v56 = vld [vmem:[#allocation4 + $0x98] sm:$0x1] }
 0x456   : > { %5524 = vst.msk [vmem:[#allocation4 + $0x88] sm:$0xf] %vm430_vm3, %v5286_v36  ;;  %v5487_v32 = vsel %vm9854_vm9, %v5192_v49, %v5486_v40  ;;  %v5289_v28 = vshrl.u32 %v5072_v11, 16  ;;  %v5292_v48 = vshll.u32 %v5072_v11, 16  ;;  %v5061_v1 = vpack.c.bf16 %v4917_v21, %v4917_v21  ;;  %v5662_v4 = vld [vmem:[#allocation4 + $0x40] sm:$0xf] }
 0x457   : > { %5527 = vst [vmem:[#allocation4 + $0x8c] sm:$0x1] %v5526_v59  ;;  %v4853_v7 = vmul.f32 %v11806_v61, %v4796_v14  ;;  %v4769_v30 = vpop.f32.mrf.mxu0  ;;  %v5824_v58 = vshll.u32 %v5662_v4, 16  ;;  %v5828_v22 = vshrl.u32 %v5662_v4, 16  ;;  %v5822_v53 = vrot.slane %v5821_v8, 4 }
 0x458   : > { %5488 = vst [vmem:[#allocation4 + $0x48] sm:$0xf] %v5487_v32  ;;  %v12054_v45 = vrot.slane %v5289_v28, 7  ;;  %v5195_v39 = vshrl.u32 %v5061_v1, 16  ;;  %v4842_v50 = vmul.f32 %v12059_v35, %v4769_v30  ;;  %v5198_v55 = vshll.u32 %v5061_v1, 16 }
 0x459   : > { %v12065_v61 = vld [vmem:[%s13423_s3] ss:$0 sm:$0xff]  ;;  %v5826_v10 = vrot.slane %v5824_v58, 5  ;;  %v5663_v16 = vld [vmem:[#allocation4 + $0x44] sm:$0x1]  ;;  %v5830_v60 = vrot.slane %v5828_v22, 4 }
 0x45a   : > { %v4893_v51 = vadd.f32 %v12065_v61, %v4853_v7  ;;  %v5294_v12 = vor.u32 %v5292_v48, %v12054_v45  ;;  %v5295_v43 = vrot.slane %v12054_v45, 4  ;;  %v5197_v29 = vrot.slane %v5195_v39, 7  ;;  %v5018_v46 = vld [vmem:[#allocation4 + $0x68] sm:$0x1]  ;;  %v5036_v8 = vld [vmem:[#allocation4 + $0xb0] sm:$0x1] }
 0x45b   : > { %v4882_v5 = vadd.f32 %v12065_v61, %v4842_v50  ;;  %v5827_v62 = vsel %vm9894_vm11, %v5822_v53, %v5826_v10  ;;  %v5831_v24 = vor.u32 %v5830_v60, %v5826_v10  ;;  %v5834_v34 = vshll.u32 %v5663_v16, 16  ;;  %v12089_v32 = vld [vmem:[#allocation4 + $0x6c] sm:$0xf]  ;;  %v5493_v48 = vld [vmem:[#allocation4 + $0x54] sm:$0xf] }
 0x45c   : > { %v4929_v19 = vmax.f32 %v4893_v51, 0.0  ;;  %v5529_v42 = vsel %vm9854_vm9, %v5294_v12, %v5528_v20  ;;  %v5200_v38 = vor.u32 %v5198_v55, %v5197_v29  ;;  %v5202_v40 = vrot.slane %v5197_v29, 4  ;;  %6098 = vrot.lane.b32.xlu1 %v5827_v62, %s9731_s9  ;;  %v5590_v10 = vld [vmem:[#allocation4 + $0x30] sm:$0xf] }
 0x45d   : > { %v4918_v25 = vmax.f32 %v4882_v5, 0.0  ;;  %5530 = vst [vmem:[#allocation4 + $0x90] sm:$0xf] %v5529_v42  ;;  %v4799_v9 = vpop.f32.mrf.mxu2  ;;  %v5832_v63 = vrot.slane %v5831_v24, 4  ;;  %v5836_v6 = vrot.slane %v5834_v34, 5  ;;  %v4983_v13 = vsel %vm9801_vm4, 0, %v4982_v33 }
 0x45e   : > { %v5073_v17 = vpack.c.bf16 %v4929_v19, %v4929_v19  ;;  %v5201_v37 = vsel %vm9875_vm10, %v5193_v27, %v5200_v38  ;;  %v5491_v47 = vsel %vm9801_vm4, %v5202_v40, %v5490_v44  ;;  %v4854_v15 = vmul.f32 %v12059_v35, %v4799_v9  ;;  %4984 = vst [vmem:[#allocation4 + $0xa8] sm:$0x1] %v4983_v13  ;;  %v5535_v33 = vld [vmem:[#allocation4 + $0x9c] sm:$0xf] }
 0x45f   : > { %v5062_v52 = vpack.c.bf16 %v4918_v25, %v4918_v25  ;;  %5489 = vst.msk [vmem:[#allocation4 + $0x4c] sm:$0xf] %vm430_vm3, %v5201_v37  ;;  %v4771_v49 = vpop.f32.mrf.mxu0  ;;  %v5837_v11 = vsel %vm9894_vm11, %v5832_v63, %v5836_v6  ;;  %v5664_v21 = vld [vmem:[#allocation4 + $0x48] sm:$0xf]  ;;  %v5019_v20 = vsel %vm9807_vm5, 0, %v5018_v46  ;;  %v5037_v22 = vsel %vm9807_vm5, 0, %v5036_v8 }
 0x460   : > { %v5297_v41 = vshrl.u32 %v5073_v17, 16  ;;  %v5300_v26 = vshll.u32 %v5073_v17, 16  ;;  %5492 = vst [vmem:[#allocation4 + $0x50] sm:$0x1] %v5491_v47  ;;  %v4894_v27 = vadd.f32 %v12065_v61, %v4854_v15  ;;  %v4843_v14 = vmul.f32 %v12059_v35, %v4771_v49  ;;  %6100 = vrot.lane.b32.xlu2 %v5837_v11, %s9731_s9  ;;  %v5588_v17 = vld [vmem:[#allocation4 + $0x24] sm:$0xf] }
 0x461   : > { %v5204_v36 = vshrl.u32 %v5062_v52, 16  ;;  %v5207_v59 = vshll.u32 %v5062_v52, 16  ;;  %v5839_v1 = vshrl.u32 %v5664_v21, 16  ;;  %v5842_v4 = vshll.u32 %v5664_v21, 16  ;;  %5020 = vst [vmem:[#allocation4 + $0x68] sm:$0x1] %v5019_v20 }
 0x462   : > { %v5299_v28 = vrot.slane %v5297_v41, 7  ;;  %v4930_v30 = vmax.f32 %v4894_v27, 0.0  ;;  %v4883_v58 = vadd.f32 %v12065_v61, %v4843_v14  ;;  %5038 = vst [vmem:[#allocation4 + $0xb0] sm:$0x1] %v5037_v22  ;;  %v5911_v5 = vshrl.u32 %v12089_v32, 16 }
 0x463   : > { %v12093_v7 = vrot.slane %v5204_v36, 7  ;;  %v5841_v39 = vrot.slane %v5839_v1, 4  ;;  %v5844_v50 = vrot.slane %v5842_v4, 5  ;;  %5622 = vst.msk [vmem:[#allocation5 + $0x20] sm:$0xf] %vm430_vm3, %v5590_v10 }
 0x464   : > { %v5302_v54 = vor.u32 %v5300_v26, %v5299_v28  ;;  %v5304_v45 = vrot.slane %v5299_v28, 4  ;;  %v5074_v55 = vpack.c.bf16 %v4930_v30, %v4930_v30  ;;  %v4919_v51 = vmax.f32 %v4883_v58, 0.0  ;;  %v4985_v21 = vld [vmem:[#allocation4 + $0xb4] sm:$0x1]  ;;  %v5497_v36 = vld [vmem:[#allocation4 + $0x5c] sm:$0x1] }
 0x465   : > { %v5209_v53 = vor.u32 %v5207_v59, %v12093_v7  ;;  %v4801_v12 = vpop.f32.mrf.mxu2  ;;  %v5845_v29 = vor.u32 %v5844_v50, %v5841_v39  ;;  %5620 = vst.msk [vmem:[#allocation5 + $0x18] sm:$0xf] %vm430_vm3, %v5588_v17  ;;  %v4986_v22 = vsel %vm9801_vm4, 0, %v4985_v21 }
 0x466   : > { %v5303_v16 = vsel %vm9875_vm10, %v5295_v43, %v5302_v54  ;;  %v5533_v60 = vsel %vm9801_vm4, %v5304_v45, %v5532_v56  ;;  %v5306_v19 = vshrl.u32 %v5074_v55, 16  ;;  %v5309_v62 = vshll.u32 %v5074_v55, 16  ;;  %v5665_v34 = vld [vmem:[#allocation4 + $0x4c] sm:$0xf]  ;;  %v4426_v56 = vpop.permute.xlu0 %4425  ;;  %4987 = vst [vmem:[#allocation4 + $0xb4] sm:$0x1] %v4986_v22 }
 0x467   : > { %5531 = vst.msk [vmem:[#allocation4 + $0x94] sm:$0xf] %vm430_vm3, %v5303_v16  ;;  %v5494_v44 = vsel %vm9854_vm9, %v5209_v53, %v5493_v48  ;;  %v5063_v24 = vpack.c.bf16 %v4919_v51, %v4919_v51  ;;  %v5210_v43 = vrot.slane %v12093_v7, 4  ;;  %v4855_v42 = vmul.f32 %v12059_v35, %v4801_v12  ;;  %v4774_v38 = vpop.f32.mrf.mxu0  ;;  %v5666_v15 = vld [vmem:[#allocation4 + $0x50] sm:$0x1] }
 0x468   : > { %5534 = vst [vmem:[#allocation4 + $0x98] sm:$0x1] %v5533_v60  ;;  %v5848_v40 = vshll.u32 %v5665_v34, 16  ;;  %v5852_v25 = vshrl.u32 %v5665_v34, 16  ;;  %v12110_v9 = vrot.slane %v5306_v19, 7  ;;  %v4844_v6 = vmul.f32 %v12059_v35, %v4774_v38 }
 0x469   : > { %5495 = vst [vmem:[#allocation4 + $0x54] sm:$0xf] %v5494_v44  ;;  %v5212_v63 = vshrl.u32 %v5063_v24, 16  ;;  %v5846_v13 = vrot.slane %v5845_v29, 4  ;;  %v5215_v37 = vshll.u32 %v5063_v24, 16  ;;  %v4895_v47 = vadd.f32 %v12065_v61, %v4855_v42 }
 0x46a   : > { %v5850_v52 = vrot.slane %v5848_v40, 5  ;;  %v5854_v46 = vrot.slane %v5852_v25, 4  ;;  %v5311_v41 = vor.u32 %v5309_v62, %v12110_v9  ;;  %v5312_v26 = vrot.slane %v12110_v9, 4  ;;  %4501 = vst.msk [vmem:[#allocation3 + $0x84] sm:$0xf] %vm4467_vm8, %v4426_v56 }
 0x46b   : > { %v5214_v49 = vrot.slane %v5212_v63, 7  ;;  %v4884_v11 = vadd.f32 %v12065_v61, %v4844_v6  ;;  %v4931_v59 = vmax.f32 %v4895_v47, 0.0  ;;  %v5858_v8 = vshll.u32 %v5666_v15, 16  ;;  %v5039_v53 = vld [vmem:[#allocation4 + $0xbc] sm:$0x1] }
 0x46c   : > { %v5851_v27 = vsel %vm9894_vm11, %v5846_v13, %v5850_v52  ;;  %v5855_v14 = vor.u32 %v5854_v46, %v5850_v52  ;;  %v5536_v28 = vsel %vm9854_vm9, %v5311_v41, %v5535_v33  ;;  %v5539_v12 = vld [vmem:[#allocation4 + $0xa4] sm:$0x1]  ;;  %v5589_v24 = vld [vmem:[#allocation4 + $0x28] sm:$0xf]  ;;  %v5040_v38 = vsel %vm9807_vm5, 0, %v5039_v53 }
 0x46d   : > { %v5217_v48 = vor.u32 %v5215_v37, %v5214_v49  ;;  %v5219_v1 = vrot.slane %v5214_v49, 4  ;;  %v4920_v4 = vmax.f32 %v4884_v11, 0.0  ;;  %6102 = vrot.lane.b32.xlu0 %v5851_v27, %s9731_s9  ;;  %5537 = vst [vmem:[#allocation4 + $0x9c] sm:$0xf] %v5536_v28  ;;  %v5075_v20 = vpack.c.bf16 %v4931_v59, %v4931_v59  ;;  %v4804_v7 = vpop.f32.mrf.mxu2 }
 0x46e   : > { %v5856_v30 = vrot.slane %v5855_v14, 4  ;;  %v5860_v58 = vrot.slane %v5858_v8, 5  ;;  %v4856_v50 = vmul.f32 %v12059_v35, %v4804_v7  ;;  %5041 = vst [vmem:[#allocation4 + $0xbc] sm:$0x1] %v5040_v38  ;;  %v5914_v63 = vshll.u32 %v12089_v32, 16 }
 0x46f   : > { %v5218_v54 = vsel %vm9875_vm10, %v5210_v43, %v5217_v48  ;;  %v5498_v45 = vsel %vm9801_vm4, %v5219_v1, %v5497_v36  ;;  %v5064_v39 = vpack.c.bf16 %v4920_v4, %v4920_v4  ;;  %v5314_v55 = vshrl.u32 %v5075_v20, 16  ;;  %v4776_v10 = vpop.f32.mrf.mxu0  ;;  %v5500_v43 = vld [vmem:[#allocation4 + $0x60] sm:$0xf]  ;;  %5621 = vst.msk [vmem:[#allocation5 + $0x1c] sm:$0xf] %vm430_vm3, %v5589_v24 }
 0x470   : > { %5496 = vst.msk [vmem:[#allocation4 + $0x58] sm:$0xf] %vm430_vm3, %v5218_v54  ;;  %v5317_v51 = vshll.u32 %v5075_v20, 16  ;;  %v5861_v16 = vsel %vm9894_vm11, %v5856_v30, %v5860_v58  ;;  %v5667_v60 = vld [vmem:[#allocation4 + $0x54] sm:$0xf]  ;;  %v4896_v19 = vadd.f32 %v12065_v61, %v4856_v50  ;;  %v4845_v62 = vmul.f32 %v12059_v35, %v4776_v10 }
 0x471   : > { %5499 = vst [vmem:[#allocation4 + $0x5c] sm:$0x1] %v5498_v45  ;;  %v5221_v29 = vshrl.u32 %v5064_v39, 16  ;;  %v5224_v44 = vshll.u32 %v5064_v39, 16  ;;  %6104 = vrot.lane.b32.xlu1 %v5861_v16, %s9731_s9  ;;  %v5316_v34 = vrot.slane %v5314_v55, 7  ;;  %v5863_v33 = vshrl.u32 %v5667_v60, 16  ;;  %v4428_v16 = vpop.permute.xlu1 %4427 }
 0x472   : > { %v5866_v42 = vshll.u32 %v5667_v60, 16  ;;  %v4932_v25 = vmax.f32 %v4896_v19, 0.0  ;;  %v4885_v17 = vadd.f32 %v12065_v61, %v4845_v62  ;;  %v12147_v41 = vrot.slane %v5911_v5, 4  ;;  %v5542_v8 = vld [vmem:[#allocation4 + $0xa8] sm:$0xf] }
 0x473   : > { %v12139_v40 = vrot.slane %v5221_v29, 7  ;;  %v5319_v6 = vor.u32 %v5317_v51, %v5316_v34  ;;  %v5321_v13 = vrot.slane %v5316_v34, 4  ;;  %v5865_v37 = vrot.slane %v5863_v33, 4  ;;  %v5674_v58 = vld [vmem:[#allocation4 + $0x70] sm:$0xf] }
 0x474   : > { %v5868_v47 = vrot.slane %v5866_v42, 5  ;;  %v5076_v15 = vpack.c.bf16 %v4932_v25, %v4932_v25  ;;  %v4921_v46 = vmax.f32 %v4885_v17, 0.0  ;;  %v12155_v36 = vrot.slane %v5914_v63, 5  ;;  %v5504_v55 = vld [vmem:[#allocation4 + $0x68] sm:$0x1] }
 0x475   : > { %v5226_v52 = vor.u32 %v5224_v44, %v12139_v40  ;;  %v5320_v49 = vsel %vm9875_vm10, %v5312_v26, %v5319_v6  ;;  %v5540_v11 = vsel %vm9801_vm4, %v5321_v13, %v5539_v12  ;;  %v4806_v21 = vpop.f32.mrf.mxu2  ;;  %v5227_v26 = vrot.slane %v12139_v40, 4  ;;  %v5677_v60 = vld [vmem:[#allocation4 + $0x7c] sm:$0xf]  ;;  %v5582_v62 = vld [vmem:[#allocation4] sm:$0xf] }
 0x476   : > { %v5869_v56 = vor.u32 %v5868_v47, %v5865_v37  ;;  %5538 = vst.msk [vmem:[#allocation4 + $0xa0] sm:$0xf] %vm430_vm3, %v5320_v49  ;;  %v5323_v32 = vshrl.u32 %v5076_v15, 16  ;;  %v5326_v5 = vshll.u32 %v5076_v15, 16  ;;  %v5065_v27 = vpack.c.bf16 %v4921_v46, %v4921_v46  ;;  %v6083_v14 = vpop.permute.xlu2 %6082  ;;  %v5583_v42 = vld [vmem:[#allocation4 + $0x4] sm:$0xf] }
 0x477   : > { %v5501_v59 = vsel %vm9854_vm9, %v5226_v52, %v5500_v43  ;;  %v5668_v9 = vld [vmem:[#allocation4 + $0x58] sm:$0xf]  ;;  %5541 = vst [vmem:[#allocation4 + $0xa4] sm:$0x1] %v5540_v11  ;;  %v4857_v28 = vmul.f32 %v12059_v35, %v4806_v21  ;;  %v5917_v10 = vor.u32 %v12155_v36, %v12147_v41  ;;  %v5920_v17 = vshll.u32 %v5674_v58, 16 }
 0x478   : > { %v5872_v48 = vshll.u32 %v5668_v9, 16  ;;  %v5876_v1 = vshrl.u32 %v5668_v9, 16  ;;  %5502 = vst [vmem:[#allocation4 + $0x60] sm:$0xf] %v5501_v59  ;;  %v12162_v4 = vrot.slane %v5323_v32, 7  ;;  %v5229_v20 = vshrl.u32 %v5065_v27, 16 }
 0x479   : > { %v5232_v7 = vshll.u32 %v5065_v27, 16  ;;  %v5870_v30 = vrot.slane %v5869_v56, 4  ;;  %v4897_v22 = vadd.f32 %v12065_v61, %v4857_v28  ;;  %6176 = vst.msk [vmem:[#allocation5 + $0x8] sm:$0xf] %vm1630_vm14, %v6083_v14  ;;  %v5669_v45 = vld [vmem:[#allocation4 + $0x5c] sm:$0x1] }
 0x47a   : > { %v5874_v54 = vrot.slane %v5872_v48, 5  ;;  %v5878_v39 = vrot.slane %v5876_v1, 4  ;;  %v5328_v50 = vor.u32 %v5326_v5, %v12162_v4  ;;  %v5231_v53 = vrot.slane %v5229_v20, 7  ;;  %4502 = vst.msk [vmem:[#allocation3 + $0x88] sm:$0xf] %vm4467_vm8, %v4428_v16 }
 0x47b   : > { %v5882_v51 = vshll.u32 %v5669_v45, 16  ;;  %v5329_v12 = vrot.slane %v12162_v4, 4  ;;  %v4933_v29 = vmax.f32 %v4897_v22, 0.0  ;;  %5614 = vst.msk [vmem:[#allocation5] sm:$0xf] %vm430_vm3, %v5582_v62  ;;  %v5924_v63 = vshrl.u32 %v5674_v58, 16 }
 0x47c   : > { %v5875_v44 = vsel %vm9894_vm11, %v5870_v30, %v5874_v54  ;;  %v5879_v19 = vor.u32 %v5878_v39, %v5874_v54  ;;  %v5543_v24 = vsel %vm9854_vm9, %v5328_v50, %v5542_v8  ;;  %v5234_v34 = vor.u32 %v5232_v7, %v5231_v53  ;;  %v5678_v47 = vld [vmem:[#allocation4 + $0x80] sm:$0x1]  ;;  %5615 = vst.msk [vmem:[#allocation5 + $0x4] sm:$0xf] %vm430_vm3, %v5583_v42  ;;  %v5675_v32 = vld [vmem:[#allocation4 + $0x74] sm:$0x1] }
 0x47d   : > { %v5236_v43 = vrot.slane %v5231_v53, 4  ;;  %6106 = vrot.lane.b32.xlu2 %v5875_v44, %s9731_s9  ;;  %v5884_v33 = vrot.slane %v5882_v51, 5  ;;  %5544 = vst [vmem:[#allocation4 + $0xa8] sm:$0xf] %v5543_v24  ;;  %v5077_v38 = vpack.c.bf16 %v4933_v29, %v4933_v29  ;;  %v4809_v40 = vpop.f32.mrf.mxu2  ;;  %v5944_v52 = vshll.u32 %v5677_v60, 16 }
 0x47e   : > { %v5880_v25 = vrot.slane %v5879_v19, 4  ;;  %v5235_v6 = vsel %vm9875_vm10, %v5227_v26, %v5234_v34  ;;  %v4858_v37 = vmul.f32 %v12059_v35, %v4809_v40  ;;  %v5922_v49 = vrot.slane %v5920_v17, 5  ;;  %v5546_v26 = vld [vmem:[#allocation4 + $0xb0] sm:$0x1]  ;;  %v6566_v2 = vld [vmem:[#allocation4 + $0x94] sm:$0xf] }
 0x47f   : > { %v5505_v13 = vsel %vm9801_vm4, %v5236_v43, %v5504_v55  ;;  %5503 = vst.msk [vmem:[#allocation4 + $0x64] sm:$0xf] %vm430_vm3, %v5235_v6  ;;  %v5331_v15 = vshrl.u32 %v5077_v38, 16  ;;  %v5334_v46 = vshll.u32 %v5077_v38, 16  ;;  %v5670_v56 = vld [vmem:[#allocation4 + $0x60] sm:$0xf] }
 0x480   : > { %v5885_v41 = vsel %vm9894_vm11, %v5880_v25, %v5884_v33  ;;  %5506 = vst [vmem:[#allocation4 + $0x68] sm:$0x1] %v5505_v13  ;;  %v4898_v11 = vadd.f32 %v12065_v61, %v4858_v37  ;;  %v6079_v21 = vpop.permute.xlu0 %6078  ;;  %v12188_v36 = vrot.slane %v5944_v52, 5  ;;  %v5948_v59 = vshrl.u32 %v5677_v60, 16  ;;  %v5682_v62 = vld [vmem:[#allocation4 + $0x90] sm:$0xf] }
 0x481   : > { %6108 = vrot.lane.b32.xlu0 %v5885_v41, %s9731_s9  ;;  %v5333_v5 = vrot.slane %v5331_v15, 7  ;;  %v5918_v27 = vrot.slane %v5917_v10, 4  ;;  %6174 = vst.msk [vmem:[#allocation5] sm:$0xf] %vm1630_vm14, %v6079_v21  ;;  %v5887_v14 = vshrl.u32 %v5670_v56, 16  ;;  %v5890_v9 = vshll.u32 %v5670_v56, 16 }
 0x482   : > { %v4934_v8 = vmax.f32 %v4898_v11, 0.0  ;;  %v5950_v28 = vrot.slane %v5948_v59, 4  ;;  %v5954_v48 = vshll.u32 %v5678_v47, 16  ;;  %v5926_v1 = vrot.slane %v5924_v63, 4  ;;  %v12214_v37 = vld [vmem:[#allocation4 + $0x94] sm:$0xf] }
 0x483   : > { %v5336_v4 = vor.u32 %v5334_v46, %v5333_v5  ;;  %v5338_v20 = vrot.slane %v5333_v5, 4  ;;  %v5889_v7 = vrot.slane %v5887_v14, 4  ;;  %v5892_v30 = vrot.slane %v5890_v9, 5  ;;  %v5676_v41 = vld [vmem:[#allocation4 + $0x78] sm:$0xf] }
 0x484   : > { %v5078_v58 = vpack.c.bf16 %v4934_v8, %v4934_v8  ;;  %v5951_v22 = vor.u32 %v5950_v28, %v12188_v36  ;;  %v12192_v54 = vrot.slane %v5954_v48, 5  ;;  %v5927_v45 = vor.u32 %v5926_v1, %v5922_v49  ;;  %v6081_v39 = vpop.permute.xlu1 %6080  ;;  %v5679_v14 = vld [vmem:[#allocation4 + $0x84] sm:$0xf]  ;;  %v5680_v9 = vld [vmem:[#allocation4 + $0x88] sm:$0xf] }
 0x485   : > { %v5337_v50 = vsel %vm9875_vm10, %v5329_v12, %v5336_v4  ;;  %v5547_v53 = vsel %vm9801_vm4, %v5338_v20, %v5546_v26  ;;  %v4811_v55 = vpop.f32.mrf.mxu2  ;;  %v5893_v51 = vor.u32 %v5892_v30, %v5889_v7  ;;  %v5930_v10 = vshll.u32 %v5675_v32, 16  ;;  %6175 = vst.msk [vmem:[#allocation5 + $0x4] sm:$0xf] %vm1630_vm14, %v6081_v39  ;;  %v5549_v12 = vld [vmem:[#allocation4 + $0xb4] sm:$0xf] }
 0x486   : > { %5545 = vst.msk [vmem:[#allocation4 + $0xac] sm:$0xf] %vm430_vm3, %v5337_v50  ;;  %v5340_v16 = vshrl.u32 %v5078_v58, 16  ;;  %v5343_v60 = vshll.u32 %v5078_v58, 16  ;;  %v4859_v29 = vmul.f32 %v12059_v35, %v4811_v55  ;;  %v5923_v44 = vsel %vm9894_vm11, %v5918_v27, %v5922_v49  ;;  %v5671_v19 = vld [vmem:[#allocation4 + $0x64] sm:$0xf] }
 0x487   : > { %5548 = vst [vmem:[#allocation4 + $0xb0] sm:$0x1] %v5547_v53  ;;  %v5894_v24 = vrot.slane %v5893_v51, 4  ;;  %v5896_v34 = vshll.u32 %v5671_v19, 16  ;;  %v5900_v43 = vshrl.u32 %v5671_v19, 16  ;;  %v5952_v33 = vrot.slane %v5951_v22, 4 }
 0x488   : > { %v12203_v42 = vrot.slane %v5340_v16, 7  ;;  %v4899_v38 = vadd.f32 %v12065_v61, %v4859_v29  ;;  %v5672_v40 = vld [vmem:[#allocation4 + $0x68] sm:$0x1]  ;;  %v12207_v25 = vrot.slane %v5927_v45, 4  ;;  %v12209_v35 = vrot.slane %v5930_v10, 5 }
 0x489   : > { %6114 = vrot.lane.b32.xlu0 %v5923_v44, %s9731_s9  ;;  %v5898_v17 = vrot.slane %v5896_v34, 5  ;;  %v5957_v63 = vsel %vm9894_vm11, %v5952_v33, %v12192_v54  ;;  %v5902_v6 = vrot.slane %v5900_v43, 4  ;;  %v5906_v13 = vshll.u32 %v5672_v40, 16  ;;  %v5686_v30 = vld [vmem:[#allocation4 + $0xa0] sm:$0xf] }
 0x48a   : > { %v5345_v47 = vor.u32 %v5343_v60, %v12203_v42  ;;  %v5346_v61 = vrot.slane %v12203_v42, 4  ;;  %v4935_v52 = vmax.f32 %v4899_v38, 0.0  ;;  %v6089_v15 = vpop.permute.xlu2 %6088  ;;  %v5933_v46 = vsel %vm9894_vm11, %v12207_v25, %v12209_v35  ;;  %v5553_v50 = vld [vmem:[#allocation4 + $0xbc] sm:$0x1]  ;;  %v5687_v29 = vld [vmem:[#allocation4 + $0xa4] sm:$0x1] }
 0x48b   : > { %6179 = vst.msk [vmem:[#allocation5 + $0x14] sm:$0xf] %vm1630_vm14, %v6089_v15  ;;  %v5899_v49 = vsel %vm9894_vm11, %v5894_v24, %v5898_v17  ;;  %v5903_v11 = vor.u32 %v5902_v6, %v5898_v17  ;;  %v5908_v21 = vrot.slane %v5906_v13, 5  ;;  %v5983_v56 = vshrl.u32 %v5682_v62, 16  ;;  %v5681_v43 = vld [vmem:[#allocation4 + $0x8c] sm:$0x1] }
 0x48c   : > { %v5550_v59 = vsel %vm9854_vm9, %v5345_v47, %v5549_v12  ;;  %v5079_v32 = vpack.c.bf16 %v4935_v52, %v4935_v52  ;;  %6110 = vrot.lane.b32.xlu1 %v5899_v49, %s9731_s9  ;;  %v5986_v5 = vshll.u32 %v5682_v62, 16  ;;  %v5992_v27 = vshll.u32 %v12214_v37, 16  ;;  %v9629_v6 = vld [vmem:[#allocation3 + $0x80] sm:$0xff] }
 0x48d   : > { %5551 = vst [vmem:[#allocation4 + $0xb4] sm:$0xf] %v5550_v59  ;;  %v5904_v26 = vrot.slane %v5903_v11, 4  ;;  %v5985_v8 = vrot.slane %v5983_v56, 4  ;;  %v5996_v28 = vshrl.u32 %v12214_v37, 16  ;;  %v5935_v48 = vshrl.u32 %v5676_v41, 16  ;;  %9463 = vmatmul.msk.bf16.gmra.mxu2 %vm4666_vm13, %v9629_v6 }
 0x48e   : > { %v5348_v1 = vshrl.u32 %v5079_v32, 16  ;;  %v5351_v4 = vshll.u32 %v5079_v32, 16  ;;  %v5988_v20 = vrot.slane %v5986_v5, 5  ;;  %v12230_v7 = vrot.slane %v5992_v27, 5  ;;  %v5685_v59 = vld [vmem:[#allocation4 + $0x9c] sm:$0xf] }
 0x48f   : > { %v5909_v58 = vsel %vm9894_vm11, %v5904_v26, %v5908_v21  ;;  %v5937_v22 = vrot.slane %v5935_v48, 4  ;;  %v5938_v54 = vshll.u32 %v5676_v41, 16  ;;  %v5959_v45 = vshrl.u32 %v5679_v14, 16  ;;  %v5688_v32 = vld [vmem:[#allocation4 + $0xa8] sm:$0xf] }
 0x490   : > { %v5350_v39 = vrot.slane %v5348_v1, 7  ;;  %6112 = vrot.lane.b32.xlu2 %v5909_v58, %s9731_s9  ;;  %v5989_v53 = vor.u32 %v5988_v20, %v5985_v8  ;;  %v5962_v55 = vshll.u32 %v5679_v14, 16  ;;  %v5968_v51 = vshll.u32 %v5680_v9, 16  ;;  %v5593_v20 = vld [vmem:[#allocation4 + $0x40] sm:$0xf] }
 0x491   : > { %6120 = vrot.lane.b32.xlu0 %v5957_v63, %s9731_s9  ;;  %v5940_v10 = vrot.slane %v5938_v54, 5  ;;  %v5961_v16 = vrot.slane %v5959_v45, 4  ;;  %v5972_v60 = vshrl.u32 %v5680_v9, 16  ;;  %v6016_v44 = vshll.u32 %v5686_v30, 16  ;;  %v5684_v63 = vld [vmem:[#allocation4 + $0x98] sm:$0x1] }
 0x492   : > { %v5353_v19 = vor.u32 %v5351_v4, %v5350_v39  ;;  %v5355_v62 = vrot.slane %v5350_v39, 4  ;;  %v6085_v12 = vpop.permute.xlu0 %6084  ;;  %v5990_v24 = vrot.slane %v5989_v53, 4  ;;  %v5964_v34 = vrot.slane %v5962_v55, 5  ;;  %5625 = vst.msk [vmem:[#allocation5 + $0x2c] sm:$0xf] %vm430_vm3, %v5593_v20 }
 0x493   : > { %6177 = vst.msk [vmem:[#allocation5 + $0xc] sm:$0xf] %vm1630_vm14, %v6085_v12  ;;  %v5941_v33 = vor.u32 %v5940_v10, %v5937_v22  ;;  %v5970_v42 = vrot.slane %v5968_v51, 5  ;;  %v12237_v38 = vrot.slane %v6016_v44, 5  ;;  %v6020_v40 = vshrl.u32 %v5686_v30, 16 }
 0x494   : > { %v5354_v25 = vsel %vm9875_vm10, %v5346_v61, %v5353_v19  ;;  %v5554_v35 = vsel %vm9801_vm4, %v5355_v62, %v5553_v50  ;;  %6116 = vrot.lane.b32.xlu1 %v5933_v46, %s9731_s9  ;;  %v5965_v17 = vor.u32 %v5964_v34, %v5961_v16  ;;  %v6026_v47 = vshll.u32 %v5687_v29, 16  ;;  %v5691_v49 = vld [vmem:[#allocation4 + $0xb4] sm:$0xf]  ;;  %v6207_v34 = vld [vmem:[#allocation4 + $0x4] sm:$0xf] }
 0x495   : > { %5552 = vst.msk [vmem:[#allocation4 + $0xb8] sm:$0xf] %vm430_vm3, %v5354_v25  ;;  %v5942_v13 = vrot.slane %v5941_v33, 4  ;;  %v6022_v37 = vrot.slane %v6020_v40, 4  ;;  %v5974_v52 = vrot.slane %v5972_v60, 4  ;;  %v5995_v15 = vsel %vm9894_vm11, %v5990_v24, %v12230_v7 }
 0x496   : > { %5555 = vst [vmem:[#allocation4 + $0xbc] sm:$0x1] %v5554_v35  ;;  %v5978_v61 = vshll.u32 %v5681_v43, 16  ;;  %v5998_v41 = vrot.slane %v5996_v28, 4  ;;  %v5966_v11 = vrot.slane %v5965_v17, 4  ;;  %v6028_v5 = vrot.slane %v6026_v47, 5 }
 0x497   : > { %v5947_v46 = vsel %vm9894_vm11, %v5942_v13, %v12188_v36  ;;  %v6023_v21 = vor.u32 %v6022_v37, %v12237_v38  ;;  %v5975_v56 = vor.u32 %v5974_v52, %v5970_v42  ;;  %v6002_v14 = vshll.u32 %v5684_v63, 16  ;;  %v5690_v43 = vld [vmem:[#allocation4 + $0xb0] sm:$0x1]  ;;  %v5591_v35 = vld [vmem:[#allocation4 + $0x34] sm:$0xf] }
 0x498   : > { %6118 = vrot.lane.b32.xlu2 %v5947_v46, %s9731_s9  ;;  %v5980_v27 = vrot.slane %v5978_v61, 5  ;;  %v5999_v26 = vor.u32 %v5998_v41, %v12230_v7  ;;  %v6055_v8 = vshrl.u32 %v5691_v49, 16  ;;  %v6058_v28 = vshll.u32 %v5691_v49, 16  ;;  %v5689_v7 = vld [vmem:[#allocation4 + $0xac] sm:$0xf] }
 0x499   : > { %6126 = vrot.lane.b32.xlu0 %v5995_v15, %s9731_s9  ;;  %v6024_v9 = vrot.slane %v6023_v21, 4  ;;  %v5976_v48 = vrot.slane %v5975_v56, 4  ;;  %v6007_v36 = vshrl.u32 %v5685_v59, 16  ;;  %v6010_v1 = vshll.u32 %v5685_v59, 16  ;;  %5623 = vst.msk [vmem:[#allocation5 + $0x24] sm:$0xf] %vm430_vm3, %v5591_v35 }
 0x49a   : > { %v6031_v4 = vshrl.u32 %v5688_v32, 16  ;;  %v5971_v30 = vsel %vm9894_vm11, %v5966_v11, %v5970_v42  ;;  %v6057_v58 = vrot.slane %v6055_v8, 4  ;;  %v6060_v22 = vrot.slane %v6058_v28, 5  ;;  %v6208_v15 = vld [vmem:[#allocation4 + $0x8] sm:$0x1] }
 0x49b   : > { %v6009_v45 = vrot.slane %v6007_v36, 4  ;;  %v6012_v39 = vrot.slane %v6010_v1, 5  ;;  %v6029_v50 = vsel %vm9894_vm11, %v6024_v9, %v6028_v5  ;;  %v6000_v53 = vrot.slane %v5999_v26, 4  ;;  %v6206_v28 = vld [vmem:[#allocation4] sm:$0xe] }
 0x49c   : > { %6122 = vrot.lane.b32.xlu1 %v5971_v30, %s9731_s9  ;;  %v5692_v54 = vld [vmem:[#allocation4 + $0xb8] sm:$0xf]  ;;  %v6004_v55 = vrot.slane %v6002_v14, 5  ;;  %v6034_v51 = vshll.u32 %v5688_v32, 16  ;;  %v5981_v16 = vsel %vm9894_vm11, %v5976_v48, %v5980_v27  ;;  %v6061_v60 = vor.u32 %v6060_v22, %v6057_v58  ;;  %v6213_v20 = vld [vmem:[#allocation4 + $0x1c] sm:$0xf] }
 0x49d   : > { %v6064_v29 = vshll.u32 %v5692_v54, 16  ;;  %v6033_v44 = vrot.slane %v6031_v4, 4  ;;  %v6013_v19 = vor.u32 %v6012_v39, %v6009_v45  ;;  %v6040_v12 = vshll.u32 %v5689_v7, 16  ;;  %v5693_v11 = vld [vmem:[#allocation4 + $0xbc] sm:$0x1] }
 0x49e   : > { %v6087_v10 = vpop.permute.xlu1 %6086  ;;  %v6036_v62 = vrot.slane %v6034_v51, 5  ;;  %v6044_v24 = vshrl.u32 %v5689_v7, 16  ;;  %v6005_v33 = vsel %vm9894_vm11, %v6000_v53, %v6004_v55  ;;  %v6062_v42 = vrot.slane %v6061_v60, 4  ;;  %v9630_v4 = vld [vmem:[#allocation3 + $0x88] sm:$0xff]  ;;  %v6210_v39 = vld [vmem:[#allocation4 + $0x10] sm:$0xf] }
 0x49f   : > { %6178 = vst.msk [vmem:[#allocation5 + $0x10] sm:$0xf] %vm1630_vm14, %v6087_v10  ;;  %v6066_v40 = vrot.slane %v6064_v29, 5  ;;  %v6068_v25 = vshrl.u32 %v5692_v54, 16  ;;  %v6014_v17 = vrot.slane %v6013_v19, 4  ;;  %v6042_v6 = vrot.slane %v6040_v12, 5  ;;  %9464 = vmatmul.msk.bf16.gmra.mxu2 %vm4666_vm13, %v9630_v4 }
 0x4a0   : > { %6124 = vrot.lane.b32.xlu2 %v5981_v16, %s9731_s9  ;;  %v6037_v63 = vor.u32 %v6036_v62, %v6033_v44  ;;  %v6046_v13 = vrot.slane %v6044_v24, 4  ;;  %v6304_v37 = vrot.slane %v6207_v34, 5  ;;  %v6050_v61 = vshll.u32 %v5690_v43, 16  ;;  %v6212_v22 = vld [vmem:[#allocation4 + $0x18] sm:$0xe] }
 0x4a1   : > { %6132 = vrot.lane.b32.xlu0 %v6029_v50, %s9731_s9  ;;  %v6067_v52 = vsel %vm9894_vm11, %v6062_v42, %v6066_v40  ;;  %v6019_v41 = vsel %vm9894_vm11, %v6014_v17, %v12237_v38  ;;  %v6070_v21 = vrot.slane %v6068_v25, 4  ;;  %v6307_v59 = vrot.slane %v6208_v15, 5  ;;  %v5592_v38 = vld [vmem:[#allocation4 + $0x3c] sm:$0xf]  ;;  %v6216_v7 = vld [vmem:[#allocation4 + $0x28] sm:$0xf] }
 0x4a2   : > { %v6038_v49 = vrot.slane %v6037_v63, 4  ;;  %v6047_v46 = vor.u32 %v6046_v13, %v6042_v6  ;;  %v6306_v56 = vrot.slane %v6304_v37, 4  ;;  %v6074_v32 = vshll.u32 %v5693_v11, 16  ;;  %5624 = vst.msk [vmem:[#allocation5 + $0x28] sm:$0xf] %vm430_vm3, %v5592_v38 }
 0x4a3   : > { %v6052_v14 = vrot.slane %v6050_v61, 5  ;;  %v6071_v9 = vor.u32 %v6070_v21, %v6066_v40  ;;  %v9465_v30 = vrot.slane %v6206_v28, 9  ;;  %v6318_v45 = vrot.slane %v6213_v20, 5  ;;  %v5596_v50 = vld [vmem:[#allocation4 + $0x54] sm:$0xf] }
 0x4a4   : > { %6128 = vrot.lane.b32.xlu1 %v6005_v33, %s9731_s9  ;;  %v6043_v5 = vsel %vm9894_vm11, %v6038_v49, %v6042_v6  ;;  %v6048_v27 = vrot.slane %v6047_v46, 4  ;;  %v6308_v26 = vsel %vm10365_vm15, %v6306_v56, %v6307_v59  ;;  %v6076_v1 = vrot.slane %v6074_v32, 5  ;;  %v5600_v53 = vld [vmem:[#allocation4 + $0x6c] sm:$0xf]  ;;  %5628 = vst.msk [vmem:[#allocation5 + $0x38] sm:$0xf] %vm430_vm3, %v5596_v50 }
 0x4a5   : > { %v6072_v36 = vrot.slane %v6071_v9, 4  ;;  %v9467_v55 = vrot.slane %v6212_v22, 9  ;;  %v6305_v51 = vsel %vm10365_vm15, %v9465_v30, %v6304_v37  ;;  %v5601_v10 = vld [vmem:[#allocation4 + $0x70] sm:$0xf]  ;;  %v6209_v16 = vld [vmem:[#allocation4 + $0xc] sm:$0xe] }
 0x4a6   : > { %v6095_v47 = vpop.permute.xlu2 %6094  ;;  %v6053_v48 = vsel %vm9894_vm11, %v6048_v27, %v6052_v14  ;;  %5632 = vst.msk [vmem:[#allocation5 + $0x48] sm:$0xf] %vm430_vm3, %v5600_v53  ;;  %v6311_v29 = vrot.slane %v6210_v39, 5  ;;  %v6325_v44 = vrot.slane %v6216_v7, 5  ;;  %v9466_v19 = vrot.slane %v6209_v16, 9 }
 0x4a7   : > { %6182 = vst.msk [vmem:[#allocation5 + $0x20] sm:$0xf] %vm1630_vm14, %v6095_v47  ;;  %v6077_v54 = vsel %vm9894_vm11, %v6072_v36, %v6076_v1  ;;  %v6319_v60 = vsel %vm10365_vm15, %v9467_v55, %v6318_v45  ;;  %v6217_v12 = vld [vmem:[#allocation4 + $0x2c] sm:$0x1]  ;;  %v6211_v24 = vld [vmem:[#allocation4 + $0x14] sm:$0x1] }
 0x4a8   : > { %6130 = vrot.lane.b32.xlu2 %v6019_v41, %s9731_s9  ;;  %5633 = vst.msk [vmem:[#allocation5 + $0x4c] sm:$0xf] %vm430_vm3, %v5601_v10  ;;  %v6312_v34 = vsel %vm10365_vm15, %v9466_v19, %v6311_v29  ;;  %v6327_v43 = vrot.slane %v6325_v44, 4  ;;  %v6313_v33 = vrot.slane %v6311_v29, 4  ;;  %v5594_v42 = vld [vmem:[#allocation4 + $0x48] sm:$0xf] }
 0x4a9   : > { %6138 = vrot.lane.b32.xlu0 %v6067_v52, %s9731_s9  ;;  %v6328_v40 = vrot.slane %v6217_v12, 5  ;;  %v6314_v25 = vrot.slane %v6211_v24, 5  ;;  %5626 = vst.msk [vmem:[#allocation5 + $0x30] sm:$0xf] %vm430_vm3, %v5594_v42  ;;  %v6214_v35 = vld [vmem:[#allocation4 + $0x20] sm:$0x1] }
 0x4aa   : > { %v6320_v6 = vrot.slane %v6318_v45, 4  ;;  %v6222_v13 = vld [vmem:[#allocation4 + $0x40] sm:$0xf]  ;;  %v6321_v37 = vrot.slane %v6214_v35, 5  ;;  %v6221_v52 = vld [vmem:[#allocation4 + $0x3c] sm:$0xe] }
 0x4ab   : > { %v6329_v17 = vsel %vm10365_vm15, %v6327_v43, %v6328_v40  ;;  %v6315_v63 = vsel %vm10365_vm15, %v6313_v33, %v6314_v25  ;;  %v6215_v15 = vld [vmem:[#allocation4 + $0x24] sm:$0xe]  ;;  %v5595_v61 = vld [vmem:[#allocation4 + $0x4c] sm:$0xf]  ;;  %v6339_v49 = vrot.slane %v6222_v13, 5  ;;  %v9470_v21 = vrot.slane %v6221_v52, 9 }
 0x4ac   : > { %6134 = vrot.lane.b32.xlu1 %v6043_v5, %s9731_s9  ;;  %v6322_v41 = vsel %vm10365_vm15, %v6320_v6, %v6321_v37  ;;  %v6219_v46 = vld [vmem:[#allocation4 + $0x34] sm:$0xf]  ;;  %v6225_v11 = vld [vmem:[#allocation4 + $0x4c] sm:$0xf]  ;;  %5627 = vst.msk [vmem:[#allocation5 + $0x34] sm:$0xf] %vm430_vm3, %v5595_v61 }
 0x4ad   : > { %v9468_v56 = vrot.slane %v6215_v15, 9  ;;  %v6218_v59 = vld [vmem:[#allocation4 + $0x30] sm:$0xe]  ;;  %v6340_v32 = vsel %vm10365_vm15, %v9470_v21, %v6339_v49  ;;  %v6332_v27 = vrot.slane %v6219_v46, 5  ;;  %v6346_v14 = vrot.slane %v6225_v11, 5 }
 0x4ae   : > { %v6091_v8 = vpop.permute.xlu0 %6090  ;;  %v5602_v9 = vld [vmem:[#allocation4 + $0x78] sm:$0xf]  ;;  %v5603_v38 = vld [vmem:[#allocation4 + $0x7c] sm:$0xf]  ;;  %v6223_v22 = vld [vmem:[#allocation4 + $0x44] sm:$0x1] }
 0x4af   : > { %6180 = vst.msk [vmem:[#allocation5 + $0x18] sm:$0xf] %vm1630_vm14, %v6091_v8  ;;  %v6326_v5 = vsel %vm10365_vm15, %v9468_v56, %v6325_v44  ;;  %v6226_v8 = vld [vmem:[#allocation4 + $0x50] sm:$0x1]  ;;  %v6220_v28 = vld [vmem:[#allocation4 + $0x38] sm:$0x1] }
 0x4b0   : > { %6136 = vrot.lane.b32.xlu2 %v6053_v48, %s9731_s9  ;;  %5634 = vst.msk [vmem:[#allocation5 + $0x50] sm:$0xf] %vm430_vm3, %v5602_v9  ;;  %v5599_v48 = vld [vmem:[#allocation4 + $0x64] sm:$0xf]  ;;  %v6348_v1 = vrot.slane %v6346_v14, 4  ;;  %v6334_v4 = vrot.slane %v6332_v27, 4 }
 0x4b1   : > { %6416 = vrot.lane.b32.xlu0 %v6308_v26, %s9732_s10  ;;  %v9469_v26 = vrot.slane %v6218_v59, 9  ;;  %5635 = vst.msk [vmem:[#allocation5 + $0x54] sm:$0xf] %vm430_vm3, %v5603_v38  ;;  %v6349_v20 = vrot.slane %v6226_v8, 5  ;;  %v6335_v30 = vrot.slane %v6220_v28, 5  ;;  %v6341_v39 = vrot.slane %v6339_v49, 4 }
 0x4b2   : > { %v6093_v58 = vpop.permute.xlu1 %6092  ;;  %5631 = vst.msk [vmem:[#allocation5 + $0x44] sm:$0xf] %vm430_vm3, %v5599_v48  ;;  %v6231_v7 = vld [vmem:[#allocation4 + $0x64] sm:$0xf]  ;;  %v6342_v50 = vrot.slane %v6223_v22, 5 }
 0x4b3   : > { %6181 = vst.msk [vmem:[#allocation5 + $0x1c] sm:$0xf] %vm1630_vm14, %v6093_v58  ;;  %v6333_v36 = vsel %vm10365_vm15, %v9469_v26, %v6332_v27  ;;  %v6336_v45 = vsel %vm10365_vm15, %v6334_v4, %v6335_v30  ;;  %v6230_v53 = vld [vmem:[#allocation4 + $0x60] sm:$0xe]  ;;  %v6360_v55 = vrot.slane %v6231_v7, 5 }
 0x4b4   : > { %6140 = vrot.lane.b32.xlu1 %v6077_v54, %s9731_s9  ;;  %v6350_v54 = vsel %vm10365_vm15, %v6348_v1, %v6349_v20  ;;  %v5597_v10 = vld [vmem:[#allocation4 + $0x58] sm:$0xf]  ;;  %v6343_v16 = vsel %vm10365_vm15, %v6341_v39, %v6342_v50  ;;  %v5604_v29 = vld [vmem:[#allocation4 + $0x84] sm:$0xf]  ;;  %v6234_v19 = vld [vmem:[#allocation4 + $0x70] sm:$0xf] }
 0x4b5   : > { %5629 = vst.msk [vmem:[#allocation5 + $0x3c] sm:$0xf] %vm430_vm3, %v5597_v10  ;;  %v6228_v44 = vld [vmem:[#allocation4 + $0x58] sm:$0xf]  ;;  %v6367_v40 = vrot.slane %v6234_v19, 5 }
 0x4b6   : > { %5636 = vst.msk [vmem:[#allocation5 + $0x58] sm:$0xf] %vm430_vm3, %v5604_v29  ;;  %v6353_v42 = vrot.slane %v6228_v44, 5  ;;  %v6235_v25 = vld [vmem:[#allocation4 + $0x74] sm:$0x1] }
 0x4b7   : > { %v6369_v6 = vrot.slane %v6367_v40, 4  ;;  %v6370_v13 = vrot.slane %v6235_v25, 5  ;;  %v6232_v61 = vld [vmem:[#allocation4 + $0x68] sm:$0x1]  ;;  %v6233_v49 = vld [vmem:[#allocation4 + $0x6c] sm:$0xe] }
 0x4b8   : > { %6414 = vrot.lane.b32.xlu2 %v6305_v51, %s9732_s10  ;;  %v6224_v51 = vld [vmem:[#allocation4 + $0x48] sm:$0xe]  ;;  %v6355_v37 = vrot.slane %v6353_v42, 4  ;;  %v6239_v21 = vld [vmem:[#allocation4 + $0x84] sm:$0xe]  ;;  %v6363_v59 = vrot.slane %v6232_v61, 5 }
 0x4b9   : > { %6422 = vrot.lane.b32.xlu0 %v6319_v60, %s9732_s10  ;;  %v5605_v60 = vld [vmem:[#allocation4 + $0x88] sm:$0xf]  ;;  %v9471_v12 = vrot.slane %v6224_v51, 9  ;;  %v6371_v46 = vsel %vm10365_vm15, %v6369_v6, %v6370_v13  ;;  %v6237_v9 = vld [vmem:[#allocation4 + $0x7c] sm:$0xf] }
 0x4ba   : > { %v6101_v62 = vpop.permute.xlu2 %6100  ;;  %5637 = vst.msk [vmem:[#allocation5 + $0x5c] sm:$0xf] %vm430_vm3, %v5605_v60  ;;  %v6240_v56 = vld [vmem:[#allocation4 + $0x88] sm:$0xf]  ;;  %v5608_v26 = vld [vmem:[#allocation4 + $0x9c] sm:$0xf] }
 0x4bb   : > { %6185 = vst.msk [vmem:[#allocation5 + $0x2c] sm:$0xf] %vm1630_vm14, %v6101_v62  ;;  %v9473_v62 = vrot.slane %v6230_v53, 9  ;;  %v6347_v33 = vsel %vm10365_vm15, %v9471_v12, %v6346_v14  ;;  %v6381_v27 = vrot.slane %v6240_v56, 5  ;;  %v9474_v14 = vrot.slane %v6233_v49, 9 }
 0x4bc   : > { %6418 = vrot.lane.b32.xlu1 %v6312_v34, %s9732_s10  ;;  %v6227_v34 = vld [vmem:[#allocation4 + $0x54] sm:$0xe]  ;;  %v5606_v8 = vld [vmem:[#allocation4 + $0x90] sm:$0xf]  ;;  %v6236_v28 = vld [vmem:[#allocation4 + $0x78] sm:$0xe] }
 0x4bd   : > { %v6361_v43 = vsel %vm10365_vm15, %v9473_v62, %v6360_v55  ;;  %v9472_v35 = vrot.slane %v6227_v34, 9  ;;  %v6243_v48 = vld [vmem:[#allocation4 + $0x94] sm:$0xf]  ;;  %5640 = vst.msk [vmem:[#allocation5 + $0x68] sm:$0xf] %vm430_vm3, %v5608_v26  ;;  %v6374_v1 = vrot.slane %v6237_v9, 5  ;;  %v6368_v20 = vsel %vm10365_vm15, %v9474_v14, %v6367_v40 }
 0x4be   : > { %5638 = vst.msk [vmem:[#allocation5 + $0x60] sm:$0xf] %vm430_vm3, %v5606_v8  ;;  %v9475_v30 = vrot.slane %v6236_v28, 9  ;;  %v6238_v22 = vld [vmem:[#allocation4 + $0x80] sm:$0x1]  ;;  %v6383_v44 = vrot.slane %v6381_v27, 4 }
 0x4bf   : > { %v6376_v39 = vrot.slane %v6374_v1, 4  ;;  %v6377_v7 = vrot.slane %v6238_v22, 5  ;;  %v5611_v51 = vld [vmem:[#allocation4 + $0xac] sm:$0xf]  ;;  %v6242_v12 = vld [vmem:[#allocation4 + $0x90] sm:$0xe] }
 0x4c0   : > { %6420 = vrot.lane.b32.xlu2 %v6315_v63, %s9732_s10  ;;  %v6354_v63 = vsel %vm10365_vm15, %v9472_v35, %v6353_v42  ;;  %v6375_v50 = vsel %vm10365_vm15, %v9475_v30, %v6374_v1  ;;  %v6241_v10 = vld [vmem:[#allocation4 + $0x8c] sm:$0x1]  ;;  %5643 = vst.msk [vmem:[#allocation5 + $0x74] sm:$0xf] %vm430_vm3, %v5611_v51  ;;  %v9477_v40 = vrot.slane %v6242_v12, 9 }
 0x4c1   : > { %6428 = vrot.lane.b32.xlu0 %v6329_v17, %s9732_s10  ;;  %v6229_v17 = vld [vmem:[#allocation4 + $0x5c] sm:$0x1]  ;;  %v6378_v29 = vsel %vm10365_vm15, %v6376_v39, %v6377_v7  ;;  %v6384_v19 = vrot.slane %v6241_v10, 5  ;;  %v6249_v62 = vld [vmem:[#allocation4 + $0xac] sm:$0xf] }
 0x4c2   : > { %v6097_v47 = vpop.permute.xlu0 %6096  ;;  %v6356_v52 = vrot.slane %v6229_v17, 5  ;;  %v6402_v42 = vrot.slane %v6249_v62, 5  ;;  %v6245_v35 = vld [vmem:[#allocation4 + $0x9c] sm:$0xe]  ;;  %v6246_v17 = vld [vmem:[#allocation4 + $0xa0] sm:$0xf] }
 0x4c3   : > { %6183 = vst.msk [vmem:[#allocation5 + $0x24] sm:$0xf] %vm1630_vm14, %v6097_v47  ;;  %v5598_v47 = vld [vmem:[#allocation4 + $0x60] sm:$0xf]  ;;  %v6385_v25 = vsel %vm10365_vm15, %v6383_v44, %v6384_v19  ;;  %v9478_v6 = vrot.slane %v6245_v35, 9  ;;  %v6395_v13 = vrot.slane %v6246_v17, 5 }
 0x4c4   : > { %6424 = vrot.lane.b32.xlu1 %v6322_v41, %s9732_s10  ;;  %5630 = vst.msk [vmem:[#allocation5 + $0x40] sm:$0xf] %vm430_vm3, %v5598_v47  ;;  %v6362_v41 = vrot.slane %v6360_v55, 4  ;;  %v6357_v11 = vsel %vm10365_vm15, %v6355_v37, %v6356_v52  ;;  %v6247_v61 = vld [vmem:[#allocation4 + $0xa4] sm:$0x1]  ;;  %v6404_v26 = vrot.slane %v6402_v42, 4 }
 0x4c5   : > { %v6251_v28 = vld [vmem:[#allocation4 + $0xb4] sm:$0xe]  ;;  %v6543_v39 = vld [vmem:[#allocation4 + $0xc] sm:$0xf]  ;;  %v6546_v10 = vld [vmem:[#allocation4 + $0x1c] sm:$0xf] }
 0x4c6   : > { %v6364_v38 = vsel %vm10365_vm15, %v6362_v41, %v6363_v59  ;;  %v5612_v41 = vld [vmem:[#allocation4 + $0xb4] sm:$0xf]  ;;  %v6397_v59 = vrot.slane %v6395_v13, 4  ;;  %v4988_v44 = vld [vmem:[#allocation4 + $0xc0] sm:$0x1] }
 0x4c7   : > { %5644 = vst.msk [vmem:[#allocation5 + $0x78] sm:$0xf] %vm430_vm3, %v5612_v41  ;;  %v4989_v19 = vsel %vm9801_vm4, 0, %v4988_v44  ;;  %v6550_v35 = vld [vmem:[#allocation4 + $0x34] sm:$0xf] }
 0x4c8   : > { %6426 = vrot.lane.b32.xlu2 %v6326_v5, %s9732_s10  ;;  %v9476_v5 = vrot.slane %v6239_v21, 9  ;;  %4990 = vst [vmem:[#allocation4 + $0xc0] sm:$0x1] %v4989_v19  ;;  %v6563_v44 = vld [vmem:[#allocation4 + $0x84] sm:$0xf] }
 0x4c9   : > { %6434 = vrot.lane.b32.xlu0 %v6340_v32, %s9732_s10  ;;  %v6559_v19 = vld [vmem:[#allocation4 + $0x6c] sm:$0xf]  ;;  %v6572_v57 = vld [vmem:[#allocation4 + $0xb8] sm:$0xf] }
 0x4ca   : > { %v6382_v4 = vsel %vm10365_vm15, %v9476_v5, %v6381_v27  ;;  %v6250_v5 = vld [vmem:[#allocation4 + $0xb0] sm:$0x1]  ;;  %v5610_v27 = vld [vmem:[#allocation4 + $0xa8] sm:$0xf] }
 0x4cb   : > { %5642 = vst.msk [vmem:[#allocation5 + $0x70] sm:$0xf] %vm430_vm3, %v5610_v27  ;;  %v6405_v8 = vrot.slane %v6250_v5, 5  ;;  %v6557_v27 = vld [vmem:[#allocation4 + $0x60] sm:$0xf] }
 0x4cc   : > { %6430 = vrot.lane.b32.xlu1 %v6333_v36, %s9732_s10  ;;  %v5607_v36 = vld [vmem:[#allocation4 + $0x94] sm:$0xf] }
 0x4cd   : > { %5639 = vst.msk [vmem:[#allocation5 + $0x64] sm:$0xf] %vm430_vm3, %v5607_v36  ;;  %v6406_v1 = vsel %vm10365_vm15, %v6404_v26, %v6405_v8 }
 0x4ce   : > { %v6099_v58 = vpop.permute.xlu1 %6098 }
 0x4cf   : > { %6184 = vst.msk [vmem:[#allocation5 + $0x28] sm:$0xf] %vm1630_vm14, %v6099_v58  ;;  %v6388_v58 = vrot.slane %v6243_v48, 5 }
 0x4d0   : > { %6432 = vrot.lane.b32.xlu2 %v6336_v45, %s9732_s10 }
 0x4d1   : > { %6440 = vrot.lane.b32.xlu0 %v6350_v54, %s9732_s10  ;;  %v6244_v54 = vld [vmem:[#allocation4 + $0x98] sm:$0x1]  ;;  %v6390_v53 = vrot.slane %v6388_v58, 4  ;;  %v6389_v47 = vsel %vm10365_vm15, %v9477_v40, %v6388_v58 }
 0x4d2   : > { %v6391_v55 = vrot.slane %v6244_v54, 5  ;;  %v6545_v58 = vld [vmem:[#allocation4 + $0x18] sm:$0xf] }
 0x4d4   : > { %6436 = vrot.lane.b32.xlu1 %v6343_v16, %s9732_s10  ;;  %v6248_v16 = vld [vmem:[#allocation4 + $0xa8] sm:$0xe]  ;;  %v6392_v60 = vsel %vm10365_vm15, %v6390_v53, %v6391_v55  ;;  %v6544_v53 = vld [vmem:[#allocation4 + $0x10] sm:$0xf] }
 0x4d7   : > { %v6107_v24 = vpop.permute.xlu2 %6106 }
 0x4d8   : > { %6188 = vst.msk [vmem:[#allocation5 + $0x38] sm:$0xf] %vm1630_vm14, %v6107_v24  ;;  %6438 = vrot.lane.b32.xlu2 %v6347_v33, %s9732_s10  ;;  %v5609_v24 = vld [vmem:[#allocation4 + $0xa0] sm:$0xf]  ;;  %v9479_v33 = vrot.slane %v6248_v16, 9 }
 0x4d9   : > { %6446 = vrot.lane.b32.xlu0 %v6361_v43, %s9732_s10  ;;  %5641 = vst.msk [vmem:[#allocation5 + $0x6c] sm:$0xf] %vm430_vm3, %v5609_v24 }
 0x4da   : > { %v6403_v37 = vsel %vm10365_vm15, %v9479_v33, %v6402_v42  ;;  %v6549_v33 = vld [vmem:[#allocation4 + $0x30] sm:$0xf]  ;;  %v12450_v42 = vld [vmem:[%s13423_s3] ss:$0 sm:$0xff] }
 0x4dc   : > { %6442 = vrot.lane.b32.xlu1 %v6354_v63, %s9732_s10  ;;  %v6252_v63 = vld [vmem:[#allocation4 + $0xb8] sm:$0xf] }
 0x4dd   : > { %v6409_v52 = vrot.slane %v6252_v63, 5  ;;  %v6554_v63 = vld [vmem:[#allocation4 + $0x4c] sm:$0xf] }
 0x4df   : > { %v6103_v15 = vpop.permute.xlu0 %6102  ;;  %v6411_v21 = vrot.slane %v6409_v52, 4 }
 0x4e0   : > { %6186 = vst.msk [vmem:[#allocation5 + $0x30] sm:$0xf] %vm1630_vm14, %v6103_v15  ;;  %6444 = vrot.lane.b32.xlu2 %v6357_v11, %s9732_s10  ;;  %v6253_v15 = vld [vmem:[#allocation4 + $0xbc] sm:$0x1]  ;;  %v6396_v11 = vsel %vm10365_vm15, %v9478_v6, %v6395_v13  ;;  %v5042_v6 = vld [vmem:[#allocation4 + $0xc8] sm:$0x1] }
 0x4e1   : > { %6452 = vrot.lane.b32.xlu0 %v6371_v46, %s9732_s10  ;;  %v6412_v56 = vrot.slane %v6253_v15, 5 }
 0x4e3   : > { %v6105_v32 = vpop.permute.xlu1 %6104  ;;  %v6413_v9 = vsel %vm10365_vm15, %v6411_v21, %v6412_v56  ;;  %v5556_v56 = vld [vmem:[#allocation4 + $0xc0] sm:$0xf] }
 0x4e4   : > { %6187 = vst.msk [vmem:[#allocation5 + $0x34] sm:$0xf] %vm1630_vm14, %v6105_v32  ;;  %6448 = vrot.lane.b32.xlu1 %v6364_v38, %s9732_s10  ;;  %v6398_v32 = vrot.slane %v6247_v61, 5 }
 0x4e6   : > { %v6399_v38 = vsel %vm10365_vm15, %v6397_v59, %v6398_v32 }
 0x4e8   : > { %6450 = vrot.lane.b32.xlu2 %v6368_v20, %s9732_s10  ;;  %v5613_v20 = vld [vmem:[#allocation4 + $0xb8] sm:$0xf] }
 0x4e9   : > { %6458 = vrot.lane.b32.xlu0 %v6382_v4, %s9732_s10  ;;  %v9480_v4 = vrot.slane %v6251_v28, 9  ;;  %5645 = vst.msk [vmem:[#allocation5 + $0x7c] sm:$0xf] %vm430_vm3, %v5613_v20 }
 0x4ea   : > { %v6113_v45 = vpop.permute.xlu2 %6112 }
 0x4eb   : > { %6191 = vst.msk [vmem:[#allocation5 + $0x44] sm:$0xf] %vm1630_vm14, %v6113_v45  ;;  %v6410_v22 = vsel %vm10365_vm15, %v9480_v4, %v6409_v52 }
 0x4ec   : > { %6454 = vrot.lane.b32.xlu1 %v6375_v50, %s9732_s10  ;;  %v6548_v50 = vld [vmem:[#allocation4 + $0x28] sm:$0xf] }
 0x4f0   : > { %6456 = vrot.lane.b32.xlu2 %v6378_v29, %s9732_s10  ;;  %v6551_v29 = vld [vmem:[#allocation4 + $0x3c] sm:$0xf] }
 0x4f1   : > { %6464 = vrot.lane.b32.xlu0 %v6392_v60, %s9732_s10  ;;  %v6547_v60 = vld [vmem:[#allocation4 + $0x24] sm:$0xf] }
 0x4f2   : > { %v6119_v43 = vpop.permute.xlu2 %6118 }
 0x4f3   : > { %v6109_v34 = vpop.permute.xlu0 %6108  ;;  %6194 = vst.msk [vmem:[#allocation5 + $0x50] sm:$0xf] %vm1630_vm14, %v6119_v43 }
 0x4f4   : > { %6189 = vst.msk [vmem:[#allocation5 + $0x3c] sm:$0xf] %vm1630_vm14, %v6109_v34  ;;  %6460 = vrot.lane.b32.xlu1 %v6385_v25, %s9732_s10  ;;  %v12441_v34 = vld [vmem:[%s13422_s2] ss:$0 sm:$0xff] }
 0x4f8   : > { %6462 = vrot.lane.b32.xlu2 %v6389_v47, %s9732_s10 }
 0x4f9   : > { %6470 = vrot.lane.b32.xlu0 %v6403_v37, %s9732_s10  ;;  %v5043_v37 = vsel %vm9807_vm5, 0, %v5042_v6 }
 0x4fa   : > { %v6125_v46 = vpop.permute.xlu2 %6124  ;;  %5044 = vst [vmem:[#allocation4 + $0xc8] sm:$0x1] %v5043_v37 }
 0x4fb   : > { %v6115_v49 = vpop.permute.xlu0 %6114  ;;  %6197 = vst.msk [vmem:[#allocation5 + $0x5c] sm:$0xf] %vm1630_vm14, %v6125_v46  ;;  %v6552_v46 = vld [vmem:[#allocation4 + $0x40] sm:$0xf] }
 0x4fc   : > { %6192 = vst.msk [vmem:[#allocation5 + $0x48] sm:$0xf] %vm1630_vm14, %v6115_v49  ;;  %6466 = vrot.lane.b32.xlu1 %v6396_v11, %s9732_s10 }
 0x4fe   : > { %v6111_v14 = vpop.permute.xlu1 %6110 }
 0x4ff   : > { %6190 = vst.msk [vmem:[#allocation5 + $0x40] sm:$0xf] %vm1630_vm14, %v6111_v14  ;;  %v6553_v14 = vld [vmem:[#allocation4 + $0x48] sm:$0xf] }
 0x500   : > { %6468 = vrot.lane.b32.xlu2 %v6399_v38, %s9732_s10 }
 0x501   : > { %6476 = vrot.lane.b32.xlu0 %v6413_v9, %s9732_s10  ;;  %v5560_v20 = vld [vmem:[#allocation4 + $0xc8] sm:$0x1] }
 0x502   : > { %v6131_v36 = vpop.permute.xlu2 %6130 }
 0x503   : > { %v6121_v48 = vpop.permute.xlu0 %6120  ;;  %6200 = vst.msk [vmem:[#allocation5 + $0x68] sm:$0xf] %vm1630_vm14, %v6131_v36  ;;  %v6555_v36 = vld [vmem:[#allocation4 + $0x54] sm:$0xf] }
 0x504   : > { %6195 = vst.msk [vmem:[#allocation5 + $0x54] sm:$0xf] %vm1630_vm14, %v6121_v48  ;;  %6472 = vrot.lane.b32.xlu1 %v6406_v1, %s9732_s10 }
 0x506   : > { %v6117_v30 = vpop.permute.xlu1 %6116 }
 0x507   : > { %6193 = vst.msk [vmem:[#allocation5 + $0x4c] sm:$0xf] %vm1630_vm14, %v6117_v30 }
 0x508   : > { %6474 = vrot.lane.b32.xlu2 %v6410_v22, %s9732_s10 }
 0x509   : > { %6611 = vrot.lane.b32.xlu0 %v6545_v58, %s9733_s11 }
 0x50a   : > { %v6137_v45 = vpop.permute.xlu2 %6136 }
 0x50b   : > { %v6127_v54 = vpop.permute.xlu0 %6126  ;;  %6203 = vst.msk [vmem:[#allocation5 + $0x74] sm:$0xf] %vm1630_vm14, %v6137_v45  ;;  %v6556_v45 = vld [vmem:[#allocation4 + $0x58] sm:$0xf] }
 0x50c   : > { %6198 = vst.msk [vmem:[#allocation5 + $0x60] sm:$0xf] %vm1630_vm14, %v6127_v54  ;;  %6607 = vrot.lane.b32.xlu1 %v6543_v39, %s9733_s11  ;;  %v6560_v54 = vld [vmem:[#allocation4 + $0x70] sm:$0xf] }
 0x50e   : > { %v6123_v7 = vpop.permute.xlu1 %6122 }
 0x50f   : > { %6196 = vst.msk [vmem:[#allocation5 + $0x58] sm:$0xf] %vm1630_vm14, %v6123_v7 }
 0x510   : > { %6609 = vrot.lane.b32.xlu2 %v6544_v53, %s9733_s11  ;;  %v4814_v62 = vpop.f32.mrf.mxu2 }
 0x511   : > { %6617 = vrot.lane.b32.xlu0 %v6548_v50, %s9733_s11  ;;  %v4860_v43 = vmul.f32 %v12441_v34, %v4814_v62  ;;  %v4991_v50 = vld [vmem:[#allocation4 + $0xcc] sm:$0x1] }
 0x512   : > { %v6415_v51 = vpop.permute.xlu2 %6414 }
 0x513   : > { %v6133_v55 = vpop.permute.xlu0 %6132  ;;  %6510 = vst.msk [vmem:[#allocation5] sm:$0xf] %vm2012_vm1, %v6415_v51  ;;  %v4900_v40 = vadd.f32 %v12450_v42, %v4860_v43  ;;  %v4992_v51 = vsel %vm9801_vm4, 0, %v4991_v50 }
 0x514   : > { %6201 = vst.msk [vmem:[#allocation5 + $0x6c] sm:$0xf] %vm1630_vm14, %v6133_v55  ;;  %6613 = vrot.lane.b32.xlu1 %v6546_v10, %s9733_s11  ;;  %v6558_v10 = vld [vmem:[#allocation4 + $0x64] sm:$0xf] }
 0x515   : > { %v4936_v17 = vmax.f32 %v4900_v40, 0.0  ;;  %4993 = vst [vmem:[#allocation4 + $0xcc] sm:$0x1] %v4992_v51 }
 0x516   : > { %v6129_v16 = vpop.permute.xlu1 %6128 }
 0x517   : > { %6199 = vst.msk [vmem:[#allocation5 + $0x64] sm:$0xf] %vm1630_vm14, %v6129_v16  ;;  %v5080_v13 = vpack.c.bf16 %v4936_v17, %v4936_v17 }
 0x518   : > { %6615 = vrot.lane.b32.xlu2 %v6547_v60, %s9733_s11  ;;  %v4816_v47 = vpop.f32.mrf.mxu2 }
 0x519   : > { %6623 = vrot.lane.b32.xlu0 %v6551_v29, %s9733_s11  ;;  %v5357_v61 = vshrl.u32 %v5080_v13, 16  ;;  %v5360_v41 = vshll.u32 %v5080_v13, 16  ;;  %v4861_v49 = vmul.f32 %v12441_v34, %v4816_v47  ;;  %v6562_v47 = vld [vmem:[#allocation4 + $0x7c] sm:$0xf] }
 0x51a   : > { %v6421_v24 = vpop.permute.xlu2 %6420 }
 0x51b   : > { %v6139_v12 = vpop.permute.xlu0 %6138  ;;  %6513 = vst.msk [vmem:[#allocation5 + $0xc] sm:$0xf] %vm2012_vm1, %v6421_v24  ;;  %v5359_v11 = vrot.slane %v5357_v61, 7  ;;  %v4901_v21 = vadd.f32 %v12450_v42, %v4861_v49 }
 0x51c   : > { %6204 = vst.msk [vmem:[#allocation5 + $0x78] sm:$0xf] %vm1630_vm14, %v6139_v12  ;;  %6619 = vrot.lane.b32.xlu1 %v6549_v33, %s9733_s11  ;;  %v5045_v12 = vld [vmem:[#allocation4 + $0xd4] sm:$0x1]  ;;  %v5563_v61 = vld [vmem:[#allocation4 + $0xcc] sm:$0xf] }
 0x51d   : > { %v5362_v32 = vor.u32 %v5360_v41, %v5359_v11  ;;  %v4937_v5 = vmax.f32 %v4901_v21, 0.0  ;;  %v5363_v1 = vrot.slane %v5359_v11, 4  ;;  %v5046_v43 = vsel %vm9807_vm5, 0, %v5045_v12 }
 0x51e   : > { %v6135_v25 = vpop.permute.xlu1 %6134  ;;  %5047 = vst [vmem:[#allocation4 + $0xd4] sm:$0x1] %v5046_v43  ;;  %v6737_v43 = vld [vmem:[#allocation4 + $0x14] sm:$0x1] }
 0x51f   : > { %6202 = vst.msk [vmem:[#allocation5 + $0x70] sm:$0xf] %vm1630_vm14, %v6135_v25  ;;  %v5557_v9 = vsel %vm9854_vm9, %v5362_v32, %v5556_v56  ;;  %v5081_v38 = vpack.c.bf16 %v4937_v5, %v4937_v5  ;;  %v6561_v25 = vld [vmem:[#allocation4 + $0x78] sm:$0xf]  ;;  %v6565_v5 = vld [vmem:[#allocation4 + $0x90] sm:$0xf] }
 0x520   : > { %6621 = vrot.lane.b32.xlu2 %v6550_v35, %s9733_s11  ;;  %5558 = vst [vmem:[#allocation4 + $0xc0] sm:$0xf] %v5557_v9 }
 0x521   : > { %6629 = vrot.lane.b32.xlu0 %v6554_v63, %s9733_s11  ;;  %v5365_v28 = vshrl.u32 %v5081_v38, 16  ;;  %v5368_v48 = vshll.u32 %v5081_v38, 16 }
 0x522   : > { %v6427_v15 = vpop.permute.xlu2 %6426  ;;  %v4819_v16 = vpop.f32.mrf.mxu2 }
 0x523   : > { %v6417_v52 = vpop.permute.xlu0 %6416  ;;  %6516 = vst.msk [vmem:[#allocation5 + $0x18] sm:$0xf] %vm2012_vm1, %v6427_v15  ;;  %v5367_v4 = vrot.slane %v5365_v28, 7  ;;  %v4862_v60 = vmul.f32 %v12441_v34, %v4819_v16 }
 0x524   : > { %6511 = vst.msk [vmem:[#allocation5 + $0x4] sm:$0xf] %vm2012_vm1, %v6417_v52  ;;  %6625 = vrot.lane.b32.xlu1 %v6552_v46, %s9733_s11 }
 0x525   : > { %v5370_v58 = vor.u32 %v5368_v48, %v5367_v4  ;;  %v5372_v22 = vrot.slane %v5367_v4, 4  ;;  %v4902_v62 = vadd.f32 %v12450_v42, %v4862_v60  ;;  %v5567_v38 = vld [vmem:[#allocation4 + $0xd4] sm:$0x1]  ;;  %v6736_v4 = vld [vmem:[#allocation4 + $0x10] sm:$0xf] }
 0x526   : > { %v6141_v59 = vpop.permute.xlu1 %6140  ;;  %v6797_v51 = vshrl.u32 %v6736_v4, 16  ;;  %v6740_v60 = vld [vmem:[#allocation4 + $0x20] sm:$0x1] }
 0x527   : > { %6205 = vst.msk [vmem:[#allocation5 + $0x7c] sm:$0xf] %vm1630_vm14, %v6141_v59  ;;  %v5371_v39 = vsel %vm9875_vm10, %v5363_v1, %v5370_v58  ;;  %v5561_v7 = vsel %vm9801_vm4, %v5372_v22, %v5560_v20  ;;  %v4938_v24 = vmax.f32 %v4902_v62, 0.0  ;;  %v6567_v20 = vld [vmem:[#allocation4 + $0x9c] sm:$0xf] }
 0x528   : > { %6627 = vrot.lane.b32.xlu2 %v6553_v14, %s9733_s11  ;;  %5559 = vst.msk [vmem:[#allocation4 + $0xc4] sm:$0xf] %vm430_vm3, %v5371_v39  ;;  %v6569_v14 = vld [vmem:[#allocation4 + $0xa8] sm:$0xf]  ;;  %v6739_v22 = vld [vmem:[#allocation4 + $0x1c] sm:$0xf] }
 0x529   : > { %6635 = vrot.lane.b32.xlu0 %v6557_v27, %s9733_s11  ;;  %5562 = vst [vmem:[#allocation4 + $0xc8] sm:$0x1] %v5561_v7  ;;  %v5082_v35 = vpack.c.bf16 %v4938_v24, %v4938_v24  ;;  %v6735_v27 = vld [vmem:[#allocation4 + $0xc] sm:$0xf]  ;;  %v6793_v7 = vshll.u32 %v6736_v4, 16  ;;  %v6817_v50 = vshll.u32 %v6739_v22, 16 }
 0x52a   : > { %v6433_v8 = vpop.permute.xlu2 %6432  ;;  %v4821_v17 = vpop.f32.mrf.mxu2  ;;  %v6570_v62 = vld [vmem:[#allocation4 + $0xac] sm:$0xf] }
 0x52b   : > { %v6423_v26 = vpop.permute.xlu0 %6422  ;;  %6519 = vst.msk [vmem:[#allocation5 + $0x24] sm:$0xf] %vm2012_vm1, %v6433_v8  ;;  %v5374_v63 = vshrl.u32 %v5082_v35, 16  ;;  %v5377_v6 = vshll.u32 %v5082_v35, 16  ;;  %v4863_v13 = vmul.f32 %v12441_v34, %v4821_v17  ;;  %v6564_v34 = vld [vmem:[#allocation4 + $0x88] sm:$0xf] }
 0x52c   : > { %6514 = vst.msk [vmem:[#allocation5 + $0x10] sm:$0xf] %vm2012_vm1, %v6423_v26  ;;  %6631 = vrot.lane.b32.xlu1 %v6555_v36, %s9733_s11  ;;  %v6784_v26 = vshrl.u32 %v6735_v27, 16  ;;  %v6787_v8 = vshll.u32 %v6735_v27, 16  ;;  %v6795_v12 = vrot.slane %v6793_v7, 5 }
 0x52d   : > { %v5376_v52 = vrot.slane %v5374_v63, 7  ;;  %v4903_v15 = vadd.f32 %v12450_v42, %v4863_v13  ;;  %v6744_v35 = vld [vmem:[#allocation4 + $0x30] sm:$0xf]  ;;  %v6571_v13 = vld [vmem:[#allocation4 + $0xb4] sm:$0xf] }
 0x52e   : > { %v6419_v30 = vpop.permute.xlu1 %6418 }
 0x52f   : > { %6512 = vst.msk [vmem:[#allocation5 + $0x8] sm:$0xf] %vm2012_vm1, %v6419_v30  ;;  %v5379_v41 = vor.u32 %v5377_v6, %v5376_v52  ;;  %v4939_v49 = vmax.f32 %v4903_v15, 0.0  ;;  %v5380_v9 = vrot.slane %v5376_v52, 4  ;;  %v6859_v52 = vshll.u32 %v6744_v35, 16 }
 0x530   : > { %6633 = vrot.lane.b32.xlu2 %v6556_v45, %s9733_s11  ;;  %v6789_v45 = vrot.slane %v6787_v8, 5  ;;  %v6741_v15 = vld [vmem:[#allocation4 + $0x24] sm:$0xf] }
 0x531   : > { %6641 = vrot.lane.b32.xlu0 %v6560_v54, %s9733_s11  ;;  %v5564_v21 = vsel %vm9854_vm9, %v5379_v41, %v5563_v61  ;;  %v5083_v56 = vpack.c.bf16 %v4939_v49, %v4939_v49  ;;  %v6786_v54 = vrot.slane %v6784_v26, 4 }
 0x532   : > { %v6439_v55 = vpop.permute.xlu2 %6438  ;;  %5565 = vst [vmem:[#allocation4 + $0xcc] sm:$0xf] %v5564_v21  ;;  %v6742_v21 = vld [vmem:[#allocation4 + $0x28] sm:$0xf] }
 0x533   : > { %v6429_v53 = vpop.permute.xlu0 %6428  ;;  %6522 = vst.msk [vmem:[#allocation5 + $0x30] sm:$0xf] %vm2012_vm1, %v6439_v55  ;;  %v5382_v42 = vshrl.u32 %v5083_v56, 16  ;;  %v5385_v59 = vshll.u32 %v5083_v56, 16  ;;  %v6568_v55 = vld [vmem:[#allocation4 + $0xa0] sm:$0xf]  ;;  %v6790_v0 = vor.u32 %v6789_v45, %v6786_v54 }
 0x534   : > { %6517 = vst.msk [vmem:[#allocation5 + $0x1c] sm:$0xf] %vm2012_vm1, %v6429_v53  ;;  %6637 = vrot.lane.b32.xlu1 %v6558_v10, %s9733_s11  ;;  %v6821_v53 = vshrl.u32 %v6739_v22, 16  ;;  %v6573_v56 = vld [vmem:[#allocation4 + $0xc0] sm:$0xf] }
 0x535   : > { %5579 = vst.msk [vmem:[#allocation4 + $0xcc] sm:$0xf] %vm430_vm3, %v9730_v3  ;;  %v5384_v31 = vrot.slane %v5382_v42, 7  ;;  %v6791_v24 = vrot.slane %v6790_v0, 4  ;;  %v6745_v42 = vld [vmem:[#allocation4 + $0x34] sm:$0xf] }
 0x536   : > { %v6425_v29 = vpop.permute.xlu1 %6424  ;;  %v6865_v8 = vshll.u32 %v6745_v42, 16  ;;  %v6743_v45 = vld [vmem:[#allocation4 + $0x2c] sm:$0x1] }
 0x537   : > { %6515 = vst.msk [vmem:[#allocation5 + $0x14] sm:$0xf] %vm2012_vm1, %v6425_v29  ;;  %v5387_v28 = vor.u32 %v5385_v59, %v5384_v31  ;;  %v5389_v48 = vrot.slane %v5384_v31, 4  ;;  %v12524_v29 = vrot.slane %v6817_v50, 5  ;;  %v6796_v6 = vsel %vm9894_vm11, %v6791_v24, %v6795_v12 }
 0x538   : > { %6639 = vrot.lane.b32.xlu2 %v6559_v19, %s9733_s11  ;;  %v6738_v19 = vld [vmem:[#allocation4 + $0x18] sm:$0xf]  ;;  %v6832_v59 = vshrl.u32 %v6741_v15, 16  ;;  %v6845_v31 = vshrl.u32 %v6742_v21, 16 }
 0x539   : > { %6647 = vrot.lane.b32.xlu0 %v6563_v44, %s9733_s11  ;;  %v5388_v30 = vsel %vm9875_vm10, %v5380_v9, %v5387_v28  ;;  %v5568_v58 = vsel %vm9801_vm4, %v5389_v48, %v5567_v38  ;;  %v6823_v44 = vrot.slane %v6821_v53, 4  ;;  %v6808_v17 = vshrl.u32 %v6738_v19, 16  ;;  %v6574_v48 = vld [vmem:[#allocation4 + $0xc4] sm:$0xf] }
 0x53a   : > { %v6445_v40 = vpop.permute.xlu2 %6444  ;;  %5566 = vst.msk [vmem:[#allocation4 + $0xd0] sm:$0xf] %vm430_vm3, %v5388_v30  ;;  %v6811_v63 = vshll.u32 %v6738_v19, 16  ;;  %v6841_v9 = vshll.u32 %v6742_v21, 16  ;;  %v6834_v30 = vrot.slane %v6832_v59, 4  ;;  %v6867_v53 = vrot.slane %v6865_v8, 5 }
 0x53b   : > { %v6435_v33 = vpop.permute.xlu0 %6434  ;;  %6525 = vst.msk [vmem:[#allocation5 + $0x3c] sm:$0xf] %vm2012_vm1, %v6445_v40  ;;  %v6754_v59 = vld [vmem:[#allocation4 + $0x58] sm:$0xf] }
 0x53c   : > { %6520 = vst.msk [vmem:[#allocation5 + $0x28] sm:$0xf] %vm2012_vm1, %v6435_v33  ;;  %6643 = vrot.lane.b32.xlu1 %v6561_v25, %s9733_s11  ;;  %v6799_v33 = vrot.slane %v6797_v51, 4  ;;  %v6827_v25 = vshll.u32 %v6740_v60, 16  ;;  %v6843_v54 = vrot.slane %v6841_v9, 5  ;;  %v6851_v60 = vshll.u32 %v6743_v45, 16 }
 0x53d   : > { %5569 = vst [vmem:[#allocation4 + $0xd4] sm:$0x1] %v5568_v58 }
 0x53e   : > { %v6431_v37 = vpop.permute.xlu1 %6430  ;;  %5580 = vst.msk [vmem:[#allocation4 + $0xd0] sm:$0xf] %vm430_vm3, %v9730_v3  ;;  %vm13443_vm3 = vcmask 454016  }
 0x53f   : > { %6518 = vst.msk [vmem:[#allocation5 + $0x20] sm:$0xf] %vm2012_vm1, %v6431_v37  ;;  %v6800_v37 = vor.u32 %v6799_v33, %v6795_v12  ;;  %v6753_v33 = vld [vmem:[#allocation4 + $0x54] sm:$0xf]  ;;  %vm13444_vm4 = vmmov %vm13443_vm3 }
 0x540   : > { %6645 = vrot.lane.b32.xlu2 %v6562_v47, %s9733_s11  ;;  %5581 = vst.msk [vmem:[#allocation4 + $0xd4] sm:$0x1] %vm305_vm0, %v9730_v3  ;;  %v6824_v3 = vor.u32 %v6823_v44, %v12524_v29  ;;  %v6803_v47 = vshll.u32 %v6737_v43, 16  ;;  %vm13442_vm0 = vcmask 1043456   ;;  %vm13445_vm5 = vmmov %vm13443_vm3 }
 0x541   : > { %6653 = vrot.lane.b32.xlu0 %v6566_v2, %s9733_s11  ;;  %v6856_v2 = vshrl.u32 %v6744_v35, 16  ;;  %v6801_v26 = vrot.slane %v6800_v37, 4  ;;  %vm13446_vm9 = vmmov %vm13443_vm3 }
 0x542   : > { %v6451_v11 = vpop.permute.xlu2 %6450  ;;  %v6825_v49 = vrot.slane %v6824_v3, 4  ;;  %v6805_v4 = vrot.slane %v6803_v47, 5  ;;  %vm13447_vm10 = vmmov %vm13443_vm3 }
 0x543   : > { %v6441_v46 = vpop.permute.xlu0 %6440  ;;  %6528 = vst.msk [vmem:[#allocation5 + $0x48] sm:$0xf] %vm2012_vm1, %v6451_v11  ;;  %v6810_v11 = vrot.slane %v6808_v17, 4  ;;  %v6858_v27 = vrot.slane %v6856_v2, 4  ;;  %v6928_v2 = vshrl.u32 %v6753_v33, 16  ;;  %vm13448_vm14 = vmmov %vm13443_vm3 }
 0x544   : > { %6523 = vst.msk [vmem:[#allocation5 + $0x34] sm:$0xf] %vm2012_vm1, %v6441_v46  ;;  %6649 = vrot.lane.b32.xlu1 %v6564_v34, %s9733_s11  ;;  %v6829_v46 = vrot.slane %v6827_v25, 5  ;;  %v6813_v34 = vrot.slane %v6811_v63, 5 }
 0x546   : > { %v6437_v32 = vpop.permute.xlu1 %6436  ;;  %v6830_v28 = vsel %vm9894_vm11, %v6825_v49, %v6829_v46 }
 0x547   : > { %6521 = vst.msk [vmem:[#allocation5 + $0x2c] sm:$0xf] %vm2012_vm1, %v6437_v32  ;;  %v6835_v32 = vshll.u32 %v6741_v15, 16 }
 0x548   : > { %6651 = vrot.lane.b32.xlu2 %v6565_v5, %s9733_s11  ;;  %v6748_v5 = vld [vmem:[#allocation4 + $0x40] sm:$0xf] }
 0x549   : > { %6659 = vrot.lane.b32.xlu0 %v6569_v14, %s9733_s11  ;;  %v6861_v14 = vrot.slane %v6859_v52, 5  ;;  %v6837_v22 = vrot.slane %v6835_v32, 5  ;;  %v6931_v52 = vshll.u32 %v6753_v33, 16  ;;  %v6757_v32 = vld [vmem:[#allocation4 + $0x64] sm:$0xf] }
 0x54a   : > { %v6457_v1 = vpop.permute.xlu2 %6456  ;;  %v6758_v33 = vld [vmem:[#allocation4 + $0x68] sm:$0x1] }
 0x54b   : > { %v6447_v36 = vpop.permute.xlu0 %6446  ;;  %6531 = vst.msk [vmem:[#allocation5 + $0x54] sm:$0xf] %vm2012_vm1, %v6457_v1  ;;  %v6893_v1 = vshrl.u32 %v6748_v5, 16  ;;  %v6862_v58 = vor.u32 %v6861_v14, %v6858_v27  ;;  %v6933_v27 = vrot.slane %v6931_v52, 5 }
 0x54c   : > { %6526 = vst.msk [vmem:[#allocation5 + $0x40] sm:$0xf] %vm2012_vm1, %v6447_v36  ;;  %6655 = vrot.lane.b32.xlu1 %v6567_v20, %s9733_s11  ;;  %v6889_v36 = vshll.u32 %v6748_v5, 16  ;;  %v6814_v20 = vor.u32 %v6813_v34, %v6810_v11  ;;  %v6930_v5 = vrot.slane %v6928_v2, 4 }
 0x54d   : > { %v6895_v51 = vrot.slane %v6893_v1, 4  ;;  %v6863_v44 = vrot.slane %v6862_v58, 4  ;;  %v6961_v1 = vshll.u32 %v6757_v32, 16 }
 0x54e   : > { %v6443_v39 = vpop.permute.xlu1 %6442  ;;  %v12546_v0 = vrot.slane %v6889_v36, 5  ;;  %v6815_v19 = vrot.slane %v6814_v20, 4  ;;  %v6937_v36 = vshll.u32 %v6754_v59, 16  ;;  %v6934_v58 = vor.u32 %v6933_v27, %v6930_v5 }
 0x54f   : > { %6524 = vst.msk [vmem:[#allocation5 + $0x38] sm:$0xf] %vm2012_vm1, %v6443_v39  ;;  %v6847_v39 = vrot.slane %v6845_v31, 4  ;;  %v6868_v25 = vsel %vm9894_vm11, %v6863_v44, %v6867_v53 }
 0x550   : > { %6657 = vrot.lane.b32.xlu2 %v6568_v55, %s9733_s11  ;;  %v6806_v55 = vsel %vm9894_vm11, %v6801_v26, %v6805_v4  ;;  %v6820_v35 = vsel %vm9894_vm11, %v6815_v19, %v12524_v29  ;;  %v6896_v17 = vor.u32 %v6895_v51, %v12546_v0  ;;  %v6750_v29 = vld [vmem:[#allocation4 + $0x48] sm:$0xf]  ;;  %v6965_v4 = vshrl.u32 %v6757_v32, 16  ;;  %v6763_v32 = vld [vmem:[#allocation4 + $0x7c] sm:$0xf] }
 0x551   : > { %6665 = vrot.lane.b32.xlu0 %v6572_v57, %s9733_s11  ;;  %v6869_v57 = vshrl.u32 %v6745_v42, 16  ;;  %v6848_v12 = vor.u32 %v6847_v39, %v6843_v54  ;;  %v6751_v42 = vld [vmem:[#allocation4 + $0x4c] sm:$0xf]  ;;  %v6904_v14 = vshrl.u32 %v6750_v29, 16  ;;  %v6907_v9 = vshll.u32 %v6750_v29, 16 }
 0x552   : > { %v6463_v16 = vpop.permute.xlu2 %6462  ;;  %v6897_v21 = vrot.slane %v6896_v17, 4  ;;  %v6913_v8 = vshll.u32 %v6751_v42, 16  ;;  %v6941_v51 = vshrl.u32 %v6754_v59, 16  ;;  %v6935_v44 = vrot.slane %v6934_v58, 4 }
 0x553   : > { %v6453_v10 = vpop.permute.xlu0 %6452  ;;  %6534 = vst.msk [vmem:[#allocation5 + $0x60] sm:$0xf] %vm2012_vm1, %v6463_v16  ;;  %v6749_v16 = vld [vmem:[#allocation4 + $0x44] sm:$0x1]  ;;  %v6871_v43 = vrot.slane %v6869_v57, 4  ;;  %v6849_v47 = vrot.slane %v6848_v12, 4 }
 0x554   : > { %6529 = vst.msk [vmem:[#allocation5 + $0x4c] sm:$0xf] %vm2012_vm1, %v6453_v10  ;;  %6661 = vrot.lane.b32.xlu1 %v6570_v62, %s9733_s11  ;;  %v6747_v10 = vld [vmem:[#allocation4 + $0x3c] sm:$0xf]  ;;  %v6838_v62 = vor.u32 %v6837_v22, %v6834_v30  ;;  %v6899_v63 = vshll.u32 %v6749_v16, 16  ;;  %v6906_v22 = vrot.slane %v6904_v14, 4 }
 0x555   : > { %v6883_v3 = vshll.u32 %v6747_v10, 16  ;;  %v6762_v57 = vld [vmem:[#allocation4 + $0x78] sm:$0xf]  ;;  %v6967_v16 = vrot.slane %v6965_v4, 4  ;;  %v6759_v12 = vld [vmem:[#allocation4 + $0x6c] sm:$0xf] }
 0x556   : > { %v6449_v40 = vpop.permute.xlu1 %6448  ;;  %v6839_v37 = vrot.slane %v6838_v62, 4  ;;  %v6752_v62 = vld [vmem:[#allocation4 + $0x50] sm:$0x1] }
 0x557   : > { %6527 = vst.msk [vmem:[#allocation5 + $0x44] sm:$0xf] %vm2012_vm1, %v6449_v40  ;;  %v6880_v40 = vshrl.u32 %v6747_v10, 16  ;;  %v6885_v11 = vrot.slane %v6883_v3, 5  ;;  %v12576_v10 = vrot.slane %v6961_v1, 5  ;;  %v7003_v3 = vshll.u32 %v6762_v57, 16 }
 0x558   : > { %6663 = vrot.lane.b32.xlu2 %v6571_v13, %s9733_s11  ;;  %v6853_v13 = vrot.slane %v6851_v60, 5  ;;  %v6844_v34 = vsel %vm9894_vm11, %v6839_v37, %v6843_v54  ;;  %v6909_v54 = vrot.slane %v6907_v9, 5 }
 0x559   : > { %7167 = vrot.lane.b32.xlu0 %v6796_v6, %s9734_s12  ;;  %v6746_v6 = vld [vmem:[#allocation4 + $0x38] sm:$0x1]  ;;  %v6882_v46 = vrot.slane %v6880_v40, 4  ;;  %v7000_v40 = vshrl.u32 %v6762_v57, 16  ;;  %v6968_v17 = vor.u32 %v6967_v16, %v12576_v10  ;;  %v7005_v29 = vrot.slane %v7003_v3, 5 }
 0x55a   : > { %v6469_v41 = vpop.permute.xlu2 %6468  ;;  %v6875_v49 = vshll.u32 %v6746_v6, 16  ;;  %v6910_v19 = vor.u32 %v6909_v54, %v6906_v22  ;;  %v6943_v6 = vrot.slane %v6941_v51, 4  ;;  %v7013_v54 = vshrl.u32 %v6763_v32, 16 }
 0x55b   : > { %v6459_v61 = vpop.permute.xlu0 %6458  ;;  %6537 = vst.msk [vmem:[#allocation5 + $0x6c] sm:$0xf] %vm2012_vm1, %v6469_v41  ;;  %v6872_v41 = vor.u32 %v6871_v43, %v6867_v53  ;;  %v6886_v30 = vor.u32 %v6885_v11, %v6882_v46  ;;  %v6755_v46 = vld [vmem:[#allocation4 + $0x5c] sm:$0x1]  ;;  %v7002_v11 = vrot.slane %v7000_v40, 4 }
 0x55c   : > { %6532 = vst.msk [vmem:[#allocation5 + $0x58] sm:$0xf] %vm2012_vm1, %v6459_v61  ;;  %6667 = vrot.lane.b32.xlu1 %v6573_v56, %s9733_s11  ;;  %v6901_v56 = vrot.slane %v6899_v63, 5  ;;  %v6877_v20 = vrot.slane %v6875_v49, 5  ;;  %v6911_v37 = vrot.slane %v6910_v19, 4  ;;  %v7015_v40 = vrot.slane %v7013_v54, 4 }
 0x55d   : > { %v6873_v26 = vrot.slane %v6872_v41, 4  ;;  %v6887_v60 = vrot.slane %v6886_v30, 4 }
 0x55e   : > { %v6455_v38 = vpop.permute.xlu1 %6454 }
 0x55f   : > { %6530 = vst.msk [vmem:[#allocation5 + $0x50] sm:$0xf] %vm2012_vm1, %v6455_v38  ;;  %v6854_v38 = vsel %vm9894_vm11, %v6849_v47, %v6853_v13  ;;  %v6892_v43 = vsel %vm9894_vm11, %v6887_v60, %v12546_v0  ;;  %v6923_v13 = vshll.u32 %v6752_v62, 16  ;;  %v6976_v0 = vshrl.u32 %v6759_v12, 16  ;;  %v6761_v60 = vld [vmem:[#allocation4 + $0x74] sm:$0x1] }
 0x560   : > { %6669 = vrot.lane.b32.xlu2 %v6574_v48, %s9733_s11  ;;  %v6902_v48 = vsel %vm9894_vm11, %v6897_v21, %v6901_v56  ;;  %v6971_v47 = vshll.u32 %v6758_v33, 16  ;;  %v6969_v56 = vrot.slane %v6968_v17, 4 }
 0x561   : > { %7173 = vrot.lane.b32.xlu0 %v6830_v28, %s9734_s12  ;;  %v6917_v28 = vshrl.u32 %v6751_v42, 16  ;;  %v6925_v5 = vrot.slane %v6923_v13, 5  ;;  %v6978_v27 = vrot.slane %v6976_v0, 4 }
 0x562   : > { %v6475_v50 = vpop.permute.xlu2 %6474 }
 0x563   : > { %v6465_v7 = vpop.permute.xlu0 %6464  ;;  %6540 = vst.msk [vmem:[#allocation5 + $0x78] sm:$0xf] %vm2012_vm1, %v6475_v50  ;;  %v6915_v50 = vrot.slane %v6913_v8, 5  ;;  %v6919_v53 = vrot.slane %v6917_v28, 4 }
 0x564   : > { %6535 = vst.msk [vmem:[#allocation5 + $0x64] sm:$0xf] %vm2012_vm1, %v6465_v7  ;;  %7169 = vrot.lane.b32.xlu1 %v6806_v55, %s9734_s12  ;;  %v6878_v7 = vsel %vm9894_vm11, %v6873_v26, %v6877_v20  ;;  %v12574_v55 = vrot.slane %v6937_v36, 5  ;;  %v7009_v36 = vshll.u32 %v6763_v32, 16 }
 0x565   : > { %v6920_v63 = vor.u32 %v6919_v53, %v6915_v50  ;;  %v6916_v21 = vsel %vm9894_vm11, %v6911_v37, %v6915_v50  ;;  %v6768_v37 = vld [vmem:[#allocation4 + $0x90] sm:$0xf] }
 0x566   : > { %v6461_v24 = vpop.permute.xlu1 %6460  ;;  %v6944_v59 = vor.u32 %v6943_v6, %v12574_v55  ;;  %v7011_v16 = vrot.slane %v7009_v36, 5 }
 0x567   : > { %6533 = vst.msk [vmem:[#allocation5 + $0x5c] sm:$0xf] %vm2012_vm1, %v6461_v24  ;;  %v6921_v42 = vrot.slane %v6920_v63, 4 }
 0x568   : > { %7171 = vrot.lane.b32.xlu2 %v6820_v35, %s9734_s12  ;;  %v6940_v35 = vsel %vm9894_vm11, %v6935_v44, %v12574_v55  ;;  %v6945_v58 = vrot.slane %v6944_v59, 4  ;;  %v6765_v44 = vld [vmem:[#allocation4 + $0x84] sm:$0xf] }
 0x569   : > { %7179 = vrot.lane.b32.xlu0 %v6868_v25, %s9734_s12  ;;  %v6756_v25 = vld [vmem:[#allocation4 + $0x60] sm:$0xf]  ;;  %v6926_v30 = vsel %vm9894_vm11, %v6921_v42, %v6925_v5  ;;  %v7024_v13 = vshrl.u32 %v6765_v44, 16  ;;  %v7027_v0 = vshll.u32 %v6765_v44, 16 }
 0x56a   : > { %v6610_v61 = vpop.permute.xlu2 %6609  ;;  %v6952_v2 = vshrl.u32 %v6756_v25, 16  ;;  %v6955_v52 = vshll.u32 %v6756_v25, 16 }
 0x56b   : > { %v6471_v15 = vpop.permute.xlu0 %6470  ;;  %6704 = vst.msk [vmem:[#allocation5 + $0x4] sm:$0xf] %vm2230_vm2, %v6610_v61  ;;  %v6766_v61 = vld [vmem:[#allocation4 + $0x88] sm:$0xf]  ;;  %v7026_v32 = vrot.slane %v7024_v13, 4  ;;  %v7029_v5 = vrot.slane %v7027_v0, 5 }
 0x56c   : > { %6538 = vst.msk [vmem:[#allocation5 + $0x70] sm:$0xf] %vm2012_vm1, %v6471_v15  ;;  %7175 = vrot.lane.b32.xlu1 %v6844_v34, %s9734_s12  ;;  %v6760_v15 = vld [vmem:[#allocation4 + $0x70] sm:$0xf]  ;;  %v6979_v34 = vshll.u32 %v6759_v12, 16  ;;  %v7033_v14 = vshll.u32 %v6766_v61, 16 }
 0x56d   : > { %v7037_v9 = vshrl.u32 %v6766_v61, 16  ;;  %v6954_v26 = vrot.slane %v6952_v2, 4  ;;  %v6957_v8 = vrot.slane %v6955_v52, 5  ;;  %v6985_v4 = vshll.u32 %v6760_v15, 16 }
 0x56e   : > { %v6467_v31 = vpop.permute.xlu1 %6466  ;;  %v6981_v1 = vrot.slane %v6979_v34, 5  ;;  %v6989_v22 = vshrl.u32 %v6760_v15, 16  ;;  %v12603_v50 = vrot.slane %v7033_v14, 5  ;;  %v7051_v34 = vshll.u32 %v6768_v37, 16 }
 0x56f   : > { %6536 = vst.msk [vmem:[#allocation5 + $0x68] sm:$0xf] %vm2012_vm1, %v6467_v31  ;;  %v6973_v31 = vrot.slane %v6971_v47, 5  ;;  %v7039_v53 = vrot.slane %v7037_v9, 4  ;;  %v6987_v12 = vrot.slane %v6985_v4, 5 }
 0x570   : > { %7177 = vrot.lane.b32.xlu2 %v6854_v38, %s9734_s12  ;;  %v6947_v38 = vshll.u32 %v6755_v46, 16  ;;  %v6982_v62 = vor.u32 %v6981_v1, %v6978_v27 }
 0x571   : > { %7185 = vrot.lane.b32.xlu0 %v6902_v48, %s9734_s12  ;;  %v7006_v48 = vor.u32 %v7005_v29, %v7002_v11  ;;  %v6974_v20 = vsel %vm9894_vm11, %v6969_v56, %v6973_v31  ;;  %v7040_v25 = vor.u32 %v7039_v53, %v12603_v50  ;;  %v7048_v29 = vshrl.u32 %v6768_v37, 16  ;;  %v6772_v31 = vld [vmem:[#allocation4 + $0xa0] sm:$0xf]  ;;  %v6773_v37 = vld [vmem:[#allocation4 + $0xa4] sm:$0x1] }
 0x572   : > { %v6616_v39 = vpop.permute.xlu2 %6615  ;;  %v6983_v52 = vrot.slane %v6982_v62, 4 }
 0x573   : > { %v6477_v45 = vpop.permute.xlu0 %6476  ;;  %6707 = vst.msk [vmem:[#allocation5 + $0x10] sm:$0xf] %vm2230_vm2, %v6616_v39  ;;  %v6958_v39 = vor.u32 %v6957_v8, %v6954_v26  ;;  %v7007_v51 = vrot.slane %v7006_v48, 4  ;;  %v7041_v46 = vrot.slane %v7040_v25, 4  ;;  %v6775_v26 = vld [vmem:[#allocation4 + $0xac] sm:$0xf] }
 0x574   : > { %6541 = vst.msk [vmem:[#allocation5 + $0x7c] sm:$0xf] %vm2012_vm1, %v6477_v45  ;;  %7181 = vrot.lane.b32.xlu1 %v6878_v7, %s9734_s12  ;;  %v6949_v45 = vrot.slane %v6947_v38, 5  ;;  %v6767_v7 = vld [vmem:[#allocation4 + $0x8c] sm:$0x1]  ;;  %v6988_v27 = vsel %vm9894_vm11, %v6983_v52, %v6987_v12  ;;  %v7050_v8 = vrot.slane %v7048_v29, 4 }
 0x575   : > { %v7043_v33 = vshll.u32 %v6767_v7, 16  ;;  %v6959_v3 = vrot.slane %v6958_v39, 4  ;;  %v7012_v47 = vsel %vm9894_vm11, %v7007_v51, %v7011_v16  ;;  %v7109_v39 = vshrl.u32 %v6775_v26, 16  ;;  %v6780_v25 = vld [vmem:[#allocation4 + $0xc0] sm:$0xf] }
 0x576   : > { %v6473_v24 = vpop.permute.xlu1 %6472  ;;  %v6950_v19 = vsel %vm9894_vm11, %v6945_v58, %v6949_v45  ;;  %v7030_v58 = vor.u32 %v7029_v5, %v7026_v32  ;;  %v7105_v45 = vshll.u32 %v6775_v26, 16  ;;  %v7085_v7 = vshrl.u32 %v6772_v31, 16 }
 0x577   : > { %6539 = vst.msk [vmem:[#allocation5 + $0x74] sm:$0xf] %vm2012_vm1, %v6473_v24  ;;  %v6991_v24 = vrot.slane %v6989_v22, 4  ;;  %v6964_v2 = vsel %vm9894_vm11, %v6959_v3, %v12576_v10  ;;  %v7045_v61 = vrot.slane %v7043_v33, 5  ;;  %v6769_v10 = vld [vmem:[#allocation4 + $0x94] sm:$0xf]  ;;  %vm13449_vm1 = vmmov %vm13443_vm3 }
 0x578   : > { %7183 = vrot.lane.b32.xlu2 %v6892_v43, %s9734_s12  ;;  %v6771_v43 = vld [vmem:[#allocation4 + $0x9c] sm:$0xf]  ;;  %v7057_v48 = vshll.u32 %v6769_v10, 16  ;;  %v7061_v36 = vshrl.u32 %v6769_v10, 16  ;;  %v7031_v62 = vrot.slane %v7030_v58, 4  ;;  %v12634_v33 = vrot.slane %v7105_v45, 5 }
 0x579   : > { %7191 = vrot.lane.b32.xlu0 %v6940_v35, %s9734_s12  ;;  %v6995_v35 = vshll.u32 %v6761_v60, 16  ;;  %v7072_v63 = vshrl.u32 %v6771_v43, 16  ;;  %v7075_v6 = vshll.u32 %v6771_v43, 16  ;;  %v6992_v15 = vor.u32 %v6991_v24, %v6987_v12  ;;  %v6774_v12 = vld [vmem:[#allocation4 + $0xa8] sm:$0xf] }
 0x57a   : > { %v6622_v49 = vpop.permute.xlu2 %6621  ;;  %v7046_v4 = vsel %vm9894_vm11, %v7041_v46, %v7045_v61  ;;  %v7063_v51 = vrot.slane %v7061_v36, 4  ;;  %v6776_v43 = vld [vmem:[#allocation4 + $0xb0] sm:$0x1]  ;;  %v7036_v13 = vsel %vm9894_vm11, %v7031_v62, %v12603_v50  ;;  %v7144_v61 = vshrl.u32 %v6780_v25, 16 }
 0x57b   : > { %v6612_v41 = vpop.permute.xlu0 %6611  ;;  %6710 = vst.msk [vmem:[#allocation5 + $0x1c] sm:$0xf] %vm2230_vm2, %v6622_v49  ;;  %v7016_v49 = vor.u32 %v7015_v40, %v7011_v16  ;;  %v6997_v11 = vrot.slane %v6995_v35, 5  ;;  %v7074_v42 = vrot.slane %v7072_v63, 4  ;;  %v7077_v59 = vrot.slane %v7075_v6, 5 }
 0x57c   : > { %6705 = vst.msk [vmem:[#allocation5 + $0x8] sm:$0xf] %vm2230_vm2, %v6612_v41  ;;  %7187 = vrot.lane.b32.xlu1 %v6916_v21, %s9734_s12  ;;  %v6764_v41 = vld [vmem:[#allocation4 + $0x80] sm:$0x1]  ;;  %v6993_v14 = vrot.slane %v6992_v15, 4  ;;  %v7111_v40 = vrot.slane %v7109_v39, 4 }
 0x57d   : > { %v7019_v9 = vshll.u32 %v6764_v41, 16  ;;  %v7017_v38 = vrot.slane %v7016_v49, 4  ;;  %v7087_v63 = vrot.slane %v7085_v7, 4  ;;  %v7115_v0 = vshll.u32 %v6776_v43, 16  ;;  %v6777_v49 = vld [vmem:[#allocation4 + $0xb4] sm:$0xf] }
 0x57e   : > { %v6608_v28 = vpop.permute.xlu1 %6607  ;;  %v6998_v22 = vsel %vm9894_vm11, %v6993_v14, %v6997_v11  ;;  %v7112_v15 = vor.u32 %v7111_v40, %v12634_v33  ;;  %v7147_v41 = vshll.u32 %v6780_v25, 16  ;;  %v7120_v32 = vshrl.u32 %v6777_v49, 16 }
 0x57f   : > { %6703 = vst.msk [vmem:[#allocation5] sm:$0xf] %vm2230_vm2, %v6608_v28  ;;  %v7053_v28 = vrot.slane %v7051_v34, 5  ;;  %v7021_v54 = vrot.slane %v7019_v9, 5  ;;  %v7091_v34 = vshll.u32 %v6773_v37, 16  ;;  %v7123_v5 = vshll.u32 %v6777_v49, 16 }
 0x580   : > { %7189 = vrot.lane.b32.xlu2 %v6926_v30, %s9734_s12  ;;  %v7081_v30 = vshll.u32 %v6772_v31, 16  ;;  %v7113_v10 = vrot.slane %v7112_v15, 4  ;;  %v7146_v14 = vrot.slane %v7144_v61, 4  ;;  %v7149_v9 = vrot.slane %v7147_v41, 5  ;;  %v6778_v31 = vld [vmem:[#allocation4 + $0xb8] sm:$0xf] }
 0x581   : > { %7197 = vrot.lane.b32.xlu0 %v6974_v20, %s9734_s12  ;;  %v7078_v20 = vor.u32 %v7077_v59, %v7074_v42  ;;  %v7054_v53 = vor.u32 %v7053_v28, %v7050_v8  ;;  %v7022_v24 = vsel %vm9894_vm11, %v7017_v38, %v7021_v54  ;;  %v7093_v26 = vrot.slane %v7091_v34, 5 }
 0x582   : > { %v6628_v55 = vpop.permute.xlu2 %6627  ;;  %v7129_v58 = vshll.u32 %v6778_v31, 16 }
 0x583   : > { %v6618_v57 = vpop.permute.xlu0 %6617  ;;  %6713 = vst.msk [vmem:[#allocation5 + $0x28] sm:$0xf] %vm2230_vm2, %v6628_v55  ;;  %v6770_v55 = vld [vmem:[#allocation4 + $0x98] sm:$0x1]  ;;  %v7079_v44 = vrot.slane %v7078_v20, 4  ;;  %v7055_v35 = vrot.slane %v7054_v53, 4 }
 0x584   : > { %6708 = vst.msk [vmem:[#allocation5 + $0x14] sm:$0xf] %vm2230_vm2, %v6618_v57  ;;  %7193 = vrot.lane.b32.xlu1 %v6950_v19, %s9734_s12  ;;  %v7059_v57 = vrot.slane %v7057_v48, 5  ;;  %v7083_v19 = vrot.slane %v7081_v30, 5  ;;  %v7067_v3 = vshll.u32 %v6770_v55, 16  ;;  %v7150_v30 = vor.u32 %v7149_v9, %v7146_v14 }
 0x585   : > { %v6781_v48 = vld [vmem:[#allocation4 + $0xc4] sm:$0xf]  ;;  %v12661_v55 = vld [vmem:[#allocation4 + $0x10] sm:$0xf] }
 0x586   : > { %v6614_v17 = vpop.permute.xlu1 %6613  ;;  %v7084_v52 = vsel %vm9894_vm11, %v7079_v44, %v7083_v19  ;;  %v7069_v46 = vrot.slane %v7067_v3, 5  ;;  %v7060_v50 = vsel %vm9894_vm11, %v7055_v35, %v7059_v57  ;;  %v7088_v29 = vor.u32 %v7087_v63, %v7083_v19  ;;  %v6779_v19 = vld [vmem:[#allocation4 + $0xbc] sm:$0x1]  ;;  %v6782_v63 = vld [vmem:[#allocation4 + $0xc8] sm:$0x1] }
 0x587   : > { %6706 = vst.msk [vmem:[#allocation5 + $0xc] sm:$0xf] %vm2230_vm2, %v6614_v17  ;;  %v7064_v17 = vor.u32 %v7063_v51, %v7059_v57  ;;  %v7153_v54 = vshll.u32 %v6781_v48, 16  ;;  %v7151_v51 = vrot.slane %v7150_v30, 4  ;;  %v7393_v40 = vrot.slane %v12661_v55, 5 }
 0x588   : > { %7195 = vrot.lane.b32.xlu2 %v6964_v2, %s9734_s12  ;;  %v7099_v2 = vshll.u32 %v6774_v12, 16  ;;  %v7089_v28 = vrot.slane %v7088_v29, 4  ;;  %v7139_v35 = vshll.u32 %v6779_v19, 16  ;;  %v7163_v15 = vshll.u32 %v6782_v63, 16  ;;  %v7302_v29 = vld [vmem:[#allocation4 + $0x28] sm:$0xf] }
 0x589   : > { %7203 = vrot.lane.b32.xlu0 %v7012_v47, %s9734_s12  ;;  %v7096_v47 = vshrl.u32 %v6774_v12, 16  ;;  %v7065_v11 = vrot.slane %v7064_v17, 4  ;;  %v7155_v62 = vrot.slane %v7153_v54, 5  ;;  %v7395_v37 = vrot.slane %v7393_v40, 4  ;;  %v7310_v19 = vld [vmem:[#allocation4 + $0x48] sm:$0xe] }
 0x58a   : > { %v6634_v56 = vpop.permute.xlu2 %6633  ;;  %v7101_v59 = vrot.slane %v7099_v2, 5  ;;  %v7094_v7 = vsel %vm9894_vm11, %v7089_v28, %v7093_v26  ;;  %v7141_v2 = vrot.slane %v7139_v35, 5 }
 0x58b   : > { %v6624_v21 = vpop.permute.xlu0 %6623  ;;  %6716 = vst.msk [vmem:[#allocation5 + $0x34] sm:$0xf] %vm2230_vm2, %v6634_v56  ;;  %v7098_v42 = vrot.slane %v7096_v47, 4  ;;  %v7070_v38 = vsel %vm9894_vm11, %v7065_v11, %v7069_v46  ;;  %v7156_v3 = vsel %vm9894_vm11, %v7151_v51, %v7155_v62  ;;  %v7165_v11 = vrot.slane %v7163_v15, 5  ;;  %v7311_v51 = vld [vmem:[#allocation4 + $0x4c] sm:$0xf] }
 0x58c   : > { %6711 = vst.msk [vmem:[#allocation5 + $0x20] sm:$0xf] %vm2230_vm2, %v6624_v21  ;;  %7199 = vrot.lane.b32.xlu1 %v6988_v27, %s9734_s12  ;;  %v7117_v27 = vrot.slane %v7115_v0, 5  ;;  %v7297_v0 = vld [vmem:[#allocation4 + $0x14] sm:$0x1] }
 0x58d   : > { %v7102_v36 = vor.u32 %v7101_v59, %v7098_v42  ;;  %v7396_v61 = vrot.slane %v7297_v0, 5  ;;  %v7295_v42 = vld [vmem:[#allocation4 + $0xc] sm:$0xe] }
 0x58e   : > { %v6620_v1 = vpop.permute.xlu1 %6619  ;;  %v7118_v20 = vsel %vm9894_vm11, %v7113_v10, %v7117_v27  ;;  %v7305_v10 = vld [vmem:[#allocation4 + $0x34] sm:$0xf]  ;;  %v9481_v14 = vrot.slane %v7295_v42, 9  ;;  %v7320_v42 = vld [vmem:[#allocation4 + $0x70] sm:$0xf] }
 0x58f   : > { %6709 = vst.msk [vmem:[#allocation5 + $0x18] sm:$0xf] %vm2230_vm2, %v6620_v1  ;;  %v7122_v1 = vrot.slane %v7120_v32, 4  ;;  %v7103_v53 = vrot.slane %v7102_v36, 4  ;;  %v7397_v49 = vsel %vm10365_vm15, %v7395_v37, %v7396_v61  ;;  %v7407_v32 = vrot.slane %v7302_v29, 5 }
 0x590   : > { %7201 = vrot.lane.b32.xlu2 %v6998_v22, %s9734_s12  ;;  %v7133_v22 = vshrl.u32 %v6778_v31, 16  ;;  %v7298_v31 = vld [vmem:[#allocation4 + $0x18] sm:$0xe]  ;;  %v7394_v26 = vsel %vm10365_vm15, %v9481_v14, %v7393_v40  ;;  %v7414_v28 = vrot.slane %v7305_v10, 5  ;;  %v7313_v10 = vld [vmem:[#allocation4 + $0x54] sm:$0xe] }
 0x591   : > { %7209 = vrot.lane.b32.xlu0 %v7046_v4, %s9734_s12  ;;  %v7125_v4 = vrot.slane %v7123_v5, 5  ;;  %v7299_v5 = vld [vmem:[#allocation4 + $0x1c] sm:$0xf]  ;;  %v7409_v55 = vrot.slane %v7407_v32, 4  ;;  %v7314_v40 = vld [vmem:[#allocation4 + $0x58] sm:$0xf] }
 0x592   : > { %v6640_v60 = vpop.permute.xlu2 %6639  ;;  %v7135_v44 = vrot.slane %v7133_v22, 4 }
 0x593   : > { %v6630_v16 = vpop.permute.xlu0 %6629  ;;  %6719 = vst.msk [vmem:[#allocation5 + $0x40] sm:$0xf] %vm2230_vm2, %v6640_v60  ;;  %v7126_v57 = vor.u32 %v7125_v4, %v7122_v1  ;;  %v7131_v60 = vrot.slane %v7129_v58, 5  ;;  %v7306_v4 = vld [vmem:[#allocation4 + $0x38] sm:$0x1]  ;;  %v7416_v58 = vrot.slane %v7414_v28, 4 }
 0x594   : > { %6714 = vst.msk [vmem:[#allocation5 + $0x2c] sm:$0xf] %vm2230_vm2, %v6630_v16  ;;  %7205 = vrot.lane.b32.xlu1 %v7022_v24, %s9734_s12  ;;  %v7157_v16 = vshrl.u32 %v6781_v48, 16  ;;  %v7108_v24 = vsel %vm9894_vm11, %v7103_v53, %v12634_v33  ;;  %v9482_v48 = vrot.slane %v7298_v31, 9  ;;  %v7417_v54 = vrot.slane %v7306_v4, 5 }
 0x595   : > { %v7127_v43 = vrot.slane %v7126_v57, 4  ;;  %v7136_v25 = vor.u32 %v7135_v44, %v7131_v60  ;;  %v7317_v31 = vld [vmem:[#allocation4 + $0x64] sm:$0xf] }
 0x596   : > { %v6626_v6 = vpop.permute.xlu1 %6625  ;;  %v7159_v17 = vrot.slane %v7157_v16, 4  ;;  %v7418_v53 = vsel %vm10365_vm15, %v7416_v58, %v7417_v54  ;;  %v7318_v54 = vld [vmem:[#allocation4 + $0x68] sm:$0x1] }
 0x597   : > { %6712 = vst.msk [vmem:[#allocation5 + $0x24] sm:$0xf] %vm2230_vm2, %v6626_v6  ;;  %v7132_v33 = vsel %vm9894_vm11, %v7127_v43, %v7131_v60  ;;  %v7137_v47 = vrot.slane %v7136_v25, 4  ;;  %v7308_v43 = vld [vmem:[#allocation4 + $0x40] sm:$0xf] }
 0x598   : > { %7207 = vrot.lane.b32.xlu2 %v7036_v13, %s9734_s12 }
 0x599   : > { %7215 = vrot.lane.b32.xlu0 %v7084_v52, %s9734_s12  ;;  %v7160_v52 = vor.u32 %v7159_v17, %v7155_v62  ;;  %v7142_v46 = vsel %vm9894_vm11, %v7137_v47, %v7141_v2  ;;  %v7304_v62 = vld [vmem:[#allocation4 + $0x30] sm:$0xe]  ;;  %v7307_v17 = vld [vmem:[#allocation4 + $0x3c] sm:$0xe]  ;;  %v7315_v2 = vld [vmem:[#allocation4 + $0x5c] sm:$0x1] }
 0x59a   : > { %v6646_v56 = vpop.permute.xlu2 %6645  ;;  %v9484_v25 = vrot.slane %v7304_v62, 9  ;;  %v9485_v0 = vrot.slane %v7307_v17, 9  ;;  %v7322_v62 = vld [vmem:[#allocation4 + $0x78] sm:$0xe]  ;;  %v12764_v17 = vld [vmem:[#allocation4 + $0x88] sm:$0xf] }
 0x59b   : > { %v6636_v21 = vpop.permute.xlu0 %6635  ;;  %6722 = vst.msk [vmem:[#allocation5 + $0x4c] sm:$0xf] %vm2230_vm2, %v6646_v56  ;;  %v7301_v56 = vld [vmem:[#allocation4 + $0x24] sm:$0xe] }
 0x59c   : > { %6717 = vst.msk [vmem:[#allocation5 + $0x38] sm:$0xf] %vm2230_vm2, %v6636_v21  ;;  %7211 = vrot.lane.b32.xlu1 %v7060_v50, %s9734_s12  ;;  %v7161_v50 = vrot.slane %v7160_v52, 4  ;;  %v9483_v27 = vrot.slane %v7301_v56, 9  ;;  %v7309_v52 = vld [vmem:[#allocation4 + $0x44] sm:$0x1] }
 0x59d   : > { %v7319_v56 = vld [vmem:[#allocation4 + $0x6c] sm:$0xe] }
 0x59e   : > { %v6632_v8 = vpop.permute.xlu1 %6631  ;;  %v7166_v59 = vsel %vm9894_vm11, %v7161_v50, %v7165_v11  ;;  %v7312_v11 = vld [vmem:[#allocation4 + $0x50] sm:$0x1]  ;;  %v9489_v14 = vrot.slane %v7319_v56, 9 }
 0x59f   : > { %6715 = vst.msk [vmem:[#allocation5 + $0x30] sm:$0xf] %vm2230_vm2, %v6632_v8  ;;  %v7400_v8 = vrot.slane %v7299_v5, 5 }
 0x5a0   : > { %7213 = vrot.lane.b32.xlu2 %v7070_v38, %s9734_s12  ;;  %v7408_v38 = vsel %vm10365_vm15, %v9483_v27, %v7407_v32 }
 0x5a1   : > { %7221 = vrot.lane.b32.xlu0 %v7118_v20, %s9734_s12  ;;  %v7300_v20 = vld [vmem:[#allocation4 + $0x20] sm:$0x1]  ;;  %v7401_v30 = vsel %vm10365_vm15, %v9482_v48, %v7400_v8  ;;  %v7402_v22 = vrot.slane %v7400_v8, 4 }
 0x5a2   : > { %v6652_v39 = vpop.permute.xlu2 %6651 }
 0x5a3   : > { %v6642_v45 = vpop.permute.xlu0 %6641  ;;  %6725 = vst.msk [vmem:[#allocation5 + $0x58] sm:$0xf] %vm2230_vm2, %v6652_v39 }
 0x5a4   : > { %6720 = vst.msk [vmem:[#allocation5 + $0x44] sm:$0xf] %vm2230_vm2, %v6642_v45  ;;  %7217 = vrot.lane.b32.xlu1 %v7094_v7, %s9734_s12  ;;  %v7403_v45 = vrot.slane %v7300_v20, 5  ;;  %v7303_v7 = vld [vmem:[#allocation4 + $0x2c] sm:$0x1] }
 0x5a5   : > { %v7410_v16 = vrot.slane %v7303_v7, 5  ;;  %v7324_v20 = vld [vmem:[#allocation4 + $0x80] sm:$0x1] }
 0x5a6   : > { %v6638_v12 = vpop.permute.xlu1 %6637  ;;  %v7404_v57 = vsel %vm10365_vm15, %v7402_v22, %v7403_v45  ;;  %v7459_v7 = vrot.slane %v7324_v20, 5 }
 0x5a7   : > { %6718 = vst.msk [vmem:[#allocation5 + $0x3c] sm:$0xf] %vm2230_vm2, %v6638_v12  ;;  %v7411_v12 = vsel %vm10365_vm15, %v7409_v55, %v7410_v16  ;;  %v7445_v55 = vrot.slane %v7318_v54, 5 }
 0x5a8   : > { %7219 = vrot.lane.b32.xlu2 %v7108_v24, %s9734_s12  ;;  %v7428_v24 = vrot.slane %v7311_v51, 5 }
 0x5a9   : > { %7227 = vrot.lane.b32.xlu0 %v7156_v3, %s9734_s12  ;;  %v9486_v3 = vrot.slane %v7310_v19, 9 }
 0x5aa   : > { %v6658_v13 = vpop.permute.xlu2 %6657 }
 0x5ab   : > { %v6648_v6 = vpop.permute.xlu0 %6647  ;;  %6728 = vst.msk [vmem:[#allocation5 + $0x64] sm:$0xf] %vm2230_vm2, %v6658_v13  ;;  %v7429_v63 = vsel %vm10365_vm15, %v9486_v3, %v7428_v24  ;;  %v7421_v13 = vrot.slane %v7308_v43, 5  ;;  %v7824_v43 = vld [vmem:[#allocation4 + $0x18] sm:$0xf]  ;;  %v9490_v3 = vrot.slane %v7322_v62, 9 }
 0x5ac   : > { %6723 = vst.msk [vmem:[#allocation5 + $0x50] sm:$0xf] %vm2230_vm2, %v6648_v6  ;;  %7223 = vrot.lane.b32.xlu1 %v7132_v33, %s9734_s12  ;;  %v7415_v6 = vsel %vm10365_vm15, %v9484_v25, %v7414_v28  ;;  %v7435_v33 = vrot.slane %v7314_v40, 5  ;;  %v7316_v28 = vld [vmem:[#allocation4 + $0x60] sm:$0xe] }
 0x5ad   : > { %v7422_v15 = vsel %vm10365_vm15, %v9485_v0, %v7421_v13  ;;  %v7825_v25 = vld [vmem:[#allocation4 + $0x1c] sm:$0xf] }
 0x5ae   : > { %v6644_v41 = vpop.permute.xlu1 %6643  ;;  %v7437_v61 = vrot.slane %v7435_v33, 4  ;;  %v7882_v0 = vshll.u32 %v7825_v25, 16 }
 0x5af   : > { %6721 = vst.msk [vmem:[#allocation5 + $0x48] sm:$0xf] %vm2230_vm2, %v6644_v41  ;;  %v7423_v41 = vrot.slane %v7421_v13, 4 }
 0x5b0   : > { %7225 = vrot.lane.b32.xlu2 %v7142_v46, %s9734_s12  ;;  %v7424_v46 = vrot.slane %v7309_v52, 5  ;;  %v7886_v52 = vshrl.u32 %v7825_v25, 16 }
 0x5b1   : > { %7505 = vrot.lane.b32.xlu0 %v7397_v49, %s9735_s13  ;;  %v7438_v49 = vrot.slane %v7315_v2, 5  ;;  %v7463_v2 = vrot.slane %v12764_v17, 5 }
 0x5b2   : > { %v6664_v21 = vpop.permute.xlu2 %6663 }
 0x5b3   : > { %v6654_v34 = vpop.permute.xlu0 %6653  ;;  %6731 = vst.msk [vmem:[#allocation5 + $0x70] sm:$0xf] %vm2230_vm2, %v6664_v21  ;;  %v7439_v29 = vsel %vm10365_vm15, %v7437_v61, %v7438_v49  ;;  %v7430_v21 = vrot.slane %v7428_v24, 4 }
 0x5b4   : > { %6726 = vst.msk [vmem:[#allocation5 + $0x5c] sm:$0xf] %vm2230_vm2, %v6654_v34  ;;  %7229 = vrot.lane.b32.xlu1 %v7166_v59, %s9734_s12  ;;  %v7425_v34 = vsel %vm10365_vm15, %v7423_v41, %v7424_v46  ;;  %v7431_v59 = vrot.slane %v7312_v11, 5 }
 0x5b6   : > { %v6650_v9 = vpop.permute.xlu1 %6649  ;;  %v7432_v27 = vsel %vm10365_vm15, %v7430_v21, %v7431_v59  ;;  %v7888_v21 = vrot.slane %v7886_v52, 4 }
 0x5b7   : > { %6724 = vst.msk [vmem:[#allocation5 + $0x54] sm:$0xf] %vm2230_vm2, %v6650_v9  ;;  %v7449_v9 = vrot.slane %v7320_v42, 5 }
 0x5b8   : > { %7503 = vrot.lane.b32.xlu2 %v7394_v26, %s9735_s13  ;;  %v9487_v26 = vrot.slane %v7313_v10, 9  ;;  %v7632_v10 = vld [vmem:[#allocation4 + $0x18] sm:$0xf] }
 0x5b9   : > { %7511 = vrot.lane.b32.xlu0 %v7408_v38, %s9735_s13  ;;  %v7323_v38 = vld [vmem:[#allocation4 + $0x7c] sm:$0xf]  ;;  %v7450_v48 = vsel %vm10365_vm15, %v9489_v14, %v7449_v9 }
 0x5ba   : > { %v6670_v1 = vpop.permute.xlu2 %6669  ;;  %v7456_v4 = vrot.slane %v7323_v38, 5 }
 0x5bb   : > { %v6660_v36 = vpop.permute.xlu0 %6659  ;;  %6734 = vst.msk [vmem:[#allocation5 + $0x7c] sm:$0xf] %vm2230_vm2, %v6670_v1  ;;  %v7442_v1 = vrot.slane %v7317_v31, 5 }
 0x5bc   : > { %6729 = vst.msk [vmem:[#allocation5 + $0x68] sm:$0xf] %vm2230_vm2, %v6660_v36  ;;  %7507 = vrot.lane.b32.xlu1 %v7401_v30, %s9735_s13  ;;  %v7436_v36 = vsel %vm10365_vm15, %v9487_v26, %v7435_v33  ;;  %v9488_v30 = vrot.slane %v7316_v28, 9  ;;  %v7633_v33 = vld [vmem:[#allocation4 + $0x1c] sm:$0xf] }
 0x5bd   : > { %v7827_v26 = vld [vmem:[#allocation4 + $0x24] sm:$0xf] }
 0x5be   : > { %v6656_v39 = vpop.permute.xlu1 %6655  ;;  %v7443_v45 = vsel %vm10365_vm15, %v9488_v30, %v7442_v1  ;;  %v7635_v30 = vld [vmem:[#allocation4 + $0x28] sm:$0xf] }
 0x5bf   : > { %6727 = vst.msk [vmem:[#allocation5 + $0x60] sm:$0xf] %vm2230_vm2, %v6656_v39  ;;  %v7458_v39 = vrot.slane %v7456_v4, 4 }
 0x5c0   : > { %7509 = vrot.lane.b32.xlu2 %v7404_v57, %s9735_s13  ;;  %v7321_v57 = vld [vmem:[#allocation4 + $0x74] sm:$0x1] }
 0x5c1   : > { %7517 = vrot.lane.b32.xlu0 %v7418_v53, %s9735_s13  ;;  %v7444_v53 = vrot.slane %v7442_v1, 4  ;;  %v7460_v16 = vsel %vm10365_vm15, %v7458_v39, %v7459_v7  ;;  %v7452_v19 = vrot.slane %v7321_v57, 5  ;;  %v7897_v1 = vshrl.u32 %v7827_v26, 16  ;;  %v8388_v7 = vld [vmem:[#allocation4 + $0x28] sm:$0xf] }
 0x5c2   : > { %v7172_v44 = vpop.permute.xlu2 %7171 }
 0x5c3   : > { %v6666_v60 = vpop.permute.xlu0 %6665  ;;  %7265 = vst.msk [vmem:[#allocation5 + $0x8] sm:$0xf] %vm2861_vm6, %v7172_v44  ;;  %v7451_v44 = vrot.slane %v7449_v9, 4  ;;  %v7899_v57 = vrot.slane %v7897_v1, 4 }
 0x5c4   : > { %6732 = vst.msk [vmem:[#allocation5 + $0x74] sm:$0xf] %vm2230_vm2, %v6666_v60  ;;  %7513 = vrot.lane.b32.xlu1 %v7411_v12, %s9735_s13  ;;  %v7446_v60 = vsel %vm10365_vm15, %v7444_v53, %v7445_v55 }
 0x5c5   : > { %v7453_v40 = vsel %vm10365_vm15, %v7451_v44, %v7452_v19  ;;  %v8489_v19 = vrot.slane %v8388_v7, 5 }
 0x5c6   : > { %v6662_v35 = vpop.permute.xlu1 %6661 }
 0x5c7   : > { %6730 = vst.msk [vmem:[#allocation5 + $0x6c] sm:$0xf] %vm2230_vm2, %v6662_v35  ;;  %v7325_v35 = vld [vmem:[#allocation4 + $0x84] sm:$0xe] }
 0x5c8   : > { %7515 = vrot.lane.b32.xlu2 %v7415_v6, %s9735_s13  ;;  %v7876_v6 = vshll.u32 %v7824_v43, 16 }
 0x5c9   : > { %7523 = vrot.lane.b32.xlu0 %v7429_v63, %s9735_s13  ;;  %v7873_v63 = vshrl.u32 %v7824_v43, 16 }
 0x5ca   : > { %v7178_v47 = vpop.permute.xlu2 %7177  ;;  %v7878_v41 = vrot.slane %v7876_v6, 5  ;;  %v7851_v6 = vld [vmem:[#allocation4 + $0x84] sm:$0xf] }
 0x5cb   : > { %v7168_v37 = vpop.permute.xlu0 %7167  ;;  %7268 = vst.msk [vmem:[#allocation5 + $0x14] sm:$0xf] %vm2861_vm6, %v7178_v47  ;;  %v9491_v47 = vrot.slane %v7325_v35, 9  ;;  %v7875_v61 = vrot.slane %v7873_v63, 4  ;;  %v7634_v35 = vld [vmem:[#allocation4 + $0x24] sm:$0xf] }
 0x5cc   : > { %7263 = vst.msk [vmem:[#allocation5] sm:$0xf] %vm2861_vm6, %v7168_v37  ;;  %7519 = vrot.lane.b32.xlu1 %v7422_v15, %s9735_s13  ;;  %v7457_v37 = vsel %vm10365_vm15, %v9490_v3, %v7456_v4  ;;  %v8385_v15 = vld [vmem:[#allocation4 + $0x1c] sm:$0xf]  ;;  %v7900_v4 = vshll.u32 %v7827_v26, 16  ;;  %v8092_v52 = vshll.u32 %v7851_v6, 16 }
 0x5cd   : > { %v7464_v11 = vsel %vm10365_vm15, %v9491_v47, %v7463_v2  ;;  %v7879_v42 = vor.u32 %v7878_v41, %v7875_v61  ;;  %v7829_v3 = vld [vmem:[#allocation4 + $0x2c] sm:$0x1]  ;;  %v8089_v47 = vshrl.u32 %v7851_v6, 16  ;;  %v7852_v41 = vld [vmem:[#allocation4 + $0x88] sm:$0xf] }
 0x5ce   : > { %v6668_v50 = vpop.permute.xlu1 %6667  ;;  %v7902_v55 = vrot.slane %v7900_v4, 5  ;;  %v7650_v4 = vld [vmem:[#allocation4 + $0x84] sm:$0xf]  ;;  %v8390_v6 = vld [vmem:[#allocation4 + $0x30] sm:$0xe] }
 0x5cf   : > { %6733 = vst.msk [vmem:[#allocation5 + $0x78] sm:$0xf] %vm2230_vm2, %v6668_v50  ;;  %v8384_v50 = vld [vmem:[#allocation4 + $0x18] sm:$0xe]  ;;  %v7880_v14 = vrot.slane %v7879_v42, 4  ;;  %vm13450_vm2 = vmmov %vm13449_vm1 }
 0x5d0   : > { %7521 = vrot.lane.b32.xlu2 %v7425_v34, %s9735_s13  ;;  %v7884_v34 = vrot.slane %v7882_v0, 5  ;;  %v9497_v56 = vrot.slane %v8384_v50, 9  ;;  %v7903_v43 = vor.u32 %v7902_v55, %v7899_v57  ;;  %v8411_v42 = vld [vmem:[#allocation4 + $0x84] sm:$0xe]  ;;  %v7831_v57 = vld [vmem:[#allocation4 + $0x34] sm:$0xf] }
 0x5d1   : > { %7529 = vrot.lane.b32.xlu0 %v7439_v29, %s9735_s13  ;;  %v8482_v29 = vrot.slane %v8385_v15, 5  ;;  %v8413_v55 = vld [vmem:[#allocation4 + $0x8c] sm:$0x1] }
 0x5d2   : > { %v7184_v5 = vpop.permute.xlu2 %7183 }
 0x5d3   : > { %v7174_v32 = vpop.permute.xlu0 %7173  ;;  %7271 = vst.msk [vmem:[#allocation5 + $0x20] sm:$0xf] %vm2861_vm6, %v7184_v5  ;;  %v8483_v5 = vsel %vm10365_vm15, %v9497_v56, %v8482_v29  ;;  %v8484_v54 = vrot.slane %v8482_v29, 4  ;;  %v8491_v29 = vrot.slane %v8489_v19, 4 }
 0x5d4   : > { %7266 = vst.msk [vmem:[#allocation5 + $0xc] sm:$0xf] %vm2861_vm6, %v7174_v32  ;;  %7525 = vrot.lane.b32.xlu1 %v7432_v27, %s9735_s13  ;;  %v7826_v32 = vld [vmem:[#allocation4 + $0x20] sm:$0x1]  ;;  %v7889_v27 = vor.u32 %v7888_v21, %v7884_v34  ;;  %v8094_v21 = vrot.slane %v8092_v52, 5 }
 0x5d5   : > { %v7892_v9 = vshll.u32 %v7826_v32, 16  ;;  %v8102_v32 = vshrl.u32 %v7852_v41, 16  ;;  %v7855_v52 = vld [vmem:[#allocation4 + $0x94] sm:$0xf] }
 0x5d6   : > { %v7170_v8 = vpop.permute.xlu1 %7169  ;;  %v7890_v28 = vrot.slane %v7889_v27, 4 }
 0x5d7   : > { %7264 = vst.msk [vmem:[#allocation5 + $0x4] sm:$0xf] %vm2861_vm6, %v7170_v8  ;;  %v7885_v8 = vsel %vm9894_vm11, %v7880_v14, %v7884_v34  ;;  %v8091_v34 = vrot.slane %v8089_v47, 4  ;;  %v7832_v47 = vld [vmem:[#allocation4 + $0x38] sm:$0x1] }
 0x5d8   : > { %7527 = vrot.lane.b32.xlu2 %v7436_v36, %s9735_s13  ;;  %v7894_v36 = vrot.slane %v7892_v9, 5 }
 0x5d9   : > { %7535 = vrot.lane.b32.xlu0 %v7450_v48, %s9735_s13  ;;  %v7828_v48 = vld [vmem:[#allocation4 + $0x28] sm:$0xf]  ;;  %v8095_v26 = vor.u32 %v8094_v21, %v8091_v34  ;;  %v8126_v34 = vshrl.u32 %v7855_v52, 16 }
 0x5da   : > { %v7190_v22 = vpop.permute.xlu2 %7189  ;;  %v7910_v39 = vshrl.u32 %v7828_v48, 16 }
 0x5db   : > { %v7180_v58 = vpop.permute.xlu0 %7179  ;;  %7274 = vst.msk [vmem:[#allocation5 + $0x2c] sm:$0xf] %vm2861_vm6, %v7190_v22  ;;  %v7895_v22 = vsel %vm9894_vm11, %v7890_v28, %v7894_v36  ;;  %v8104_v28 = vrot.slane %v8102_v32, 4 }
 0x5dc   : > { %7269 = vst.msk [vmem:[#allocation5 + $0x18] sm:$0xf] %vm2861_vm6, %v7180_v58  ;;  %7531 = vrot.lane.b32.xlu1 %v7443_v45, %s9735_s13  ;;  %v8386_v58 = vld [vmem:[#allocation4 + $0x20] sm:$0x1]  ;;  %v7906_v45 = vshll.u32 %v7828_v48, 16 }
 0x5dd   : > { %v8485_v53 = vrot.slane %v8386_v58, 5  ;;  %v7853_v48 = vld [vmem:[#allocation4 + $0x8c] sm:$0x1] }
 0x5de   : > { %v7176_v51 = vpop.permute.xlu1 %7175  ;;  %v7908_v62 = vrot.slane %v7906_v45, 5  ;;  %v8108_v58 = vshll.u32 %v7853_v48, 16  ;;  %v7830_v45 = vld [vmem:[#allocation4 + $0x30] sm:$0xf]  ;;  %v7327_v48 = vld [vmem:[#allocation4 + $0x8c] sm:$0x1] }
 0x5df   : > { %7267 = vst.msk [vmem:[#allocation5 + $0x10] sm:$0xf] %vm2861_vm6, %v7176_v51  ;;  %v8486_v44 = vsel %vm10365_vm15, %v8484_v54, %v8485_v53 }
 0x5e0   : > { %7533 = vrot.lane.b32.xlu2 %v7446_v60, %s9735_s13  ;;  %v8387_v60 = vld [vmem:[#allocation4 + $0x24] sm:$0xe]  ;;  %v8110_v53 = vrot.slane %v8108_v58, 5 }
 0x5e1   : > { %7541 = vrot.lane.b32.xlu0 %v7460_v16, %s9735_s13 }
 0x5e2   : > { %v7196_v24 = vpop.permute.xlu2 %7195 }
 0x5e3   : > { %v7186_v12 = vpop.permute.xlu0 %7185  ;;  %7277 = vst.msk [vmem:[#allocation5 + $0x38] sm:$0xf] %vm2861_vm6, %v7196_v24  ;;  %v9498_v24 = vrot.slane %v8387_v60, 9 }
 0x5e4   : > { %7272 = vst.msk [vmem:[#allocation5 + $0x24] sm:$0xf] %vm2861_vm6, %v7186_v12  ;;  %7537 = vrot.lane.b32.xlu1 %v7453_v40, %s9735_s13  ;;  %v7912_v12 = vrot.slane %v7910_v39, 4 }
 0x5e5   : > { %v8490_v25 = vsel %vm10365_vm15, %v9498_v24, %v8489_v19  ;;  %v7934_v19 = vshrl.u32 %v7831_v57, 16 }
 0x5e6   : > { %v7182_v13 = vpop.permute.xlu1 %7181  ;;  %v7913_v63 = vor.u32 %v7912_v12, %v7908_v62 }
 0x5e7   : > { %7270 = vst.msk [vmem:[#allocation5 + $0x1c] sm:$0xf] %vm2861_vm6, %v7182_v13  ;;  %v7904_v13 = vrot.slane %v7903_v43, 4  ;;  %v8548_v43 = vrot.slane %v8413_v55, 5 }
 0x5e8   : > { %7539 = vrot.lane.b32.xlu2 %v7457_v37, %s9735_s13  ;;  %v7914_v61 = vrot.slane %v7913_v63, 4 }
 0x5e9   : > { %7698 = vrot.lane.b32.xlu0 %v7633_v33, %s9736_s14  ;;  %v7916_v33 = vshll.u32 %v7829_v3, 16  ;;  %v7909_v15 = vsel %vm9894_vm11, %v7904_v13, %v7908_v62  ;;  %v7637_v62 = vld [vmem:[#allocation4 + $0x34] sm:$0xf] }
 0x5ea   : > { %v7202_v46 = vpop.permute.xlu2 %7201 }
 0x5eb   : > { %v7192_v49 = vpop.permute.xlu0 %7191  ;;  %7280 = vst.msk [vmem:[#allocation5 + $0x44] sm:$0xf] %vm2861_vm6, %v7202_v46  ;;  %v8389_v46 = vld [vmem:[#allocation4 + $0x2c] sm:$0x1] }
 0x5ec   : > { %7275 = vst.msk [vmem:[#allocation5 + $0x30] sm:$0xf] %vm2861_vm6, %v7192_v49  ;;  %7543 = vrot.lane.b32.xlu1 %v7464_v11, %s9735_s13  ;;  %v7918_v49 = vrot.slane %v7916_v33, 5  ;;  %v7651_v11 = vld [vmem:[#allocation4 + $0x88] sm:$0xf]  ;;  %v7936_v33 = vrot.slane %v7934_v19, 4 }
 0x5ee   : > { %v7188_v59 = vpop.permute.xlu1 %7187  ;;  %v7919_v56 = vsel %vm9894_vm11, %v7914_v61, %v7918_v49  ;;  %v7636_v49 = vld [vmem:[#allocation4 + $0x30] sm:$0xf] }
 0x5ef   : > { %7273 = vst.msk [vmem:[#allocation5 + $0x28] sm:$0xf] %vm2861_vm6, %v7188_v59  ;;  %v8098_v59 = vshll.u32 %v7852_v41, 16 }
 0x5f0   : > { %7696 = vrot.lane.b32.xlu2 %v7632_v10, %s9736_s14  ;;  %v8412_v10 = vld [vmem:[#allocation4 + $0x88] sm:$0xf] }
 0x5f1   : > { %8592 = vrot.lane.b32.xlu0 %v8483_v5, %s9738_s16  ;;  %v8492_v5 = vrot.slane %v8389_v46, 5 }
 0x5f2   : > { %v7208_v38 = vpop.permute.xlu2 %7207 }
 0x5f3   : > { %v7198_v31 = vpop.permute.xlu0 %7197  ;;  %7283 = vst.msk [vmem:[#allocation5 + $0x50] sm:$0xf] %vm2861_vm6, %v7208_v38  ;;  %v8493_v9 = vsel %vm10365_vm15, %v8491_v29, %v8492_v5  ;;  %v8545_v38 = vrot.slane %v8412_v10, 5  ;;  %v8122_v29 = vshll.u32 %v7855_v52, 16 }
 0x5f4   : > { %7278 = vst.msk [vmem:[#allocation5 + $0x3c] sm:$0xf] %vm2861_vm6, %v7198_v31  ;;  %8256 = vrot.lane.b32.xlu1 %v7885_v8, %s9737_s15  ;;  %v9506_v31 = vrot.slane %v8411_v42, 9  ;;  %v8100_v8 = vrot.slane %v8098_v59, 5 }
 0x5f5   : > { %v8547_v24 = vrot.slane %v8545_v38, 4  ;;  %v12847_v10 = vrot.slane %v8122_v29, 5 }
 0x5f6   : > { %v7194_v20 = vpop.permute.xlu1 %7193  ;;  %v8546_v1 = vsel %vm10365_vm15, %v9506_v31, %v8545_v38  ;;  %v8392_v31 = vld [vmem:[#allocation4 + $0x38] sm:$0x1] }
 0x5f7   : > { %7276 = vst.msk [vmem:[#allocation5 + $0x34] sm:$0xf] %vm2861_vm6, %v7194_v20  ;;  %v8096_v20 = vrot.slane %v8095_v26, 4  ;;  %v7652_v26 = vld [vmem:[#allocation4 + $0x90] sm:$0xf] }
 0x5f8   : > { %8258 = vrot.lane.b32.xlu2 %v7895_v22, %s9737_s15 }
 0x5f9   : > { %7702 = vrot.lane.b32.xlu0 %v7635_v30, %s9736_s14  ;;  %v8105_v30 = vor.u32 %v8104_v28, %v8100_v8  ;;  %v8101_v39 = vsel %vm9894_vm11, %v8096_v20, %v8100_v8 }
 0x5fa   : > { %v7214_v16 = vpop.permute.xlu2 %7213 }
 0x5fb   : > { %v7204_v51 = vpop.permute.xlu0 %7203  ;;  %7286 = vst.msk [vmem:[#allocation5 + $0x5c] sm:$0xf] %vm2861_vm6, %v7214_v16  ;;  %v8106_v7 = vrot.slane %v8105_v30, 4  ;;  %v7924_v16 = vshll.u32 %v7830_v45, 16  ;;  %v8499_v30 = vrot.slane %v8392_v31, 5 }
 0x5fc   : > { %7281 = vst.msk [vmem:[#allocation5 + $0x48] sm:$0xf] %vm2861_vm6, %v7204_v51  ;;  %8594 = vrot.lane.b32.xlu1 %v8486_v44, %s9738_s16  ;;  %v7921_v51 = vshrl.u32 %v7830_v45, 16  ;;  %v7930_v44 = vshll.u32 %v7831_v57, 16  ;;  %v7465_v45 = vrot.slane %v7463_v2, 4 }
 0x5fd   : > { %v8111_v12 = vsel %vm9894_vm11, %v8106_v7, %v8110_v53  ;;  %v7834_v7 = vld [vmem:[#allocation4 + $0x40] sm:$0xf] }
 0x5fe   : > { %v7200_v40 = vpop.permute.xlu1 %7199  ;;  %v7923_v3 = vrot.slane %v7921_v51, 4  ;;  %v7932_v13 = vrot.slane %v7930_v44, 5  ;;  %v7958_v19 = vshrl.u32 %v7834_v7, 16 }
 0x5ff   : > { %7279 = vst.msk [vmem:[#allocation5 + $0x40] sm:$0xf] %vm2861_vm6, %v7200_v40  ;;  %v8391_v40 = vld [vmem:[#allocation4 + $0x34] sm:$0xf] }
 0x600   : > { %7700 = vrot.lane.b32.xlu2 %v7634_v35, %s9736_s14  ;;  %v7937_v46 = vor.u32 %v7936_v33, %v7932_v13  ;;  %v7638_v33 = vld [vmem:[#allocation4 + $0x3c] sm:$0xf] }
 0x601   : > { %8596 = vrot.lane.b32.xlu0 %v8490_v25, %s9738_s16  ;;  %v7926_v25 = vrot.slane %v7924_v16, 5 }
 0x602   : > { %v7220_v37 = vpop.permute.xlu2 %7219  ;;  %v7938_v59 = vrot.slane %v7937_v46, 4 }
 0x603   : > { %v7210_v0 = vpop.permute.xlu0 %7209  ;;  %7289 = vst.msk [vmem:[#allocation5 + $0x68] sm:$0xf] %vm2861_vm6, %v7220_v37  ;;  %v8496_v37 = vrot.slane %v8391_v40, 5  ;;  %v7927_v61 = vor.u32 %v7926_v25, %v7923_v3  ;;  %v7960_v3 = vrot.slane %v7958_v19, 4  ;;  %v8414_v25 = vld [vmem:[#allocation4 + $0x90] sm:$0xe] }
 0x604   : > { %7284 = vst.msk [vmem:[#allocation5 + $0x54] sm:$0xf] %vm2861_vm6, %v7210_v0  ;;  %8260 = vrot.lane.b32.xlu1 %v7909_v15, %s9737_s15  ;;  %v8549_v0 = vsel %vm10365_vm15, %v8547_v24, %v8548_v43  ;;  %v9499_v15 = vrot.slane %v8390_v6, 9  ;;  %v7653_v24 = vld [vmem:[#allocation4 + $0x94] sm:$0xf] }
 0x605   : > { %v7928_v21 = vrot.slane %v7927_v61, 4  ;;  %v8498_v28 = vrot.slane %v8496_v37, 4  ;;  %v7835_v6 = vld [vmem:[#allocation4 + $0x44] sm:$0x1] }
 0x606   : > { %v7206_v50 = vpop.permute.xlu1 %7205  ;;  %v7964_v61 = vshll.u32 %v7835_v6, 16 }
 0x607   : > { %7282 = vst.msk [vmem:[#allocation5 + $0x4c] sm:$0xf] %vm2861_vm6, %v7206_v50  ;;  %v8497_v50 = vsel %vm10365_vm15, %v9499_v15, %v8496_v37  ;;  %v7933_v32 = vsel %vm9894_vm11, %v7928_v21, %v7932_v13  ;;  %v7833_v13 = vld [vmem:[#allocation4 + $0x3c] sm:$0xf]  ;;  %v9507_v37 = vrot.slane %v8414_v25, 9 }
 0x608   : > { %8262 = vrot.lane.b32.xlu2 %v7919_v56, %s9737_s15  ;;  %v8416_v15 = vld [vmem:[#allocation4 + $0x98] sm:$0x1] }
 0x609   : > { %7734 = vrot.lane.b32.xlu0 %v7651_v11, %s9736_s14  ;;  %v7940_v11 = vshll.u32 %v7832_v47, 16  ;;  %v8555_v21 = vrot.slane %v8416_v15, 5 }
 0x60a   : > { %v7226_v14 = vpop.permute.xlu2 %7225 }
 0x60b   : > { %v7216_v27 = vpop.permute.xlu0 %7215  ;;  %7292 = vst.msk [vmem:[#allocation5 + $0x74] sm:$0xf] %vm2861_vm6, %v7226_v14  ;;  %v7942_v5 = vrot.slane %v7940_v11, 5  ;;  %v7856_v14 = vld [vmem:[#allocation4 + $0x98] sm:$0x1] }
 0x60c   : > { %7287 = vst.msk [vmem:[#allocation5 + $0x60] sm:$0xf] %vm2861_vm6, %v7216_v27  ;;  %8598 = vrot.lane.b32.xlu1 %v8493_v9, %s9738_s16  ;;  %v8128_v27 = vrot.slane %v8126_v34, 4  ;;  %v7854_v9 = vld [vmem:[#allocation4 + $0x90] sm:$0xf] }
 0x60d   : > { %v7943_v8 = vsel %vm9894_vm11, %v7938_v59, %v7942_v5  ;;  %v8116_v20 = vshll.u32 %v7854_v9, 16 }
 0x60e   : > { %v7212_v36 = vpop.permute.xlu1 %7211 }
 0x60f   : > { %7285 = vst.msk [vmem:[#allocation5 + $0x58] sm:$0xf] %vm2861_vm6, %v7212_v36  ;;  %v8129_v36 = vor.u32 %v8128_v27, %v12847_v10  ;;  %v8118_v51 = vrot.slane %v8116_v20, 5  ;;  %v7328_v27 = vld [vmem:[#allocation4 + $0x90] sm:$0xe] }
 0x610   : > { %7732 = vrot.lane.b32.xlu2 %v7650_v4, %s9736_s14  ;;  %v8113_v4 = vshrl.u32 %v7854_v9, 16 }
 0x611   : > { %8628 = vrot.lane.b32.xlu0 %v8546_v1, %s9738_s16  ;;  %v8132_v1 = vshll.u32 %v7856_v14, 16  ;;  %v8130_v53 = vrot.slane %v8129_v36, 4  ;;  %v7329_v14 = vld [vmem:[#allocation4 + $0x94] sm:$0xf]  ;;  %v8760_v36 = vld [vmem:[%s13424_s4 + $0x20] sm:$0xf] }
 0x612   : > { %v7504_v54 = vpop.permute.xlu2 %7503  ;;  %v8115_v55 = vrot.slane %v8113_v4, 4  ;;  %v8858_v4 = vunpack.c.l.b16 %v8760_v36 }
 0x613   : > { %v7222_v22 = vpop.permute.xlu0 %7221  ;;  %7599 = vst.msk [vmem:[#allocation5] sm:$0xf] %vm3240_vm7, %v7504_v54  ;;  %v8500_v54 = vsel %vm10365_vm15, %v8498_v28, %v8499_v30  ;;  %v8134_v57 = vrot.slane %v8132_v1, 5  ;;  %v7470_v28 = vrot.slane %v7329_v14, 5  ;;  %v8393_v30 = vld [vmem:[#allocation4 + $0x3c] sm:$0xe] }
 0x614   : > { %7290 = vst.msk [vmem:[#allocation5 + $0x6c] sm:$0xf] %vm2861_vm6, %v7222_v22  ;;  %8292 = vrot.lane.b32.xlu1 %v8101_v39, %s9737_s15  ;;  %v7466_v39 = vrot.slane %v7327_v48, 5  ;;  %v8119_v44 = vor.u32 %v8118_v51, %v8115_v55  ;;  %v8394_v48 = vld [vmem:[#allocation4 + $0x40] sm:$0xf] }
 0x615   : > { %v8135_v17 = vsel %vm9894_vm11, %v8130_v53, %v8134_v57  ;;  %v8395_v53 = vld [vmem:[#allocation4 + $0x44] sm:$0x1] }
 0x616   : > { %v7218_v60 = vpop.permute.xlu1 %7217  ;;  %v7467_v2 = vsel %vm10365_vm15, %v7465_v45, %v7466_v39  ;;  %v8120_v43 = vrot.slane %v8119_v44, 4  ;;  %v7857_v45 = vld [vmem:[#allocation4 + $0x9c] sm:$0xf]  ;;  %v8863_v39 = vpack.c.b16 %v8858_v4, %v8858_v4 }
 0x617   : > { %7288 = vst.msk [vmem:[#allocation5 + $0x64] sm:$0xf] %vm2861_vm6, %v7218_v60  ;;  %v7954_v60 = vshll.u32 %v7834_v7, 16  ;;  %v9500_v7 = vrot.slane %v8393_v30, 9 }
 0x618   : > { %8294 = vrot.lane.b32.xlu2 %v8111_v12, %s9737_s15  ;;  %v8917_v57 = vsel %vm13442_vm0, %v8863_v39, 0  ;;  %vm13452_vm0 = vmmov %vm13449_vm1 }
 0x619   : > { %7706 = vrot.lane.b32.xlu0 %v7637_v62, %s9736_s14  ;;  %v12872_v40 = vrot.slane %v7954_v60, 5  ;;  %v8137_v60 = vshrl.u32 %v7857_v45, 16  ;;  %8922 = vmatpush.bf16.msra.mxu1 %v8917_v57 }
 0x61a   : > { %v7510_v63 = vpop.permute.xlu2 %7509  ;;  %9660 = vmatpush.bf16.msra.mxu3 %v8917_v57  ;;  %v8396_v57 = vld [vmem:[#allocation4 + $0x48] sm:$0xe] }
 0x61b   : > { %v7228_v35 = vpop.permute.xlu0 %7227  ;;  %7602 = vst.msk [vmem:[#allocation5 + $0xc] sm:$0xf] %vm3240_vm7, %v7510_v63  ;;  %v7961_v52 = vor.u32 %v7960_v3, %v12872_v40  ;;  %v7472_v3 = vrot.slane %v7470_v28, 4  ;;  %v8139_v25 = vrot.slane %v8137_v60, 4 }
 0x61c   : > { %7293 = vst.msk [vmem:[#allocation5 + $0x78] sm:$0xf] %vm2861_vm6, %v7228_v35  ;;  %8630 = vrot.lane.b32.xlu1 %v8549_v0, %s9738_s16  ;;  %v8415_v35 = vld [vmem:[#allocation4 + $0x94] sm:$0xf]  ;;  %v8125_v0 = vsel %vm9894_vm11, %v8120_v43, %v12847_v10 }
 0x61d   : > { %v8552_v47 = vrot.slane %v8415_v35, 5  ;;  %v7962_v29 = vrot.slane %v7961_v52, 4 }
 0x61e   : > { %v7224_v41 = vpop.permute.xlu1 %7223 }
 0x61f   : > { %7291 = vst.msk [vmem:[#allocation5 + $0x70] sm:$0xf] %vm2861_vm6, %v7224_v41  ;;  %v7945_v41 = vshrl.u32 %v7833_v13, 16  ;;  %v8553_v11 = vsel %vm10365_vm15, %v9507_v37, %v8552_v47  ;;  %v8554_v34 = vrot.slane %v8552_v47, 4  ;;  %v8418_v37 = vld [vmem:[#allocation4 + $0xa0] sm:$0xf] }
 0x620   : > { %7704 = vrot.lane.b32.xlu2 %v7636_v49, %s9736_s14  ;;  %v7948_v49 = vshll.u32 %v7833_v13, 16  ;;  %v8417_v13 = vld [vmem:[#allocation4 + $0x9c] sm:$0xe] }
 0x621   : > { %8600 = vrot.lane.b32.xlu0 %v8497_v50, %s9738_s16  ;;  %v8556_v10 = vsel %vm10365_vm15, %v8554_v34, %v8555_v21  ;;  %v9651_v21 = vld [vmem:[%s13424_s4] sm:$0xff] }
 0x622   : > { %v7516_v42 = vpop.permute.xlu2 %7515  ;;  %v7950_v59 = vrot.slane %v7948_v49, 5  ;;  %v8559_v49 = vrot.slane %v8418_v37, 5 }
 0x623   : > { %v7506_v56 = vpop.permute.xlu0 %7505  ;;  %7605 = vst.msk [vmem:[#allocation5 + $0x18] sm:$0xf] %vm3240_vm7, %v7516_v42  ;;  %v7947_v42 = vrot.slane %v7945_v41, 4  ;;  %v9652_v41 = vld [vmem:[%s13424_s4 + $0x8] sm:$0xff] }
 0x624   : > { %7600 = vst.msk [vmem:[#allocation5 + $0x4] sm:$0xf] %vm3240_vm7, %v7506_v56  ;;  %8264 = vrot.lane.b32.xlu1 %v7933_v32, %s9737_s15  ;;  %v7966_v56 = vrot.slane %v7964_v61, 5  ;;  %v9508_v61 = vrot.slane %v8417_v13, 9 }
 0x625   : > { %v7951_v9 = vor.u32 %v7950_v59, %v7947_v42  ;;  %v7654_v42 = vld [vmem:[#allocation4 + $0x9c] sm:$0xf] }
 0x626   : > { %v7230_v38 = vpop.permute.xlu1 %7229  ;;  %v7967_v5 = vsel %vm9894_vm11, %v7962_v29, %v7966_v56  ;;  %v7859_v29 = vld [vmem:[#allocation4 + $0xa4] sm:$0x1]  ;;  %v8560_v56 = vsel %vm10365_vm15, %v9508_v61, %v8559_v49 }
 0x627   : > { %7294 = vst.msk [vmem:[#allocation5 + $0x7c] sm:$0xf] %vm2861_vm6, %v7230_v38  ;;  %v7952_v1 = vrot.slane %v7951_v9, 4  ;;  %vm13451_vm6 = vmmov %vm13449_vm1 }
 0x628   : > { %8266 = vrot.lane.b32.xlu2 %v7943_v8, %s9737_s15  ;;  %v9492_v8 = vrot.slane %v7328_v27, 9 }
 0x629   : > { %7736 = vrot.lane.b32.xlu0 %v7652_v26, %s9736_s14  ;;  %v7639_v26 = vld [vmem:[#allocation4 + $0x40] sm:$0xf] }
 0x62a   : > { %v7522_v22 = vpop.permute.xlu2 %7521 }
 0x62b   : > { %v7512_v58 = vpop.permute.xlu0 %7511  ;;  %7608 = vst.msk [vmem:[#allocation5 + $0x24] sm:$0xf] %vm3240_vm7, %v7522_v22  ;;  %v7957_v22 = vsel %vm9894_vm11, %v7952_v1, %v12872_v40  ;;  %v7655_v40 = vld [vmem:[#allocation4 + $0xa0] sm:$0xf] }
 0x62c   : > { %7603 = vst.msk [vmem:[#allocation5 + $0x10] sm:$0xf] %vm3240_vm7, %v7512_v58  ;;  %8602 = vrot.lane.b32.xlu1 %v8500_v54, %s9738_s16  ;;  %v7471_v58 = vsel %vm10365_vm15, %v9492_v8, %v7470_v28  ;;  %v8503_v54 = vrot.slane %v8394_v48, 5  ;;  %v8419_v8 = vld [vmem:[#allocation4 + $0xa4] sm:$0x1] }
 0x62e   : > { %v7508_v16 = vpop.permute.xlu1 %7507  ;;  %v8504_v44 = vsel %vm10365_vm15, %v9500_v7, %v8503_v54  ;;  %v8505_v19 = vrot.slane %v8503_v54, 4  ;;  %v8397_v54 = vld [vmem:[#allocation4 + $0x4c] sm:$0xf] }
 0x62f   : > { %7601 = vst.msk [vmem:[#allocation5 + $0x8] sm:$0xf] %vm3240_vm7, %v7508_v16  ;;  %v7330_v16 = vld [vmem:[#allocation4 + $0x98] sm:$0x1]  ;;  %v8510_v60 = vrot.slane %v8397_v54, 5 }
 0x630   : > { %7545 = vrot.lane.b32.xlu2 %v7467_v2, %s9735_s13  ;;  %v9654_v2 = vld [vmem:[%s13424_s4 + $0x18] sm:$0xff] }
 0x631   : > { %8298 = vrot.lane.b32.xlu0 %v8135_v17, %s9737_s15  ;;  %v8140_v17 = vshll.u32 %v7857_v45, 16  ;;  %8923 = vmatpush.bf16.msra.mxu1 %v9654_v2 }
 0x632   : > { %v7528_v12 = vpop.permute.xlu2 %7527  ;;  %9661 = vmatpush.bf16.msra.mxu3 %v9654_v2  ;;  %v7332_v2 = vld [vmem:[#allocation4 + $0xa0] sm:$0xf] }
 0x633   : > { %v7518_v62 = vpop.permute.xlu0 %7517  ;;  %7611 = vst.msk [vmem:[#allocation5 + $0x30] sm:$0xf] %vm3240_vm7, %v7528_v12  ;;  %v8506_v12 = vrot.slane %v8395_v53, 5  ;;  %v8142_v35 = vrot.slane %v8140_v17, 5 }
 0x634   : > { %7606 = vst.msk [vmem:[#allocation5 + $0x1c] sm:$0xf] %vm3240_vm7, %v7518_v62  ;;  %7738 = vrot.lane.b32.xlu1 %v7653_v24, %s9736_s14  ;;  %v7858_v62 = vld [vmem:[#allocation4 + $0xa0] sm:$0xf]  ;;  %v7473_v24 = vrot.slane %v7330_v16, 5 }
 0x635   : > { %v8507_v6 = vsel %vm10365_vm15, %v8505_v19, %v8506_v12  ;;  %v9501_v19 = vrot.slane %v8396_v57, 9  ;;  %v7640_v12 = vld [vmem:[#allocation4 + $0x48] sm:$0xf] }
 0x636   : > { %v7514_v63 = vpop.permute.xlu1 %7513  ;;  %v7474_v15 = vsel %vm10365_vm15, %v7472_v3, %v7473_v24  ;;  %v7838_v24 = vld [vmem:[#allocation4 + $0x50] sm:$0x1]  ;;  %v7477_v3 = vrot.slane %v7332_v2, 5 }
 0x637   : > { %7604 = vst.msk [vmem:[#allocation5 + $0x14] sm:$0xf] %vm3240_vm7, %v7514_v63  ;;  %v9653_v63 = vld [vmem:[%s13424_s4 + $0x10] sm:$0xff]  ;;  %v7988_v13 = vshll.u32 %v7838_v24, 16 }
 0x638   : > { %8296 = vrot.lane.b32.xlu2 %v8125_v0, %s9737_s15  ;;  %v8150_v0 = vshrl.u32 %v7858_v62, 16  ;;  %8924 = vmatpush.bf16.msra.mxu1 %v9653_v63 }
 0x639   : > { %7708 = vrot.lane.b32.xlu0 %v7638_v33, %s9736_s14  ;;  %v8146_v33 = vshll.u32 %v7858_v62, 16  ;;  %9662 = vmatpush.bf16.msra.mxu3 %v9653_v63 }
 0x63a   : > { %v7534_v50 = vpop.permute.xlu2 %7533 }
 0x63b   : > { %v7524_v46 = vpop.permute.xlu0 %7523  ;;  %7614 = vst.msk [vmem:[#allocation5 + $0x3c] sm:$0xf] %vm3240_vm7, %v7534_v50  ;;  %v8148_v50 = vrot.slane %v8146_v33, 5 }
 0x63c   : > { %7609 = vst.msk [vmem:[#allocation5 + $0x28] sm:$0xf] %vm3240_vm7, %v7524_v46  ;;  %8632 = vrot.lane.b32.xlu1 %v8553_v11, %s9738_s16  ;;  %v8143_v46 = vor.u32 %v8142_v35, %v8139_v25  ;;  %v8152_v11 = vrot.slane %v8150_v0, 4  ;;  %8925 = vmatpush.bf16.msra.mxu1 %v9652_v41 }
 0x63d   : > { %9663 = vmatpush.bf16.msra.mxu3 %v9652_v41 }
 0x63e   : > { %v7520_v32 = vpop.permute.xlu1 %7519  ;;  %v8144_v59 = vrot.slane %v8143_v46, 4  ;;  %v7990_v46 = vrot.slane %v7988_v13, 5 }
 0x63f   : > { %7607 = vst.msk [vmem:[#allocation5 + $0x20] sm:$0xf] %vm3240_vm7, %v7520_v32  ;;  %v8153_v32 = vor.u32 %v8152_v11, %v8148_v50 }
 0x640   : > { %8634 = vrot.lane.b32.xlu2 %v8556_v10, %s9738_s16  ;;  %v7836_v10 = vld [vmem:[#allocation4 + $0x48] sm:$0xf]  ;;  %8926 = vmatpush.bf16.msra.mxu1 %v9651_v21  ;;  %v8149_v9 = vsel %vm9894_vm11, %v8144_v59, %v8148_v50  ;;  %v8398_v50 = vld [vmem:[#allocation4 + $0x50] sm:$0x1] }
 0x641   : > { %8270 = vrot.lane.b32.xlu0 %v7967_v5, %s9737_s15  ;;  %v8156_v5 = vshll.u32 %v7859_v29, 16  ;;  %9664 = vmatpush.bf16.msra.mxu3 %v9651_v21  ;;  %v7969_v28 = vshrl.u32 %v7836_v10, 16  ;;  %v7972_v48 = vshll.u32 %v7836_v10, 16  ;;  %v8512_v29 = vrot.slane %v8510_v60, 4 }
 0x642   : > { %v7540_v38 = vpop.permute.xlu2 %7539  ;;  %v8513_v59 = vrot.slane %v8398_v50, 5  ;;  %v8401_v50 = vld [vmem:[#allocation4 + $0x5c] sm:$0x1] }
 0x643   : > { %v7530_v31 = vpop.permute.xlu0 %7529  ;;  %7617 = vst.msk [vmem:[#allocation5 + $0x48] sm:$0xf] %vm3240_vm7, %v7540_v38  ;;  %v8158_v38 = vrot.slane %v8156_v5, 5  ;;  %v7971_v45 = vrot.slane %v7969_v28, 4  ;;  %v7974_v39 = vrot.slane %v7972_v48, 5 }
 0x644   : > { %7612 = vst.msk [vmem:[#allocation5 + $0x34] sm:$0xf] %vm3240_vm7, %v7530_v31  ;;  %7710 = vrot.lane.b32.xlu1 %v7639_v26, %s9736_s14  ;;  %v8154_v31 = vrot.slane %v8153_v32, 4  ;;  %v7837_v26 = vld [vmem:[#allocation4 + $0x4c] sm:$0xf] }
 0x645   : > { %v7978_v1 = vshll.u32 %v7837_v26, 16  ;;  %v7982_v4 = vshrl.u32 %v7837_v26, 16  ;;  %v7975_v17 = vor.u32 %v7974_v39, %v7971_v45  ;;  %v7331_v32 = vld [vmem:[#allocation4 + $0x9c] sm:$0xe]  ;;  %v8421_v26 = vld [vmem:[#allocation4 + $0xac] sm:$0xf] }
 0x646   : > { %v7526_v20 = vpop.permute.xlu1 %7525  ;;  %v8159_v30 = vsel %vm9894_vm11, %v8154_v31, %v8158_v38  ;;  %v9493_v38 = vrot.slane %v7331_v32, 9  ;;  %v7839_v48 = vld [vmem:[#allocation4 + $0x54] sm:$0xf] }
 0x647   : > { %7610 = vst.msk [vmem:[#allocation5 + $0x2c] sm:$0xf] %vm3240_vm7, %v7526_v20  ;;  %v7641_v20 = vld [vmem:[#allocation4 + $0x4c] sm:$0xf]  ;;  %v7976_v63 = vrot.slane %v7975_v17, 4  ;;  %v7996_v54 = vshll.u32 %v7839_v48, 16 }
 0x648   : > { %8268 = vrot.lane.b32.xlu2 %v7957_v22, %s9737_s15  ;;  %v8562_v22 = vrot.slane %v8419_v8, 5 }
 0x649   : > { %7547 = vrot.lane.b32.xlu0 %v7471_v58, %s9735_s13  ;;  %v8561_v58 = vrot.slane %v8559_v49, 4  ;;  %v7861_v49 = vld [vmem:[#allocation4 + $0xac] sm:$0xf]  ;;  %v7998_v17 = vrot.slane %v7996_v54, 5 }
 0x64a   : > { %v7697_v51 = vpop.permute.xlu2 %7696  ;;  %v8174_v31 = vshrl.u32 %v7861_v49, 16 }
 0x64b   : > { %v7536_v55 = vpop.permute.xlu0 %7535  ;;  %7792 = vst.msk [vmem:[#allocation5] sm:$0xf] %vm13443_vm3, %v7697_v51  ;;  %v7984_v51 = vrot.slane %v7982_v4, 4  ;;  %v8563_v16 = vsel %vm10365_vm15, %v8561_v58, %v8562_v22  ;;  %v8566_v4 = vrot.slane %v8421_v26, 5  ;;  %v7862_v58 = vld [vmem:[#allocation4 + $0xb0] sm:$0x1]  ;;  %vm13453_vm3 = vmmov %vm13452_vm0 }
 0x64c   : > { %7615 = vst.msk [vmem:[#allocation5 + $0x40] sm:$0xf] %vm3240_vm7, %v7536_v55  ;;  %8604 = vrot.lane.b32.xlu1 %v8504_v44, %s9738_s16  ;;  %v7980_v55 = vrot.slane %v7978_v1, 5  ;;  %v7860_v44 = vld [vmem:[#allocation4 + $0xa8] sm:$0xf]  ;;  %v7478_v1 = vsel %vm10365_vm15, %v9493_v38, %v7477_v3  ;;  %v7993_v22 = vshrl.u32 %v7839_v48, 16 }
 0x64d   : > { %v8161_v25 = vshrl.u32 %v7860_v44, 16  ;;  %v8164_v35 = vshll.u32 %v7860_v44, 16  ;;  %v8568_v57 = vrot.slane %v8566_v4, 4 }
 0x64e   : > { %v7532_v43 = vpop.permute.xlu1 %7531  ;;  %v7981_v37 = vsel %vm9894_vm11, %v7976_v63, %v7980_v55 }
 0x64f   : > { %7613 = vst.msk [vmem:[#allocation5 + $0x38] sm:$0xf] %vm3240_vm7, %v7532_v43  ;;  %v7985_v43 = vor.u32 %v7984_v51, %v7980_v55  ;;  %v8163_v61 = vrot.slane %v8161_v25, 4  ;;  %v8166_v41 = vrot.slane %v8164_v35, 5 }
 0x650   : > { %8606 = vrot.lane.b32.xlu2 %v8507_v6, %s9738_s16  ;;  %v7333_v6 = vld [vmem:[#allocation4 + $0xa4] sm:$0x1] }
 0x651   : > { %7742 = vrot.lane.b32.xlu0 %v7655_v40, %s9736_s14  ;;  %v8511_v40 = vsel %vm10365_vm15, %v9501_v19, %v8510_v60  ;;  %v7995_v60 = vrot.slane %v7993_v22, 4 }
 0x652   : > { %v8259_v52 = vpop.permute.xlu2 %8258 }
 0x653   : > { %v7542_v47 = vpop.permute.xlu0 %7541 }
 0x654   : > { %7618 = vst.msk [vmem:[#allocation5 + $0x4c] sm:$0xf] %vm3240_vm7, %v7542_v47  ;;  %7549 = vrot.lane.b32.xlu1 %v7474_v15, %s9735_s13  ;;  %v7986_v47 = vrot.slane %v7985_v43, 4  ;;  %v7480_v15 = vrot.slane %v7333_v6, 5  ;;  %v8420_v43 = vld [vmem:[#allocation4 + $0xa8] sm:$0xe] }
 0x655   : > { %v9509_v13 = vrot.slane %v8420_v43, 9 }
 0x656   : > { %v7538_v34 = vpop.permute.xlu1 %7537  ;;  %v7991_v21 = vsel %vm9894_vm11, %v7986_v47, %v7990_v46 }
 0x657   : > { %7616 = vst.msk [vmem:[#allocation5 + $0x44] sm:$0xf] %vm3240_vm7, %v7538_v34 }
 0x658   : > { %7740 = vrot.lane.b32.xlu2 %v7654_v42, %s9736_s14  ;;  %v8170_v42 = vshll.u32 %v7861_v49, 16 }
 0x659   : > { %8636 = vrot.lane.b32.xlu0 %v8560_v56, %s9738_s16  ;;  %v8167_v56 = vor.u32 %v8166_v41, %v8163_v61 }
 0x65a   : > { %v7701_v14 = vpop.permute.xlu2 %7700 }
 0x65b   : > { %v7699_v27 = vpop.permute.xlu0 %7698  ;;  %7794 = vst.msk [vmem:[#allocation5 + $0x8] sm:$0xf] %vm13445_vm5, %v7701_v14  ;;  %v8168_v14 = vrot.slane %v8167_v56, 4  ;;  %v7864_v56 = vld [vmem:[#allocation4 + $0xb8] sm:$0xf]  ;;  %vm13455_vm5 = vmmov %vm13452_vm0 }
 0x65c   : > { %7793 = vst.msk [vmem:[#allocation5 + $0x4] sm:$0xf] %vm13444_vm4, %v7699_v27  ;;  %8300 = vrot.lane.b32.xlu1 %v8149_v9, %s9737_s15  ;;  %v8514_v27 = vsel %vm10365_vm15, %v8512_v29, %v8513_v59  ;;  %v8172_v9 = vrot.slane %v8170_v42, 5  ;;  %v7642_v29 = vld [vmem:[#allocation4 + $0x54] sm:$0xf]  ;;  %v8520_v42 = vrot.slane %v8401_v50, 5  ;;  %vm13454_vm4 = vmmov %vm13452_vm0 }
 0x65d   : > { %8353 = vst.msk [vmem:[#allocation5 + $0x4] sm:$0xf] %vm4088_vm12, %v8259_v52  ;;  %v7479_v52 = vrot.slane %v7477_v3, 4 }
 0x65e   : > { %v7544_v36 = vpop.permute.xlu1 %7543 }
 0x65f   : > { %7619 = vst.msk [vmem:[#allocation5 + $0x50] sm:$0xf] %vm3240_vm7, %v7544_v36  ;;  %v7481_v34 = vsel %vm10365_vm15, %v7479_v52, %v7480_v15  ;;  %v8173_v36 = vsel %vm9894_vm11, %v8168_v14, %v8172_v9  ;;  %v8567_v15 = vsel %vm10365_vm15, %v9509_v13, %v8566_v4  ;;  %v8194_v14 = vshll.u32 %v7864_v56, 16 }
 0x660   : > { %8302 = vrot.lane.b32.xlu2 %v8159_v30, %s9737_s15  ;;  %v8422_v30 = vld [vmem:[#allocation4 + $0xb0] sm:$0x1] }
 0x661   : > { %7714 = vrot.lane.b32.xlu0 %v7641_v20, %s9736_s14  ;;  %v8176_v20 = vrot.slane %v8174_v31, 4  ;;  %v8569_v55 = vrot.slane %v8422_v30, 5  ;;  %v7865_v30 = vld [vmem:[#allocation4 + $0xbc] sm:$0x1] }
 0x662   : > { %v8263_v53 = vpop.permute.xlu2 %8262 }
 0x663   : > { %v8593_v7 = vpop.permute.xlu0 %8592  ;;  %v8177_v51 = vor.u32 %v8176_v20, %v8172_v9  ;;  %v8570_v19 = vsel %vm10365_vm15, %v8568_v57, %v8569_v55  ;;  %v8198_v9 = vshrl.u32 %v7864_v56, 16  ;;  %v7863_v20 = vld [vmem:[#allocation4 + $0xb4] sm:$0xf] }
 0x664   : > { %8638 = vrot.lane.b32.xlu1 %v8563_v16, %s9738_s16  ;;  %v8180_v16 = vshll.u32 %v7862_v58, 16  ;;  %v7658_v57 = vld [vmem:[#allocation4 + $0xb4] sm:$0xf] }
 0x665   : > { %v8200_v4 = vrot.slane %v8198_v9, 4 }
 0x666   : > { %v8257_v62 = vpop.permute.xlu1 %8256  ;;  %v8182_v24 = vrot.slane %v8180_v16, 5  ;;  %v8204_v16 = vshll.u32 %v7865_v30, 16  ;;  %v7337_v30 = vld [vmem:[#allocation4 + $0xb4] sm:$0xe] }
 0x667   : > { %8352 = vst.msk [vmem:[#allocation5] sm:$0xf] %vm4088_vm12, %v8257_v62  ;;  %v7657_v62 = vld [vmem:[#allocation4 + $0xac] sm:$0xf] }
 0x668   : > { %8688 = vst.msk [vmem:[#allocation5] sm:$0xf] %vm4467_vm8, %v8593_v7  ;;  %7712 = vrot.lane.b32.xlu2 %v7640_v12, %s9736_s14  ;;  %v7656_v7 = vld [vmem:[#allocation4 + $0xa8] sm:$0xf]  ;;  %v8178_v12 = vrot.slane %v8177_v51, 4  ;;  %v8206_v43 = vrot.slane %v8204_v16, 5 }
 0x669   : > { %8608 = vrot.lane.b32.xlu0 %v8511_v40, %s9738_s16  ;;  %v7999_v40 = vor.u32 %v7998_v17, %v7995_v60  ;;  %v8188_v60 = vshll.u32 %v7863_v20, 16 }
 0x66a   : > { %v7733_v0 = vpop.permute.xlu2 %7732  ;;  %v8183_v35 = vsel %vm9894_vm11, %v8178_v12, %v8182_v24  ;;  %v7843_v12 = vld [vmem:[#allocation4 + $0x64] sm:$0xf] }
 0x66b   : > { %v7703_v33 = vpop.permute.xlu0 %7702  ;;  %7810 = vst.msk [vmem:[#allocation5 + $0x48] sm:$0xf] %vm13447_vm10, %v7733_v0  ;;  %v8000_v0 = vrot.slane %v7999_v40, 4  ;;  %vm13457_vm10 = vmmov %vm13452_vm0 }
 0x66c   : > { %7795 = vst.msk [vmem:[#allocation5 + $0xc] sm:$0xf] %vm13446_vm9, %v7703_v33  ;;  %8272 = vrot.lane.b32.xlu1 %v7981_v37, %s9737_s15  ;;  %v8400_v33 = vld [vmem:[#allocation4 + $0x58] sm:$0xf]  ;;  %vm13456_vm9 = vmmov %vm13452_vm0 }
 0x66d   : > { %8355 = vst.msk [vmem:[#allocation5 + $0xc] sm:$0xf] %vm4088_vm12, %v8263_v53  ;;  %v7840_v53 = vld [vmem:[#allocation4 + $0x58] sm:$0xf]  ;;  %v8517_v61 = vrot.slane %v8400_v33, 5  ;;  %v8030_v33 = vshrl.u32 %v7843_v12, 16 }
 0x66e   : > { %v8595_v11 = vpop.permute.xlu1 %8594  ;;  %v8002_v44 = vshll.u32 %v7840_v53, 16  ;;  %v8006_v6 = vshrl.u32 %v7840_v53, 16  ;;  %v8185_v53 = vshrl.u32 %v7863_v20, 16 }
 0x66f   : > { %8689 = vst.msk [vmem:[#allocation5 + $0x4] sm:$0xf] %vm4467_vm8, %v8595_v11  ;;  %v7841_v11 = vld [vmem:[#allocation4 + $0x5c] sm:$0x1] }
 0x670   : > { %8274 = vrot.lane.b32.xlu2 %v7991_v21, %s9737_s15  ;;  %v8004_v63 = vrot.slane %v8002_v44, 5  ;;  %v8008_v41 = vrot.slane %v8006_v6, 4  ;;  %v8012_v59 = vshll.u32 %v7841_v11, 16  ;;  %v8187_v40 = vrot.slane %v8185_v53, 4  ;;  %v7844_v11 = vld [vmem:[#allocation4 + $0x68] sm:$0x1] }
 0x671   : > { %7553 = vrot.lane.b32.xlu0 %v7481_v34, %s9735_s13  ;;  %v8519_v34 = vrot.slane %v8517_v61, 4 }
 0x672   : > { %v8295_v10 = vpop.permute.xlu2 %8294  ;;  %v8005_v52 = vsel %vm9894_vm11, %v8000_v0, %v8004_v63  ;;  %v8009_v21 = vor.u32 %v8008_v41, %v8004_v63  ;;  %v8014_v31 = vrot.slane %v8012_v59, 5  ;;  %v8423_v41 = vld [vmem:[#allocation4 + $0xb4] sm:$0xe] }
 0x673   : > { %v8597_v5 = vpop.permute.xlu0 %8596  ;;  %v9510_v56 = vrot.slane %v8423_v41, 9  ;;  %v7661_v41 = vld [vmem:[#allocation4 + $0xc4] sm:$0xf] }
 0x674   : > { %8610 = vrot.lane.b32.xlu1 %v8514_v27, %s9738_s16  ;;  %v8010_v27 = vrot.slane %v8009_v21, 4 }
 0x676   : > { %v8261_v8 = vpop.permute.xlu1 %8260  ;;  %v9635_v28 = vld [vmem:[#allocation5] sm:$0xff]  ;;  %v8015_v48 = vsel %vm9894_vm11, %v8010_v27, %v8014_v31 }
 0x677   : > { %8354 = vst.msk [vmem:[#allocation5 + $0x8] sm:$0xf] %vm4088_vm12, %v8261_v8  ;;  %9593 = vmatmul.msk.bf16.vlgmr.msra.gmra.mxu1 %vm4666_vm13, %v9635_v28  ;;  %v8399_v8 = vld [vmem:[#allocation4 + $0x54] sm:$0xe]  ;;  %v7334_v28 = vld [vmem:[#allocation4 + $0xa8] sm:$0xe] }
 0x678   : > { %8690 = vst.msk [vmem:[#allocation5 + $0x8] sm:$0xf] %vm4467_vm8, %v8597_v5  ;;  %7551 = vrot.lane.b32.xlu2 %v7478_v1, %s9735_s13  ;;  %v7643_v5 = vld [vmem:[#allocation4 + $0x58] sm:$0xf]  ;;  %v13018_v1 = vrot.slane %v8194_v14, 5  ;;  %v9502_v58 = vrot.slane %v8399_v8, 9 }
 0x679   : > { %8304 = vrot.lane.b32.xlu0 %v8173_v36, %s9737_s15  ;;  %v7335_v36 = vld [vmem:[#allocation4 + $0xac] sm:$0xf] }
 0x67a   : > { %v7705_v39 = vpop.permute.xlu2 %7704  ;;  %v8518_v55 = vsel %vm10365_vm15, %v9502_v58, %v8517_v61  ;;  %v8201_v51 = vor.u32 %v8200_v4, %v13018_v1  ;;  %v8032_v61 = vrot.slane %v8030_v33, 4  ;;  %v7338_v58 = vld [vmem:[#allocation4 + $0xb8] sm:$0xf] }
 0x67b   : > { %v7735_v45 = vpop.permute.xlu0 %7734  ;;  %7796 = vst.msk [vmem:[#allocation5 + $0x10] sm:$0xf] %vm13449_vm1, %v7705_v39  ;;  %v7484_v39 = vrot.slane %v7335_v36, 5  ;;  %v7491_v53 = vrot.slane %v7338_v58, 5  ;;  %v7846_v58 = vld [vmem:[#allocation4 + $0x70] sm:$0xf]  ;;  %vm13459_vm1 = vmmov %vm13452_vm0 }
 0x67c   : > { %7811 = vst.msk [vmem:[#allocation5 + $0x4c] sm:$0xf] %vm13448_vm14, %v7735_v45  ;;  %7744 = vrot.lane.b32.xlu1 %v7656_v7, %s9736_s14  ;;  %v9494_v45 = vrot.slane %v7334_v28, 9  ;;  %v7336_v7 = vld [vmem:[#allocation4 + $0xb0] sm:$0x1]  ;;  %v8202_v24 = vrot.slane %v8201_v51, 4  ;;  %vm13458_vm14 = vmmov %vm13452_vm0 }
 0x67d   : > { %8371 = vst.msk [vmem:[#allocation5 + $0x4c] sm:$0xf] %vm4088_vm12, %v8295_v10  ;;  %v8521_v10 = vsel %vm10365_vm15, %v8519_v34, %v8520_v42  ;;  %v7644_v34 = vld [vmem:[#allocation4 + $0x60] sm:$0xf]  ;;  %v7493_v33 = vrot.slane %v7491_v53, 4 }
 0x67e   : > { %v8599_v2 = vpop.permute.xlu1 %8598  ;;  %v7485_v44 = vsel %vm10365_vm15, %v9494_v45, %v7484_v39  ;;  %v8207_v63 = vsel %vm9894_vm11, %v8202_v24, %v8206_v43  ;;  %v8404_v43 = vld [vmem:[#allocation4 + $0x68] sm:$0x1] }
 0x67f   : > { %8691 = vst.msk [vmem:[#allocation5 + $0xc] sm:$0xf] %vm4467_vm8, %v8599_v2 }
 0x680   : > { %7746 = vrot.lane.b32.xlu2 %v7657_v62, %s9736_s14  ;;  %v7487_v62 = vrot.slane %v7336_v7, 5  ;;  %v9495_v7 = vrot.slane %v7337_v30, 9 }
 0x681   : > { %8642 = vrot.lane.b32.xlu0 %v8570_v19, %s9738_s16  ;;  %v7486_v19 = vrot.slane %v7484_v39, 4  ;;  %v7645_v39 = vld [vmem:[#allocation4 + $0x64] sm:$0xf] }
 0x682   : > { %v8267_v25 = vpop.permute.xlu2 %8266 }
 0x683   : > { %v8629_v3 = vpop.permute.xlu0 %8628  ;;  %v7488_v6 = vsel %vm10365_vm15, %v7486_v19, %v7487_v62  ;;  %v7866_v19 = vld [vmem:[#allocation4 + $0xc0] sm:$0xf] }
 0x684   : > { %8306 = vrot.lane.b32.xlu1 %v8183_v35, %s9737_s15  ;;  %v8026_v35 = vshll.u32 %v7843_v12, 16 }
 0x686   : > { %v8293_v37 = vpop.permute.xlu1 %8292  ;;  %v9636_v47 = vld [vmem:[#allocation5 + $0x8] sm:$0xff] }
 0x687   : > { %8370 = vst.msk [vmem:[#allocation5 + $0x48] sm:$0xf] %vm4088_vm12, %v8293_v37  ;;  %9594 = vmatmul.msk.bf16.gmra.mxu1 %vm4666_vm13, %v9636_v47  ;;  %v7659_v47 = vld [vmem:[#allocation4 + $0xb8] sm:$0xf] }
 0x688   : > { %8706 = vst.msk [vmem:[#allocation5 + $0x48] sm:$0xf] %vm4467_vm8, %v8629_v3  ;;  %8640 = vrot.lane.b32.xlu2 %v8567_v15, %s9738_s16  ;;  %v8190_v3 = vrot.slane %v8188_v60, 5  ;;  %v13041_v15 = vrot.slane %v8026_v35, 5  ;;  %v8402_v60 = vld [vmem:[#allocation4 + $0x60] sm:$0xe] }
 0x689   : > { %8276 = vrot.lane.b32.xlu0 %v8005_v52, %s9737_s15  ;;  %v9503_v62 = vrot.slane %v8402_v60, 9  ;;  %v8054_v60 = vshrl.u32 %v7846_v58, 16 }
 0x68a   : > { %v7546_v46 = vpop.permute.xlu2 %7545  ;;  %v8191_v13 = vor.u32 %v8190_v3, %v8187_v40  ;;  %v8033_v59 = vor.u32 %v8032_v61, %v13041_v15  ;;  %v7339_v40 = vld [vmem:[#allocation4 + $0xbc] sm:$0x1]  ;;  %v8209_v3 = vshrl.u32 %v7866_v19, 16 }
 0x68b   : > { %v7707_v49 = vpop.permute.xlu0 %7706  ;;  %7620 = vst.msk [vmem:[#allocation5 + $0x54] sm:$0xf] %vm3240_vm7, %v7546_v46 }
 0x68c   : > { %7797 = vst.msk [vmem:[#allocation5 + $0x14] sm:$0xf] %vm13450_vm2, %v7707_v49  ;;  %7716 = vrot.lane.b32.xlu1 %v7642_v29, %s9736_s14  ;;  %v8192_v52 = vrot.slane %v8191_v13, 4  ;;  %v8424_v49 = vld [vmem:[#allocation4 + $0xb8] sm:$0xf]  ;;  %v8527_v13 = vrot.slane %v8404_v43, 5  ;;  %vm13460_vm2 = vmmov %vm13452_vm0 }
 0x68d   : > { %8357 = vst.msk [vmem:[#allocation5 + $0x14] sm:$0xf] %vm4088_vm12, %v8267_v25  ;;  %v7842_v29 = vld [vmem:[#allocation4 + $0x60] sm:$0xf]  ;;  %v8573_v42 = vrot.slane %v8424_v49, 5 }
 0x68e   : > { %v8631_v32 = vpop.permute.xlu1 %8630  ;;  %v8197_v21 = vsel %vm9894_vm11, %v8192_v52, %v13018_v1  ;;  %v8020_v27 = vshll.u32 %v7842_v29, 16 }
 0x68f   : > { %8707 = vst.msk [vmem:[#allocation5 + $0x4c] sm:$0xf] %vm4467_vm8, %v8631_v32  ;;  %v8425_v32 = vld [vmem:[#allocation4 + $0xbc] sm:$0x1]  ;;  %v8574_v31 = vsel %vm10365_vm15, %v9510_v56, %v8573_v42 }
 0x690   : > { %7718 = vrot.lane.b32.xlu2 %v7643_v5, %s9736_s14  ;;  %v8036_v5 = vshll.u32 %v7844_v11, 16  ;;  %v8576_v8 = vrot.slane %v8425_v32, 5  ;;  %v8022_v36 = vrot.slane %v8020_v27, 5 }
 0x691   : > { %8614 = vrot.lane.b32.xlu0 %v8521_v10, %s9738_s16  ;;  %v8017_v10 = vshrl.u32 %v7842_v29, 16 }
 0x692   : > { %v8297_v26 = vpop.permute.xlu2 %8296  ;;  %v8038_v28 = vrot.slane %v8036_v5, 5  ;;  %v7868_v5 = vld [vmem:[#allocation4 + $0xc8] sm:$0x1] }
 0x693   : > { %v8601_v38 = vpop.permute.xlu0 %8600 }
 0x694   : > { %8278 = vrot.lane.b32.xlu1 %v8015_v48, %s9737_s15  ;;  %v8019_v48 = vrot.slane %v8017_v10, 4 }
 0x696   : > { %v8265_v22 = vpop.permute.xlu1 %8264  ;;  %v9644_v54 = vld [vmem:[#allocation5 + $0x48] sm:$0xff] }
 0x697   : > { %8356 = vst.msk [vmem:[#allocation5 + $0x10] sm:$0xf] %vm4088_vm12, %v8265_v22  ;;  %9602 = vmatmul.msk.bf16.vlgmr.msra.gmra.mxu3 %vm4666_vm13, %v9644_v54  ;;  %v8023_v22 = vor.u32 %v8022_v36, %v8019_v48 }
 0x698   : > { %8692 = vst.msk [vmem:[#allocation5 + $0x10] sm:$0xf] %vm4467_vm8, %v8601_v38  ;;  %8612 = vrot.lane.b32.xlu2 %v8518_v55, %s9738_s16  ;;  %v8034_v38 = vrot.slane %v8033_v59, 4 }
 0x699   : > { %7748 = vrot.lane.b32.xlu0 %v7658_v57, %s9736_s14  ;;  %v8403_v57 = vld [vmem:[#allocation4 + $0x64] sm:$0xf]  ;;  %v8024_v55 = vrot.slane %v8023_v22, 4  ;;  %v8428_v22 = vld [vmem:[#allocation4 + $0xc8] sm:$0x1] }
 0x69a   : > { %v8635_v2 = vpop.permute.xlu2 %8634  ;;  %v8039_v4 = vsel %vm9894_vm11, %v8034_v38, %v8038_v28 }
 0x69b   : > { %v7737_v17 = vpop.permute.xlu0 %7736 }
 0x69c   : > { %7812 = vst.msk [vmem:[#allocation5 + $0x50] sm:$0xf] %vm13451_vm6, %v7737_v17  ;;  %7555 = vrot.lane.b32.xlu1 %v7485_v44, %s9735_s13  ;;  %v7492_v17 = vsel %vm10365_vm15, %v9495_v7, %v7491_v53  ;;  %v8524_v44 = vrot.slane %v8403_v57, 5  ;;  %v8050_v57 = vshll.u32 %v7846_v58, 16  ;;  %v7848_v58 = vld [vmem:[#allocation4 + $0x78] sm:$0xf]  ;;  %vm13461_vm6 = vmmov %vm13452_vm0 }
 0x69d   : > { %8372 = vst.msk [vmem:[#allocation5 + $0x50] sm:$0xf] %vm4088_vm12, %v8297_v26  ;;  %v8575_v26 = vrot.slane %v8573_v42, 4 }
 0x69e   : > { %v8603_v25 = vpop.permute.xlu1 %8602  ;;  %v8525_v35 = vsel %vm10365_vm15, %v9503_v62, %v8524_v44 }
 0x69f   : > { %8693 = vst.msk [vmem:[#allocation5 + $0x14] sm:$0xf] %vm4467_vm8, %v8603_v25  ;;  %v8577_v20 = vsel %vm10365_vm15, %v8575_v26, %v8576_v8  ;;  %v8212_v25 = vshll.u32 %v7866_v19, 16  ;;  %v8228_v8 = vshll.u32 %v7868_v5, 16 }
 0x6a0   : > { %7557 = vrot.lane.b32.xlu2 %v7488_v6, %s9735_s13  ;;  %v7867_v6 = vld [vmem:[#allocation4 + $0xc4] sm:$0xf] }
 0x6a1   : > { %8310 = vrot.lane.b32.xlu0 %v8207_v63, %s9737_s15  ;;  %v8526_v63 = vrot.slane %v8524_v44, 4  ;;  %v8214_v52 = vrot.slane %v8212_v25, 5  ;;  %v8222_v61 = vshrl.u32 %v7867_v6, 16  ;;  %v8230_v30 = vrot.slane %v8228_v8, 5  ;;  %v13114_v25 = vld [vmem:[#allocation4 + $0xc4] sm:$0xf] }
 0x6a2   : > { %v8269_v37 = vpop.permute.xlu2 %8268 }
 0x6a3   : > { %v8299_v0 = vpop.permute.xlu0 %8298  ;;  %v8528_v49 = vsel %vm10365_vm15, %v8526_v63, %v8527_v13  ;;  %v8224_v32 = vrot.slane %v8222_v61, 4  ;;  %v7342_v61 = vld [vmem:[#allocation4 + $0xc8] sm:$0x1] }
 0x6a4   : > { %7750 = vrot.lane.b32.xlu1 %v7659_v47, %s9736_s14  ;;  %v8211_v47 = vrot.slane %v8209_v3, 4  ;;  %v8056_v3 = vrot.slane %v8054_v60, 4 }
 0x6a6   : > { %v7739_v46 = vpop.permute.xlu1 %7738  ;;  %v9637_v50 = vld [vmem:[#allocation5 + $0x10] sm:$0xff]  ;;  %v8215_v42 = vor.u32 %v8214_v52, %v8211_v47  ;;  %v7498_v47 = vrot.slane %v13114_v25, 5 }
 0x6a7   : > { %7813 = vst.msk [vmem:[#allocation5 + $0x54] sm:$0xf] %vm13452_vm0, %v7739_v46  ;;  %9595 = vmatmul.msk.bf16.gmra.mxu1 %vm4666_vm13, %v9637_v50  ;;  %v8426_v46 = vld [vmem:[#allocation4 + $0xc0] sm:$0xe]  ;;  %v8427_v50 = vld [vmem:[#allocation4 + $0xc4] sm:$0xf] }
 0x6a8   : > { %8373 = vst.msk [vmem:[#allocation5 + $0x54] sm:$0xf] %vm4088_vm12, %v8299_v0  ;;  %8308 = vrot.lane.b32.xlu2 %v8197_v21, %s9737_s15  ;;  %v7494_v0 = vrot.slane %v7339_v40, 5  ;;  %v9511_v21 = vrot.slane %v8426_v46, 9  ;;  %v8580_v56 = vrot.slane %v8427_v50, 5  ;;  %v8216_v38 = vrot.slane %v8215_v42, 4 }
 0x6a9   : > { %7720 = vrot.lane.b32.xlu0 %v7644_v34, %s9736_s14  ;;  %8709 = vst.msk [vmem:[#allocation5 + $0x54] sm:$0xf] %vm4467_vm8, %v8635_v2  ;;  %v8029_v2 = vsel %vm9894_vm11, %v8024_v55, %v13041_v15  ;;  %v8218_v15 = vshll.u32 %v7867_v6, 16  ;;  %v8052_v40 = vrot.slane %v8050_v57, 5  ;;  %vm9176_vm0 = vcmask 64512  }
 0x6aa   : > { %v8607_v9 = vpop.permute.xlu2 %8606  ;;  %v7495_v34 = vsel %vm10365_vm15, %v7493_v33, %v7494_v0 }
 0x6ab   : > { %v7709_v14 = vpop.permute.xlu0 %7708  ;;  %v8220_v59 = vrot.slane %v8218_v15, 5  ;;  %v8057_v52 = vor.u32 %v8056_v3, %v8052_v40  ;;  %v7663_v3 = vld [vmem:[#allocation4 + $0xd0] sm:$0xf] }
 0x6ac   : > { %7798 = vst.msk [vmem:[#allocation5 + $0x18] sm:$0xf] %vm13453_vm3, %v7709_v14  ;;  %8644 = vrot.lane.b32.xlu1 %v8574_v31, %s9738_s16  ;;  %v7845_v14 = vld [vmem:[#allocation4 + $0x6c] sm:$0xf]  ;;  %v7660_v31 = vld [vmem:[#allocation4 + $0xc0] sm:$0xf]  ;;  %vm13462_vm3 = vmmov %vm13459_vm1 }
 0x6ad   : > { %8358 = vst.msk [vmem:[#allocation5 + $0x18] sm:$0xf] %vm4088_vm12, %v8269_v37  ;;  %v8225_v26 = vor.u32 %v8224_v32, %v8220_v59  ;;  %v8041_v36 = vshrl.u32 %v7845_v14, 16 }
 0x6ae   : > { %v8633_v1 = vpop.permute.xlu1 %8632 }
 0x6af   : > { %8708 = vst.msk [vmem:[#allocation5 + $0x50] sm:$0xf] %vm4467_vm8, %v8633_v1  ;;  %v8044_v1 = vshll.u32 %v7845_v14, 16  ;;  %v8043_v7 = vrot.slane %v8041_v36, 4 }
 0x6b0   : > { %8646 = vrot.lane.b32.xlu2 %v8577_v20, %s9738_s16  ;;  %v8226_v20 = vrot.slane %v8225_v26, 4  ;;  %v7340_v26 = vld [vmem:[#allocation4 + $0xc0] sm:$0xe] }
 0x6b1   : > { %8282 = vrot.lane.b32.xlu0 %v8039_v4, %s9737_s15  ;;  %v8221_v4 = vsel %vm9894_vm11, %v8216_v38, %v8220_v59  ;;  %v8046_v53 = vrot.slane %v8044_v1, 5  ;;  %v8407_v59 = vld [vmem:[#allocation4 + $0x74] sm:$0x1] }
 0x6b2   : > { %v7741_v45 = vpop.permute.xlu2 %7740  ;;  %v8231_v55 = vsel %vm9894_vm11, %v8226_v20, %v8230_v30  ;;  %v8534_v38 = vrot.slane %v8407_v59, 5  ;;  %v9496_v30 = vrot.slane %v7340_v26, 9  ;;  %v8410_v59 = vld [vmem:[#allocation4 + $0x80] sm:$0x1] }
 0x6b3   : > { %v8271_v54 = vpop.permute.xlu0 %8270  ;;  %v8047_v62 = vor.u32 %v8046_v53, %v8043_v7  ;;  %v8431_v7 = vld [vmem:[#allocation4 + $0xd4] sm:$0x1] }
 0x6b4   : > { %7722 = vrot.lane.b32.xlu1 %v7645_v39, %s9736_s14  ;;  %v8405_v39 = vld [vmem:[#allocation4 + $0x6c] sm:$0xe]  ;;  %v7871_v53 = vld [vmem:[#allocation4 + $0xd4] sm:$0x1]  ;;  %v7499_v57 = vsel %vm10365_vm15, %v9496_v30, %v7498_v47 }
 0x6b5   : > { %v9504_v19 = vrot.slane %v8405_v39, 9  ;;  %v8048_v33 = vrot.slane %v8047_v62, 4 }
 0x6b6   : > { %v7711_v51 = vpop.permute.xlu1 %7710  ;;  %v9645_v16 = vld [vmem:[#allocation5 + $0x50] sm:$0xff] }
 0x6b7   : > { %7799 = vst.msk [vmem:[#allocation5 + $0x1c] sm:$0xf] %vm13454_vm4, %v7711_v51  ;;  %9603 = vmatmul.msk.bf16.gmra.mxu3 %vm4666_vm13, %v9645_v16  ;;  %v8582_v51 = vrot.slane %v8580_v56, 4  ;;  %v8583_v16 = vrot.slane %v8428_v22, 5  ;;  %vm13465_vm4 = vmmov %vm13459_vm1 }
 0x6b8   : > { %8359 = vst.msk [vmem:[#allocation5 + $0x1c] sm:$0xf] %vm4088_vm12, %v8271_v54  ;;  %8280 = vrot.lane.b32.xlu2 %v8029_v2, %s9737_s15  ;;  %v7647_v54 = vld [vmem:[#allocation4 + $0x70] sm:$0xf] }
 0x6b9   : > { %7559 = vrot.lane.b32.xlu0 %v7492_v17, %s9735_s13  ;;  %8695 = vst.msk [vmem:[#allocation5 + $0x1c] sm:$0xf] %vm4467_vm8, %v8607_v9  ;;  %v8581_v9 = vsel %vm10365_vm15, %v9511_v21, %v8580_v56  ;;  %v8406_v17 = vld [vmem:[#allocation4 + $0x70] sm:$0xf]  ;;  %v7501_v21 = vrot.slane %v7342_v61, 5  ;;  %v8058_v56 = vrot.slane %v8057_v52, 4 }
 0x6ba   : > { %v8303_v24 = vpop.permute.xlu2 %8302  ;;  %v8531_v43 = vrot.slane %v8406_v17, 5  ;;  %v8590_v17 = vrot.slane %v8431_v7, 5  ;;  %v13162_v61 = vld [vmem:[%s13425_s5] ss:$0 sm:$0xff]  ;;  %v9081_v7 = vld [vmem:[%s9839_s8 + $0x8] sm:$0xff] }
 0x6bb   : > { %v7548_v12 = vpop.permute.xlu0 %7547 }
 0x6bc   : > { %7621 = vst.msk [vmem:[#allocation5 + $0x58] sm:$0xf] %vm3240_vm7, %v7548_v12  ;;  %8616 = vrot.lane.b32.xlu1 %v8525_v35, %s9738_s16  ;;  %v7869_v12 = vld [vmem:[#allocation4 + $0xcc] sm:$0xf]  ;;  %v7847_v35 = vld [vmem:[#allocation4 + $0x74] sm:$0x1]  ;;  %v8532_v0 = vsel %vm10365_vm15, %v9504_v19, %v8531_v43 }
 0x6bd   : > { %7814 = vst.msk [vmem:[#allocation5 + $0x58] sm:$0xf] %vm13455_vm5, %v7741_v45  ;;  %v8233_v63 = vshrl.u32 %v7869_v12, 16  ;;  %v8236_v6 = vshll.u32 %v7869_v12, 16  ;;  %v8060_v15 = vshll.u32 %v7847_v35, 16  ;;  %vm13466_vm5 = vmmov %vm13459_vm1 }
 0x6be   : > { %v8605_v37 = vpop.permute.xlu1 %8604 }
 0x6bf   : > { %8694 = vst.msk [vmem:[#allocation5 + $0x18] sm:$0xf] %vm4467_vm8, %v8605_v37  ;;  %v7646_v37 = vld [vmem:[#allocation4 + $0x6c] sm:$0xf]  ;;  %v8062_v42 = vrot.slane %v8060_v15, 5 }
 0x6c0   : > { %8618 = vrot.lane.b32.xlu2 %v8528_v49, %s9738_s16  ;;  %v8238_v49 = vrot.slane %v8236_v6, 5 }
 0x6c1   : > { %7754 = vrot.lane.b32.xlu0 %v7661_v41, %s9736_s14  ;;  %v8235_v41 = vrot.slane %v8233_v63, 4 }
 0x6c2   : > { %v7713_v29 = vpop.permute.xlu2 %7712 }
 0x6c3   : > { %v7743_v11 = vpop.permute.xlu0 %7742  ;;  %7800 = vst.msk [vmem:[#allocation5 + $0x20] sm:$0xf] %vm13456_vm9, %v7713_v29  ;;  %v7870_v29 = vld [vmem:[#allocation4 + $0xd0] sm:$0xf]  ;;  %v8239_v32 = vor.u32 %v8238_v49, %v8235_v41  ;;  %vm13467_vm9 = vmmov %vm13459_vm1 }
 0x6c4   : > { %7561 = vrot.lane.b32.xlu1 %v7495_v34, %s9735_s13  ;;  %v7500_v34 = vrot.slane %v7498_v47, 4  ;;  %v8242_v5 = vshll.u32 %v7870_v29, 16 }
 0x6c5   : > { %v8240_v8 = vrot.slane %v8239_v32, 4 }
 0x6c6   : > { %v7550_v10 = vpop.permute.xlu1 %7549  ;;  %v9638_v27 = vld [vmem:[#allocation5 + $0x18] sm:$0xff]  ;;  %v7502_v14 = vsel %vm10365_vm15, %v7500_v34, %v7501_v21 }
 0x6c7   : > { %7622 = vst.msk [vmem:[#allocation5 + $0x5c] sm:$0xf] %vm3240_vm7, %v7550_v10  ;;  %9596 = vmatmul.msk.bf16.gmra.mxu1 %vm4666_vm13, %v9638_v27 }
 0x6c8   : > { %7815 = vst.msk [vmem:[#allocation5 + $0x5c] sm:$0xf] %vm13457_vm10, %v7743_v11  ;;  %7752 = vrot.lane.b32.xlu2 %v7660_v31, %s9736_s14  ;;  %v8053_v11 = vsel %vm9894_vm11, %v8048_v33, %v8052_v40  ;;  %v8533_v31 = vrot.slane %v8531_v43, 4  ;;  %v7849_v43 = vld [vmem:[#allocation4 + $0x7c] sm:$0xf]  ;;  %vm13468_vm10 = vmmov %vm13459_vm1 }
 0x6c9   : > { %8648 = vrot.lane.b32.xlu0 %v8581_v9, %s9738_s16  ;;  %8375 = vst.msk [vmem:[#allocation5 + $0x5c] sm:$0xf] %vm4088_vm12, %v8303_v24  ;;  %v8584_v24 = vsel %vm10365_vm15, %v8582_v51, %v8583_v16  ;;  %v8063_v9 = vsel %vm9894_vm11, %v8058_v56, %v8062_v42  ;;  %v8068_v51 = vshll.u32 %v7848_v58, 16  ;;  %v7662_v16 = vld [vmem:[#allocation4 + $0xcc] sm:$0xf] }
 0x6ca   : > { %v8275_v48 = vpop.permute.xlu2 %8274  ;;  %v8535_v20 = vsel %vm10365_vm15, %v8533_v31, %v8534_v38  ;;  %v8541_v38 = vrot.slane %v8410_v59, 5 }
 0x6cb   : > { %v8637_v28 = vpop.permute.xlu0 %8636 }
 0x6cc   : > { %8312 = vrot.lane.b32.xlu1 %v8221_v4, %s9737_s15  ;;  %v8430_v4 = vld [vmem:[#allocation4 + $0xd0] sm:$0xf] }
 0x6ce   : > { %v8301_v45 = vpop.permute.xlu1 %8300 }
 0x6cf   : > { %8374 = vst.msk [vmem:[#allocation5 + $0x58] sm:$0xf] %vm4088_vm12, %v8301_v45 }
 0x6d0   : > { %8710 = vst.msk [vmem:[#allocation5 + $0x58] sm:$0xf] %vm4467_vm8, %v8637_v28  ;;  %8314 = vrot.lane.b32.xlu2 %v8231_v55, %s9737_s15  ;;  %v8244_v28 = vrot.slane %v8242_v5, 5  ;;  %v8065_v55 = vshrl.u32 %v7848_v58, 16 }
 0x6d1   : > { %7726 = vrot.lane.b32.xlu0 %v7647_v54, %s9736_s14  ;;  %v8587_v54 = vrot.slane %v8430_v4, 5 }
 0x6d2   : > { %v7552_v44 = vpop.permute.xlu2 %7551  ;;  %v8245_v22 = vsel %vm9894_vm11, %v8240_v8, %v8244_v28  ;;  %v8067_v12 = vrot.slane %v8065_v55, 4  ;;  %v7648_v8 = vld [vmem:[#allocation4 + $0x78] sm:$0xf] }
 0x6d3   : > { %v7715_v2 = vpop.permute.xlu0 %7714  ;;  %7623 = vst.msk [vmem:[#allocation5 + $0x60] sm:$0xf] %vm3240_vm7, %v7552_v44  ;;  %v8589_v60 = vrot.slane %v8587_v54, 4  ;;  %v8252_v44 = vshll.u32 %v7871_v53, 16  ;;  %v8408_v53 = vld [vmem:[#allocation4 + $0x78] sm:$0xe] }
 0x6d4   : > { %7801 = vst.msk [vmem:[#allocation5 + $0x24] sm:$0xf] %vm13458_vm14, %v7715_v2  ;;  %8650 = vrot.lane.b32.xlu1 %v8584_v24, %s9738_s16  ;;  %v8070_v24 = vrot.slane %v8068_v51, 5  ;;  %vm13469_vm14 = vmmov %vm13459_vm1 }
 0x6d5   : > { %8361 = vst.msk [vmem:[#allocation5 + $0x24] sm:$0xf] %vm4088_vm12, %v8275_v48  ;;  %v8246_v48 = vshrl.u32 %v7870_v29, 16  ;;  %v8591_v40 = vsel %vm10365_vm15, %v8589_v60, %v8590_v17  ;;  %v8254_v35 = vrot.slane %v8252_v44, 5  ;;  %v9505_v17 = vrot.slane %v8408_v53, 9 }
 0x6d6   : > { %v8639_v13 = vpop.permute.xlu1 %8638  ;;  %v8071_v33 = vor.u32 %v8070_v24, %v8067_v12  ;;  %v9082_v24 = vld [vmem:[%s9839_s8 + $0x10] sm:$0xff] }
 0x6d7   : > { %8711 = vst.msk [vmem:[#allocation5 + $0x5c] sm:$0xf] %vm4467_vm8, %v8639_v13  ;;  %v8248_v45 = vrot.slane %v8246_v48, 4  ;;  %v8429_v13 = vld [vmem:[#allocation4 + $0xcc] sm:$0xe] }
 0x6d8   : > { %7724 = vrot.lane.b32.xlu2 %v7646_v37, %s9736_s14  ;;  %v9512_v47 = vrot.slane %v8429_v13, 9  ;;  %v8072_v41 = vrot.slane %v8071_v33, 4 }
 0x6d9   : > { %8620 = vrot.lane.b32.xlu0 %v8532_v0, %s9738_s16  ;;  %v8249_v2 = vor.u32 %v8248_v45, %v8244_v28  ;;  %v8074_v0 = vshll.u32 %v7849_v43, 16 }
 0x6da   : > { %v7747_v50 = vpop.permute.xlu2 %7746  ;;  %v8588_v29 = vsel %vm10365_vm15, %v9512_v47, %v8587_v54 }
 0x6db   : > { %v8609_v46 = vpop.permute.xlu0 %8608  ;;  %v8250_v25 = vrot.slane %v8249_v2, 4  ;;  %v8076_v49 = vrot.slane %v8074_v0, 5 }
 0x6dc   : > { %8284 = vrot.lane.b32.xlu1 %v8053_v11, %s9737_s15  ;;  %v13168_v11 = vld [vmem:[%s13426_s6] ss:$0 sm:$0xff] }
 0x6dd   : > { %v8255_v37 = vsel %vm9894_vm11, %v8250_v25, %v8254_v35  ;;  %v8077_v42 = vsel %vm9894_vm11, %v8072_v41, %v8076_v49 }
 0x6de   : > { %v8273_v10 = vpop.permute.xlu1 %8272  ;;  %v9646_v27 = vld [vmem:[#allocation5 + $0x58] sm:$0xff] }
 0x6df   : > { %8360 = vst.msk [vmem:[#allocation5 + $0x20] sm:$0xf] %vm4088_vm12, %v8273_v10  ;;  %9604 = vmatmul.msk.bf16.gmra.mxu3 %vm4666_vm13, %v9646_v27  ;;  %v9080_v10 = vld [vmem:[%s9839_s8] sm:$0xff] }
 0x6e0   : > { %8696 = vst.msk [vmem:[#allocation5 + $0x20] sm:$0xf] %vm4467_vm8, %v8609_v46  ;;  %8286 = vrot.lane.b32.xlu2 %v8063_v9, %s9737_s15  ;;  %v8078_v46 = vshrl.u32 %v7849_v43, 16  ;;  %v7850_v27 = vld [vmem:[#allocation4 + $0x80] sm:$0x1] }
 0x6e1   : > { %7565 = vrot.lane.b32.xlu0 %v7502_v14, %s9735_s13 }
 0x6e2   : > { %v8641_v1 = vpop.permute.xlu2 %8640  ;;  %v8080_v5 = vrot.slane %v8078_v46, 4 }
 0x6e3   : > { %v7554_v36 = vpop.permute.xlu0 %7553 }
 0x6e4   : > { %7624 = vst.msk [vmem:[#allocation5 + $0x64] sm:$0xf] %vm3240_vm7, %v7554_v36  ;;  %8622 = vrot.lane.b32.xlu1 %v8535_v20, %s9738_s16  ;;  %v8081_v48 = vor.u32 %v8080_v5, %v8076_v49  ;;  %v8084_v36 = vshll.u32 %v7850_v27, 16  ;;  %v9099_v27 = vld [vmem:[%s9839_s8 + $0x98] sm:$0xff] }
 0x6e5   : > { %7817 = vst.msk [vmem:[#allocation5 + $0x64] sm:$0xf] %vm13459_vm1, %v7747_v50  ;;  %v8409_v50 = vld [vmem:[#allocation4 + $0x7c] sm:$0xf] }
 0x6e6   : > { %v8611_v39 = vpop.permute.xlu1 %8610  ;;  %v8538_v32 = vrot.slane %v8409_v50, 5  ;;  %v8082_v45 = vrot.slane %v8081_v48, 4 }
 0x6e7   : > { %8697 = vst.msk [vmem:[#allocation5 + $0x24] sm:$0xf] %vm4467_vm8, %v8611_v39  ;;  %v8086_v39 = vrot.slane %v8084_v36, 5 }
 0x6e8   : > { %7563 = vrot.lane.b32.xlu2 %v7499_v57, %s9735_s13  ;;  %v8540_v28 = vrot.slane %v8538_v32, 4  ;;  %v8539_v12 = vsel %vm10365_vm15, %v9505_v17, %v8538_v32 }
 0x6e9   : > { %8316 = vrot.lane.b32.xlu0 %v8245_v22, %s9737_s15  ;;  %v7649_v22 = vld [vmem:[#allocation4 + $0x7c] sm:$0xf]  ;;  %v8087_v60 = vsel %vm9894_vm11, %v8082_v45, %v8086_v39  ;;  %vm13463_vm11 = vmmov %vm13459_vm1  ;;  %v9085_v45 = vld [vmem:[%s9839_s8 + $0x28] sm:$0xff] }
 0x6ea   : > { %v7719_v62 = vpop.permute.xlu2 %7718  ;;  %v8542_v58 = vsel %vm10365_vm15, %v8540_v28, %v8541_v38  ;;  %vm13464_vm15 = vmmov %vm13459_vm1 }
 0x6eb   : > { %v8305_v19 = vpop.permute.xlu0 %8304  ;;  %7803 = vst.msk [vmem:[#allocation5 + $0x2c] sm:$0xf] %vm13460_vm2, %v7719_v62  ;;  %vm13470_vm2 = vmmov %vm13459_vm1 }
 0x6ec   : > { %7756 = vrot.lane.b32.xlu1 %v7662_v16, %s9736_s14 }
 0x6ee   : > { %v7745_v63 = vpop.permute.xlu1 %7744  ;;  %v9639_v6 = vld [vmem:[#allocation5 + $0x20] sm:$0xff] }
 0x6ef   : > { %7816 = vst.msk [vmem:[#allocation5 + $0x60] sm:$0xf] %vm13461_vm6, %v7745_v63  ;;  %9597 = vmatmul.msk.bf16.gmra.mxu1 %vm4666_vm13, %v9639_v6  ;;  %v9083_v6 = vld [vmem:[%s9839_s8 + $0x18] sm:$0xff]  ;;  %vm13471_vm6 = vmmov %vm13459_vm1 }
 0x6f0   : > { %8376 = vst.msk [vmem:[#allocation5 + $0x60] sm:$0xf] %vm4088_vm12, %v8305_v19  ;;  %7758 = vrot.lane.b32.xlu2 %v7663_v3, %s9736_s14 }
 0x6f1   : > { %8654 = vrot.lane.b32.xlu0 %v8591_v40, %s9738_s16  ;;  %8712 = vst.msk [vmem:[#allocation5 + $0x60] sm:$0xf] %vm4467_vm8, %v8641_v1 }
 0x6f2   : > { %v8613_v15 = vpop.permute.xlu2 %8612 }
 0x6f3   : > { %v8643_v52 = vpop.permute.xlu0 %8642 }
 0x6f4   : > { %8318 = vrot.lane.b32.xlu1 %v8255_v37, %s9737_s15  ;;  %v8928_v34 = vpop.f32.mrf.mxu1 }
 0x6f5   : > { %v9012_v56 = vmul.f32 %v13162_v61, %v8928_v34 }
 0x6f6   : > { %v8307_v21 = vpop.permute.xlu1 %8306 }
 0x6f7   : > { %8377 = vst.msk [vmem:[#allocation5 + $0x64] sm:$0xf] %vm4088_vm12, %v8307_v21  ;;  %v9048_v14 = vadd.f32 %v13168_v11, %v9012_v56 }
 0x6f8   : > { %8713 = vst.msk [vmem:[#allocation5 + $0x64] sm:$0xf] %vm4467_vm8, %v8643_v52  ;;  %8652 = vrot.lane.b32.xlu2 %v8588_v29, %s9738_s16  ;;  %v9098_v29 = vld [vmem:[%s9839_s8 + $0x90] sm:$0xff] }
 0x6f9   : > { %8288 = vrot.lane.b32.xlu0 %v8077_v42, %s9737_s15  ;;  %v9112_v26 = vadd.f32 %v9080_v10, %v9048_v14 }
 0x6fa   : > { %v7558_v31 = vpop.permute.xlu2 %7557 }
 0x6fb   : > { %v8277_v9 = vpop.permute.xlu0 %8276  ;;  %7626 = vst.msk [vmem:[#allocation5 + $0x6c] sm:$0xf] %vm3240_vm7, %v7558_v31  ;;  %v9144_v1 = vmax.f32 %v9112_v26, 0.0 }
 0x6fc   : > { %7728 = vrot.lane.b32.xlu1 %v7648_v8, %s9736_s14  ;;  %v8930_v4 = vpop.f32.mrf.mxu1  ;;  %v9084_v8 = vld [vmem:[%s9839_s8 + $0x20] sm:$0xff] }
 0x6fd   : > { %9177 = vst.msk [vmem:[%s13187_s19] sm:$0xff] %vm9176_vm0, %v9144_v1  ;;  %v9013_v30 = vmul.f32 %v13162_v61, %v8930_v4 }
 0x6fe   : > { %v7717_v20 = vpop.permute.xlu1 %7716 }
 0x6ff   : > { %v9647_v54 = vld [vmem:[#allocation5 + $0x60] sm:$0xff]  ;;  %7802 = vst.msk [vmem:[#allocation5 + $0x28] sm:$0xf] %vm13462_vm3, %v7717_v20  ;;  %v9049_v57 = vadd.f32 %v13168_v11, %v9013_v30  ;;  %vm13472_vm3 = vmmov %vm13459_vm1 }
 0x700   : > { %7730 = vrot.lane.b32.xlu2 %v7649_v22, %s9736_s14  ;;  %8362 = vst.msk [vmem:[#allocation5 + $0x28] sm:$0xf] %vm4088_vm12, %v8277_v9  ;;  %9605 = vmatmul.msk.bf16.gmra.mxu3 %vm4666_vm13, %v9647_v54 }
 0x701   : > { %8626 = vrot.lane.b32.xlu0 %v8542_v58, %s9738_s16  ;;  %8698 = vst.msk [vmem:[#allocation5 + $0x28] sm:$0xf] %vm4467_vm8, %v8613_v15  ;;  %v9113_v16 = vadd.f32 %v9081_v7, %v9049_v57 }
 0x702   : > { %v8309_v51 = vpop.permute.xlu2 %8308 }
 0x703   : > { %v8615_v55 = vpop.permute.xlu0 %8614  ;;  %v9145_v2 = vmax.f32 %v9113_v16, 0.0 }
 0x704   : > { %8290 = vrot.lane.b32.xlu1 %v8087_v60, %s9737_s15  ;;  %v8933_v44 = vpop.f32.mrf.mxu1 }
 0x705   : > { %9178 = vst.msk [vmem:[%s13187_s19 + $0x8] sm:$0xff] %vm9176_vm0, %v9145_v2  ;;  %v9014_v62 = vmul.f32 %v13162_v61, %v8933_v44 }
 0x706   : > { %v8279_v19 = vpop.permute.xlu1 %8278 }
 0x707   : > { %8363 = vst.msk [vmem:[#allocation5 + $0x2c] sm:$0xf] %vm4088_vm12, %v8279_v19  ;;  %v9050_v18 = vadd.f32 %v13168_v11, %v9014_v62  ;;  %v9100_v19 = vld [vmem:[%s9839_s8 + $0xa0] sm:$0xff] }
 0x708   : > { %8624 = vrot.lane.b32.xlu2 %v8539_v12, %s9738_s16  ;;  %8699 = vst.msk [vmem:[#allocation5 + $0x2c] sm:$0xf] %vm4467_vm8, %v8615_v55 }
 0x709   : > { %v9114_v3 = vadd.f32 %v9082_v24, %v9050_v18 }
 0x70a   : > { %v8647_v40 = vpop.permute.xlu2 %8646 }
 0x70b   : > { %v7749_v43 = vpop.permute.xlu0 %7748  ;;  %v9146_v25 = vmax.f32 %v9114_v3, 0.0 }
 0x70c   : > { %v8935_v35 = vpop.f32.mrf.mxu1 }
 0x70d   : > { %9179 = vst.msk [vmem:[%s13187_s19 + $0x10] sm:$0xff] %vm9176_vm0, %v9146_v25  ;;  %v9015_v23 = vmul.f32 %v13162_v61, %v8935_v35  ;;  %v9101_v35 = vld [vmem:[%s9839_s8 + $0xa8] sm:$0xff] }
 0x70e   : > { %v7556_v63 = vpop.permute.xlu1 %7555 }
 0x70f   : > { %7625 = vst.msk [vmem:[#allocation5 + $0x68] sm:$0xf] %vm3240_vm7, %v7556_v63  ;;  %v9640_v13 = vld [vmem:[#allocation5 + $0x28] sm:$0xff]  ;;  %v9051_v33 = vadd.f32 %v13168_v11, %v9015_v23 }
 0x710   : > { %7818 = vst.msk [vmem:[#allocation5 + $0x68] sm:$0xf] %vm13463_vm11, %v7749_v43  ;;  %9598 = vmatmul.msk.bf16.gmra.mxu1 %vm4666_vm13, %v9640_v13 }
 0x711   : > { %8378 = vst.msk [vmem:[#allocation5 + $0x68] sm:$0xf] %vm4088_vm12, %v8309_v51  ;;  %v9115_v47 = vadd.f32 %v9083_v6, %v9051_v33  ;;  %v9086_v33 = vld [vmem:[%s9839_s8 + $0x30] sm:$0xff] }
 0x712   : > { %v8281_v37 = vpop.permute.xlu2 %8280 }
 0x713   : > { %v8311_v0 = vpop.permute.xlu0 %8310  ;;  %v9147_v52 = vmax.f32 %v9115_v47, 0.0 }
 0x715   : > { %9180 = vst.msk [vmem:[%s13187_s19 + $0x18] sm:$0xff] %vm9176_vm0, %v9147_v52 }
 0x716   : > { %v7751_v15 = vpop.permute.xlu1 %7750 }
 0x717   : > { %7819 = vst.msk [vmem:[#allocation5 + $0x6c] sm:$0xf] %vm13464_vm15, %v7751_v15 }
 0x718   : > { %8379 = vst.msk [vmem:[#allocation5 + $0x6c] sm:$0xf] %vm4088_vm12, %v8311_v0 }
 0x719   : > { %8715 = vst.msk [vmem:[#allocation5 + $0x6c] sm:$0xf] %vm4467_vm8, %v8647_v40 }
 0x71a   : > { %v8619_v49 = vpop.permute.xlu2 %8618  ;;  %v8973_v46 = vpop.f32.mrf.mxu3 }
 0x71b   : > { %v7721_v41 = vpop.permute.xlu0 %7720  ;;  %v9030_v50 = vmul.f32 %v13162_v61, %v8973_v46 }
 0x71c   : > { %7804 = vst.msk [vmem:[#allocation5 + $0x30] sm:$0xf] %vm13465_vm4, %v7721_v41 }
 0x71d   : > { %8364 = vst.msk [vmem:[#allocation5 + $0x30] sm:$0xf] %vm4088_vm12, %v8281_v37  ;;  %v9066_v21 = vadd.f32 %v13168_v11, %v9030_v50 }
 0x71e   : > { %v8645_v34 = vpop.permute.xlu1 %8644 }
 0x71f   : > { %8714 = vst.msk [vmem:[#allocation5 + $0x68] sm:$0xf] %vm4467_vm8, %v8645_v34  ;;  %v9130_v56 = vadd.f32 %v9098_v29, %v9066_v21  ;;  %v9087_v21 = vld [vmem:[%s9839_s8 + $0x38] sm:$0xff] }
 0x721   : > { %v9162_v32 = vmax.f32 %v9130_v56, 0.0 }
 0x722   : > { %v7753_v59 = vpop.permute.xlu2 %7752  ;;  %v8975_v5 = vpop.f32.mrf.mxu3 }
 0x723   : > { %v8283_v42 = vpop.permute.xlu0 %8282  ;;  %9195 = vst.msk [vmem:[%s13187_s19 + $0x90] sm:$0xff] %vm9176_vm0, %v9162_v32  ;;  %v9031_v10 = vmul.f32 %v13162_v61, %v8975_v5 }
 0x724   : > { %v8938_v14 = vpop.f32.mrf.mxu1 }
 0x725   : > { %v9067_v38 = vadd.f32 %v13168_v11, %v9031_v10  ;;  %v9016_v26 = vmul.f32 %v13162_v61, %v8938_v14 }
 0x726   : > { %v7723_v9 = vpop.permute.xlu1 %7722  ;;  %v9648_v31 = vld [vmem:[#allocation5 + $0x68] sm:$0xff] }
 0x727   : > { %7805 = vst.msk [vmem:[#allocation5 + $0x34] sm:$0xf] %vm13466_vm5, %v7723_v9  ;;  %9606 = vmatmul.msk.bf16.gmra.mxu3 %vm4666_vm13, %v9648_v31  ;;  %v9131_v28 = vadd.f32 %v9099_v27, %v9067_v38  ;;  %v9052_v48 = vadd.f32 %v13168_v11, %v9016_v26 }
 0x728   : > { %8365 = vst.msk [vmem:[#allocation5 + $0x34] sm:$0xf] %vm4088_vm12, %v8283_v42 }
 0x729   : > { %8701 = vst.msk [vmem:[#allocation5 + $0x34] sm:$0xf] %vm4467_vm8, %v8619_v49  ;;  %v9163_v4 = vmax.f32 %v9131_v28, 0.0  ;;  %v9116_v20 = vadd.f32 %v9084_v8, %v9052_v48  ;;  %v9102_v28 = vld [vmem:[%s9839_s8 + $0xb0] sm:$0xff] }
 0x72a   : > { %v8315_v1 = vpop.permute.xlu2 %8314 }
 0x72b   : > { %v7560_v36 = vpop.permute.xlu0 %7559  ;;  %9196 = vst.msk [vmem:[%s13187_s19 + $0x98] sm:$0xff] %vm9176_vm0, %v9163_v4  ;;  %v9148_v30 = vmax.f32 %v9116_v20, 0.0 }
 0x72c   : > { %7627 = vst.msk [vmem:[#allocation5 + $0x70] sm:$0xf] %vm3240_vm7, %v7560_v36  ;;  %v8940_v58 = vpop.f32.mrf.mxu1 }
 0x72d   : > { %7820 = vst.msk [vmem:[#allocation5 + $0x70] sm:$0xf] %vm13467_vm9, %v7753_v59  ;;  %v9017_v54 = vmul.f32 %v13162_v61, %v8940_v58 }
 0x72e   : > { %v8617_v22 = vpop.permute.xlu1 %8616  ;;  %9181 = vst.msk [vmem:[%s13187_s19 + $0x20] sm:$0xff] %vm9176_vm0, %v9148_v30 }
 0x72f   : > { %8700 = vst.msk [vmem:[#allocation5 + $0x30] sm:$0xf] %vm4467_vm8, %v8617_v22  ;;  %v9053_v39 = vadd.f32 %v13168_v11, %v9017_v54  ;;  %v9103_v22 = vld [vmem:[%s9839_s8 + $0xb8] sm:$0xff] }
 0x731   : > { %v9117_v57 = vadd.f32 %v9085_v45, %v9053_v39 }
 0x732   : > { %v7725_v53 = vpop.permute.xlu2 %7724 }
 0x733   : > { %v7755_v7 = vpop.permute.xlu0 %7754  ;;  %7806 = vst.msk [vmem:[#allocation5 + $0x38] sm:$0xf] %vm13468_vm10, %v7725_v53  ;;  %v9149_v55 = vmax.f32 %v9117_v57, 0.0 }
 0x735   : > { %9182 = vst.msk [vmem:[%s13187_s19 + $0x28] sm:$0xff] %vm9176_vm0, %v9149_v55  ;;  %v9088_v55 = vld [vmem:[%s9839_s8 + $0x40] sm:$0xff] }
 0x736   : > { %v7562_v51 = vpop.permute.xlu1 %7561  ;;  %v9641_v16 = vld [vmem:[#allocation5 + $0x30] sm:$0xff] }
 0x737   : > { %7628 = vst.msk [vmem:[#allocation5 + $0x74] sm:$0xf] %vm3240_vm7, %v7562_v51  ;;  %9599 = vmatmul.msk.bf16.gmra.mxu1 %vm4666_vm13, %v9641_v16 }
 0x738   : > { %7821 = vst.msk [vmem:[#allocation5 + $0x74] sm:$0xf] %vm13469_vm14, %v7755_v7 }
 0x739   : > { %8381 = vst.msk [vmem:[#allocation5 + $0x74] sm:$0xf] %vm4088_vm12, %v8315_v1 }
 0x73a   : > { %v8287_v17 = vpop.permute.xlu2 %8286  ;;  %v8978_v2 = vpop.f32.mrf.mxu3 }
 0x73b   : > { %v8649_v60 = vpop.permute.xlu0 %8648  ;;  %v9032_v44 = vmul.f32 %v13162_v61, %v8978_v2 }
 0x73d   : > { %v9068_v12 = vadd.f32 %v13168_v11, %v9032_v44 }
 0x73e   : > { %v8313_v62 = vpop.permute.xlu1 %8312 }
 0x73f   : > { %8380 = vst.msk [vmem:[#allocation5 + $0x70] sm:$0xf] %vm4088_vm12, %v8313_v62  ;;  %v9132_v24 = vadd.f32 %v9100_v19, %v9068_v12 }
 0x740   : > { %8716 = vst.msk [vmem:[#allocation5 + $0x70] sm:$0xf] %vm4467_vm8, %v8649_v60 }
 0x741   : > { %v9164_v40 = vmax.f32 %v9132_v24, 0.0  ;;  %v9089_v24 = vld [vmem:[%s9839_s8 + $0x48] sm:$0xff] }
 0x742   : > { %v7564_v43 = vpop.permute.xlu2 %7563  ;;  %v8980_v3 = vpop.f32.mrf.mxu3 }
 0x743   : > { %v7727_v18 = vpop.permute.xlu0 %7726  ;;  %9197 = vst.msk [vmem:[%s13187_s19 + $0xa0] sm:$0xff] %vm9176_vm0, %v9164_v40  ;;  %v9033_v25 = vmul.f32 %v13162_v61, %v8980_v3 }
 0x744   : > { %7807 = vst.msk [vmem:[#allocation5 + $0x3c] sm:$0xf] %vm13459_vm1, %v7727_v18  ;;  %v8943_v63 = vpop.f32.mrf.mxu1 }
 0x745   : > { %8367 = vst.msk [vmem:[#allocation5 + $0x3c] sm:$0xf] %vm4088_vm12, %v8287_v17  ;;  %v9069_v6 = vadd.f32 %v13168_v11, %v9033_v25  ;;  %v9018_v13 = vmul.f32 %v13162_v61, %v8943_v63  ;;  %v9104_v63 = vld [vmem:[%s9839_s8 + $0xc0] sm:$0xff] }
 0x746   : > { %7629 = vst.msk [vmem:[#allocation5 + $0x78] sm:$0xf] %vm3240_vm7, %v7564_v43  ;;  %v8651_v23 = vpop.permute.xlu1 %8650 }
 0x747   : > { %8717 = vst.msk [vmem:[#allocation5 + $0x74] sm:$0xf] %vm4467_vm8, %v8651_v23  ;;  %v9133_v0 = vadd.f32 %v9101_v35, %v9069_v6  ;;  %v9054_v37 = vadd.f32 %v13168_v11, %v9018_v13 }
 0x749   : > { %v9165_v15 = vmax.f32 %v9133_v0, 0.0  ;;  %v9118_v41 = vadd.f32 %v9086_v33, %v9054_v37  ;;  %v9105_v37 = vld [vmem:[%s9839_s8 + $0xc8] sm:$0xff] }
 0x74a   : > { %v7759_v52 = vpop.permute.xlu2 %7758 }
 0x74b   : > { %v8621_v47 = vpop.permute.xlu0 %8620  ;;  %9198 = vst.msk [vmem:[%s13187_s19 + $0xa8] sm:$0xff] %vm9176_vm0, %v9165_v15  ;;  %v9150_v49 = vmax.f32 %v9118_v41, 0.0 }
 0x74c   : > { %v8945_v46 = vpop.f32.mrf.mxu1 }
 0x74d   : > { %9183 = vst.msk [vmem:[%s13187_s19 + $0x30] sm:$0xff] %vm9176_vm0, %v9150_v49  ;;  %v9019_v34 = vmul.f32 %v13162_v61, %v8945_v46  ;;  %v9090_v49 = vld [vmem:[%s9839_s8 + $0x50] sm:$0xff] }
 0x74e   : > { %v8285_v50 = vpop.permute.xlu1 %8284  ;;  %v9649_v29 = vld [vmem:[#allocation5 + $0x70] sm:$0xff] }
 0x74f   : > { %8366 = vst.msk [vmem:[#allocation5 + $0x38] sm:$0xf] %vm4088_vm12, %v8285_v50  ;;  %9607 = vmatmul.msk.bf16.gmra.mxu3 %vm4666_vm13, %v9649_v29  ;;  %v9055_v56 = vadd.f32 %v13168_v11, %v9019_v34 }
 0x750   : > { %8702 = vst.msk [vmem:[#allocation5 + $0x38] sm:$0xf] %vm4467_vm8, %v8621_v47 }
 0x751   : > { %v9119_v32 = vadd.f32 %v9087_v21, %v9055_v56 }
 0x752   : > { %v8653_v59 = vpop.permute.xlu2 %8652 }
 0x753   : > { %v7566_v42 = vpop.permute.xlu0 %7565  ;;  %v9151_v5 = vmax.f32 %v9119_v32, 0.0 }
 0x754   : > { %7630 = vst.msk [vmem:[#allocation5 + $0x7c] sm:$0xf] %vm3240_vm7, %v7566_v42  ;;  %vm13473_vm7 = vmmov %vm13459_vm1  ;;  %v9091_v42 = vld [vmem:[%s9839_s8 + $0x58] sm:$0xff] }
 0x755   : > { %7823 = vst.msk [vmem:[#allocation5 + $0x7c] sm:$0xf] %vm13470_vm2, %v7759_v52 }
 0x756   : > { %v8623_v10 = vpop.permute.xlu1 %8622  ;;  %9184 = vst.msk [vmem:[%s13187_s19 + $0x38] sm:$0xff] %vm9176_vm0, %v9151_v5 }
 0x757   : > { %8703 = vst.msk [vmem:[#allocation5 + $0x3c] sm:$0xf] %vm4467_vm8, %v8623_v10 }
 0x75a   : > { %v7731_v14 = vpop.permute.xlu2 %7730 }
 0x75b   : > { %v8317_v27 = vpop.permute.xlu0 %8316  ;;  %7809 = vst.msk [vmem:[#allocation5 + $0x44] sm:$0xf] %vm13471_vm6, %v7731_v14  ;;  %v9106_v14 = vld [vmem:[%s9839_s8 + $0xd0] sm:$0xff] }
 0x75e   : > { %v7757_v9 = vpop.permute.xlu1 %7756  ;;  %v9642_v31 = vld [vmem:[#allocation5 + $0x38] sm:$0xff] }
 0x75f   : > { %7822 = vst.msk [vmem:[#allocation5 + $0x78] sm:$0xf] %vm13472_vm3, %v7757_v9  ;;  %9600 = vmatmul.msk.bf16.gmra.mxu1 %vm4666_vm13, %v9642_v31 }
 0x760   : > { %8382 = vst.msk [vmem:[#allocation5 + $0x78] sm:$0xf] %vm4088_vm12, %v8317_v27 }
 0x761   : > { %8718 = vst.msk [vmem:[#allocation5 + $0x78] sm:$0xf] %vm4467_vm8, %v8653_v59 }
 0x762   : > { %v8983_v26 = vpop.f32.mrf.mxu3  ;;  %v8625_v57 = vpop.permute.xlu2 %8624 }
 0x763   : > { %v8655_v38 = vpop.permute.xlu0 %8654  ;;  %v9034_v8 = vmul.f32 %v13162_v61, %v8983_v26 }
 0x765   : > { %v9070_v36 = vadd.f32 %v13168_v11, %v9034_v8 }
 0x766   : > { %v8319_v48 = vpop.permute.xlu1 %8318 }
 0x767   : > { %8383 = vst.msk [vmem:[#allocation5 + $0x7c] sm:$0xf] %vm4088_vm12, %v8319_v48  ;;  %v9134_v1 = vadd.f32 %v9102_v28, %v9070_v36  ;;  %v9107_v28 = vld [vmem:[%s9839_s8 + $0xd8] sm:$0xff] }
 0x768   : > { %8719 = vst.msk [vmem:[#allocation5 + $0x7c] sm:$0xf] %vm4467_vm8, %v8655_v38 }
 0x769   : > { %v9166_v4 = vmax.f32 %v9134_v1, 0.0 }
 0x76a   : > { %v8985_v20 = vpop.f32.mrf.mxu3 }
 0x76b   : > { %9199 = vst.msk [vmem:[%s13187_s19 + $0xb0] sm:$0xff] %vm9176_vm0, %v9166_v4  ;;  %v8289_v30 = vpop.permute.xlu0 %8288  ;;  %v9035_v58 = vmul.f32 %v13162_v61, %v8985_v20  ;;  %v9092_v20 = vld [vmem:[%s9839_s8 + $0x60] sm:$0xff] }
 0x76c   : > { %v8948_v54 = vpop.f32.mrf.mxu1 }
 0x76d   : > { %v9071_v39 = vadd.f32 %v13168_v11, %v9035_v58  ;;  %v9020_v7 = vmul.f32 %v13162_v61, %v8948_v54 }
 0x76e   : > { %v7729_v45 = vpop.permute.xlu1 %7728 }
 0x76f   : > { %7808 = vst.msk [vmem:[#allocation5 + $0x40] sm:$0xf] %vm13473_vm7, %v7729_v45  ;;  %v9650_v53 = vld [vmem:[#allocation5 + $0x78] sm:$0xff]  ;;  %v9135_v51 = vadd.f32 %v9103_v22, %v9071_v39  ;;  %v9056_v16 = vadd.f32 %v13168_v11, %v9020_v7  ;;  %v9093_v7 = vld [vmem:[%s9839_s8 + $0x68] sm:$0xff] }
 0x770   : > { %8368 = vst.msk [vmem:[#allocation5 + $0x40] sm:$0xf] %vm4088_vm12, %v8289_v30  ;;  %9608 = vmatmul.msk.bf16.gmra.mxu3 %vm4666_vm13, %v9650_v53 }
 0x771   : > { %8704 = vst.msk [vmem:[#allocation5 + $0x40] sm:$0xf] %vm4467_vm8, %v8625_v57  ;;  %v9167_v60 = vmax.f32 %v9135_v51, 0.0  ;;  %v9120_v17 = vadd.f32 %v9088_v55, %v9056_v16 }
 0x773   : > { %9200 = vst.msk [vmem:[%s13187_s19 + $0xb8] sm:$0xff] %vm9176_vm0, %v9167_v60  ;;  %v9152_v2 = vmax.f32 %v9120_v17, 0.0  ;;  %v8627_v12 = vpop.permute.xlu0 %8626  ;;  %v9108_v60 = vld [vmem:[%s9839_s8 + $0xe0] sm:$0xff] }
 0x774   : > { %v8950_v44 = vpop.f32.mrf.mxu1 }
 0x775   : > { %9185 = vst.msk [vmem:[%s13187_s19 + $0x40] sm:$0xff] %vm9176_vm0, %v9152_v2  ;;  %v9021_v62 = vmul.f32 %v13162_v61, %v8950_v44 }
 0x776   : > { %v8291_v19 = vpop.permute.xlu1 %8290 }
 0x777   : > { %8369 = vst.msk [vmem:[#allocation5 + $0x44] sm:$0xf] %vm4088_vm12, %v8291_v19  ;;  %v9057_v18 = vadd.f32 %v13168_v11, %v9021_v62 }
 0x778   : > { %8705 = vst.msk [vmem:[#allocation5 + $0x44] sm:$0xf] %vm4467_vm8, %v8627_v12  ;;  %v9109_v12 = vld [vmem:[%s9839_s8 + $0xe8] sm:$0xff] }
 0x779   : > { %v9121_v43 = vadd.f32 %v9089_v24, %v9057_v18 }
 0x77b   : > { %v9153_v40 = vmax.f32 %v9121_v43, 0.0 }
 0x77d   : > { %9186 = vst.msk [vmem:[%s13187_s19 + $0x48] sm:$0xff] %vm9176_vm0, %v9153_v40 }
 0x77f   : > { %v9643_v3 = vld [vmem:[#allocation5 + $0x40] sm:$0xff] }
 0x780   : > { %9601 = vmatmul.msk.bf16.gmra.mxu1 %vm4666_vm13, %v9643_v3  ;;  %v9094_v3 = vld [vmem:[%s9839_s8 + $0x70] sm:$0xff] }
 0x783   : > { %v8988_v25 = vpop.f32.mrf.mxu3 }
 0x784   : > { %v9036_v35 = vmul.f32 %v13162_v61, %v8988_v25 }
 0x786   : > { %v9072_v23 = vadd.f32 %v13168_v11, %v9036_v35 }
 0x788   : > { %v9136_v6 = vadd.f32 %v9104_v63, %v9072_v23 }
 0x78a   : > { %v9168_v13 = vmax.f32 %v9136_v6, 0.0 }
 0x78b   : > { %v8990_v33 = vpop.f32.mrf.mxu3 }
 0x78c   : > { %9201 = vst.msk [vmem:[%s13187_s19 + $0xc0] sm:$0xff] %vm9176_vm0, %v9168_v13  ;;  %v9037_v0 = vmul.f32 %v13162_v61, %v8990_v33  ;;  %v9095_v33 = vld [vmem:[%s9839_s8 + $0x78] sm:$0xff] }
 0x78d   : > { %v8953_v52 = vpop.f32.mrf.mxu1 }
 0x78e   : > { %v9073_v47 = vadd.f32 %v13168_v11, %v9037_v0  ;;  %v9022_v15 = vmul.f32 %v13162_v61, %v8953_v52 }
 0x790   : > { %v9137_v41 = vadd.f32 %v9105_v37, %v9073_v47  ;;  %v9058_v46 = vadd.f32 %v13168_v11, %v9022_v15 }
 0x792   : > { %v9169_v50 = vmax.f32 %v9137_v41, 0.0  ;;  %v9122_v29 = vadd.f32 %v9090_v49, %v9058_v46  ;;  %v9110_v41 = vld [vmem:[%s9839_s8 + $0xf0] sm:$0xff] }
 0x794   : > { %9202 = vst.msk [vmem:[%s13187_s19 + $0xc8] sm:$0xff] %vm9176_vm0, %v9169_v50  ;;  %v9154_v34 = vmax.f32 %v9122_v29, 0.0 }
 0x795   : > { %v8955_v21 = vpop.f32.mrf.mxu1 }
 0x796   : > { %9187 = vst.msk [vmem:[%s13187_s19 + $0x50] sm:$0xff] %vm9176_vm0, %v9154_v34  ;;  %v9023_v56 = vmul.f32 %v13162_v61, %v8955_v21  ;;  %v9111_v21 = vld [vmem:[%s9839_s8 + $0xf8] sm:$0xff] }
 0x798   : > { %v9059_v59 = vadd.f32 %v13168_v11, %v9023_v56 }
 0x79a   : > { %v9123_v32 = vadd.f32 %v9091_v42, %v9059_v59 }
 0x79c   : > { %v9155_v5 = vmax.f32 %v9123_v32, 0.0 }
 0x79e   : > { %9188 = vst.msk [vmem:[%s13187_s19 + $0x58] sm:$0xff] %vm9176_vm0, %v9155_v5  ;;  %v9096_v5 = vld [vmem:[%s9839_s8 + $0x80] sm:$0xff] }
 0x7aa   : > { %v8993_v10 = vpop.f32.mrf.mxu3 }
 0x7ab   : > { %v9038_v27 = vmul.f32 %v13162_v61, %v8993_v10 }
 0x7ad   : > { %v9074_v9 = vadd.f32 %v13168_v11, %v9038_v27 }
 0x7af   : > { %v9138_v31 = vadd.f32 %v9106_v14, %v9074_v9 }
 0x7b1   : > { %v9170_v38 = vmax.f32 %v9138_v31, 0.0 }
 0x7b2   : > { %v8995_v26 = vpop.f32.mrf.mxu3 }
 0x7b3   : > { %9203 = vst.msk [vmem:[%s13187_s19 + $0xd0] sm:$0xff] %vm9176_vm0, %v9170_v38  ;;  %v9039_v8 = vmul.f32 %v13162_v61, %v8995_v26  ;;  %v9097_v26 = vld [vmem:[%s9839_s8 + $0x88] sm:$0xff] }
 0x7b4   : > { %v8958_v36 = vpop.f32.mrf.mxu1 }
 0x7b5   : > { %v9075_v48 = vadd.f32 %v13168_v11, %v9039_v8  ;;  %v9024_v1 = vmul.f32 %v13162_v61, %v8958_v36 }
 0x7b7   : > { %v9139_v4 = vadd.f32 %v9107_v28, %v9075_v48  ;;  %v9060_v30 = vadd.f32 %v13168_v11, %v9024_v1 }
 0x7b9   : > { %v9171_v58 = vmax.f32 %v9139_v4, 0.0  ;;  %v9124_v22 = vadd.f32 %v9092_v20, %v9060_v30 }
 0x7bb   : > { %9204 = vst.msk [vmem:[%s13187_s19 + $0xd8] sm:$0xff] %vm9176_vm0, %v9171_v58  ;;  %v9156_v54 = vmax.f32 %v9124_v22, 0.0 }
 0x7bc   : > { %v8960_v45 = vpop.f32.mrf.mxu1 }
 0x7bd   : > { %9189 = vst.msk [vmem:[%s13187_s19 + $0x60] sm:$0xff] %vm9176_vm0, %v9156_v54  ;;  %v9025_v39 = vmul.f32 %v13162_v61, %v8960_v45 }
 0x7bf   : > { %v9061_v53 = vadd.f32 %v13168_v11, %v9025_v39 }
 0x7c1   : > { %v9125_v57 = vadd.f32 %v9093_v7, %v9061_v53 }
 0x7c3   : > { %v9157_v55 = vmax.f32 %v9125_v57, 0.0 }
 0x7c5   : > { %9190 = vst.msk [vmem:[%s13187_s19 + $0x68] sm:$0xff] %vm9176_vm0, %v9157_v55 }
 0x7d2   : > { %v8998_v51 = vpop.f32.mrf.mxu3 }
 0x7d3   : > { %v9040_v16 = vmul.f32 %v13162_v61, %v8998_v51 }
 0x7d5   : > { %v9076_v17 = vadd.f32 %v13168_v11, %v9040_v16 }
 0x7d7   : > { %v9140_v2 = vadd.f32 %v9108_v60, %v9076_v17 }
 0x7d9   : > { %v9172_v44 = vmax.f32 %v9140_v2, 0.0 }
 0x7da   : > { %v9000_v19 = vpop.f32.mrf.mxu3 }
 0x7db   : > { %9205 = vst.msk [vmem:[%s13187_s19 + $0xe0] sm:$0xff] %vm9176_vm0, %v9172_v44  ;;  %v9041_v62 = vmul.f32 %v13162_v61, %v9000_v19 }
 0x7dc   : > { %v8963_v18 = vpop.f32.mrf.mxu1 }
 0x7dd   : > { %v9077_v24 = vadd.f32 %v13168_v11, %v9041_v62  ;;  %v9026_v43 = vmul.f32 %v13162_v61, %v8963_v18 }
 0x7df   : > { %v9141_v40 = vadd.f32 %v9109_v12, %v9077_v24  ;;  %v9062_v25 = vadd.f32 %v13168_v11, %v9026_v43 }
 0x7e1   : > { %v9173_v35 = vmax.f32 %v9141_v40, 0.0  ;;  %v9126_v63 = vadd.f32 %v9094_v3, %v9062_v25 }
 0x7e3   : > { %9206 = vst.msk [vmem:[%s13187_s19 + $0xe8] sm:$0xff] %vm9176_vm0, %v9173_v35  ;;  %v9158_v23 = vmax.f32 %v9126_v63, 0.0 }
 0x7e4   : > { %v8965_v6 = vpop.f32.mrf.mxu1 }
 0x7e5   : > { %9191 = vst.msk [vmem:[%s13187_s19 + $0x70] sm:$0xff] %vm9176_vm0, %v9158_v23  ;;  %v9027_v13 = vmul.f32 %v13162_v61, %v8965_v6 }
 0x7e7   : > { %v9063_v0 = vadd.f32 %v13168_v11, %v9027_v13 }
 0x7e9   : > { %v9127_v37 = vadd.f32 %v9095_v33, %v9063_v0 }
 0x7eb   : > { %v9159_v47 = vmax.f32 %v9127_v37, 0.0 }
 0x7ed   : > { %9192 = vst.msk [vmem:[%s13187_s19 + $0x78] sm:$0xff] %vm9176_vm0, %v9159_v47 }
 0x7f3   : > { %v9003_v52 = vpop.f32.mrf.mxu3 }
 0x7f4   : > { %v9042_v15 = vmul.f32 %v13162_v61, %v9003_v52 }
 0x7f6   : > { %v9078_v49 = vadd.f32 %v13168_v11, %v9042_v15 }
 0x7f8   : > { %v9142_v46 = vadd.f32 %v9110_v41, %v9078_v49 }
 0x7fa   : > { %v9174_v50 = vmax.f32 %v9142_v46, 0.0 }
 0x7fb   : > { %v9005_v29 = vpop.f32.mrf.mxu3 }
 0x7fc   : > { %9207 = vst.msk [vmem:[%s13187_s19 + $0xf0] sm:$0xff] %vm9176_vm0, %v9174_v50  ;;  %v9043_v34 = vmul.f32 %v13162_v61, %v9005_v29 }
 0x7fd   : > { %v8968_v42 = vpop.f32.mrf.mxu1 }
 0x7fe   : > { %v9079_v56 = vadd.f32 %v13168_v11, %v9043_v34  ;;  %v9028_v59 = vmul.f32 %v13162_v61, %v8968_v42 }
 0x800   : > { %v9143_v32 = vadd.f32 %v9111_v21, %v9079_v56  ;;  %v9064_v10 = vadd.f32 %v13168_v11, %v9028_v59 }
 0x802   : > { %v9175_v27 = vmax.f32 %v9143_v32, 0.0  ;;  %v9128_v14 = vadd.f32 %v9096_v5, %v9064_v10 }
 0x804   : > { %9208 = vst.msk [vmem:[%s13187_s19 + $0xf8] sm:$0xff] %vm9176_vm0, %v9175_v27  ;;  %v9160_v9 = vmax.f32 %v9128_v14, 0.0 }
 0x805   : > { %v8970_v31 = vpop.f32.mrf.mxu1 }
 0x806   : > { %9193 = vst.msk [vmem:[%s13187_s19 + $0x80] sm:$0xff] %vm9176_vm0, %v9160_v9  ;;  %v9029_v38 = vmul.f32 %v13162_v61, %v8970_v31 }
 0x808   : > { %v9065_v8 = vadd.f32 %v13168_v11, %v9029_v38 }
 0x80a   : > { %v9129_v28 = vadd.f32 %v9097_v26, %v9065_v8 }
 0x80c   : > { %v9161_v48 = vmax.f32 %v9129_v28, 0.0 }
 0x80e   : > { %9194 = vst.msk [vmem:[%s13187_s19 + $0x88] sm:$0xff] %vm9176_vm0, %v9161_v48 }
 0x80f PF: > { %s17_s26 = sadd.s32 1, %s9728_s26   ;;  %s13474_s24 = smov %s9724_s25 }
 0x810   : > { %p14_p5 = scmp.ge.s32.totalorder %s17_s26, 4   ;;  %s13475_s25 = smov %s13477_s27 }
 0x812   :  { %16 = sbr.rel (!%p14_p5) target bundleno = 2 (0x2), region = 88 }

</bundles_post_ra>
